<compile_context>
chip_gen: v7x
topology: tpu7x:2x2x1
jax: 0.10.0
libtpu: 0.0.40
codegen_flags: <defaults>
</compile_context>

<pallas_src>
import math

import numpy as np
import jax
import jax.numpy as jnp
from jax.experimental import pallas as pl
from jax.experimental.pallas import tpu as pltpu


_COMPILER_PARAMS = pltpu.CompilerParams(
    dimension_semantics=("parallel",),
    # Plenty for the demo; safe on v7x's 64 MiB.  For large images add a spatial
    # row-tile grid axis and re-tune per generation (larger tiles on v6e).
    vmem_limit_bytes=32 * 1024 * 1024,
)


def _wspec(shape):
    """BlockSpec for a (small) 2-D weight operand, replicated over the grid."""
    return pl.BlockSpec(shape, lambda b: (0, 0))


# ---------------------------------------------------------------------------
# In-kernel building blocks (one batch sample, activations laid out (C, H*W))
# ---------------------------------------------------------------------------
def _instance_norm(y, eps=1e-5):
    """InstanceNorm2d (affine=False, biased var) over the spatial (lane) axis."""
    mu = jnp.mean(y, axis=-1, keepdims=True)
    yc = y - mu
    var = jnp.mean(yc * yc, axis=-1, keepdims=True)
    return yc * jax.lax.rsqrt(var + eps)


def _conv3x3_packed(x, pad_ref, w9, cin, W, HW, mask_l, mask_r):
    """3x3 'same' conv as ONE tap-packed MXU matmul (K = 9*cin).

    x:       (cin, HW) activation value (any float dtype, cast to bf16 here).
    pad_ref: (>=cin, HW + 2*(W+1)) bf16 scratch whose pad columns are zero.
    w9:      (cout, 9*cin) bf16 packed weights, column = tap*cin + cin_idx with
             tap = (dh+1)*3 + (dw+1).
    mask_l/mask_r: (1, HW) bool column-boundary masks (hoisted by the caller).
    Returns  (cout, HW) float32.

    On v5e (128-deep MXU) the K=144 contraction is split by the compiler into
    two passes; still ~8x fewer MXU pushes than nine K=16 matmuls.
    """
    P = W + 1
    pad_ref[:cin, P:P + HW] = x.astype(jnp.bfloat16)
    taps = []
    for dh in (-1, 0, 1):
        for dw in (-1, 0, 1):
            s = dh * W + dw
            xs = pad_ref[:cin, P + s:P + s + HW]
            if dw == -1:                       # left neighbour invalid in col 0
                xs = jnp.where(mask_l, xs, jnp.zeros_like(xs))
            elif dw == 1:                      # right neighbour invalid in col W-1
                xs = jnp.where(mask_r, xs, jnp.zeros_like(xs))
            taps.append(xs)
    x9 = jnp.concatenate(taps, axis=0)         # (9*cin, HW) bf16 im2col stack
    return jnp.dot(w9, x9, preferred_element_type=jnp.float32)


def _zero_pad_columns(pad_ref, pad_rows, P, HW):
    """Zero only the pad columns, once (interior is overwritten every conv)."""
    @pl.when(pl.program_id(0) == 0)
    def _():
        pad_ref[:, :P] = jnp.zeros((pad_rows, P), jnp.bfloat16)
        pad_ref[:, P + HW:] = jnp.zeros((pad_rows, P), jnp.bfloat16)


def _column_masks(W, HW):
    col = jax.lax.broadcasted_iota(jnp.int32, (1, HW), 1) % W
    return col > 0, col < (W - 1)


# ---------------------------------------------------------------------------
# Space-to-depth kernel for the 2x2 / stride-2 down-convs
# ---------------------------------------------------------------------------
def _make_s2d_kernel(Win, Wout):
    def kernel(x_ref, sel_ref, o0_ref, o1_ref):
        X = x_ref[0]                                              # (C*Hout, 2*Win)
        # rows: (c, r); lane half kh holds input row 2r+kh.  Stack kh on sublanes.
        xall = jnp.concatenate([X[:, :Win], X[:, Win:]], axis=0)  # (C*Hin, Win)
        g = jnp.dot(xall, sel_ref[...],
                    preferred_element_type=jnp.float32)           # (C*Hin, 2*Wout)
        o0_ref[0] = g[:, :Wout].astype(o0_ref.dtype)              # kw = 0 planes
        o1_ref[0] = g[:, Wout:].astype(o1_ref.dtype)              # kw = 1 planes
    return kernel


def _space_to_depth(x, *, C, Hin, Win):
    """x: (B, C, Hin*Win) bf16 -> two tap-plane stacks, each (B, 2*C, Hout*Wout).

    Plane index = kh*C + c; plane[c] holds x[c, 2r+kh, 2s+kw] flattened over
    (r, s), for kw = 0 (first output) / kw = 1 (second output).  All re-views
    of the HBM layout are free reshapes; the only compute is one 0/1 matmul
    with M = C*Hin (lane-dense stores, no per-row loop, no lane concat).
    """
    B = x.shape[0]
    Hout, Wout = Hin // 2, Win // 2
    xv = x.reshape(B, C * Hout, 2 * Win)                 # free view: row = (c, r)

    sel = np.zeros((Win, 2 * Wout), np.float32)          # fused kw decimation
    for s in range(Wout):
        for kw in (0, 1):
            sel[2 * s + kw, kw * Wout + s] = 1.0
    sel = jnp.asarray(sel, jnp.bfloat16)

    o0, o1 = pl.pallas_call(
        _make_s2d_kernel(Win, Wout),
        out_shape=(jax.ShapeDtypeStruct((B, C * Hin, Wout), jnp.bfloat16),
                   jax.ShapeDtypeStruct((B, C * Hin, Wout), jnp.bfloat16)),
        grid=(B,),
        in_specs=[pl.BlockSpec((1, C * Hout, 2 * Win), lambda b: (b, 0, 0)),
                  _wspec(sel.shape)],
        out_specs=[pl.BlockSpec((1, C * Hin, Wout), lambda b: (b, 0, 0)),
                   pl.BlockSpec((1, C * Hin, Wout), lambda b: (b, 0, 0))],
        compiler_params=_COMPILER_PARAMS,
    )(xv, sel)
    return (o0.reshape(B, 2 * C, Hout * Wout),
            o1.reshape(B, 2 * C, Hout * Wout))


# ---------------------------------------------------------------------------
# Encoder block kernels (optional stride-2 down-conv + [Conv3x3+IN+ReLU]*n)
# ---------------------------------------------------------------------------
def _make_encoder_kernel(H, W, down, cins, pad_rows):
    HW = H * W
    P = W + 1
    n = len(cins)

    def kernel(*refs):
        if down:
            t0_ref, t1_ref, wd_ref, bd_ref = refs[:4]
            i = 4
        else:
            x_ref = refs[0]
            i = 1
        w_refs = refs[i:i + n]
        o_ref = refs[i + n]
        pad_ref = refs[i + n + 1]

        _zero_pad_columns(pad_ref, pad_rows, P, HW)
        mask_l, mask_r = _column_masks(W, HW)

        if down:
            # Conv2d(cd, cd, kernel_size=2, stride=2, bias=True): one K=4*cd matmul
            # over the space-to-depth tap planes (no ReLU/IN after it in the module).
            d = jnp.concatenate([t0_ref[0], t1_ref[0]], axis=0)   # (4*cd, HW) bf16
            cur = jnp.dot(wd_ref[...], d,
                          preferred_element_type=jnp.float32) + bd_ref[...]
        else:
            cur = x_ref[0]           # conv1: f32 input, cast in-kernel to bf16

        for li in range(n):          # [Conv3x3(no bias) + InstanceNorm + ReLU] * n
            acc = _conv3x3_packed(cur, pad_ref, w_refs[li][...],
                                  cins[li], W, HW, mask_l, mask_r)
            cur = jnp.maximum(_instance_norm(acc), 0.0)

        o_ref[0] = cur.astype(o_ref.dtype)

    return kernel


def _encoder_block(x_or_taps, ws, wd=None, bd=None, *, H, W, down):
    HW = H * W
    cins = [int(w.shape[1]) // 9 for w in ws]
    cout = int(ws[-1].shape[0])
    pad_rows = max(cins)

    if down:
        t0, t1 = x_or_taps
        B = t0.shape[0]
        operands = [t0, t1, wd, bd]
        in_specs = [pl.BlockSpec((1,) + tuple(t0.shape[1:]), lambda b: (b, 0, 0)),
                    pl.BlockSpec((1,) + tuple(t1.shape[1:]), lambda b: (b, 0, 0)),
                    _wspec(wd.shape), _wspec(bd.shape)]
    else:
        x = x_or_taps
        B = x.shape[0]
        operands = [x]
        in_specs = [pl.BlockSpec((1,) + tuple(x.shape[1:]), lambda b: (b, 0, 0))]
    for w in ws:
        operands.append(w)
        in_specs.append(_wspec(w.shape))

    return pl.pallas_call(
        _make_encoder_kernel(H, W, down, cins, pad_rows),
        out_shape=jax.ShapeDtypeStruct((B, cout, HW), jnp.bfloat16),
        grid=(B,),
        in_specs=in_specs,
        out_specs=pl.BlockSpec((1, cout, HW), lambda b: (b, 0, 0)),
        scratch_shapes=[pltpu.VMEM((pad_rows, HW + 2 * (W + 1)), jnp.bfloat16)],
        compiler_params=_COMPILER_PARAMS,
    )(*operands)


# ---------------------------------------------------------------------------
# Bottleneck stage: conv5 + dec4's convs fused in one kernel (tiny H*W level)
# ---------------------------------------------------------------------------
def _make_deep_kernel(H, W, cd, ch, pad_rows):
    HW = H * W
    P = W + 1

    def kernel(c4_ref, w51_ref, w52_ref, wd1_ref, bd1_ref, wd2_ref, o_ref, pad_ref):
        _zero_pad_columns(pad_ref, pad_rows, P, HW)
        mask_l, mask_r = _column_masks(W, HW)

        x4 = c4_ref[0]
        # conv5: [Conv3x3 + IN + ReLU] * 2 (second outputs cd//2 channels)
        t = jnp.maximum(_instance_norm(_conv3x3_packed(
            x4, pad_ref, w51_ref[...], cd, W, HW, mask_l, mask_r)), 0.0)
        c5 = jnp.maximum(_instance_norm(_conv3x3_packed(
            t, pad_ref, w52_ref[...], cd, W, HW, mask_l, mask_r)), 0.0)
        # dec4: Conv3x3(cat([conv5, conv4]) -> cd, bias) + ReLU; concat stays in VMEM
        xcat = jnp.concatenate([c5, x4.astype(c5.dtype)], axis=0)   # (cd+ch, HW)
        y1 = jnp.maximum(_conv3x3_packed(
            xcat, pad_ref, wd1_ref[...], cd + ch, W, HW, mask_l, mask_r)
            + bd1_ref[...], 0.0)
        # Conv3x3(cd -> ch, no bias) + InstanceNorm (upsample + ReLU in next kernel)
        y2 = _instance_norm(_conv3x3_packed(
            y1, pad_ref, wd2_ref[...], cd, W, HW, mask_l, mask_r))
        o_ref[0] = y2.astype(o_ref.dtype)

    return kernel


def _deep_block(c4, w51, w52, wd1, bd1, wd2, *, H, W):
    B, cd = c4.shape[0], int(c4.shape[1])
    ch = int(w52.shape[0])
    HW = H * W
    pad_rows = cd + ch
    return pl.pallas_call(
        _make_deep_kernel(H, W, cd, ch, pad_rows),
        out_shape=jax.ShapeDtypeStruct((B, ch, HW), jnp.bfloat16),
        grid=(B,),
        in_specs=[pl.BlockSpec((1, cd, HW), lambda b: (b, 0, 0)),
                  _wspec(w51.shape), _wspec(w52.shape),
                  _wspec(wd1.shape), _wspec(bd1.shape), _wspec(wd2.shape)],
        out_specs=pl.BlockSpec((1, ch, HW), lambda b: (b, 0, 0)),
        scratch_shapes=[pltpu.VMEM((pad_rows, HW + 2 * (W + 1)), jnp.bfloat16)],
        compiler_params=_COMPILER_PARAMS,
    )(c4, w51, w52, wd1, bd1, wd2)


# ---------------------------------------------------------------------------
# Decoder conv block (dec3/dec2): Conv+ReLU, Conv+IN (upsample is separate)
# ---------------------------------------------------------------------------
def _make_decoder_kernel(H, W, c_dec, c_skip, c_mid, pad_rows):
    HW = H * W
    P = W + 1
    c_cat = c_dec + c_skip

    def kernel(dec_ref, skip_ref, w1_ref, b1_ref, w2_ref, o_ref, pad_ref):
        _zero_pad_columns(pad_ref, pad_rows, P, HW)
        mask_l, mask_r = _column_masks(W, HW)

        xcat = jnp.concatenate([dec_ref[0], skip_ref[0]], axis=0)   # (c_cat, HW)
        y1 = jnp.maximum(_conv3x3_packed(
            xcat, pad_ref, w1_ref[...], c_cat, W, HW, mask_l, mask_r)
            + b1_ref[...], 0.0)
        y2 = _instance_norm(_conv3x3_packed(
            y1, pad_ref, w2_ref[...], c_mid, W, HW, mask_l, mask_r))
        o_ref[0] = y2.astype(o_ref.dtype)

    return kernel


def _decoder_conv_block(dec, skip, w1, b1, w2, *, H, W):
    B = dec.shape[0]
    HW = H * W
    c_dec, c_skip = int(dec.shape[1]), int(skip.shape[1])
    c_mid, c_out = int(w1.shape[0]), int(w2.shape[0])
    pad_rows = c_dec + c_skip
    return pl.pallas_call(
        _make_decoder_kernel(H, W, c_dec, c_skip, c_mid, pad_rows),
        out_shape=jax.ShapeDtypeStruct((B, c_out, HW), jnp.bfloat16),
        grid=(B,),
        in_specs=[pl.BlockSpec((1, c_dec, HW), lambda b: (b, 0, 0)),
                  pl.BlockSpec((1, c_skip, HW), lambda b: (b, 0, 0)),
                  _wspec(w1.shape), _wspec(b1.shape), _wspec(w2.shape)],
        out_specs=pl.BlockSpec((1, c_out, HW), lambda b: (b, 0, 0)),
        scratch_shapes=[pltpu.VMEM((pad_rows, HW + 2 * (W + 1)), jnp.bfloat16)],
        compiler_params=_COMPILER_PARAMS,
    )(dec, skip, w1, b1, w2)


# ---------------------------------------------------------------------------
# Bilinear 2x upsample (PyTorch align_corners=False) + ReLU, fully vectorized
# ---------------------------------------------------------------------------
def _width_interp_matrix(w):
    """(w, 2w) column-interpolation matrix (applied as x @ M), scale factor 2."""
    m = np.zeros((w, 2 * w), np.float32)
    for c_out in range(2 * w):
        src = max((c_out + 0.5) * 0.5 - 0.5, 0.0)
        c0 = min(int(math.floor(src)), w - 1)
        c1 = min(c0 + 1, w - 1)
        lam = src - math.floor(src)
        m[c0, c_out] += 1.0 - lam
        m[c1, c_out] += lam
    return m


def _make_upsample_kernel(C, H, W):
    rows = C * H

    def kernel(x_ref, rw_ref, o_ref):
        x = x_ref[0]                                               # (C*H, W) bf16
        # Width interp: one matmul over all rows (rows stacked on sublanes).
        u = jnp.dot(x, rw_ref[...], preferred_element_type=jnp.float32)  # (C*H, 2W)
        # Height interp (scale 2, half-pixel): even rows use (0.25*prev + 0.75*cur),
        # odd rows use (0.75*cur + 0.25*next), edges clamped within each channel.
        r = jax.lax.broadcasted_iota(jnp.int32, (rows, 1), 0) % H
        u_dn = jnp.concatenate([u[:1, :], u[:-1, :]], axis=0)
        u_dn = jnp.where(r == 0, u, u_dn)
        u_up = jnp.concatenate([u[1:, :], u[-1:, :]], axis=0)
        u_up = jnp.where(r == H - 1, u, u_up)
        even = 0.75 * u + 0.25 * u_dn
        odd = 0.75 * u + 0.25 * u_up
        # Single lane-dense store; the (C*H, 4W) HBM layout re-views for free as
        # the row-interleaved (C, 2H*2W) activation.
        out = jnp.concatenate([even, odd], axis=1)                 # (C*H, 4W)
        o_ref[0] = jnp.maximum(out, 0.0).astype(o_ref.dtype)

    return kernel


def _upsample2x_relu(y, *, C, H, W):
    """y: (B, C, H*W) -> ReLU(bilinear 2x upsample(y)): (B, C, 4*H*W)."""
    B = y.shape[0]
    yv = y.reshape(B, C * H, W)                                    # free view
    rw = jnp.asarray(_width_interp_matrix(W), jnp.bfloat16)        # exact in bf16
    out = pl.pallas_call(
        _make_upsample_kernel(C, H, W),
        out_shape=jax.ShapeDtypeStruct((B, C * H, 4 * W), jnp.bfloat16),
        grid=(B,),
        in_specs=[pl.BlockSpec((1, C * H, W), lambda b: (b, 0, 0)),
                  _wspec(rw.shape)],
        out_specs=pl.BlockSpec((1, C * H, 4 * W), lambda b: (b, 0, 0)),
        compiler_params=_COMPILER_PARAMS,
    )(yv, rw)
    return out.reshape(B, C, 4 * H * W)                            # free view


# ---------------------------------------------------------------------------
# Final stage: dec1 (Conv3x3 + ReLU on cat) + final 1x1 conv, fused
# ---------------------------------------------------------------------------
def _make_final_kernel(H, W, c_dec, c_skip, pad_rows):
    HW = H * W
    P = W + 1
    c_cat = c_dec + c_skip

    def kernel(dec_ref, skip_ref, w1_ref, b1_ref, wf_ref, bf_ref, o_ref, pad_ref):
        _zero_pad_columns(pad_ref, pad_rows, P, HW)
        mask_l, mask_r = _column_masks(W, HW)

        xcat = jnp.concatenate([dec_ref[0], skip_ref[0]], axis=0)
        y1 = jnp.maximum(_conv3x3_packed(
            xcat, pad_ref, w1_ref[...], c_cat, W, HW, mask_l, mask_r)
            + b1_ref[...], 0.0)
        y2 = jnp.dot(wf_ref[...], y1.astype(jnp.bfloat16),
                     preferred_element_type=jnp.float32) + bf_ref[...]
        o_ref[0] = y2.astype(o_ref.dtype)

    return kernel


def _final_block(dec, skip, w1, b1, wf, bf, *, H, W):
    B = dec.shape[0]
    HW = H * W
    c_dec, c_skip = int(dec.shape[1]), int(skip.shape[1])
    n_out = int(wf.shape[0])
    pad_rows = c_dec + c_skip
    return pl.pallas_call(
        _make_final_kernel(H, W, c_dec, c_skip, pad_rows),
        out_shape=jax.ShapeDtypeStruct((B, n_out, HW), jnp.float32),
        grid=(B,),
        in_specs=[pl.BlockSpec((1, c_dec, HW), lambda b: (b, 0, 0)),
                  pl.BlockSpec((1, c_skip, HW), lambda b: (b, 0, 0)),
                  _wspec(w1.shape), _wspec(b1.shape),
                  _wspec(wf.shape), _wspec(bf.shape)],
        out_specs=pl.BlockSpec((1, n_out, HW), lambda b: (b, 0, 0)),
        scratch_shapes=[pltpu.VMEM((pad_rows, HW + 2 * (W + 1)), jnp.bfloat16)],
        compiler_params=_COMPILER_PARAMS,
    )(dec, skip, w1, b1, wf, bf)


# ---------------------------------------------------------------------------
# Parameters (synthetic, deterministic), stored pre-packed for the kernels:
#   * 3x3 convs: (cout, 9*cin) bf16, column = ((dh+1)*3 + (dw+1))*cin + cin_idx
#   * 2x2/stride-2 convs: (cd, 4*cd) bf16, column = (kw*2 + kh)*cd + cin_idx
#   * biases: (C, 1) f32
# ---------------------------------------------------------------------------
def init_params(key, in_classes=1, channel_depth=16, out_classes=3):
    cd = channel_depth
    ch = cd // 2
    keys = iter(jax.random.split(key, 40))

    def conv3(cin, cout):
        w = jax.random.normal(next(keys), (cout, 9 * cin), jnp.float32)
        return (w / math.sqrt(9 * cin)).astype(jnp.bfloat16)

    def lin(cin, cout):
        w = jax.random.normal(next(keys), (cout, cin), jnp.float32)
        return (w / math.sqrt(cin)).astype(jnp.bfloat16)

    def bias(c):
        return jax.random.normal(next(keys), (c, 1), jnp.float32) * 0.05

    p = {}
    p['c1_w1'], p['c1_w2'] = conv3(in_classes, cd), conv3(cd, cd)
    for blk in ('c2', 'c3', 'c4'):
        p[blk + '_wd'] = lin(4 * cd, cd)
        p[blk + '_bd'] = bias(cd)
    p['c2_w1'], p['c2_w2'] = conv3(cd, cd), conv3(cd, cd)
    for blk in ('c3', 'c4'):
        p[blk + '_w1'] = conv3(cd, cd)
        p[blk + '_w2'] = conv3(cd, cd)
        p[blk + '_w3'] = conv3(cd, cd)
    p['c5_w1'], p['c5_w2'] = conv3(cd, cd), conv3(cd, ch)
    for blk in ('d4', 'd3', 'd2', 'd1'):
        p[blk + '_w1'] = conv3(cd + ch, cd)   # conv over cat([dec, skip], 1)
        p[blk + '_b1'] = bias(cd)
        if blk != 'd1':
            p[blk + '_w2'] = conv3(cd, ch)
    p['f_w'] = lin(cd, out_classes)
    p['f_b'] = bias(out_classes)
    return p


# ---------------------------------------------------------------------------
# UNetLimMultiOut.forward (multiout=False)
# ---------------------------------------------------------------------------
def unet_forward(x, p):
    B, cin, H, W = x.shape
    cd = int(p['c1_w2'].shape[0])
    ch = int(p['c5_w2'].shape[0])
    xf = x.reshape(B, cin, H * W)                 # f32; cast to bf16 in-kernel

    # --- encoder ---
    c1 = _encoder_block(xf, [p['c1_w1'], p['c1_w2']], H=H, W=W, down=False)

    t = _space_to_depth(c1, C=cd, Hin=H, Win=W)
    c2 = _encoder_block(t, [p['c2_w1'], p['c2_w2']], p['c2_wd'], p['c2_bd'],
                        H=H // 2, W=W // 2, down=True)

    t = _space_to_depth(c2, C=cd, Hin=H // 2, Win=W // 2)
    c3 = _encoder_block(t, [p['c3_w1'], p['c3_w2'], p['c3_w3']],
                        p['c3_wd'], p['c3_bd'], H=H // 4, W=W // 4, down=True)

    t = _space_to_depth(c3, C=cd, Hin=H // 4, Win=W // 4)
    c4 = _encoder_block(t, [p['c4_w1'], p['c4_w2'], p['c4_w3']],
                        p['c4_wd'], p['c4_bd'], H=H // 8, W=W // 8, down=True)

    # --- bottleneck: conv5 + dec4 convs fused (tiny spatial level) ---
    d4 = _deep_block(c4, p['c5_w1'], p['c5_w2'],
                     p['d4_w1'], p['d4_b1'], p['d4_w2'], H=H // 8, W=W // 8)
    d4u = _upsample2x_relu(d4, C=ch, H=H // 8, W=W // 8)

    # --- decoder ---
    d3 = _decoder_conv_block(d4u, c3, p['d3_w1'], p['d3_b1'], p['d3_w2'],
                             H=H // 4, W=W // 4)
    d3u = _upsample2x_relu(d3, C=ch, H=H // 4, W=W // 4)

    d2 = _decoder_conv_block(d3u, c2, p['d2_w1'], p['d2_b1'], p['d2_w2'],
                             H=H // 2, W=W // 2)
    d2u = _upsample2x_relu(d2, C=ch, H=H // 2, W=W // 2)

    out = _final_block(d2u, c1, p['d1_w1'], p['d1_b1'], p['f_w'], p['f_b'],
                       H=H, W=W)
    return out.reshape(B, -1, H, W)


if __name__ == "__main__":
    B, Cin, H, W = 2, 1, 16, 16          # module defaults: in_classes=1
    channel_depth, out_classes = 16, 3

    key = jax.random.PRNGKey(0)
    kx, kp = jax.random.split(key)
    x = jax.random.normal(kx, (B, Cin, H, W), jnp.float32)
    params = init_params(kp, in_classes=Cin, channel_depth=channel_depth,
                         out_classes=out_classes)

    fwd = jax.jit(unet_forward)
    out = jax.block_until_ready(fwd(x, params))

    assert out.shape == (B, out_classes, H, W), out.shape
    assert bool(jnp.all(jnp.isfinite(out)))
    print("KERNEL_OK")
</pallas_src>

<mosaic_0001>
module attributes {stable_mosaic.version = 11 : i64} {
  func.func @kernel(%arg0: i32, %arg1: memref<1x1x256xf32, #tpu.memory_space<vmem>>, %arg2: memref<16x9xbf16, #tpu.memory_space<vmem>>, %arg3: memref<16x144xbf16, #tpu.memory_space<vmem>>, %arg4: memref<1x16x256xbf16, #tpu.memory_space<vmem>>, %arg5: memref<16x290xbf16, #tpu.memory_space<vmem>>) attributes {dimension_semantics = [#tpu.dimension_semantics<parallel>], iteration_bounds = array<i64: 2>, scalar_prefetch = 0 : i64, scratch_operands = 1 : i64, tpu.core_type = #tpu.core_type<tc>, window_params = [{transform_indices = @transform_0, window_bounds = array<i64: 1, 1, 256>}, {pipeline_mode = #tpu.pipeline_mode<synchronous>, transform_indices = @transform_1, window_bounds = array<i64: 16, 9>}, {pipeline_mode = #tpu.pipeline_mode<synchronous>, transform_indices = @transform_2, window_bounds = array<i64: 16, 144>}, {transform_indices = @transform_3, window_bounds = array<i64: 1, 16, 256>}]} {
    %c0_i32 = arith.constant 0 : i32
    %0 = arith.cmpi eq, %arg0, %c0_i32 : i32
    %1 = arith.extui %0 : i1 to i32
    %c0_i32_0 = arith.constant 0 : i32
    %2 = arith.cmpi ne, %1, %c0_i32_0 : i32
    scf.if %2 {
      %cst_72 = arith.constant 0.000000e+00 : bf16
      %130 = vector.broadcast %cst_72 : bf16 to vector<16x17xbf16>
      %c0_73 = arith.constant 0 : index
      %c0_74 = arith.constant 0 : index
      %131 = vector.load %arg5[%c0_73, %c0_74] : memref<16x290xbf16, #tpu.memory_space<vmem>>, vector<16x17xbf16>
      tpu.vector_store %arg5[%c0_73, %c0_74], %130 {strides = array<i32>} : memref<16x290xbf16, #tpu.memory_space<vmem>>, vector<16x17xbf16>,
      %cst_75 = arith.constant 0.000000e+00 : bf16
      %132 = vector.broadcast %cst_75 : bf16 to vector<16x17xbf16>
      %c0_76 = arith.constant 0 : index
      %c273 = arith.constant 273 : index
      %133 = vector.load %arg5[%c0_76, %c273] : memref<16x290xbf16, #tpu.memory_space<vmem>>, vector<16x17xbf16>
      tpu.vector_store %arg5[%c0_76, %c273], %132 {strides = array<i32>} : memref<16x290xbf16, #tpu.memory_space<vmem>>, vector<16x17xbf16>,
    } else {
    }
    %3 = tpu.iota {dimensions = array<i32: 1>} : vector<1x256xi32>
    %c16_i32 = arith.constant 16 : i32
    %c0_i32_1 = arith.constant 0 : i32
    %4 = arith.cmpi eq, %c16_i32, %c0_i32_1 : i32
    %c1_i32 = arith.constant 1 : i32
    %5 = arith.select %4, %c1_i32, %c16_i32 : i32
    %6 = vector.broadcast %5 : i32 to vector<1x256xi32>
    %7 = arith.remsi %3, %6 : vector<1x256xi32>
    %c0_i32_2 = arith.constant 0 : i32
    %8 = vector.broadcast %c0_i32_2 : i32 to vector<1x256xi32>
    %9 = arith.cmpi ne, %7, %8 : vector<1x256xi32>
    %c0_i32_3 = arith.constant 0 : i32
    %10 = vector.broadcast %c0_i32_3 : i32 to vector<1x256xi32>
    %11 = arith.cmpi slt, %7, %10 : vector<1x256xi32>
    %c0_i32_4 = arith.constant 0 : i32
    %12 = arith.cmpi slt, %5, %c0_i32_4 : i32
    %13 = vector.broadcast %12 : i1 to vector<1x256xi1>
    %14 = vector.broadcast %13 : vector<1x256xi1> to vector<1x256xi1>
    %15 = arith.xori %11, %14 : vector<1x256xi1>
    %16 = arith.andi %15, %9 : vector<1x256xi1>
    %17 = vector.broadcast %5 : i32 to vector<1x256xi32>
    %18 = arith.addi %7, %17 : vector<1x256xi32>
    %19 = arith.select %16, %18, %7 : vector<1x256xi1>, vector<1x256xi32>
    %c0_i32_5 = arith.constant 0 : i32
    %20 = vector.broadcast %c0_i32_5 : i32 to vector<1x256xi32>
    %21 = arith.cmpi sgt, %19, %20 : vector<1x256xi32>
    %c15_i32 = arith.constant 15 : i32
    %22 = vector.broadcast %c15_i32 : i32 to vector<1x256xi32>
    %23 = arith.cmpi slt, %19, %22 : vector<1x256xi32>
    %c0 = arith.constant 0 : index
    %c0_6 = arith.constant 0 : index
    %c0_7 = arith.constant 0 : index
    %24 = vector.load %arg1[%c0, %c0_6, %c0_7] : memref<1x1x256xf32, #tpu.memory_space<vmem>>, vector<1x1x256xf32>
    %25 = vector.shape_cast %24 : vector<1x1x256xf32> to vector<1x256xf32>
    %c0_8 = arith.constant 0 : index
    %c0_9 = arith.constant 0 : index
    %26 = vector.load %arg2[%c0_8, %c0_9] : memref<16x9xbf16, #tpu.memory_space<vmem>>, vector<16x9xbf16>
    %27 = arith.truncf %25 : vector<1x256xf32> to vector<1x256xbf16>
    %c0_10 = arith.constant 0 : index
    %c17 = arith.constant 17 : index
    %28 = vector.load %arg5[%c0_10, %c17] : memref<16x290xbf16, #tpu.memory_space<vmem>>, vector<1x256xbf16>
    tpu.vector_store %arg5[%c0_10, %c17], %27 {strides = array<i32>} : memref<16x290xbf16, #tpu.memory_space<vmem>>, vector<1x256xbf16>,
    %c0_11 = arith.constant 0 : index
    %c0_12 = arith.constant 0 : index
    %29 = vector.load %arg5[%c0_11, %c0_12] : memref<16x290xbf16, #tpu.memory_space<vmem>>, vector<1x256xbf16>
    %cst = arith.constant 0.000000e+00 : bf16
    %30 = vector.broadcast %cst : bf16 to vector<1x256xbf16>
    %31 = arith.select %21, %29, %30 : vector<1x256xi1>, vector<1x256xbf16>
    %c0_13 = arith.constant 0 : index
    %c1 = arith.constant 1 : index
    %32 = vector.load %arg5[%c0_13, %c1] : memref<16x290xbf16, #tpu.memory_space<vmem>>, vector<1x256xbf16>
    %c0_14 = arith.constant 0 : index
    %c2 = arith.constant 2 : index
    %33 = vector.load %arg5[%c0_14, %c2] : memref<16x290xbf16, #tpu.memory_space<vmem>>, vector<1x256xbf16>
    %cst_15 = arith.constant 0.000000e+00 : bf16
    %34 = vector.broadcast %cst_15 : bf16 to vector<1x256xbf16>
    %35 = arith.select %23, %33, %34 : vector<1x256xi1>, vector<1x256xbf16>
    %c0_16 = arith.constant 0 : index
    %c16 = arith.constant 16 : index
    %36 = vector.load %arg5[%c0_16, %c16] : memref<16x290xbf16, #tpu.memory_space<vmem>>, vector<1x256xbf16>
    %cst_17 = arith.constant 0.000000e+00 : bf16
    %37 = vector.broadcast %cst_17 : bf16 to vector<1x256xbf16>
    %38 = arith.select %21, %36, %37 : vector<1x256xi1>, vector<1x256xbf16>
    %c0_18 = arith.constant 0 : index
    %c17_19 = arith.constant 17 : index
    %39 = vector.load %arg5[%c0_18, %c17_19] : memref<16x290xbf16, #tpu.memory_space<vmem>>, vector<1x256xbf16>
    %c0_20 = arith.constant 0 : index
    %c18 = arith.constant 18 : index
    %40 = vector.load %arg5[%c0_20, %c18] : memref<16x290xbf16, #tpu.memory_space<vmem>>, vector<1x256xbf16>
    %cst_21 = arith.constant 0.000000e+00 : bf16
    %41 = vector.broadcast %cst_21 : bf16 to vector<1x256xbf16>
    %42 = arith.select %23, %40, %41 : vector<1x256xi1>, vector<1x256xbf16>
    %c0_22 = arith.constant 0 : index
    %c32 = arith.constant 32 : index
    %43 = vector.load %arg5[%c0_22, %c32] : memref<16x290xbf16, #tpu.memory_space<vmem>>, vector<1x256xbf16>
    %cst_23 = arith.constant 0.000000e+00 : bf16
    %44 = vector.broadcast %cst_23 : bf16 to vector<1x256xbf16>
    %45 = arith.select %21, %43, %44 : vector<1x256xi1>, vector<1x256xbf16>
    %c0_24 = arith.constant 0 : index
    %c33 = arith.constant 33 : index
    %46 = vector.load %arg5[%c0_24, %c33] : memref<16x290xbf16, #tpu.memory_space<vmem>>, vector<1x256xbf16>
    %c0_25 = arith.constant 0 : index
    %c34 = arith.constant 34 : index
    %47 = vector.load %arg5[%c0_25, %c34] : memref<16x290xbf16, #tpu.memory_space<vmem>>, vector<1x256xbf16>
    %cst_26 = arith.constant 0.000000e+00 : bf16
    %48 = vector.broadcast %cst_26 : bf16 to vector<1x256xbf16>
    %49 = arith.select %23, %47, %48 : vector<1x256xi1>, vector<1x256xbf16>
    %50 = tpu.concatenate %31, %32, %35, %38, %39, %42, %45, %46, %49 in 0 : vector<1x256xbf16>, vector<1x256xbf16>, vector<1x256xbf16>, vector<1x256xbf16>, vector<1x256xbf16>, vector<1x256xbf16>, vector<1x256xbf16>, vector<1x256xbf16>, vector<1x256xbf16> -> vector<9x256xbf16>
    %cst_27 = arith.constant dense<0.000000e+00> : vector<16x256xf32>
    %51 = tpu.matmul %26, %50, %cst_27 {dimension_numbers = #tpu.dot_dimension_numbers<[1], [0], [0], [1], [0, 0, 1, 1], [], []>} : vector<16x9xbf16>, vector<9x256xbf16>, vector<16x256xf32> -> vector<16x256xf32>
    %cst_28 = arith.constant dense<0.000000e+00> : vector<16xf32>
    %52 = vector.multi_reduction <add>, %51, %cst_28 [1] : vector<16x256xf32> to vector<16xf32>
    %53 = vector.shape_cast %52 : vector<16xf32> to vector<16x1xf32>
    %cst_29 = arith.constant 2.560000e+02 : f32
    %54 = vector.broadcast %cst_29 : f32 to vector<16x1xf32>
    %55 = arith.divf %53, %54 : vector<16x1xf32>
    %56 = vector.broadcast %55 : vector<16x1xf32> to vector<16x256xf32>
    %57 = arith.subf %51, %56 : vector<16x256xf32>
    %58 = arith.mulf %57, %57 : vector<16x256xf32>
    %cst_30 = arith.constant dense<0.000000e+00> : vector<16xf32>
    %59 = vector.multi_reduction <add>, %58, %cst_30 [1] : vector<16x256xf32> to vector<16xf32>
    %60 = vector.shape_cast %59 : vector<16xf32> to vector<16x1xf32>
    %cst_31 = arith.constant 2.560000e+02 : f32
    %61 = vector.broadcast %cst_31 : f32 to vector<16x1xf32>
    %62 = arith.divf %60, %61 : vector<16x1xf32>
    %cst_32 = arith.constant 9.99999974E-6 : f32
    %63 = vector.broadcast %cst_32 : f32 to vector<16x1xf32>
    %64 = arith.addf %62, %63 : vector<16x1xf32>
    %65 = math.rsqrt %64 : vector<16x1xf32>
    %66 = vector.broadcast %65 : vector<16x1xf32> to vector<16x256xf32>
    %67 = arith.mulf %57, %66 : vector<16x256xf32>
    %cst_33 = arith.constant 0.000000e+00 : f32
    %68 = vector.broadcast %cst_33 : f32 to vector<16x256xf32>
    %69 = arith.maximumf %67, %68 : vector<16x256xf32>
    %c0_34 = arith.constant 0 : index
    %c0_35 = arith.constant 0 : index
    %70 = vector.load %arg3[%c0_34, %c0_35] : memref<16x144xbf16, #tpu.memory_space<vmem>>, vector<16x144xbf16>
    %71 = arith.truncf %69 : vector<16x256xf32> to vector<16x256xbf16>
    %c0_36 = arith.constant 0 : index
    %c17_37 = arith.constant 17 : index
    %72 = vector.load %arg5[%c0_36, %c17_37] : memref<16x290xbf16, #tpu.memory_space<vmem>>, vector<16x256xbf16>
    tpu.vector_store %arg5[%c0_36, %c17_37], %71 {strides = array<i32>} : memref<16x290xbf16, #tpu.memory_space<vmem>>, vector<16x256xbf16>,
    %c0_38 = arith.constant 0 : index
    %c0_39 = arith.constant 0 : index
    %73 = vector.load %arg5[%c0_38, %c0_39] : memref<16x290xbf16, #tpu.memory_space<vmem>>, vector<16x256xbf16>
    %cst_40 = arith.constant 0.000000e+00 : bf16
    %74 = vector.broadcast %cst_40 : bf16 to vector<16x256xbf16>
    %75 = vector.shape_cast %21 : vector<1x256xi1> to vector<1x256xi1>
    %76 = vector.broadcast %75 : vector<1x256xi1> to vector<16x256xi1>
    %77 = arith.select %76, %73, %74 : vector<16x256xi1>, vector<16x256xbf16>
    %c0_41 = arith.constant 0 : index
    %c1_42 = arith.constant 1 : index
    %78 = vector.load %arg5[%c0_41, %c1_42] : memref<16x290xbf16, #tpu.memory_space<vmem>>, vector<16x256xbf16>
    %c0_43 = arith.constant 0 : index
    %c2_44 = arith.constant 2 : index
    %79 = vector.load %arg5[%c0_43, %c2_44] : memref<16x290xbf16, #tpu.memory_space<vmem>>, vector<16x256xbf16>
    %cst_45 = arith.constant 0.000000e+00 : bf16
    %80 = vector.broadcast %cst_45 : bf16 to vector<16x256xbf16>
    %81 = vector.shape_cast %23 : vector<1x256xi1> to vector<1x256xi1>
    %82 = vector.broadcast %81 : vector<1x256xi1> to vector<16x256xi1>
    %83 = arith.select %82, %79, %80 : vector<16x256xi1>, vector<16x256xbf16>
    %c0_46 = arith.constant 0 : index
    %c16_47 = arith.constant 16 : index
    %84 = vector.load %arg5[%c0_46, %c16_47] : memref<16x290xbf16, #tpu.memory_space<vmem>>, vector<16x256xbf16>
    %cst_48 = arith.constant 0.000000e+00 : bf16
    %85 = vector.broadcast %cst_48 : bf16 to vector<16x256xbf16>
    %86 = vector.shape_cast %21 : vector<1x256xi1> to vector<1x256xi1>
    %87 = vector.broadcast %86 : vector<1x256xi1> to vector<16x256xi1>
    %88 = arith.select %87, %84, %85 : vector<16x256xi1>, vector<16x256xbf16>
    %c0_49 = arith.constant 0 : index
    %c17_50 = arith.constant 17 : index
    %89 = vector.load %arg5[%c0_49, %c17_50] : memref<16x290xbf16, #tpu.memory_space<vmem>>, vector<16x256xbf16>
    %c0_51 = arith.constant 0 : index
    %c18_52 = arith.constant 18 : index
    %90 = vector.load %arg5[%c0_51, %c18_52] : memref<16x290xbf16, #tpu.memory_space<vmem>>, vector<16x256xbf16>
    %cst_53 = arith.constant 0.000000e+00 : bf16
    %91 = vector.broadcast %cst_53 : bf16 to vector<16x256xbf16>
    %92 = vector.shape_cast %23 : vector<1x256xi1> to vector<1x256xi1>
    %93 = vector.broadcast %92 : vector<1x256xi1> to vector<16x256xi1>
    %94 = arith.select %93, %90, %91 : vector<16x256xi1>, vector<16x256xbf16>
    %c0_54 = arith.constant 0 : index
    %c32_55 = arith.constant 32 : index
    %95 = vector.load %arg5[%c0_54, %c32_55] : memref<16x290xbf16, #tpu.memory_space<vmem>>, vector<16x256xbf16>
    %cst_56 = arith.constant 0.000000e+00 : bf16
    %96 = vector.broadcast %cst_56 : bf16 to vector<16x256xbf16>
    %97 = vector.shape_cast %21 : vector<1x256xi1> to vector<1x256xi1>
    %98 = vector.broadcast %97 : vector<1x256xi1> to vector<16x256xi1>
    %99 = arith.select %98, %95, %96 : vector<16x256xi1>, vector<16x256xbf16>
    %c0_57 = arith.constant 0 : index
    %c33_58 = arith.constant 33 : index
    %100 = vector.load %arg5[%c0_57, %c33_58] : memref<16x290xbf16, #tpu.memory_space<vmem>>, vector<16x256xbf16>
    %c0_59 = arith.constant 0 : index
    %c34_60 = arith.constant 34 : index
    %101 = vector.load %arg5[%c0_59, %c34_60] : memref<16x290xbf16, #tpu.memory_space<vmem>>, vector<16x256xbf16>
    %cst_61 = arith.constant 0.000000e+00 : bf16
    %102 = vector.broadcast %cst_61 : bf16 to vector<16x256xbf16>
    %103 = vector.shape_cast %23 : vector<1x256xi1> to vector<1x256xi1>
    %104 = vector.broadcast %103 : vector<1x256xi1> to vector<16x256xi1>
    %105 = arith.select %104, %101, %102 : vector<16x256xi1>, vector<16x256xbf16>
    %106 = tpu.concatenate %77, %78, %83, %88, %89, %94, %99, %100, %105 in 0 : vector<16x256xbf16>, vector<16x256xbf16>, vector<16x256xbf16>, vector<16x256xbf16>, vector<16x256xbf16>, vector<16x256xbf16>, vector<16x256xbf16>, vector<16x256xbf16>, vector<16x256xbf16> -> vector<144x256xbf16>
    %cst_62 = arith.constant dense<0.000000e+00> : vector<16x256xf32>
    %107 = tpu.matmul %70, %106, %cst_62 {dimension_numbers = #tpu.dot_dimension_numbers<[1], [0], [0], [1], [0, 0, 1, 1], [], []>} : vector<16x144xbf16>, vector<144x256xbf16>, vector<16x256xf32> -> vector<16x256xf32>
    %cst_63 = arith.constant dense<0.000000e+00> : vector<16xf32>
    %108 = vector.multi_reduction <add>, %107, %cst_63 [1] : vector<16x256xf32> to vector<16xf32>
    %109 = vector.shape_cast %108 : vector<16xf32> to vector<16x1xf32>
    %cst_64 = arith.constant 2.560000e+02 : f32
    %110 = vector.broadcast %cst_64 : f32 to vector<16x1xf32>
    %111 = arith.divf %109, %110 : vector<16x1xf32>
    %112 = vector.broadcast %111 : vector<16x1xf32> to vector<16x256xf32>
    %113 = arith.subf %107, %112 : vector<16x256xf32>
    %114 = arith.mulf %113, %113 : vector<16x256xf32>
    %cst_65 = arith.constant dense<0.000000e+00> : vector<16xf32>
    %115 = vector.multi_reduction <add>, %114, %cst_65 [1] : vector<16x256xf32> to vector<16xf32>
    %116 = vector.shape_cast %115 : vector<16xf32> to vector<16x1xf32>
    %cst_66 = arith.constant 2.560000e+02 : f32
    %117 = vector.broadcast %cst_66 : f32 to vector<16x1xf32>
    %118 = arith.divf %116, %117 : vector<16x1xf32>
    %cst_67 = arith.constant 9.99999974E-6 : f32
    %119 = vector.broadcast %cst_67 : f32 to vector<16x1xf32>
    %120 = arith.addf %118, %119 : vector<16x1xf32>
    %121 = math.rsqrt %120 : vector<16x1xf32>
    %122 = vector.broadcast %121 : vector<16x1xf32> to vector<16x256xf32>
    %123 = arith.mulf %113, %122 : vector<16x256xf32>
    %cst_68 = arith.constant 0.000000e+00 : f32
    %124 = vector.broadcast %cst_68 : f32 to vector<16x256xf32>
    %125 = arith.maximumf %123, %124 : vector<16x256xf32>
    %126 = arith.truncf %125 : vector<16x256xf32> to vector<16x256xbf16>
    %c0_69 = arith.constant 0 : index
    %c0_70 = arith.constant 0 : index
    %c0_71 = arith.constant 0 : index
    %127 = vector.load %arg4[%c0_69, %c0_70, %c0_71] : memref<1x16x256xbf16, #tpu.memory_space<vmem>>, vector<1x16x256xbf16>
    %128 = vector.shape_cast %127 : vector<1x16x256xbf16> to vector<16x256xbf16>
    %129 = vector.shape_cast %126 : vector<16x256xbf16> to vector<1x16x256xbf16>
    tpu.vector_store %arg4[%c0_69, %c0_70, %c0_71], %129 {strides = array<i32>} : memref<1x16x256xbf16, #tpu.memory_space<vmem>>, vector<1x16x256xbf16>,
    return
  }
  func.func @transform_0(%arg0: i32) -> (i32, i32, i32) {
    %c0_i32 = arith.constant 0 : i32
    %c0_i32_0 = arith.constant 0 : i32
    %c0_i32_1 = arith.constant 0 : i32
    return %arg0, %c0_i32, %c0_i32_0 : i32, i32, i32
  }
  func.func @transform_1(%arg0: i32) -> (i32, i32) {
    %c0_i32 = arith.constant 0 : i32
    %c0_i32_0 = arith.constant 0 : i32
    %c0_i32_1 = arith.constant 0 : i32
    return %c0_i32, %c0_i32_0 : i32, i32
  }
  func.func @transform_2(%arg0: i32) -> (i32, i32) {
    %c0_i32 = arith.constant 0 : i32
    %c0_i32_0 = arith.constant 0 : i32
    %c0_i32_1 = arith.constant 0 : i32
    return %c0_i32, %c0_i32_0 : i32, i32
  }
  func.func @transform_3(%arg0: i32) -> (i32, i32, i32) {
    %c0_i32 = arith.constant 0 : i32
    %c0_i32_0 = arith.constant 0 : i32
    %c0_i32_1 = arith.constant 0 : i32
    return %arg0, %c0_i32, %c0_i32_0 : i32, i32, i32
  }
}

module attributes {stable_mosaic.version = 11 : i64} {
  func.func @kernel(%arg0: i32, %arg1: memref<1x128x32xbf16, #tpu.memory_space<vmem>>, %arg2: memref<16x16xbf16, #tpu.memory_space<vmem>>, %arg3: memref<1x256x8xbf16, #tpu.memory_space<vmem>>, %arg4: memref<1x256x8xbf16, #tpu.memory_space<vmem>>) attributes {dimension_semantics = [#tpu.dimension_semantics<parallel>], iteration_bounds = array<i64: 2>, scalar_prefetch = 0 : i64, scratch_operands = 0 : i64, tpu.core_type = #tpu.core_type<tc>, window_params = [{transform_indices = @transform_0, window_bounds = array<i64: 1, 128, 32>}, {pipeline_mode = #tpu.pipeline_mode<synchronous>, transform_indices = @transform_1, window_bounds = array<i64: 16, 16>}, {transform_indices = @transform_2, window_bounds = array<i64: 1, 256, 8>}, {transform_indices = @transform_3, window_bounds = array<i64: 1, 256, 8>}]} {
    %c0 = arith.constant 0 : index
    %c0_0 = arith.constant 0 : index
    %c0_1 = arith.constant 0 : index
    %0 = vector.load %arg1[%c0, %c0_0, %c0_1] : memref<1x128x32xbf16, #tpu.memory_space<vmem>>, vector<1x128x32xbf16>
    %1 = vector.shape_cast %0 : vector<1x128x32xbf16> to vector<128x32xbf16>
    %2 = vector.extract_strided_slice %1 {offsets = [0, 0], sizes = [128, 16], strides = [1, 1]} : vector<128x32xbf16> to vector<128x16xbf16>
    %3 = vector.extract_strided_slice %1 {offsets = [0, 16], sizes = [128, 16], strides = [1, 1]} : vector<128x32xbf16> to vector<128x16xbf16>
    %4 = tpu.concatenate %2, %3 in 0 : vector<128x16xbf16>, vector<128x16xbf16> -> vector<256x16xbf16>
    %c0_2 = arith.constant 0 : index
    %c0_3 = arith.constant 0 : index
    %5 = vector.load %arg2[%c0_2, %c0_3] : memref<16x16xbf16, #tpu.memory_space<vmem>>, vector<16x16xbf16>
    %cst = arith.constant dense<0.000000e+00> : vector<256x16xf32>
    %6 = tpu.matmul %4, %5, %cst {dimension_numbers = #tpu.dot_dimension_numbers<[1], [0], [0], [1], [0, 0, 1, 1], [], []>} : vector<256x16xbf16>, vector<16x16xbf16>, vector<256x16xf32> -> vector<256x16xf32>
    %7 = vector.extract_strided_slice %6 {offsets = [0, 0], sizes = [256, 8], strides = [1, 1]} : vector<256x16xf32> to vector<256x8xf32>
    %8 = arith.truncf %7 : vector<256x8xf32> to vector<256x8xbf16>
    %c0_4 = arith.constant 0 : index
    %c0_5 = arith.constant 0 : index
    %c0_6 = arith.constant 0 : index
    %9 = vector.load %arg3[%c0_4, %c0_5, %c0_6] : memref<1x256x8xbf16, #tpu.memory_space<vmem>>, vector<1x256x8xbf16>
    %10 = vector.shape_cast %9 : vector<1x256x8xbf16> to vector<256x8xbf16>
    %11 = vector.shape_cast %8 : vector<256x8xbf16> to vector<1x256x8xbf16>
    tpu.vector_store %arg3[%c0_4, %c0_5, %c0_6], %11 {strides = array<i32>} : memref<1x256x8xbf16, #tpu.memory_space<vmem>>, vector<1x256x8xbf16>,
    %12 = vector.extract_strided_slice %6 {offsets = [0, 8], sizes = [256, 8], strides = [1, 1]} : vector<256x16xf32> to vector<256x8xf32>
    %13 = arith.truncf %12 : vector<256x8xf32> to vector<256x8xbf16>
    %c0_7 = arith.constant 0 : index
    %c0_8 = arith.constant 0 : index
    %c0_9 = arith.constant 0 : index
    %14 = vector.load %arg4[%c0_7, %c0_8, %c0_9] : memref<1x256x8xbf16, #tpu.memory_space<vmem>>, vector<1x256x8xbf16>
    %15 = vector.shape_cast %14 : vector<1x256x8xbf16> to vector<256x8xbf16>
    %16 = vector.shape_cast %13 : vector<256x8xbf16> to vector<1x256x8xbf16>
    tpu.vector_store %arg4[%c0_7, %c0_8, %c0_9], %16 {strides = array<i32>} : memref<1x256x8xbf16, #tpu.memory_space<vmem>>, vector<1x256x8xbf16>,
    return
  }
  func.func @transform_0(%arg0: i32) -> (i32, i32, i32) {
    %c0_i32 = arith.constant 0 : i32
    %c0_i32_0 = arith.constant 0 : i32
    %c0_i32_1 = arith.constant 0 : i32
    return %arg0, %c0_i32, %c0_i32_0 : i32, i32, i32
  }
  func.func @transform_1(%arg0: i32) -> (i32, i32) {
    %c0_i32 = arith.constant 0 : i32
    %c0_i32_0 = arith.constant 0 : i32
    %c0_i32_1 = arith.constant 0 : i32
    return %c0_i32, %c0_i32_0 : i32, i32
  }
  func.func @transform_2(%arg0: i32) -> (i32, i32, i32) {
    %c0_i32 = arith.constant 0 : i32
    %c0_i32_0 = arith.constant 0 : i32
    %c0_i32_1 = arith.constant 0 : i32
    return %arg0, %c0_i32, %c0_i32_0 : i32, i32, i32
  }
  func.func @transform_3(%arg0: i32) -> (i32, i32, i32) {
    %c0_i32 = arith.constant 0 : i32
    %c0_i32_0 = arith.constant 0 : i32
    %c0_i32_1 = arith.constant 0 : i32
    return %arg0, %c0_i32, %c0_i32_0 : i32, i32, i32
  }
}

module attributes {stable_mosaic.version = 11 : i64} {
  func.func @kernel(%arg0: i32, %arg1: memref<1x32x64xbf16, #tpu.memory_space<vmem>>, %arg2: memref<1x32x64xbf16, #tpu.memory_space<vmem>>, %arg3: memref<16x64xbf16, #tpu.memory_space<vmem>>, %arg4: memref<16x1xf32, #tpu.memory_space<vmem>>, %arg5: memref<16x144xbf16, #tpu.memory_space<vmem>>, %arg6: memref<16x144xbf16, #tpu.memory_space<vmem>>, %arg7: memref<1x16x64xbf16, #tpu.memory_space<vmem>>, %arg8: memref<16x82xbf16, #tpu.memory_space<vmem>>) attributes {dimension_semantics = [#tpu.dimension_semantics<parallel>], iteration_bounds = array<i64: 2>, scalar_prefetch = 0 : i64, scratch_operands = 1 : i64, tpu.core_type = #tpu.core_type<tc>, window_params = [{transform_indices = @transform_0, window_bounds = array<i64: 1, 32, 64>}, {transform_indices = @transform_1, window_bounds = array<i64: 1, 32, 64>}, {pipeline_mode = #tpu.pipeline_mode<synchronous>, transform_indices = @transform_2, window_bounds = array<i64: 16, 64>}, {pipeline_mode = #tpu.pipeline_mode<synchronous>, transform_indices = @transform_3, window_bounds = array<i64: 16, 1>}, {pipeline_mode = #tpu.pipeline_mode<synchronous>, transform_indices = @transform_4, window_bounds = array<i64: 16, 144>}, {pipeline_mode = #tpu.pipeline_mode<synchronous>, transform_indices = @transform_5, window_bounds = array<i64: 16, 144>}, {transform_indices = @transform_6, window_bounds = array<i64: 1, 16, 64>}]} {
    %c0_i32 = arith.constant 0 : i32
    %0 = arith.cmpi eq, %arg0, %c0_i32 : i32
    %1 = arith.extui %0 : i1 to i32
    %c0_i32_0 = arith.constant 0 : i32
    %2 = arith.cmpi ne, %1, %c0_i32_0 : i32
    scf.if %2 {
      %cst_80 = arith.constant 0.000000e+00 : bf16
      %150 = vector.broadcast %cst_80 : bf16 to vector<16x9xbf16>
      %c0_81 = arith.constant 0 : index
      %c0_82 = arith.constant 0 : index
      %151 = vector.load %arg8[%c0_81, %c0_82] : memref<16x82xbf16, #tpu.memory_space<vmem>>, vector<16x9xbf16>
      tpu.vector_store %arg8[%c0_81, %c0_82], %150 {strides = array<i32>} : memref<16x82xbf16, #tpu.memory_space<vmem>>, vector<16x9xbf16>,
      %cst_83 = arith.constant 0.000000e+00 : bf16
      %152 = vector.broadcast %cst_83 : bf16 to vector<16x9xbf16>
      %c0_84 = arith.constant 0 : index
      %c73 = arith.constant 73 : index
      %153 = vector.load %arg8[%c0_84, %c73] : memref<16x82xbf16, #tpu.memory_space<vmem>>, vector<16x9xbf16>
      tpu.vector_store %arg8[%c0_84, %c73], %152 {strides = array<i32>} : memref<16x82xbf16, #tpu.memory_space<vmem>>, vector<16x9xbf16>,
    } else {
    }
    %3 = tpu.iota {dimensions = array<i32: 1>} : vector<1x64xi32>
    %c8_i32 = arith.constant 8 : i32
    %c0_i32_1 = arith.constant 0 : i32
    %4 = arith.cmpi eq, %c8_i32, %c0_i32_1 : i32
    %c1_i32 = arith.constant 1 : i32
    %5 = arith.select %4, %c1_i32, %c8_i32 : i32
    %6 = vector.broadcast %5 : i32 to vector<1x64xi32>
    %7 = arith.remsi %3, %6 : vector<1x64xi32>
    %c0_i32_2 = arith.constant 0 : i32
    %8 = vector.broadcast %c0_i32_2 : i32 to vector<1x64xi32>
    %9 = arith.cmpi ne, %7, %8 : vector<1x64xi32>
    %c0_i32_3 = arith.constant 0 : i32
    %10 = vector.broadcast %c0_i32_3 : i32 to vector<1x64xi32>
    %11 = arith.cmpi slt, %7, %10 : vector<1x64xi32>
    %c0_i32_4 = arith.constant 0 : i32
    %12 = arith.cmpi slt, %5, %c0_i32_4 : i32
    %13 = vector.broadcast %12 : i1 to vector<1x64xi1>
    %14 = vector.broadcast %13 : vector<1x64xi1> to vector<1x64xi1>
    %15 = arith.xori %11, %14 : vector<1x64xi1>
    %16 = arith.andi %15, %9 : vector<1x64xi1>
    %17 = vector.broadcast %5 : i32 to vector<1x64xi32>
    %18 = arith.addi %7, %17 : vector<1x64xi32>
    %19 = arith.select %16, %18, %7 : vector<1x64xi1>, vector<1x64xi32>
    %c0_i32_5 = arith.constant 0 : i32
    %20 = vector.broadcast %c0_i32_5 : i32 to vector<1x64xi32>
    %21 = arith.cmpi sgt, %19, %20 : vector<1x64xi32>
    %c7_i32 = arith.constant 7 : i32
    %22 = vector.broadcast %c7_i32 : i32 to vector<1x64xi32>
    %23 = arith.cmpi slt, %19, %22 : vector<1x64xi32>
    %c0 = arith.constant 0 : index
    %c0_6 = arith.constant 0 : index
    %c0_7 = arith.constant 0 : index
    %24 = vector.load %arg1[%c0, %c0_6, %c0_7] : memref<1x32x64xbf16, #tpu.memory_space<vmem>>, vector<1x32x64xbf16>
    %25 = vector.shape_cast %24 : vector<1x32x64xbf16> to vector<32x64xbf16>
    %c0_8 = arith.constant 0 : index
    %c0_9 = arith.constant 0 : index
    %c0_10 = arith.constant 0 : index
    %26 = vector.load %arg2[%c0_8, %c0_9, %c0_10] : memref<1x32x64xbf16, #tpu.memory_space<vmem>>, vector<1x32x64xbf16>
    %27 = vector.shape_cast %26 : vector<1x32x64xbf16> to vector<32x64xbf16>
    %28 = tpu.concatenate %25, %27 in 0 : vector<32x64xbf16>, vector<32x64xbf16> -> vector<64x64xbf16>
    %c0_11 = arith.constant 0 : index
    %c0_12 = arith.constant 0 : index
    %29 = vector.load %arg3[%c0_11, %c0_12] : memref<16x64xbf16, #tpu.memory_space<vmem>>, vector<16x64xbf16>
    %cst = arith.constant dense<0.000000e+00> : vector<16x64xf32>
    %30 = tpu.matmul %29, %28, %cst {dimension_numbers = #tpu.dot_dimension_numbers<[1], [0], [0], [1], [0, 0, 1, 1], [], []>} : vector<16x64xbf16>, vector<64x64xbf16>, vector<16x64xf32> -> vector<16x64xf32>
    %c0_13 = arith.constant 0 : index
    %c0_14 = arith.constant 0 : index
    %31 = vector.load %arg4[%c0_13, %c0_14] : memref<16x1xf32, #tpu.memory_space<vmem>>, vector<16x1xf32>
    %32 = vector.broadcast %31 : vector<16x1xf32> to vector<16x64xf32>
    %33 = arith.addf %30, %32 : vector<16x64xf32>
    %c0_15 = arith.constant 0 : index
    %c0_16 = arith.constant 0 : index
    %34 = vector.load %arg5[%c0_15, %c0_16] : memref<16x144xbf16, #tpu.memory_space<vmem>>, vector<16x144xbf16>
    %35 = arith.truncf %33 : vector<16x64xf32> to vector<16x64xbf16>
    %c0_17 = arith.constant 0 : index
    %c9 = arith.constant 9 : index
    %36 = vector.load %arg8[%c0_17, %c9] : memref<16x82xbf16, #tpu.memory_space<vmem>>, vector<16x64xbf16>
    tpu.vector_store %arg8[%c0_17, %c9], %35 {strides = array<i32>} : memref<16x82xbf16, #tpu.memory_space<vmem>>, vector<16x64xbf16>,
    %c0_18 = arith.constant 0 : index
    %c0_19 = arith.constant 0 : index
    %37 = vector.load %arg8[%c0_18, %c0_19] : memref<16x82xbf16, #tpu.memory_space<vmem>>, vector<16x64xbf16>
    %cst_20 = arith.constant 0.000000e+00 : bf16
    %38 = vector.broadcast %cst_20 : bf16 to vector<16x64xbf16>
    %39 = vector.shape_cast %21 : vector<1x64xi1> to vector<1x64xi1>
    %40 = vector.broadcast %39 : vector<1x64xi1> to vector<16x64xi1>
    %41 = arith.select %40, %37, %38 : vector<16x64xi1>, vector<16x64xbf16>
    %c0_21 = arith.constant 0 : index
    %c1 = arith.constant 1 : index
    %42 = vector.load %arg8[%c0_21, %c1] : memref<16x82xbf16, #tpu.memory_space<vmem>>, vector<16x64xbf16>
    %c0_22 = arith.constant 0 : index
    %c2 = arith.constant 2 : index
    %43 = vector.load %arg8[%c0_22, %c2] : memref<16x82xbf16, #tpu.memory_space<vmem>>, vector<16x64xbf16>
    %cst_23 = arith.constant 0.000000e+00 : bf16
    %44 = vector.broadcast %cst_23 : bf16 to vector<16x64xbf16>
    %45 = vector.shape_cast %23 : vector<1x64xi1> to vector<1x64xi1>
    %46 = vector.broadcast %45 : vector<1x64xi1> to vector<16x64xi1>
    %47 = arith.select %46, %43, %44 : vector<16x64xi1>, vector<16x64xbf16>
    %c0_24 = arith.constant 0 : index
    %c8 = arith.constant 8 : index
    %48 = vector.load %arg8[%c0_24, %c8] : memref<16x82xbf16, #tpu.memory_space<vmem>>, vector<16x64xbf16>
    %cst_25 = arith.constant 0.000000e+00 : bf16
    %49 = vector.broadcast %cst_25 : bf16 to vector<16x64xbf16>
    %50 = vector.shape_cast %21 : vector<1x64xi1> to vector<1x64xi1>
    %51 = vector.broadcast %50 : vector<1x64xi1> to vector<16x64xi1>
    %52 = arith.select %51, %48, %49 : vector<16x64xi1>, vector<16x64xbf16>
    %c0_26 = arith.constant 0 : index
    %c9_27 = arith.constant 9 : index
    %53 = vector.load %arg8[%c0_26, %c9_27] : memref<16x82xbf16, #tpu.memory_space<vmem>>, vector<16x64xbf16>
    %c0_28 = arith.constant 0 : index
    %c10 = arith.constant 10 : index
    %54 = vector.load %arg8[%c0_28, %c10] : memref<16x82xbf16, #tpu.memory_space<vmem>>, vector<16x64xbf16>
    %cst_29 = arith.constant 0.000000e+00 : bf16
    %55 = vector.broadcast %cst_29 : bf16 to vector<16x64xbf16>
    %56 = vector.shape_cast %23 : vector<1x64xi1> to vector<1x64xi1>
    %57 = vector.broadcast %56 : vector<1x64xi1> to vector<16x64xi1>
    %58 = arith.select %57, %54, %55 : vector<16x64xi1>, vector<16x64xbf16>
    %c0_30 = arith.constant 0 : index
    %c16 = arith.constant 16 : index
    %59 = vector.load %arg8[%c0_30, %c16] : memref<16x82xbf16, #tpu.memory_space<vmem>>, vector<16x64xbf16>
    %cst_31 = arith.constant 0.000000e+00 : bf16
    %60 = vector.broadcast %cst_31 : bf16 to vector<16x64xbf16>
    %61 = vector.shape_cast %21 : vector<1x64xi1> to vector<1x64xi1>
    %62 = vector.broadcast %61 : vector<1x64xi1> to vector<16x64xi1>
    %63 = arith.select %62, %59, %60 : vector<16x64xi1>, vector<16x64xbf16>
    %c0_32 = arith.constant 0 : index
    %c17 = arith.constant 17 : index
    %64 = vector.load %arg8[%c0_32, %c17] : memref<16x82xbf16, #tpu.memory_space<vmem>>, vector<16x64xbf16>
    %c0_33 = arith.constant 0 : index
    %c18 = arith.constant 18 : index
    %65 = vector.load %arg8[%c0_33, %c18] : memref<16x82xbf16, #tpu.memory_space<vmem>>, vector<16x64xbf16>
    %cst_34 = arith.constant 0.000000e+00 : bf16
    %66 = vector.broadcast %cst_34 : bf16 to vector<16x64xbf16>
    %67 = vector.shape_cast %23 : vector<1x64xi1> to vector<1x64xi1>
    %68 = vector.broadcast %67 : vector<1x64xi1> to vector<16x64xi1>
    %69 = arith.select %68, %65, %66 : vector<16x64xi1>, vector<16x64xbf16>
    %70 = tpu.concatenate %41, %42, %47, %52, %53, %58, %63, %64, %69 in 0 : vector<16x64xbf16>, vector<16x64xbf16>, vector<16x64xbf16>, vector<16x64xbf16>, vector<16x64xbf16>, vector<16x64xbf16>, vector<16x64xbf16>, vector<16x64xbf16>, vector<16x64xbf16> -> vector<144x64xbf16>
    %cst_35 = arith.constant dense<0.000000e+00> : vector<16x64xf32>
    %71 = tpu.matmul %34, %70, %cst_35 {dimension_numbers = #tpu.dot_dimension_numbers<[1], [0], [0], [1], [0, 0, 1, 1], [], []>} : vector<16x144xbf16>, vector<144x64xbf16>, vector<16x64xf32> -> vector<16x64xf32>
    %cst_36 = arith.constant dense<0.000000e+00> : vector<16xf32>
    %72 = vector.multi_reduction <add>, %71, %cst_36 [1] : vector<16x64xf32> to vector<16xf32>
    %73 = vector.shape_cast %72 : vector<16xf32> to vector<16x1xf32>
    %cst_37 = arith.constant 6.400000e+01 : f32
    %74 = vector.broadcast %cst_37 : f32 to vector<16x1xf32>
    %75 = arith.divf %73, %74 : vector<16x1xf32>
    %76 = vector.broadcast %75 : vector<16x1xf32> to vector<16x64xf32>
    %77 = arith.subf %71, %76 : vector<16x64xf32>
    %78 = arith.mulf %77, %77 : vector<16x64xf32>
    %cst_38 = arith.constant dense<0.000000e+00> : vector<16xf32>
    %79 = vector.multi_reduction <add>, %78, %cst_38 [1] : vector<16x64xf32> to vector<16xf32>
    %80 = vector.shape_cast %79 : vector<16xf32> to vector<16x1xf32>
    %cst_39 = arith.constant 6.400000e+01 : f32
    %81 = vector.broadcast %cst_39 : f32 to vector<16x1xf32>
    %82 = arith.divf %80, %81 : vector<16x1xf32>
    %cst_40 = arith.constant 9.99999974E-6 : f32
    %83 = vector.broadcast %cst_40 : f32 to vector<16x1xf32>
    %84 = arith.addf %82, %83 : vector<16x1xf32>
    %85 = math.rsqrt %84 : vector<16x1xf32>
    %86 = vector.broadcast %85 : vector<16x1xf32> to vector<16x64xf32>
    %87 = arith.mulf %77, %86 : vector<16x64xf32>
    %cst_41 = arith.constant 0.000000e+00 : f32
    %88 = vector.broadcast %cst_41 : f32 to vector<16x64xf32>
    %89 = arith.maximumf %87, %88 : vector<16x64xf32>
    %c0_42 = arith.constant 0 : index
    %c0_43 = arith.constant 0 : index
    %90 = vector.load %arg6[%c0_42, %c0_43] : memref<16x144xbf16, #tpu.memory_space<vmem>>, vector<16x144xbf16>
    %91 = arith.truncf %89 : vector<16x64xf32> to vector<16x64xbf16>
    %c0_44 = arith.constant 0 : index
    %c9_45 = arith.constant 9 : index
    %92 = vector.load %arg8[%c0_44, %c9_45] : memref<16x82xbf16, #tpu.memory_space<vmem>>, vector<16x64xbf16>
    tpu.vector_store %arg8[%c0_44, %c9_45], %91 {strides = array<i32>} : memref<16x82xbf16, #tpu.memory_space<vmem>>, vector<16x64xbf16>,
    %c0_46 = arith.constant 0 : index
    %c0_47 = arith.constant 0 : index
    %93 = vector.load %arg8[%c0_46, %c0_47] : memref<16x82xbf16, #tpu.memory_space<vmem>>, vector<16x64xbf16>
    %cst_48 = arith.constant 0.000000e+00 : bf16
    %94 = vector.broadcast %cst_48 : bf16 to vector<16x64xbf16>
    %95 = vector.shape_cast %21 : vector<1x64xi1> to vector<1x64xi1>
    %96 = vector.broadcast %95 : vector<1x64xi1> to vector<16x64xi1>
    %97 = arith.select %96, %93, %94 : vector<16x64xi1>, vector<16x64xbf16>
    %c0_49 = arith.constant 0 : index
    %c1_50 = arith.constant 1 : index
    %98 = vector.load %arg8[%c0_49, %c1_50] : memref<16x82xbf16, #tpu.memory_space<vmem>>, vector<16x64xbf16>
    %c0_51 = arith.constant 0 : index
    %c2_52 = arith.constant 2 : index
    %99 = vector.load %arg8[%c0_51, %c2_52] : memref<16x82xbf16, #tpu.memory_space<vmem>>, vector<16x64xbf16>
    %cst_53 = arith.constant 0.000000e+00 : bf16
    %100 = vector.broadcast %cst_53 : bf16 to vector<16x64xbf16>
    %101 = vector.shape_cast %23 : vector<1x64xi1> to vector<1x64xi1>
    %102 = vector.broadcast %101 : vector<1x64xi1> to vector<16x64xi1>
    %103 = arith.select %102, %99, %100 : vector<16x64xi1>, vector<16x64xbf16>
    %c0_54 = arith.constant 0 : index
    %c8_55 = arith.constant 8 : index
    %104 = vector.load %arg8[%c0_54, %c8_55] : memref<16x82xbf16, #tpu.memory_space<vmem>>, vector<16x64xbf16>
    %cst_56 = arith.constant 0.000000e+00 : bf16
    %105 = vector.broadcast %cst_56 : bf16 to vector<16x64xbf16>
    %106 = vector.shape_cast %21 : vector<1x64xi1> to vector<1x64xi1>
    %107 = vector.broadcast %106 : vector<1x64xi1> to vector<16x64xi1>
    %108 = arith.select %107, %104, %105 : vector<16x64xi1>, vector<16x64xbf16>
    %c0_57 = arith.constant 0 : index
    %c9_58 = arith.constant 9 : index
    %109 = vector.load %arg8[%c0_57, %c9_58] : memref<16x82xbf16, #tpu.memory_space<vmem>>, vector<16x64xbf16>
    %c0_59 = arith.constant 0 : index
    %c10_60 = arith.constant 10 : index
    %110 = vector.load %arg8[%c0_59, %c10_60] : memref<16x82xbf16, #tpu.memory_space<vmem>>, vector<16x64xbf16>
    %cst_61 = arith.constant 0.000000e+00 : bf16
    %111 = vector.broadcast %cst_61 : bf16 to vector<16x64xbf16>
    %112 = vector.shape_cast %23 : vector<1x64xi1> to vector<1x64xi1>
    %113 = vector.broadcast %112 : vector<1x64xi1> to vector<16x64xi1>
    %114 = arith.select %113, %110, %111 : vector<16x64xi1>, vector<16x64xbf16>
    %c0_62 = arith.constant 0 : index
    %c16_63 = arith.constant 16 : index
    %115 = vector.load %arg8[%c0_62, %c16_63] : memref<16x82xbf16, #tpu.memory_space<vmem>>, vector<16x64xbf16>
    %cst_64 = arith.constant 0.000000e+00 : bf16
    %116 = vector.broadcast %cst_64 : bf16 to vector<16x64xbf16>
    %117 = vector.shape_cast %21 : vector<1x64xi1> to vector<1x64xi1>
    %118 = vector.broadcast %117 : vector<1x64xi1> to vector<16x64xi1>
    %119 = arith.select %118, %115, %116 : vector<16x64xi1>, vector<16x64xbf16>
    %c0_65 = arith.constant 0 : index
    %c17_66 = arith.constant 17 : index
    %120 = vector.load %arg8[%c0_65, %c17_66] : memref<16x82xbf16, #tpu.memory_space<vmem>>, vector<16x64xbf16>
    %c0_67 = arith.constant 0 : index
    %c18_68 = arith.constant 18 : index
    %121 = vector.load %arg8[%c0_67, %c18_68] : memref<16x82xbf16, #tpu.memory_space<vmem>>, vector<16x64xbf16>
    %cst_69 = arith.constant 0.000000e+00 : bf16
    %122 = vector.broadcast %cst_69 : bf16 to vector<16x64xbf16>
    %123 = vector.shape_cast %23 : vector<1x64xi1> to vector<1x64xi1>
    %124 = vector.broadcast %123 : vector<1x64xi1> to vector<16x64xi1>
    %125 = arith.select %124, %121, %122 : vector<16x64xi1>, vector<16x64xbf16>
    %126 = tpu.concatenate %97, %98, %103, %108, %109, %114, %119, %120, %125 in 0 : vector<16x64xbf16>, vector<16x64xbf16>, vector<16x64xbf16>, vector<16x64xbf16>, vector<16x64xbf16>, vector<16x64xbf16>, vector<16x64xbf16>, vector<16x64xbf16>, vector<16x64xbf16> -> vector<144x64xbf16>
    %cst_70 = arith.constant dense<0.000000e+00> : vector<16x64xf32>
    %127 = tpu.matmul %90, %126, %cst_70 {dimension_numbers = #tpu.dot_dimension_numbers<[1], [0], [0], [1], [0, 0, 1, 1], [], []>} : vector<16x144xbf16>, vector<144x64xbf16>, vector<16x64xf32> -> vector<16x64xf32>
    %cst_71 = arith.constant dense<0.000000e+00> : vector<16xf32>
    %128 = vector.multi_reduction <add>, %127, %cst_71 [1] : vector<16x64xf32> to vector<16xf32>
    %129 = vector.shape_cast %128 : vector<16xf32> to vector<16x1xf32>
    %cst_72 = arith.constant 6.400000e+01 : f32
    %130 = vector.broadcast %cst_72 : f32 to vector<16x1xf32>
    %131 = arith.divf %129, %130 : vector<16x1xf32>
    %132 = vector.broadcast %131 : vector<16x1xf32> to vector<16x64xf32>
    %133 = arith.subf %127, %132 : vector<16x64xf32>
    %134 = arith.mulf %133, %133 : vector<16x64xf32>
    %cst_73 = arith.constant dense<0.000000e+00> : vector<16xf32>
    %135 = vector.multi_reduction <add>, %134, %cst_73 [1] : vector<16x64xf32> to vector<16xf32>
    %136 = vector.shape_cast %135 : vector<16xf32> to vector<16x1xf32>
    %cst_74 = arith.constant 6.400000e+01 : f32
    %137 = vector.broadcast %cst_74 : f32 to vector<16x1xf32>
    %138 = arith.divf %136, %137 : vector<16x1xf32>
    %cst_75 = arith.constant 9.99999974E-6 : f32
    %139 = vector.broadcast %cst_75 : f32 to vector<16x1xf32>
    %140 = arith.addf %138, %139 : vector<16x1xf32>
    %141 = math.rsqrt %140 : vector<16x1xf32>
    %142 = vector.broadcast %141 : vector<16x1xf32> to vector<16x64xf32>
    %143 = arith.mulf %133, %142 : vector<16x64xf32>
    %cst_76 = arith.constant 0.000000e+00 : f32
    %144 = vector.broadcast %cst_76 : f32 to vector<16x64xf32>
    %145 = arith.maximumf %143, %144 : vector<16x64xf32>
    %146 = arith.truncf %145 : vector<16x64xf32> to vector<16x64xbf16>
    %c0_77 = arith.constant 0 : index
    %c0_78 = arith.constant 0 : index
    %c0_79 = arith.constant 0 : index
    %147 = vector.load %arg7[%c0_77, %c0_78, %c0_79] : memref<1x16x64xbf16, #tpu.memory_space<vmem>>, vector<1x16x64xbf16>
    %148 = vector.shape_cast %147 : vector<1x16x64xbf16> to vector<16x64xbf16>
    %149 = vector.shape_cast %146 : vector<16x64xbf16> to vector<1x16x64xbf16>
    tpu.vector_store %arg7[%c0_77, %c0_78, %c0_79], %149 {strides = array<i32>} : memref<1x16x64xbf16, #tpu.memory_space<vmem>>, vector<1x16x64xbf16>,
    return
  }
  func.func @transform_0(%arg0: i32) -> (i32, i32, i32) {
    %c0_i32 = arith.constant 0 : i32
    %c0_i32_0 = arith.constant 0 : i32
    %c0_i32_1 = arith.constant 0 : i32
    return %arg0, %c0_i32, %c0_i32_0 : i32, i32, i32
  }
  func.func @transform_1(%arg0: i32) -> (i32, i32, i32) {
    %c0_i32 = arith.constant 0 : i32
    %c0_i32_0 = arith.constant 0 : i32
    %c0_i32_1 = arith.constant 0 : i32
    return %arg0, %c0_i32, %c0_i32_0 : i32, i32, i32
  }
  func.func @transform_2(%arg0: i32) -> (i32, i32) {
    %c0_i32 = arith.constant 0 : i32
    %c0_i32_0 = arith.constant 0 : i32
    %c0_i32_1 = arith.constant 0 : i32
    return %c0_i32, %c0_i32_0 : i32, i32
  }
  func.func @transform_3(%arg0: i32) -> (i32, i32) {
    %c0_i32 = arith.constant 0 : i32
    %c0_i32_0 = arith.constant 0 : i32
    %c0_i32_1 = arith.constant 0 : i32
    return %c0_i32, %c0_i32_0 : i32, i32
  }
  func.func @transform_4(%arg0: i32) -> (i32, i32) {
    %c0_i32 = arith.constant 0 : i32
    %c0_i32_0 = arith.constant 0 : i32
    %c0_i32_1 = arith.constant 0 : i32
    return %c0_i32, %c0_i32_0 : i32, i32
  }
  func.func @transform_5(%arg0: i32) -> (i32, i32) {
    %c0_i32 = arith.constant 0 : i32
    %c0_i32_0 = arith.constant 0 : i32
    %c0_i32_1 = arith.constant 0 : i32
    return %c0_i32, %c0_i32_0 : i32, i32
  }
  func.func @transform_6(%arg0: i32) -> (i32, i32, i32) {
    %c0_i32 = arith.constant 0 : i32
    %c0_i32_0 = arith.constant 0 : i32
    %c0_i32_1 = arith.constant 0 : i32
    return %arg0, %c0_i32, %c0_i32_0 : i32, i32, i32
  }
}

module attributes {stable_mosaic.version = 11 : i64} {
  func.func @kernel(%arg0: i32, %arg1: memref<1x64x16xbf16, #tpu.memory_space<vmem>>, %arg2: memref<8x8xbf16, #tpu.memory_space<vmem>>, %arg3: memref<1x128x4xbf16, #tpu.memory_space<vmem>>, %arg4: memref<1x128x4xbf16, #tpu.memory_space<vmem>>) attributes {dimension_semantics = [#tpu.dimension_semantics<parallel>], iteration_bounds = array<i64: 2>, scalar_prefetch = 0 : i64, scratch_operands = 0 : i64, tpu.core_type = #tpu.core_type<tc>, window_params = [{transform_indices = @transform_0, window_bounds = array<i64: 1, 64, 16>}, {pipeline_mode = #tpu.pipeline_mode<synchronous>, transform_indices = @transform_1, window_bounds = array<i64: 8, 8>}, {transform_indices = @transform_2, window_bounds = array<i64: 1, 128, 4>}, {transform_indices = @transform_3, window_bounds = array<i64: 1, 128, 4>}]} {
    %c0 = arith.constant 0 : index
    %c0_0 = arith.constant 0 : index
    %c0_1 = arith.constant 0 : index
    %0 = vector.load %arg1[%c0, %c0_0, %c0_1] : memref<1x64x16xbf16, #tpu.memory_space<vmem>>, vector<1x64x16xbf16>
    %1 = vector.shape_cast %0 : vector<1x64x16xbf16> to vector<64x16xbf16>
    %2 = vector.extract_strided_slice %1 {offsets = [0, 0], sizes = [64, 8], strides = [1, 1]} : vector<64x16xbf16> to vector<64x8xbf16>
    %3 = vector.extract_strided_slice %1 {offsets = [0, 8], sizes = [64, 8], strides = [1, 1]} : vector<64x16xbf16> to vector<64x8xbf16>
    %4 = tpu.concatenate %2, %3 in 0 : vector<64x8xbf16>, vector<64x8xbf16> -> vector<128x8xbf16>
    %c0_2 = arith.constant 0 : index
    %c0_3 = arith.constant 0 : index
    %5 = vector.load %arg2[%c0_2, %c0_3] : memref<8x8xbf16, #tpu.memory_space<vmem>>, vector<8x8xbf16>
    %cst = arith.constant dense<0.000000e+00> : vector<128x8xf32>
    %6 = tpu.matmul %4, %5, %cst {dimension_numbers = #tpu.dot_dimension_numbers<[1], [0], [0], [1], [0, 0, 1, 1], [], []>} : vector<128x8xbf16>, vector<8x8xbf16>, vector<128x8xf32> -> vector<128x8xf32>
    %7 = vector.extract_strided_slice %6 {offsets = [0, 0], sizes = [128, 4], strides = [1, 1]} : vector<128x8xf32> to vector<128x4xf32>
    %8 = arith.truncf %7 : vector<128x4xf32> to vector<128x4xbf16>
    %c0_4 = arith.constant 0 : index
    %c0_5 = arith.constant 0 : index
    %c0_6 = arith.constant 0 : index
    %9 = vector.load %arg3[%c0_4, %c0_5, %c0_6] : memref<1x128x4xbf16, #tpu.memory_space<vmem>>, vector<1x128x4xbf16>
    %10 = vector.shape_cast %9 : vector<1x128x4xbf16> to vector<128x4xbf16>
    %11 = vector.shape_cast %8 : vector<128x4xbf16> to vector<1x128x4xbf16>
    tpu.vector_store %arg3[%c0_4, %c0_5, %c0_6], %11 {strides = array<i32>} : memref<1x128x4xbf16, #tpu.memory_space<vmem>>, vector<1x128x4xbf16>,
    %12 = vector.extract_strided_slice %6 {offsets = [0, 4], sizes = [128, 4], strides = [1, 1]} : vector<128x8xf32> to vector<128x4xf32>
    %13 = arith.truncf %12 : vector<128x4xf32> to vector<128x4xbf16>
    %c0_7 = arith.constant 0 : index
    %c0_8 = arith.constant 0 : index
    %c0_9 = arith.constant 0 : index
    %14 = vector.load %arg4[%c0_7, %c0_8, %c0_9] : memref<1x128x4xbf16, #tpu.memory_space<vmem>>, vector<1x128x4xbf16>
    %15 = vector.shape_cast %14 : vector<1x128x4xbf16> to vector<128x4xbf16>
    %16 = vector.shape_cast %13 : vector<128x4xbf16> to vector<1x128x4xbf16>
    tpu.vector_store %arg4[%c0_7, %c0_8, %c0_9], %16 {strides = array<i32>} : memref<1x128x4xbf16, #tpu.memory_space<vmem>>, vector<1x128x4xbf16>,
    return
  }
  func.func @transform_0(%arg0: i32) -> (i32, i32, i32) {
    %c0_i32 = arith.constant 0 : i32
    %c0_i32_0 = arith.constant 0 : i32
    %c0_i32_1 = arith.constant 0 : i32
    return %arg0, %c0_i32, %c0_i32_0 : i32, i32, i32
  }
  func.func @transform_1(%arg0: i32) -> (i32, i32) {
    %c0_i32 = arith.constant 0 : i32
    %c0_i32_0 = arith.constant 0 : i32
    %c0_i32_1 = arith.constant 0 : i32
    return %c0_i32, %c0_i32_0 : i32, i32
  }
  func.func @transform_2(%arg0: i32) -> (i32, i32, i32) {
    %c0_i32 = arith.constant 0 : i32
    %c0_i32_0 = arith.constant 0 : i32
    %c0_i32_1 = arith.constant 0 : i32
    return %arg0, %c0_i32, %c0_i32_0 : i32, i32, i32
  }
  func.func @transform_3(%arg0: i32) -> (i32, i32, i32) {
    %c0_i32 = arith.constant 0 : i32
    %c0_i32_0 = arith.constant 0 : i32
    %c0_i32_1 = arith.constant 0 : i32
    return %arg0, %c0_i32, %c0_i32_0 : i32, i32, i32
  }
}

module attributes {stable_mosaic.version = 11 : i64} {
  func.func @kernel(%arg0: i32, %arg1: memref<1x32x8xbf16, #tpu.memory_space<vmem>>, %arg2: memref<4x4xbf16, #tpu.memory_space<vmem>>, %arg3: memref<1x64x2xbf16, #tpu.memory_space<vmem>>, %arg4: memref<1x64x2xbf16, #tpu.memory_space<vmem>>) attributes {dimension_semantics = [#tpu.dimension_semantics<parallel>], iteration_bounds = array<i64: 2>, scalar_prefetch = 0 : i64, scratch_operands = 0 : i64, tpu.core_type = #tpu.core_type<tc>, window_params = [{transform_indices = @transform_0, window_bounds = array<i64: 1, 32, 8>}, {pipeline_mode = #tpu.pipeline_mode<synchronous>, transform_indices = @transform_1, window_bounds = array<i64: 4, 4>}, {transform_indices = @transform_2, window_bounds = array<i64: 1, 64, 2>}, {transform_indices = @transform_3, window_bounds = array<i64: 1, 64, 2>}]} {
    %c0 = arith.constant 0 : index
    %c0_0 = arith.constant 0 : index
    %c0_1 = arith.constant 0 : index
    %0 = vector.load %arg1[%c0, %c0_0, %c0_1] : memref<1x32x8xbf16, #tpu.memory_space<vmem>>, vector<1x32x8xbf16>
    %1 = vector.shape_cast %0 : vector<1x32x8xbf16> to vector<32x8xbf16>
    %2 = vector.extract_strided_slice %1 {offsets = [0, 0], sizes = [32, 4], strides = [1, 1]} : vector<32x8xbf16> to vector<32x4xbf16>
    %3 = vector.extract_strided_slice %1 {offsets = [0, 4], sizes = [32, 4], strides = [1, 1]} : vector<32x8xbf16> to vector<32x4xbf16>
    %4 = tpu.concatenate %2, %3 in 0 : vector<32x4xbf16>, vector<32x4xbf16> -> vector<64x4xbf16>
    %c0_2 = arith.constant 0 : index
    %c0_3 = arith.constant 0 : index
    %5 = vector.load %arg2[%c0_2, %c0_3] : memref<4x4xbf16, #tpu.memory_space<vmem>>, vector<4x4xbf16>
    %cst = arith.constant dense<0.000000e+00> : vector<64x4xf32>
    %6 = tpu.matmul %4, %5, %cst {dimension_numbers = #tpu.dot_dimension_numbers<[1], [0], [0], [1], [0, 0, 1, 1], [], []>} : vector<64x4xbf16>, vector<4x4xbf16>, vector<64x4xf32> -> vector<64x4xf32>
    %7 = vector.extract_strided_slice %6 {offsets = [0, 0], sizes = [64, 2], strides = [1, 1]} : vector<64x4xf32> to vector<64x2xf32>
    %8 = arith.truncf %7 : vector<64x2xf32> to vector<64x2xbf16>
    %c0_4 = arith.constant 0 : index
    %c0_5 = arith.constant 0 : index
    %c0_6 = arith.constant 0 : index
    %9 = vector.load %arg3[%c0_4, %c0_5, %c0_6] : memref<1x64x2xbf16, #tpu.memory_space<vmem>>, vector<1x64x2xbf16>
    %10 = vector.shape_cast %9 : vector<1x64x2xbf16> to vector<64x2xbf16>
    %11 = vector.shape_cast %8 : vector<64x2xbf16> to vector<1x64x2xbf16>
    tpu.vector_store %arg3[%c0_4, %c0_5, %c0_6], %11 {strides = array<i32>} : memref<1x64x2xbf16, #tpu.memory_space<vmem>>, vector<1x64x2xbf16>,
    %12 = vector.extract_strided_slice %6 {offsets = [0, 2], sizes = [64, 2], strides = [1, 1]} : vector<64x4xf32> to vector<64x2xf32>
    %13 = arith.truncf %12 : vector<64x2xf32> to vector<64x2xbf16>
    %c0_7 = arith.constant 0 : index
    %c0_8 = arith.constant 0 : index
    %c0_9 = arith.constant 0 : index
    %14 = vector.load %arg4[%c0_7, %c0_8, %c0_9] : memref<1x64x2xbf16, #tpu.memory_space<vmem>>, vector<1x64x2xbf16>
    %15 = vector.shape_cast %14 : vector<1x64x2xbf16> to vector<64x2xbf16>
    %16 = vector.shape_cast %13 : vector<64x2xbf16> to vector<1x64x2xbf16>
    tpu.vector_store %arg4[%c0_7, %c0_8, %c0_9], %16 {strides = array<i32>} : memref<1x64x2xbf16, #tpu.memory_space<vmem>>, vector<1x64x2xbf16>,
    return
  }
  func.func @transform_0(%arg0: i32) -> (i32, i32, i32) {
    %c0_i32 = arith.constant 0 : i32
    %c0_i32_0 = arith.constant 0 : i32
    %c0_i32_1 = arith.constant 0 : i32
    return %arg0, %c0_i32, %c0_i32_0 : i32, i32, i32
  }
  func.func @transform_1(%arg0: i32) -> (i32, i32) {
    %c0_i32 = arith.constant 0 : i32
    %c0_i32_0 = arith.constant 0 : i32
    %c0_i32_1 = arith.constant 0 : i32
    return %c0_i32, %c0_i32_0 : i32, i32
  }
  func.func @transform_2(%arg0: i32) -> (i32, i32, i32) {
    %c0_i32 = arith.constant 0 : i32
    %c0_i32_0 = arith.constant 0 : i32
    %c0_i32_1 = arith.constant 0 : i32
    return %arg0, %c0_i32, %c0_i32_0 : i32, i32, i32
  }
  func.func @transform_3(%arg0: i32) -> (i32, i32, i32) {
    %c0_i32 = arith.constant 0 : i32
    %c0_i32_0 = arith.constant 0 : i32
    %c0_i32_1 = arith.constant 0 : i32
    return %arg0, %c0_i32, %c0_i32_0 : i32, i32, i32
  }
}

module attributes {stable_mosaic.version = 11 : i64} {
  func.func @kernel(%arg0: i32, %arg1: memref<1x32x16xbf16, #tpu.memory_space<vmem>>, %arg2: memref<1x32x16xbf16, #tpu.memory_space<vmem>>, %arg3: memref<16x64xbf16, #tpu.memory_space<vmem>>, %arg4: memref<16x1xf32, #tpu.memory_space<vmem>>, %arg5: memref<16x144xbf16, #tpu.memory_space<vmem>>, %arg6: memref<16x144xbf16, #tpu.memory_space<vmem>>, %arg7: memref<16x144xbf16, #tpu.memory_space<vmem>>, %arg8: memref<1x16x16xbf16, #tpu.memory_space<vmem>>, %arg9: memref<16x26xbf16, #tpu.memory_space<vmem>>) attributes {dimension_semantics = [#tpu.dimension_semantics<parallel>], iteration_bounds = array<i64: 2>, scalar_prefetch = 0 : i64, scratch_operands = 1 : i64, tpu.core_type = #tpu.core_type<tc>, window_params = [{transform_indices = @transform_0, window_bounds = array<i64: 1, 32, 16>}, {transform_indices = @transform_1, window_bounds = array<i64: 1, 32, 16>}, {pipeline_mode = #tpu.pipeline_mode<synchronous>, transform_indices = @transform_2, window_bounds = array<i64: 16, 64>}, {pipeline_mode = #tpu.pipeline_mode<synchronous>, transform_indices = @transform_3, window_bounds = array<i64: 16, 1>}, {pipeline_mode = #tpu.pipeline_mode<synchronous>, transform_indices = @transform_4, window_bounds = array<i64: 16, 144>}, {pipeline_mode = #tpu.pipeline_mode<synchronous>, transform_indices = @transform_5, window_bounds = array<i64: 16, 144>}, {pipeline_mode = #tpu.pipeline_mode<synchronous>, transform_indices = @transform_6, window_bounds = array<i64: 16, 144>}, {transform_indices = @transform_7, window_bounds = array<i64: 1, 16, 16>}]} {
    %c0_i32 = arith.constant 0 : i32
    %0 = arith.cmpi eq, %arg0, %c0_i32 : i32
    %1 = arith.extui %0 : i1 to i32
    %c0_i32_0 = arith.constant 0 : i32
    %2 = arith.cmpi ne, %1, %c0_i32_0 : i32
    scf.if %2 {
      %cst_115 = arith.constant 0.000000e+00 : bf16
      %206 = vector.broadcast %cst_115 : bf16 to vector<16x5xbf16>
      %c0_116 = arith.constant 0 : index
      %c0_117 = arith.constant 0 : index
      %207 = vector.load %arg9[%c0_116, %c0_117] : memref<16x26xbf16, #tpu.memory_space<vmem>>, vector<16x5xbf16>
      tpu.vector_store %arg9[%c0_116, %c0_117], %206 {strides = array<i32>} : memref<16x26xbf16, #tpu.memory_space<vmem>>, vector<16x5xbf16>,
      %cst_118 = arith.constant 0.000000e+00 : bf16
      %208 = vector.broadcast %cst_118 : bf16 to vector<16x5xbf16>
      %c0_119 = arith.constant 0 : index
      %c21 = arith.constant 21 : index
      %209 = vector.load %arg9[%c0_119, %c21] : memref<16x26xbf16, #tpu.memory_space<vmem>>, vector<16x5xbf16>
      tpu.vector_store %arg9[%c0_119, %c21], %208 {strides = array<i32>} : memref<16x26xbf16, #tpu.memory_space<vmem>>, vector<16x5xbf16>,
    } else {
    }
    %3 = tpu.iota {dimensions = array<i32: 1>} : vector<1x16xi32>
    %c4_i32 = arith.constant 4 : i32
    %c0_i32_1 = arith.constant 0 : i32
    %4 = arith.cmpi eq, %c4_i32, %c0_i32_1 : i32
    %c1_i32 = arith.constant 1 : i32
    %5 = arith.select %4, %c1_i32, %c4_i32 : i32
    %6 = vector.broadcast %5 : i32 to vector<1x16xi32>
    %7 = arith.remsi %3, %6 : vector<1x16xi32>
    %c0_i32_2 = arith.constant 0 : i32
    %8 = vector.broadcast %c0_i32_2 : i32 to vector<1x16xi32>
    %9 = arith.cmpi ne, %7, %8 : vector<1x16xi32>
    %c0_i32_3 = arith.constant 0 : i32
    %10 = vector.broadcast %c0_i32_3 : i32 to vector<1x16xi32>
    %11 = arith.cmpi slt, %7, %10 : vector<1x16xi32>
    %c0_i32_4 = arith.constant 0 : i32
    %12 = arith.cmpi slt, %5, %c0_i32_4 : i32
    %13 = vector.broadcast %12 : i1 to vector<1x16xi1>
    %14 = vector.broadcast %13 : vector<1x16xi1> to vector<1x16xi1>
    %15 = arith.xori %11, %14 : vector<1x16xi1>
    %16 = arith.andi %15, %9 : vector<1x16xi1>
    %17 = vector.broadcast %5 : i32 to vector<1x16xi32>
    %18 = arith.addi %7, %17 : vector<1x16xi32>
    %19 = arith.select %16, %18, %7 : vector<1x16xi1>, vector<1x16xi32>
    %c0_i32_5 = arith.constant 0 : i32
    %20 = vector.broadcast %c0_i32_5 : i32 to vector<1x16xi32>
    %21 = arith.cmpi sgt, %19, %20 : vector<1x16xi32>
    %c3_i32 = arith.constant 3 : i32
    %22 = vector.broadcast %c3_i32 : i32 to vector<1x16xi32>
    %23 = arith.cmpi slt, %19, %22 : vector<1x16xi32>
    %c0 = arith.constant 0 : index
    %c0_6 = arith.constant 0 : index
    %c0_7 = arith.constant 0 : index
    %24 = vector.load %arg1[%c0, %c0_6, %c0_7] : memref<1x32x16xbf16, #tpu.memory_space<vmem>>, vector<1x32x16xbf16>
    %25 = vector.shape_cast %24 : vector<1x32x16xbf16> to vector<32x16xbf16>
    %c0_8 = arith.constant 0 : index
    %c0_9 = arith.constant 0 : index
    %c0_10 = arith.constant 0 : index
    %26 = vector.load %arg2[%c0_8, %c0_9, %c0_10] : memref<1x32x16xbf16, #tpu.memory_space<vmem>>, vector<1x32x16xbf16>
    %27 = vector.shape_cast %26 : vector<1x32x16xbf16> to vector<32x16xbf16>
    %28 = tpu.concatenate %25, %27 in 0 : vector<32x16xbf16>, vector<32x16xbf16> -> vector<64x16xbf16>
    %c0_11 = arith.constant 0 : index
    %c0_12 = arith.constant 0 : index
    %29 = vector.load %arg3[%c0_11, %c0_12] : memref<16x64xbf16, #tpu.memory_space<vmem>>, vector<16x64xbf16>
    %cst = arith.constant dense<0.000000e+00> : vector<16x16xf32>
    %30 = tpu.matmul %29, %28, %cst {dimension_numbers = #tpu.dot_dimension_numbers<[1], [0], [0], [1], [0, 0, 1, 1], [], []>} : vector<16x64xbf16>, vector<64x16xbf16>, vector<16x16xf32> -> vector<16x16xf32>
    %c0_13 = arith.constant 0 : index
    %c0_14 = arith.constant 0 : index
    %31 = vector.load %arg4[%c0_13, %c0_14] : memref<16x1xf32, #tpu.memory_space<vmem>>, vector<16x1xf32>
    %32 = vector.broadcast %31 : vector<16x1xf32> to vector<16x16xf32>
    %33 = arith.addf %30, %32 : vector<16x16xf32>
    %c0_15 = arith.constant 0 : index
    %c0_16 = arith.constant 0 : index
    %34 = vector.load %arg5[%c0_15, %c0_16] : memref<16x144xbf16, #tpu.memory_space<vmem>>, vector<16x144xbf16>
    %35 = arith.truncf %33 : vector<16x16xf32> to vector<16x16xbf16>
    %c0_17 = arith.constant 0 : index
    %c5 = arith.constant 5 : index
    %36 = vector.load %arg9[%c0_17, %c5] : memref<16x26xbf16, #tpu.memory_space<vmem>>, vector<16x16xbf16>
    tpu.vector_store %arg9[%c0_17, %c5], %35 {strides = array<i32>} : memref<16x26xbf16, #tpu.memory_space<vmem>>, vector<16x16xbf16>,
    %c0_18 = arith.constant 0 : index
    %c0_19 = arith.constant 0 : index
    %37 = vector.load %arg9[%c0_18, %c0_19] : memref<16x26xbf16, #tpu.memory_space<vmem>>, vector<16x16xbf16>
    %cst_20 = arith.constant 0.000000e+00 : bf16
    %38 = vector.broadcast %cst_20 : bf16 to vector<16x16xbf16>
    %39 = vector.shape_cast %21 : vector<1x16xi1> to vector<1x16xi1>
    %40 = vector.broadcast %39 : vector<1x16xi1> to vector<16x16xi1>
    %41 = arith.select %40, %37, %38 : vector<16x16xi1>, vector<16x16xbf16>
    %c0_21 = arith.constant 0 : index
    %c1 = arith.constant 1 : index
    %42 = vector.load %arg9[%c0_21, %c1] : memref<16x26xbf16, #tpu.memory_space<vmem>>, vector<16x16xbf16>
    %c0_22 = arith.constant 0 : index
    %c2 = arith.constant 2 : index
    %43 = vector.load %arg9[%c0_22, %c2] : memref<16x26xbf16, #tpu.memory_space<vmem>>, vector<16x16xbf16>
    %cst_23 = arith.constant 0.000000e+00 : bf16
    %44 = vector.broadcast %cst_23 : bf16 to vector<16x16xbf16>
    %45 = vector.shape_cast %23 : vector<1x16xi1> to vector<1x16xi1>
    %46 = vector.broadcast %45 : vector<1x16xi1> to vector<16x16xi1>
    %47 = arith.select %46, %43, %44 : vector<16x16xi1>, vector<16x16xbf16>
    %c0_24 = arith.constant 0 : index
    %c4 = arith.constant 4 : index
    %48 = vector.load %arg9[%c0_24, %c4] : memref<16x26xbf16, #tpu.memory_space<vmem>>, vector<16x16xbf16>
    %cst_25 = arith.constant 0.000000e+00 : bf16
    %49 = vector.broadcast %cst_25 : bf16 to vector<16x16xbf16>
    %50 = vector.shape_cast %21 : vector<1x16xi1> to vector<1x16xi1>
    %51 = vector.broadcast %50 : vector<1x16xi1> to vector<16x16xi1>
    %52 = arith.select %51, %48, %49 : vector<16x16xi1>, vector<16x16xbf16>
    %c0_26 = arith.constant 0 : index
    %c5_27 = arith.constant 5 : index
    %53 = vector.load %arg9[%c0_26, %c5_27] : memref<16x26xbf16, #tpu.memory_space<vmem>>, vector<16x16xbf16>
    %c0_28 = arith.constant 0 : index
    %c6 = arith.constant 6 : index
    %54 = vector.load %arg9[%c0_28, %c6] : memref<16x26xbf16, #tpu.memory_space<vmem>>, vector<16x16xbf16>
    %cst_29 = arith.constant 0.000000e+00 : bf16
    %55 = vector.broadcast %cst_29 : bf16 to vector<16x16xbf16>
    %56 = vector.shape_cast %23 : vector<1x16xi1> to vector<1x16xi1>
    %57 = vector.broadcast %56 : vector<1x16xi1> to vector<16x16xi1>
    %58 = arith.select %57, %54, %55 : vector<16x16xi1>, vector<16x16xbf16>
    %c0_30 = arith.constant 0 : index
    %c8 = arith.constant 8 : index
    %59 = vector.load %arg9[%c0_30, %c8] : memref<16x26xbf16, #tpu.memory_space<vmem>>, vector<16x16xbf16>
    %cst_31 = arith.constant 0.000000e+00 : bf16
    %60 = vector.broadcast %cst_31 : bf16 to vector<16x16xbf16>
    %61 = vector.shape_cast %21 : vector<1x16xi1> to vector<1x16xi1>
    %62 = vector.broadcast %61 : vector<1x16xi1> to vector<16x16xi1>
    %63 = arith.select %62, %59, %60 : vector<16x16xi1>, vector<16x16xbf16>
    %c0_32 = arith.constant 0 : index
    %c9 = arith.constant 9 : index
    %64 = vector.load %arg9[%c0_32, %c9] : memref<16x26xbf16, #tpu.memory_space<vmem>>, vector<16x16xbf16>
    %c0_33 = arith.constant 0 : index
    %c10 = arith.constant 10 : index
    %65 = vector.load %arg9[%c0_33, %c10] : memref<16x26xbf16, #tpu.memory_space<vmem>>, vector<16x16xbf16>
    %cst_34 = arith.constant 0.000000e+00 : bf16
    %66 = vector.broadcast %cst_34 : bf16 to vector<16x16xbf16>
    %67 = vector.shape_cast %23 : vector<1x16xi1> to vector<1x16xi1>
    %68 = vector.broadcast %67 : vector<1x16xi1> to vector<16x16xi1>
    %69 = arith.select %68, %65, %66 : vector<16x16xi1>, vector<16x16xbf16>
    %70 = tpu.concatenate %41, %42, %47, %52, %53, %58, %63, %64, %69 in 0 : vector<16x16xbf16>, vector<16x16xbf16>, vector<16x16xbf16>, vector<16x16xbf16>, vector<16x16xbf16>, vector<16x16xbf16>, vector<16x16xbf16>, vector<16x16xbf16>, vector<16x16xbf16> -> vector<144x16xbf16>
    %cst_35 = arith.constant dense<0.000000e+00> : vector<16x16xf32>
    %71 = tpu.matmul %34, %70, %cst_35 {dimension_numbers = #tpu.dot_dimension_numbers<[1], [0], [0], [1], [0, 0, 1, 1], [], []>} : vector<16x144xbf16>, vector<144x16xbf16>, vector<16x16xf32> -> vector<16x16xf32>
    %cst_36 = arith.constant dense<0.000000e+00> : vector<16xf32>
    %72 = vector.multi_reduction <add>, %71, %cst_36 [1] : vector<16x16xf32> to vector<16xf32>
    %73 = vector.shape_cast %72 : vector<16xf32> to vector<16x1xf32>
    %cst_37 = arith.constant 1.600000e+01 : f32
    %74 = vector.broadcast %cst_37 : f32 to vector<16x1xf32>
    %75 = arith.divf %73, %74 : vector<16x1xf32>
    %76 = vector.broadcast %75 : vector<16x1xf32> to vector<16x16xf32>
    %77 = arith.subf %71, %76 : vector<16x16xf32>
    %78 = arith.mulf %77, %77 : vector<16x16xf32>
    %cst_38 = arith.constant dense<0.000000e+00> : vector<16xf32>
    %79 = vector.multi_reduction <add>, %78, %cst_38 [1] : vector<16x16xf32> to vector<16xf32>
    %80 = vector.shape_cast %79 : vector<16xf32> to vector<16x1xf32>
    %cst_39 = arith.constant 1.600000e+01 : f32
    %81 = vector.broadcast %cst_39 : f32 to vector<16x1xf32>
    %82 = arith.divf %80, %81 : vector<16x1xf32>
    %cst_40 = arith.constant 9.99999974E-6 : f32
    %83 = vector.broadcast %cst_40 : f32 to vector<16x1xf32>
    %84 = arith.addf %82, %83 : vector<16x1xf32>
    %85 = math.rsqrt %84 : vector<16x1xf32>
    %86 = vector.broadcast %85 : vector<16x1xf32> to vector<16x16xf32>
    %87 = arith.mulf %77, %86 : vector<16x16xf32>
    %cst_41 = arith.constant 0.000000e+00 : f32
    %88 = vector.broadcast %cst_41 : f32 to vector<16x16xf32>
    %89 = arith.maximumf %87, %88 : vector<16x16xf32>
    %c0_42 = arith.constant 0 : index
    %c0_43 = arith.constant 0 : index
    %90 = vector.load %arg6[%c0_42, %c0_43] : memref<16x144xbf16, #tpu.memory_space<vmem>>, vector<16x144xbf16>
    %91 = arith.truncf %89 : vector<16x16xf32> to vector<16x16xbf16>
    %c0_44 = arith.constant 0 : index
    %c5_45 = arith.constant 5 : index
    %92 = vector.load %arg9[%c0_44, %c5_45] : memref<16x26xbf16, #tpu.memory_space<vmem>>, vector<16x16xbf16>
    tpu.vector_store %arg9[%c0_44, %c5_45], %91 {strides = array<i32>} : memref<16x26xbf16, #tpu.memory_space<vmem>>, vector<16x16xbf16>,
    %c0_46 = arith.constant 0 : index
    %c0_47 = arith.constant 0 : index
    %93 = vector.load %arg9[%c0_46, %c0_47] : memref<16x26xbf16, #tpu.memory_space<vmem>>, vector<16x16xbf16>
    %cst_48 = arith.constant 0.000000e+00 : bf16
    %94 = vector.broadcast %cst_48 : bf16 to vector<16x16xbf16>
    %95 = vector.shape_cast %21 : vector<1x16xi1> to vector<1x16xi1>
    %96 = vector.broadcast %95 : vector<1x16xi1> to vector<16x16xi1>
    %97 = arith.select %96, %93, %94 : vector<16x16xi1>, vector<16x16xbf16>
    %c0_49 = arith.constant 0 : index
    %c1_50 = arith.constant 1 : index
    %98 = vector.load %arg9[%c0_49, %c1_50] : memref<16x26xbf16, #tpu.memory_space<vmem>>, vector<16x16xbf16>
    %c0_51 = arith.constant 0 : index
    %c2_52 = arith.constant 2 : index
    %99 = vector.load %arg9[%c0_51, %c2_52] : memref<16x26xbf16, #tpu.memory_space<vmem>>, vector<16x16xbf16>
    %cst_53 = arith.constant 0.000000e+00 : bf16
    %100 = vector.broadcast %cst_53 : bf16 to vector<16x16xbf16>
    %101 = vector.shape_cast %23 : vector<1x16xi1> to vector<1x16xi1>
    %102 = vector.broadcast %101 : vector<1x16xi1> to vector<16x16xi1>
    %103 = arith.select %102, %99, %100 : vector<16x16xi1>, vector<16x16xbf16>
    %c0_54 = arith.constant 0 : index
    %c4_55 = arith.constant 4 : index
    %104 = vector.load %arg9[%c0_54, %c4_55] : memref<16x26xbf16, #tpu.memory_space<vmem>>, vector<16x16xbf16>
    %cst_56 = arith.constant 0.000000e+00 : bf16
    %105 = vector.broadcast %cst_56 : bf16 to vector<16x16xbf16>
    %106 = vector.shape_cast %21 : vector<1x16xi1> to vector<1x16xi1>
    %107 = vector.broadcast %106 : vector<1x16xi1> to vector<16x16xi1>
    %108 = arith.select %107, %104, %105 : vector<16x16xi1>, vector<16x16xbf16>
    %c0_57 = arith.constant 0 : index
    %c5_58 = arith.constant 5 : index
    %109 = vector.load %arg9[%c0_57, %c5_58] : memref<16x26xbf16, #tpu.memory_space<vmem>>, vector<16x16xbf16>
    %c0_59 = arith.constant 0 : index
    %c6_60 = arith.constant 6 : index
    %110 = vector.load %arg9[%c0_59, %c6_60] : memref<16x26xbf16, #tpu.memory_space<vmem>>, vector<16x16xbf16>
    %cst_61 = arith.constant 0.000000e+00 : bf16
    %111 = vector.broadcast %cst_61 : bf16 to vector<16x16xbf16>
    %112 = vector.shape_cast %23 : vector<1x16xi1> to vector<1x16xi1>
    %113 = vector.broadcast %112 : vector<1x16xi1> to vector<16x16xi1>
    %114 = arith.select %113, %110, %111 : vector<16x16xi1>, vector<16x16xbf16>
    %c0_62 = arith.constant 0 : index
    %c8_63 = arith.constant 8 : index
    %115 = vector.load %arg9[%c0_62, %c8_63] : memref<16x26xbf16, #tpu.memory_space<vmem>>, vector<16x16xbf16>
    %cst_64 = arith.constant 0.000000e+00 : bf16
    %116 = vector.broadcast %cst_64 : bf16 to vector<16x16xbf16>
    %117 = vector.shape_cast %21 : vector<1x16xi1> to vector<1x16xi1>
    %118 = vector.broadcast %117 : vector<1x16xi1> to vector<16x16xi1>
    %119 = arith.select %118, %115, %116 : vector<16x16xi1>, vector<16x16xbf16>
    %c0_65 = arith.constant 0 : index
    %c9_66 = arith.constant 9 : index
    %120 = vector.load %arg9[%c0_65, %c9_66] : memref<16x26xbf16, #tpu.memory_space<vmem>>, vector<16x16xbf16>
    %c0_67 = arith.constant 0 : index
    %c10_68 = arith.constant 10 : index
    %121 = vector.load %arg9[%c0_67, %c10_68] : memref<16x26xbf16, #tpu.memory_space<vmem>>, vector<16x16xbf16>
    %cst_69 = arith.constant 0.000000e+00 : bf16
    %122 = vector.broadcast %cst_69 : bf16 to vector<16x16xbf16>
    %123 = vector.shape_cast %23 : vector<1x16xi1> to vector<1x16xi1>
    %124 = vector.broadcast %123 : vector<1x16xi1> to vector<16x16xi1>
    %125 = arith.select %124, %121, %122 : vector<16x16xi1>, vector<16x16xbf16>
    %126 = tpu.concatenate %97, %98, %103, %108, %109, %114, %119, %120, %125 in 0 : vector<16x16xbf16>, vector<16x16xbf16>, vector<16x16xbf16>, vector<16x16xbf16>, vector<16x16xbf16>, vector<16x16xbf16>, vector<16x16xbf16>, vector<16x16xbf16>, vector<16x16xbf16> -> vector<144x16xbf16>
    %cst_70 = arith.constant dense<0.000000e+00> : vector<16x16xf32>
    %127 = tpu.matmul %90, %126, %cst_70 {dimension_numbers = #tpu.dot_dimension_numbers<[1], [0], [0], [1], [0, 0, 1, 1], [], []>} : vector<16x144xbf16>, vector<144x16xbf16>, vector<16x16xf32> -> vector<16x16xf32>
    %cst_71 = arith.constant dense<0.000000e+00> : vector<16xf32>
    %128 = vector.multi_reduction <add>, %127, %cst_71 [1] : vector<16x16xf32> to vector<16xf32>
    %129 = vector.shape_cast %128 : vector<16xf32> to vector<16x1xf32>
    %cst_72 = arith.constant 1.600000e+01 : f32
    %130 = vector.broadcast %cst_72 : f32 to vector<16x1xf32>
    %131 = arith.divf %129, %130 : vector<16x1xf32>
    %132 = vector.broadcast %131 : vector<16x1xf32> to vector<16x16xf32>
    %133 = arith.subf %127, %132 : vector<16x16xf32>
    %134 = arith.mulf %133, %133 : vector<16x16xf32>
    %cst_73 = arith.constant dense<0.000000e+00> : vector<16xf32>
    %135 = vector.multi_reduction <add>, %134, %cst_73 [1] : vector<16x16xf32> to vector<16xf32>
    %136 = vector.shape_cast %135 : vector<16xf32> to vector<16x1xf32>
    %cst_74 = arith.constant 1.600000e+01 : f32
    %137 = vector.broadcast %cst_74 : f32 to vector<16x1xf32>
    %138 = arith.divf %136, %137 : vector<16x1xf32>
    %cst_75 = arith.constant 9.99999974E-6 : f32
    %139 = vector.broadcast %cst_75 : f32 to vector<16x1xf32>
    %140 = arith.addf %138, %139 : vector<16x1xf32>
    %141 = math.rsqrt %140 : vector<16x1xf32>
    %142 = vector.broadcast %141 : vector<16x1xf32> to vector<16x16xf32>
    %143 = arith.mulf %133, %142 : vector<16x16xf32>
    %cst_76 = arith.constant 0.000000e+00 : f32
    %144 = vector.broadcast %cst_76 : f32 to vector<16x16xf32>
    %145 = arith.maximumf %143, %144 : vector<16x16xf32>
    %c0_77 = arith.constant 0 : index
    %c0_78 = arith.constant 0 : index
    %146 = vector.load %arg7[%c0_77, %c0_78] : memref<16x144xbf16, #tpu.memory_space<vmem>>, vector<16x144xbf16>
    %147 = arith.truncf %145 : vector<16x16xf32> to vector<16x16xbf16>
    %c0_79 = arith.constant 0 : index
    %c5_80 = arith.constant 5 : index
    %148 = vector.load %arg9[%c0_79, %c5_80] : memref<16x26xbf16, #tpu.memory_space<vmem>>, vector<16x16xbf16>
    tpu.vector_store %arg9[%c0_79, %c5_80], %147 {strides = array<i32>} : memref<16x26xbf16, #tpu.memory_space<vmem>>, vector<16x16xbf16>,
    %c0_81 = arith.constant 0 : index
    %c0_82 = arith.constant 0 : index
    %149 = vector.load %arg9[%c0_81, %c0_82] : memref<16x26xbf16, #tpu.memory_space<vmem>>, vector<16x16xbf16>
    %cst_83 = arith.constant 0.000000e+00 : bf16
    %150 = vector.broadcast %cst_83 : bf16 to vector<16x16xbf16>
    %151 = vector.shape_cast %21 : vector<1x16xi1> to vector<1x16xi1>
    %152 = vector.broadcast %151 : vector<1x16xi1> to vector<16x16xi1>
    %153 = arith.select %152, %149, %150 : vector<16x16xi1>, vector<16x16xbf16>
    %c0_84 = arith.constant 0 : index
    %c1_85 = arith.constant 1 : index
    %154 = vector.load %arg9[%c0_84, %c1_85] : memref<16x26xbf16, #tpu.memory_space<vmem>>, vector<16x16xbf16>
    %c0_86 = arith.constant 0 : index
    %c2_87 = arith.constant 2 : index
    %155 = vector.load %arg9[%c0_86, %c2_87] : memref<16x26xbf16, #tpu.memory_space<vmem>>, vector<16x16xbf16>
    %cst_88 = arith.constant 0.000000e+00 : bf16
    %156 = vector.broadcast %cst_88 : bf16 to vector<16x16xbf16>
    %157 = vector.shape_cast %23 : vector<1x16xi1> to vector<1x16xi1>
    %158 = vector.broadcast %157 : vector<1x16xi1> to vector<16x16xi1>
    %159 = arith.select %158, %155, %156 : vector<16x16xi1>, vector<16x16xbf16>
    %c0_89 = arith.constant 0 : index
    %c4_90 = arith.constant 4 : index
    %160 = vector.load %arg9[%c0_89, %c4_90] : memref<16x26xbf16, #tpu.memory_space<vmem>>, vector<16x16xbf16>
    %cst_91 = arith.constant 0.000000e+00 : bf16
    %161 = vector.broadcast %cst_91 : bf16 to vector<16x16xbf16>
    %162 = vector.shape_cast %21 : vector<1x16xi1> to vector<1x16xi1>
    %163 = vector.broadcast %162 : vector<1x16xi1> to vector<16x16xi1>
    %164 = arith.select %163, %160, %161 : vector<16x16xi1>, vector<16x16xbf16>
    %c0_92 = arith.constant 0 : index
    %c5_93 = arith.constant 5 : index
    %165 = vector.load %arg9[%c0_92, %c5_93] : memref<16x26xbf16, #tpu.memory_space<vmem>>, vector<16x16xbf16>
    %c0_94 = arith.constant 0 : index
    %c6_95 = arith.constant 6 : index
    %166 = vector.load %arg9[%c0_94, %c6_95] : memref<16x26xbf16, #tpu.memory_space<vmem>>, vector<16x16xbf16>
    %cst_96 = arith.constant 0.000000e+00 : bf16
    %167 = vector.broadcast %cst_96 : bf16 to vector<16x16xbf16>
    %168 = vector.shape_cast %23 : vector<1x16xi1> to vector<1x16xi1>
    %169 = vector.broadcast %168 : vector<1x16xi1> to vector<16x16xi1>
    %170 = arith.select %169, %166, %167 : vector<16x16xi1>, vector<16x16xbf16>
    %c0_97 = arith.constant 0 : index
    %c8_98 = arith.constant 8 : index
    %171 = vector.load %arg9[%c0_97, %c8_98] : memref<16x26xbf16, #tpu.memory_space<vmem>>, vector<16x16xbf16>
    %cst_99 = arith.constant 0.000000e+00 : bf16
    %172 = vector.broadcast %cst_99 : bf16 to vector<16x16xbf16>
    %173 = vector.shape_cast %21 : vector<1x16xi1> to vector<1x16xi1>
    %174 = vector.broadcast %173 : vector<1x16xi1> to vector<16x16xi1>
    %175 = arith.select %174, %171, %172 : vector<16x16xi1>, vector<16x16xbf16>
    %c0_100 = arith.constant 0 : index
    %c9_101 = arith.constant 9 : index
    %176 = vector.load %arg9[%c0_100, %c9_101] : memref<16x26xbf16, #tpu.memory_space<vmem>>, vector<16x16xbf16>
    %c0_102 = arith.constant 0 : index
    %c10_103 = arith.constant 10 : index
    %177 = vector.load %arg9[%c0_102, %c10_103] : memref<16x26xbf16, #tpu.memory_space<vmem>>, vector<16x16xbf16>
    %cst_104 = arith.constant 0.000000e+00 : bf16
    %178 = vector.broadcast %cst_104 : bf16 to vector<16x16xbf16>
    %179 = vector.shape_cast %23 : vector<1x16xi1> to vector<1x16xi1>
    %180 = vector.broadcast %179 : vector<1x16xi1> to vector<16x16xi1>
    %181 = arith.select %180, %177, %178 : vector<16x16xi1>, vector<16x16xbf16>
    %182 = tpu.concatenate %153, %154, %159, %164, %165, %170, %175, %176, %181 in 0 : vector<16x16xbf16>, vector<16x16xbf16>, vector<16x16xbf16>, vector<16x16xbf16>, vector<16x16xbf16>, vector<16x16xbf16>, vector<16x16xbf16>, vector<16x16xbf16>, vector<16x16xbf16> -> vector<144x16xbf16>
    %cst_105 = arith.constant dense<0.000000e+00> : vector<16x16xf32>
    %183 = tpu.matmul %146, %182, %cst_105 {dimension_numbers = #tpu.dot_dimension_numbers<[1], [0], [0], [1], [0, 0, 1, 1], [], []>} : vector<16x144xbf16>, vector<144x16xbf16>, vector<16x16xf32> -> vector<16x16xf32>
    %cst_106 = arith.constant dense<0.000000e+00> : vector<16xf32>
    %184 = vector.multi_reduction <add>, %183, %cst_106 [1] : vector<16x16xf32> to vector<16xf32>
    %185 = vector.shape_cast %184 : vector<16xf32> to vector<16x1xf32>
    %cst_107 = arith.constant 1.600000e+01 : f32
    %186 = vector.broadcast %cst_107 : f32 to vector<16x1xf32>
    %187 = arith.divf %185, %186 : vector<16x1xf32>
    %188 = vector.broadcast %187 : vector<16x1xf32> to vector<16x16xf32>
    %189 = arith.subf %183, %188 : vector<16x16xf32>
    %190 = arith.mulf %189, %189 : vector<16x16xf32>
    %cst_108 = arith.constant dense<0.000000e+00> : vector<16xf32>
    %191 = vector.multi_reduction <add>, %190, %cst_108 [1] : vector<16x16xf32> to vector<16xf32>
    %192 = vector.shape_cast %191 : vector<16xf32> to vector<16x1xf32>
    %cst_109 = arith.constant 1.600000e+01 : f32
    %193 = vector.broadcast %cst_109 : f32 to vector<16x1xf32>
    %194 = arith.divf %192, %193 : vector<16x1xf32>
    %cst_110 = arith.constant 9.99999974E-6 : f32
    %195 = vector.broadcast %cst_110 : f32 to vector<16x1xf32>
    %196 = arith.addf %194, %195 : vector<16x1xf32>
    %197 = math.rsqrt %196 : vector<16x1xf32>
    %198 = vector.broadcast %197 : vector<16x1xf32> to vector<16x16xf32>
    %199 = arith.mulf %189, %198 : vector<16x16xf32>
    %cst_111 = arith.constant 0.000000e+00 : f32
    %200 = vector.broadcast %cst_111 : f32 to vector<16x16xf32>
    %201 = arith.maximumf %199, %200 : vector<16x16xf32>
    %202 = arith.truncf %201 : vector<16x16xf32> to vector<16x16xbf16>
    %c0_112 = arith.constant 0 : index
    %c0_113 = arith.constant 0 : index
    %c0_114 = arith.constant 0 : index
    %203 = vector.load %arg8[%c0_112, %c0_113, %c0_114] : memref<1x16x16xbf16, #tpu.memory_space<vmem>>, vector<1x16x16xbf16>
    %204 = vector.shape_cast %203 : vector<1x16x16xbf16> to vector<16x16xbf16>
    %205 = vector.shape_cast %202 : vector<16x16xbf16> to vector<1x16x16xbf16>
    tpu.vector_store %arg8[%c0_112, %c0_113, %c0_114], %205 {strides = array<i32>} : memref<1x16x16xbf16, #tpu.memory_space<vmem>>, vector<1x16x16xbf16>,
    return
  }
  func.func @transform_0(%arg0: i32) -> (i32, i32, i32) {
    %c0_i32 = arith.constant 0 : i32
    %c0_i32_0 = arith.constant 0 : i32
    %c0_i32_1 = arith.constant 0 : i32
    return %arg0, %c0_i32, %c0_i32_0 : i32, i32, i32
  }
  func.func @transform_1(%arg0: i32) -> (i32, i32, i32) {
    %c0_i32 = arith.constant 0 : i32
    %c0_i32_0 = arith.constant 0 : i32
    %c0_i32_1 = arith.constant 0 : i32
    return %arg0, %c0_i32, %c0_i32_0 : i32, i32, i32
  }
  func.func @transform_2(%arg0: i32) -> (i32, i32) {
    %c0_i32 = arith.constant 0 : i32
    %c0_i32_0 = arith.constant 0 : i32
    %c0_i32_1 = arith.constant 0 : i32
    return %c0_i32, %c0_i32_0 : i32, i32
  }
  func.func @transform_3(%arg0: i32) -> (i32, i32) {
    %c0_i32 = arith.constant 0 : i32
    %c0_i32_0 = arith.constant 0 : i32
    %c0_i32_1 = arith.constant 0 : i32
    return %c0_i32, %c0_i32_0 : i32, i32
  }
  func.func @transform_4(%arg0: i32) -> (i32, i32) {
    %c0_i32 = arith.constant 0 : i32
    %c0_i32_0 = arith.constant 0 : i32
    %c0_i32_1 = arith.constant 0 : i32
    return %c0_i32, %c0_i32_0 : i32, i32
  }
  func.func @transform_5(%arg0: i32) -> (i32, i32) {
    %c0_i32 = arith.constant 0 : i32
    %c0_i32_0 = arith.constant 0 : i32
    %c0_i32_1 = arith.constant 0 : i32
    return %c0_i32, %c0_i32_0 : i32, i32
  }
  func.func @transform_6(%arg0: i32) -> (i32, i32) {
    %c0_i32 = arith.constant 0 : i32
    %c0_i32_0 = arith.constant 0 : i32
    %c0_i32_1 = arith.constant 0 : i32
    return %c0_i32, %c0_i32_0 : i32, i32
  }
  func.func @transform_7(%arg0: i32) -> (i32, i32, i32) {
    %c0_i32 = arith.constant 0 : i32
    %c0_i32_0 = arith.constant 0 : i32
    %c0_i32_1 = arith.constant 0 : i32
    return %arg0, %c0_i32, %c0_i32_0 : i32, i32, i32
  }
}

module attributes {stable_mosaic.version = 11 : i64} {
  func.func @kernel(%arg0: i32, %arg1: memref<1x32x4xbf16, #tpu.memory_space<vmem>>, %arg2: memref<1x32x4xbf16, #tpu.memory_space<vmem>>, %arg3: memref<16x64xbf16, #tpu.memory_space<vmem>>, %arg4: memref<16x1xf32, #tpu.memory_space<vmem>>, %arg5: memref<16x144xbf16, #tpu.memory_space<vmem>>, %arg6: memref<16x144xbf16, #tpu.memory_space<vmem>>, %arg7: memref<16x144xbf16, #tpu.memory_space<vmem>>, %arg8: memref<1x16x4xbf16, #tpu.memory_space<vmem>>, %arg9: memref<16x10xbf16, #tpu.memory_space<vmem>>) attributes {dimension_semantics = [#tpu.dimension_semantics<parallel>], iteration_bounds = array<i64: 2>, scalar_prefetch = 0 : i64, scratch_operands = 1 : i64, tpu.core_type = #tpu.core_type<tc>, window_params = [{transform_indices = @transform_0, window_bounds = array<i64: 1, 32, 4>}, {transform_indices = @transform_1, window_bounds = array<i64: 1, 32, 4>}, {pipeline_mode = #tpu.pipeline_mode<synchronous>, transform_indices = @transform_2, window_bounds = array<i64: 16, 64>}, {pipeline_mode = #tpu.pipeline_mode<synchronous>, transform_indices = @transform_3, window_bounds = array<i64: 16, 1>}, {pipeline_mode = #tpu.pipeline_mode<synchronous>, transform_indices = @transform_4, window_bounds = array<i64: 16, 144>}, {pipeline_mode = #tpu.pipeline_mode<synchronous>, transform_indices = @transform_5, window_bounds = array<i64: 16, 144>}, {pipeline_mode = #tpu.pipeline_mode<synchronous>, transform_indices = @transform_6, window_bounds = array<i64: 16, 144>}, {transform_indices = @transform_7, window_bounds = array<i64: 1, 16, 4>}]} {
    %c0_i32 = arith.constant 0 : i32
    %0 = arith.cmpi eq, %arg0, %c0_i32 : i32
    %1 = arith.extui %0 : i1 to i32
    %c0_i32_0 = arith.constant 0 : i32
    %2 = arith.cmpi ne, %1, %c0_i32_0 : i32
    scf.if %2 {
      %cst_118 = arith.constant 0.000000e+00 : bf16
      %206 = vector.broadcast %cst_118 : bf16 to vector<16x3xbf16>
      %c0_119 = arith.constant 0 : index
      %c0_120 = arith.constant 0 : index
      %207 = vector.load %arg9[%c0_119, %c0_120] : memref<16x10xbf16, #tpu.memory_space<vmem>>, vector<16x3xbf16>
      tpu.vector_store %arg9[%c0_119, %c0_120], %206 {strides = array<i32>} : memref<16x10xbf16, #tpu.memory_space<vmem>>, vector<16x3xbf16>,
      %cst_121 = arith.constant 0.000000e+00 : bf16
      %208 = vector.broadcast %cst_121 : bf16 to vector<16x3xbf16>
      %c0_122 = arith.constant 0 : index
      %c7 = arith.constant 7 : index
      %209 = vector.load %arg9[%c0_122, %c7] : memref<16x10xbf16, #tpu.memory_space<vmem>>, vector<16x3xbf16>
      tpu.vector_store %arg9[%c0_122, %c7], %208 {strides = array<i32>} : memref<16x10xbf16, #tpu.memory_space<vmem>>, vector<16x3xbf16>,
    } else {
    }
    %3 = tpu.iota {dimensions = array<i32: 1>} : vector<1x4xi32>
    %c2_i32 = arith.constant 2 : i32
    %c0_i32_1 = arith.constant 0 : i32
    %4 = arith.cmpi eq, %c2_i32, %c0_i32_1 : i32
    %c1_i32 = arith.constant 1 : i32
    %5 = arith.select %4, %c1_i32, %c2_i32 : i32
    %6 = vector.broadcast %5 : i32 to vector<1x4xi32>
    %7 = arith.remsi %3, %6 : vector<1x4xi32>
    %c0_i32_2 = arith.constant 0 : i32
    %8 = vector.broadcast %c0_i32_2 : i32 to vector<1x4xi32>
    %9 = arith.cmpi ne, %7, %8 : vector<1x4xi32>
    %c0_i32_3 = arith.constant 0 : i32
    %10 = vector.broadcast %c0_i32_3 : i32 to vector<1x4xi32>
    %11 = arith.cmpi slt, %7, %10 : vector<1x4xi32>
    %c0_i32_4 = arith.constant 0 : i32
    %12 = arith.cmpi slt, %5, %c0_i32_4 : i32
    %13 = vector.broadcast %12 : i1 to vector<1x4xi1>
    %14 = vector.broadcast %13 : vector<1x4xi1> to vector<1x4xi1>
    %15 = arith.xori %11, %14 : vector<1x4xi1>
    %16 = arith.andi %15, %9 : vector<1x4xi1>
    %17 = vector.broadcast %5 : i32 to vector<1x4xi32>
    %18 = arith.addi %7, %17 : vector<1x4xi32>
    %19 = arith.select %16, %18, %7 : vector<1x4xi1>, vector<1x4xi32>
    %c0_i32_5 = arith.constant 0 : i32
    %20 = vector.broadcast %c0_i32_5 : i32 to vector<1x4xi32>
    %21 = arith.cmpi sgt, %19, %20 : vector<1x4xi32>
    %c1_i32_6 = arith.constant 1 : i32
    %22 = vector.broadcast %c1_i32_6 : i32 to vector<1x4xi32>
    %23 = arith.cmpi slt, %19, %22 : vector<1x4xi32>
    %c0 = arith.constant 0 : index
    %c0_7 = arith.constant 0 : index
    %c0_8 = arith.constant 0 : index
    %24 = vector.load %arg1[%c0, %c0_7, %c0_8] : memref<1x32x4xbf16, #tpu.memory_space<vmem>>, vector<1x32x4xbf16>
    %25 = vector.shape_cast %24 : vector<1x32x4xbf16> to vector<32x4xbf16>
    %c0_9 = arith.constant 0 : index
    %c0_10 = arith.constant 0 : index
    %c0_11 = arith.constant 0 : index
    %26 = vector.load %arg2[%c0_9, %c0_10, %c0_11] : memref<1x32x4xbf16, #tpu.memory_space<vmem>>, vector<1x32x4xbf16>
    %27 = vector.shape_cast %26 : vector<1x32x4xbf16> to vector<32x4xbf16>
    %28 = tpu.concatenate %25, %27 in 0 : vector<32x4xbf16>, vector<32x4xbf16> -> vector<64x4xbf16>
    %c0_12 = arith.constant 0 : index
    %c0_13 = arith.constant 0 : index
    %29 = vector.load %arg3[%c0_12, %c0_13] : memref<16x64xbf16, #tpu.memory_space<vmem>>, vector<16x64xbf16>
    %cst = arith.constant dense<0.000000e+00> : vector<16x4xf32>
    %30 = tpu.matmul %29, %28, %cst {dimension_numbers = #tpu.dot_dimension_numbers<[1], [0], [0], [1], [0, 0, 1, 1], [], []>} : vector<16x64xbf16>, vector<64x4xbf16>, vector<16x4xf32> -> vector<16x4xf32>
    %c0_14 = arith.constant 0 : index
    %c0_15 = arith.constant 0 : index
    %31 = vector.load %arg4[%c0_14, %c0_15] : memref<16x1xf32, #tpu.memory_space<vmem>>, vector<16x1xf32>
    %32 = vector.broadcast %31 : vector<16x1xf32> to vector<16x4xf32>
    %33 = arith.addf %30, %32 : vector<16x4xf32>
    %c0_16 = arith.constant 0 : index
    %c0_17 = arith.constant 0 : index
    %34 = vector.load %arg5[%c0_16, %c0_17] : memref<16x144xbf16, #tpu.memory_space<vmem>>, vector<16x144xbf16>
    %35 = arith.truncf %33 : vector<16x4xf32> to vector<16x4xbf16>
    %c0_18 = arith.constant 0 : index
    %c3 = arith.constant 3 : index
    %36 = vector.load %arg9[%c0_18, %c3] : memref<16x10xbf16, #tpu.memory_space<vmem>>, vector<16x4xbf16>
    tpu.vector_store %arg9[%c0_18, %c3], %35 {strides = array<i32>} : memref<16x10xbf16, #tpu.memory_space<vmem>>, vector<16x4xbf16>,
    %c0_19 = arith.constant 0 : index
    %c0_20 = arith.constant 0 : index
    %37 = vector.load %arg9[%c0_19, %c0_20] : memref<16x10xbf16, #tpu.memory_space<vmem>>, vector<16x4xbf16>
    %cst_21 = arith.constant 0.000000e+00 : bf16
    %38 = vector.broadcast %cst_21 : bf16 to vector<16x4xbf16>
    %39 = vector.shape_cast %21 : vector<1x4xi1> to vector<1x4xi1>
    %40 = vector.broadcast %39 : vector<1x4xi1> to vector<16x4xi1>
    %41 = arith.select %40, %37, %38 : vector<16x4xi1>, vector<16x4xbf16>
    %c0_22 = arith.constant 0 : index
    %c1 = arith.constant 1 : index
    %42 = vector.load %arg9[%c0_22, %c1] : memref<16x10xbf16, #tpu.memory_space<vmem>>, vector<16x4xbf16>
    %c0_23 = arith.constant 0 : index
    %c2 = arith.constant 2 : index
    %43 = vector.load %arg9[%c0_23, %c2] : memref<16x10xbf16, #tpu.memory_space<vmem>>, vector<16x4xbf16>
    %cst_24 = arith.constant 0.000000e+00 : bf16
    %44 = vector.broadcast %cst_24 : bf16 to vector<16x4xbf16>
    %45 = vector.shape_cast %23 : vector<1x4xi1> to vector<1x4xi1>
    %46 = vector.broadcast %45 : vector<1x4xi1> to vector<16x4xi1>
    %47 = arith.select %46, %43, %44 : vector<16x4xi1>, vector<16x4xbf16>
    %c0_25 = arith.constant 0 : index
    %c2_26 = arith.constant 2 : index
    %48 = vector.load %arg9[%c0_25, %c2_26] : memref<16x10xbf16, #tpu.memory_space<vmem>>, vector<16x4xbf16>
    %cst_27 = arith.constant 0.000000e+00 : bf16
    %49 = vector.broadcast %cst_27 : bf16 to vector<16x4xbf16>
    %50 = vector.shape_cast %21 : vector<1x4xi1> to vector<1x4xi1>
    %51 = vector.broadcast %50 : vector<1x4xi1> to vector<16x4xi1>
    %52 = arith.select %51, %48, %49 : vector<16x4xi1>, vector<16x4xbf16>
    %c0_28 = arith.constant 0 : index
    %c3_29 = arith.constant 3 : index
    %53 = vector.load %arg9[%c0_28, %c3_29] : memref<16x10xbf16, #tpu.memory_space<vmem>>, vector<16x4xbf16>
    %c0_30 = arith.constant 0 : index
    %c4 = arith.constant 4 : index
    %54 = vector.load %arg9[%c0_30, %c4] : memref<16x10xbf16, #tpu.memory_space<vmem>>, vector<16x4xbf16>
    %cst_31 = arith.constant 0.000000e+00 : bf16
    %55 = vector.broadcast %cst_31 : bf16 to vector<16x4xbf16>
    %56 = vector.shape_cast %23 : vector<1x4xi1> to vector<1x4xi1>
    %57 = vector.broadcast %56 : vector<1x4xi1> to vector<16x4xi1>
    %58 = arith.select %57, %54, %55 : vector<16x4xi1>, vector<16x4xbf16>
    %c0_32 = arith.constant 0 : index
    %c4_33 = arith.constant 4 : index
    %59 = vector.load %arg9[%c0_32, %c4_33] : memref<16x10xbf16, #tpu.memory_space<vmem>>, vector<16x4xbf16>
    %cst_34 = arith.constant 0.000000e+00 : bf16
    %60 = vector.broadcast %cst_34 : bf16 to vector<16x4xbf16>
    %61 = vector.shape_cast %21 : vector<1x4xi1> to vector<1x4xi1>
    %62 = vector.broadcast %61 : vector<1x4xi1> to vector<16x4xi1>
    %63 = arith.select %62, %59, %60 : vector<16x4xi1>, vector<16x4xbf16>
    %c0_35 = arith.constant 0 : index
    %c5 = arith.constant 5 : index
    %64 = vector.load %arg9[%c0_35, %c5] : memref<16x10xbf16, #tpu.memory_space<vmem>>, vector<16x4xbf16>
    %c0_36 = arith.constant 0 : index
    %c6 = arith.constant 6 : index
    %65 = vector.load %arg9[%c0_36, %c6] : memref<16x10xbf16, #tpu.memory_space<vmem>>, vector<16x4xbf16>
    %cst_37 = arith.constant 0.000000e+00 : bf16
    %66 = vector.broadcast %cst_37 : bf16 to vector<16x4xbf16>
    %67 = vector.shape_cast %23 : vector<1x4xi1> to vector<1x4xi1>
    %68 = vector.broadcast %67 : vector<1x4xi1> to vector<16x4xi1>
    %69 = arith.select %68, %65, %66 : vector<16x4xi1>, vector<16x4xbf16>
    %70 = tpu.concatenate %41, %42, %47, %52, %53, %58, %63, %64, %69 in 0 : vector<16x4xbf16>, vector<16x4xbf16>, vector<16x4xbf16>, vector<16x4xbf16>, vector<16x4xbf16>, vector<16x4xbf16>, vector<16x4xbf16>, vector<16x4xbf16>, vector<16x4xbf16> -> vector<144x4xbf16>
    %cst_38 = arith.constant dense<0.000000e+00> : vector<16x4xf32>
    %71 = tpu.matmul %34, %70, %cst_38 {dimension_numbers = #tpu.dot_dimension_numbers<[1], [0], [0], [1], [0, 0, 1, 1], [], []>} : vector<16x144xbf16>, vector<144x4xbf16>, vector<16x4xf32> -> vector<16x4xf32>
    %cst_39 = arith.constant dense<0.000000e+00> : vector<16xf32>
    %72 = vector.multi_reduction <add>, %71, %cst_39 [1] : vector<16x4xf32> to vector<16xf32>
    %73 = vector.shape_cast %72 : vector<16xf32> to vector<16x1xf32>
    %cst_40 = arith.constant 4.000000e+00 : f32
    %74 = vector.broadcast %cst_40 : f32 to vector<16x1xf32>
    %75 = arith.divf %73, %74 : vector<16x1xf32>
    %76 = vector.broadcast %75 : vector<16x1xf32> to vector<16x4xf32>
    %77 = arith.subf %71, %76 : vector<16x4xf32>
    %78 = arith.mulf %77, %77 : vector<16x4xf32>
    %cst_41 = arith.constant dense<0.000000e+00> : vector<16xf32>
    %79 = vector.multi_reduction <add>, %78, %cst_41 [1] : vector<16x4xf32> to vector<16xf32>
    %80 = vector.shape_cast %79 : vector<16xf32> to vector<16x1xf32>
    %cst_42 = arith.constant 4.000000e+00 : f32
    %81 = vector.broadcast %cst_42 : f32 to vector<16x1xf32>
    %82 = arith.divf %80, %81 : vector<16x1xf32>
    %cst_43 = arith.constant 9.99999974E-6 : f32
    %83 = vector.broadcast %cst_43 : f32 to vector<16x1xf32>
    %84 = arith.addf %82, %83 : vector<16x1xf32>
    %85 = math.rsqrt %84 : vector<16x1xf32>
    %86 = vector.broadcast %85 : vector<16x1xf32> to vector<16x4xf32>
    %87 = arith.mulf %77, %86 : vector<16x4xf32>
    %cst_44 = arith.constant 0.000000e+00 : f32
    %88 = vector.broadcast %cst_44 : f32 to vector<16x4xf32>
    %89 = arith.maximumf %87, %88 : vector<16x4xf32>
    %c0_45 = arith.constant 0 : index
    %c0_46 = arith.constant 0 : index
    %90 = vector.load %arg6[%c0_45, %c0_46] : memref<16x144xbf16, #tpu.memory_space<vmem>>, vector<16x144xbf16>
    %91 = arith.truncf %89 : vector<16x4xf32> to vector<16x4xbf16>
    %c0_47 = arith.constant 0 : index
    %c3_48 = arith.constant 3 : index
    %92 = vector.load %arg9[%c0_47, %c3_48] : memref<16x10xbf16, #tpu.memory_space<vmem>>, vector<16x4xbf16>
    tpu.vector_store %arg9[%c0_47, %c3_48], %91 {strides = array<i32>} : memref<16x10xbf16, #tpu.memory_space<vmem>>, vector<16x4xbf16>,
    %c0_49 = arith.constant 0 : index
    %c0_50 = arith.constant 0 : index
    %93 = vector.load %arg9[%c0_49, %c0_50] : memref<16x10xbf16, #tpu.memory_space<vmem>>, vector<16x4xbf16>
    %cst_51 = arith.constant 0.000000e+00 : bf16
    %94 = vector.broadcast %cst_51 : bf16 to vector<16x4xbf16>
    %95 = vector.shape_cast %21 : vector<1x4xi1> to vector<1x4xi1>
    %96 = vector.broadcast %95 : vector<1x4xi1> to vector<16x4xi1>
    %97 = arith.select %96, %93, %94 : vector<16x4xi1>, vector<16x4xbf16>
    %c0_52 = arith.constant 0 : index
    %c1_53 = arith.constant 1 : index
    %98 = vector.load %arg9[%c0_52, %c1_53] : memref<16x10xbf16, #tpu.memory_space<vmem>>, vector<16x4xbf16>
    %c0_54 = arith.constant 0 : index
    %c2_55 = arith.constant 2 : index
    %99 = vector.load %arg9[%c0_54, %c2_55] : memref<16x10xbf16, #tpu.memory_space<vmem>>, vector<16x4xbf16>
    %cst_56 = arith.constant 0.000000e+00 : bf16
    %100 = vector.broadcast %cst_56 : bf16 to vector<16x4xbf16>
    %101 = vector.shape_cast %23 : vector<1x4xi1> to vector<1x4xi1>
    %102 = vector.broadcast %101 : vector<1x4xi1> to vector<16x4xi1>
    %103 = arith.select %102, %99, %100 : vector<16x4xi1>, vector<16x4xbf16>
    %c0_57 = arith.constant 0 : index
    %c2_58 = arith.constant 2 : index
    %104 = vector.load %arg9[%c0_57, %c2_58] : memref<16x10xbf16, #tpu.memory_space<vmem>>, vector<16x4xbf16>
    %cst_59 = arith.constant 0.000000e+00 : bf16
    %105 = vector.broadcast %cst_59 : bf16 to vector<16x4xbf16>
    %106 = vector.shape_cast %21 : vector<1x4xi1> to vector<1x4xi1>
    %107 = vector.broadcast %106 : vector<1x4xi1> to vector<16x4xi1>
    %108 = arith.select %107, %104, %105 : vector<16x4xi1>, vector<16x4xbf16>
    %c0_60 = arith.constant 0 : index
    %c3_61 = arith.constant 3 : index
    %109 = vector.load %arg9[%c0_60, %c3_61] : memref<16x10xbf16, #tpu.memory_space<vmem>>, vector<16x4xbf16>
    %c0_62 = arith.constant 0 : index
    %c4_63 = arith.constant 4 : index
    %110 = vector.load %arg9[%c0_62, %c4_63] : memref<16x10xbf16, #tpu.memory_space<vmem>>, vector<16x4xbf16>
    %cst_64 = arith.constant 0.000000e+00 : bf16
    %111 = vector.broadcast %cst_64 : bf16 to vector<16x4xbf16>
    %112 = vector.shape_cast %23 : vector<1x4xi1> to vector<1x4xi1>
    %113 = vector.broadcast %112 : vector<1x4xi1> to vector<16x4xi1>
    %114 = arith.select %113, %110, %111 : vector<16x4xi1>, vector<16x4xbf16>
    %c0_65 = arith.constant 0 : index
    %c4_66 = arith.constant 4 : index
    %115 = vector.load %arg9[%c0_65, %c4_66] : memref<16x10xbf16, #tpu.memory_space<vmem>>, vector<16x4xbf16>
    %cst_67 = arith.constant 0.000000e+00 : bf16
    %116 = vector.broadcast %cst_67 : bf16 to vector<16x4xbf16>
    %117 = vector.shape_cast %21 : vector<1x4xi1> to vector<1x4xi1>
    %118 = vector.broadcast %117 : vector<1x4xi1> to vector<16x4xi1>
    %119 = arith.select %118, %115, %116 : vector<16x4xi1>, vector<16x4xbf16>
    %c0_68 = arith.constant 0 : index
    %c5_69 = arith.constant 5 : index
    %120 = vector.load %arg9[%c0_68, %c5_69] : memref<16x10xbf16, #tpu.memory_space<vmem>>, vector<16x4xbf16>
    %c0_70 = arith.constant 0 : index
    %c6_71 = arith.constant 6 : index
    %121 = vector.load %arg9[%c0_70, %c6_71] : memref<16x10xbf16, #tpu.memory_space<vmem>>, vector<16x4xbf16>
    %cst_72 = arith.constant 0.000000e+00 : bf16
    %122 = vector.broadcast %cst_72 : bf16 to vector<16x4xbf16>
    %123 = vector.shape_cast %23 : vector<1x4xi1> to vector<1x4xi1>
    %124 = vector.broadcast %123 : vector<1x4xi1> to vector<16x4xi1>
    %125 = arith.select %124, %121, %122 : vector<16x4xi1>, vector<16x4xbf16>
    %126 = tpu.concatenate %97, %98, %103, %108, %109, %114, %119, %120, %125 in 0 : vector<16x4xbf16>, vector<16x4xbf16>, vector<16x4xbf16>, vector<16x4xbf16>, vector<16x4xbf16>, vector<16x4xbf16>, vector<16x4xbf16>, vector<16x4xbf16>, vector<16x4xbf16> -> vector<144x4xbf16>
    %cst_73 = arith.constant dense<0.000000e+00> : vector<16x4xf32>
    %127 = tpu.matmul %90, %126, %cst_73 {dimension_numbers = #tpu.dot_dimension_numbers<[1], [0], [0], [1], [0, 0, 1, 1], [], []>} : vector<16x144xbf16>, vector<144x4xbf16>, vector<16x4xf32> -> vector<16x4xf32>
    %cst_74 = arith.constant dense<0.000000e+00> : vector<16xf32>
    %128 = vector.multi_reduction <add>, %127, %cst_74 [1] : vector<16x4xf32> to vector<16xf32>
    %129 = vector.shape_cast %128 : vector<16xf32> to vector<16x1xf32>
    %cst_75 = arith.constant 4.000000e+00 : f32
    %130 = vector.broadcast %cst_75 : f32 to vector<16x1xf32>
    %131 = arith.divf %129, %130 : vector<16x1xf32>
    %132 = vector.broadcast %131 : vector<16x1xf32> to vector<16x4xf32>
    %133 = arith.subf %127, %132 : vector<16x4xf32>
    %134 = arith.mulf %133, %133 : vector<16x4xf32>
    %cst_76 = arith.constant dense<0.000000e+00> : vector<16xf32>
    %135 = vector.multi_reduction <add>, %134, %cst_76 [1] : vector<16x4xf32> to vector<16xf32>
    %136 = vector.shape_cast %135 : vector<16xf32> to vector<16x1xf32>
    %cst_77 = arith.constant 4.000000e+00 : f32
    %137 = vector.broadcast %cst_77 : f32 to vector<16x1xf32>
    %138 = arith.divf %136, %137 : vector<16x1xf32>
    %cst_78 = arith.constant 9.99999974E-6 : f32
    %139 = vector.broadcast %cst_78 : f32 to vector<16x1xf32>
    %140 = arith.addf %138, %139 : vector<16x1xf32>
    %141 = math.rsqrt %140 : vector<16x1xf32>
    %142 = vector.broadcast %141 : vector<16x1xf32> to vector<16x4xf32>
    %143 = arith.mulf %133, %142 : vector<16x4xf32>
    %cst_79 = arith.constant 0.000000e+00 : f32
    %144 = vector.broadcast %cst_79 : f32 to vector<16x4xf32>
    %145 = arith.maximumf %143, %144 : vector<16x4xf32>
    %c0_80 = arith.constant 0 : index
    %c0_81 = arith.constant 0 : index
    %146 = vector.load %arg7[%c0_80, %c0_81] : memref<16x144xbf16, #tpu.memory_space<vmem>>, vector<16x144xbf16>
    %147 = arith.truncf %145 : vector<16x4xf32> to vector<16x4xbf16>
    %c0_82 = arith.constant 0 : index
    %c3_83 = arith.constant 3 : index
    %148 = vector.load %arg9[%c0_82, %c3_83] : memref<16x10xbf16, #tpu.memory_space<vmem>>, vector<16x4xbf16>
    tpu.vector_store %arg9[%c0_82, %c3_83], %147 {strides = array<i32>} : memref<16x10xbf16, #tpu.memory_space<vmem>>, vector<16x4xbf16>,
    %c0_84 = arith.constant 0 : index
    %c0_85 = arith.constant 0 : index
    %149 = vector.load %arg9[%c0_84, %c0_85] : memref<16x10xbf16, #tpu.memory_space<vmem>>, vector<16x4xbf16>
    %cst_86 = arith.constant 0.000000e+00 : bf16
    %150 = vector.broadcast %cst_86 : bf16 to vector<16x4xbf16>
    %151 = vector.shape_cast %21 : vector<1x4xi1> to vector<1x4xi1>
    %152 = vector.broadcast %151 : vector<1x4xi1> to vector<16x4xi1>
    %153 = arith.select %152, %149, %150 : vector<16x4xi1>, vector<16x4xbf16>
    %c0_87 = arith.constant 0 : index
    %c1_88 = arith.constant 1 : index
    %154 = vector.load %arg9[%c0_87, %c1_88] : memref<16x10xbf16, #tpu.memory_space<vmem>>, vector<16x4xbf16>
    %c0_89 = arith.constant 0 : index
    %c2_90 = arith.constant 2 : index
    %155 = vector.load %arg9[%c0_89, %c2_90] : memref<16x10xbf16, #tpu.memory_space<vmem>>, vector<16x4xbf16>
    %cst_91 = arith.constant 0.000000e+00 : bf16
    %156 = vector.broadcast %cst_91 : bf16 to vector<16x4xbf16>
    %157 = vector.shape_cast %23 : vector<1x4xi1> to vector<1x4xi1>
    %158 = vector.broadcast %157 : vector<1x4xi1> to vector<16x4xi1>
    %159 = arith.select %158, %155, %156 : vector<16x4xi1>, vector<16x4xbf16>
    %c0_92 = arith.constant 0 : index
    %c2_93 = arith.constant 2 : index
    %160 = vector.load %arg9[%c0_92, %c2_93] : memref<16x10xbf16, #tpu.memory_space<vmem>>, vector<16x4xbf16>
    %cst_94 = arith.constant 0.000000e+00 : bf16
    %161 = vector.broadcast %cst_94 : bf16 to vector<16x4xbf16>
    %162 = vector.shape_cast %21 : vector<1x4xi1> to vector<1x4xi1>
    %163 = vector.broadcast %162 : vector<1x4xi1> to vector<16x4xi1>
    %164 = arith.select %163, %160, %161 : vector<16x4xi1>, vector<16x4xbf16>
    %c0_95 = arith.constant 0 : index
    %c3_96 = arith.constant 3 : index
    %165 = vector.load %arg9[%c0_95, %c3_96] : memref<16x10xbf16, #tpu.memory_space<vmem>>, vector<16x4xbf16>
    %c0_97 = arith.constant 0 : index
    %c4_98 = arith.constant 4 : index
    %166 = vector.load %arg9[%c0_97, %c4_98] : memref<16x10xbf16, #tpu.memory_space<vmem>>, vector<16x4xbf16>
    %cst_99 = arith.constant 0.000000e+00 : bf16
    %167 = vector.broadcast %cst_99 : bf16 to vector<16x4xbf16>
    %168 = vector.shape_cast %23 : vector<1x4xi1> to vector<1x4xi1>
    %169 = vector.broadcast %168 : vector<1x4xi1> to vector<16x4xi1>
    %170 = arith.select %169, %166, %167 : vector<16x4xi1>, vector<16x4xbf16>
    %c0_100 = arith.constant 0 : index
    %c4_101 = arith.constant 4 : index
    %171 = vector.load %arg9[%c0_100, %c4_101] : memref<16x10xbf16, #tpu.memory_space<vmem>>, vector<16x4xbf16>
    %cst_102 = arith.constant 0.000000e+00 : bf16
    %172 = vector.broadcast %cst_102 : bf16 to vector<16x4xbf16>
    %173 = vector.shape_cast %21 : vector<1x4xi1> to vector<1x4xi1>
    %174 = vector.broadcast %173 : vector<1x4xi1> to vector<16x4xi1>
    %175 = arith.select %174, %171, %172 : vector<16x4xi1>, vector<16x4xbf16>
    %c0_103 = arith.constant 0 : index
    %c5_104 = arith.constant 5 : index
    %176 = vector.load %arg9[%c0_103, %c5_104] : memref<16x10xbf16, #tpu.memory_space<vmem>>, vector<16x4xbf16>
    %c0_105 = arith.constant 0 : index
    %c6_106 = arith.constant 6 : index
    %177 = vector.load %arg9[%c0_105, %c6_106] : memref<16x10xbf16, #tpu.memory_space<vmem>>, vector<16x4xbf16>
    %cst_107 = arith.constant 0.000000e+00 : bf16
    %178 = vector.broadcast %cst_107 : bf16 to vector<16x4xbf16>
    %179 = vector.shape_cast %23 : vector<1x4xi1> to vector<1x4xi1>
    %180 = vector.broadcast %179 : vector<1x4xi1> to vector<16x4xi1>
    %181 = arith.select %180, %177, %178 : vector<16x4xi1>, vector<16x4xbf16>
    %182 = tpu.concatenate %153, %154, %159, %164, %165, %170, %175, %176, %181 in 0 : vector<16x4xbf16>, vector<16x4xbf16>, vector<16x4xbf16>, vector<16x4xbf16>, vector<16x4xbf16>, vector<16x4xbf16>, vector<16x4xbf16>, vector<16x4xbf16>, vector<16x4xbf16> -> vector<144x4xbf16>
    %cst_108 = arith.constant dense<0.000000e+00> : vector<16x4xf32>
    %183 = tpu.matmul %146, %182, %cst_108 {dimension_numbers = #tpu.dot_dimension_numbers<[1], [0], [0], [1], [0, 0, 1, 1], [], []>} : vector<16x144xbf16>, vector<144x4xbf16>, vector<16x4xf32> -> vector<16x4xf32>
    %cst_109 = arith.constant dense<0.000000e+00> : vector<16xf32>
    %184 = vector.multi_reduction <add>, %183, %cst_109 [1] : vector<16x4xf32> to vector<16xf32>
    %185 = vector.shape_cast %184 : vector<16xf32> to vector<16x1xf32>
    %cst_110 = arith.constant 4.000000e+00 : f32
    %186 = vector.broadcast %cst_110 : f32 to vector<16x1xf32>
    %187 = arith.divf %185, %186 : vector<16x1xf32>
    %188 = vector.broadcast %187 : vector<16x1xf32> to vector<16x4xf32>
    %189 = arith.subf %183, %188 : vector<16x4xf32>
    %190 = arith.mulf %189, %189 : vector<16x4xf32>
    %cst_111 = arith.constant dense<0.000000e+00> : vector<16xf32>
    %191 = vector.multi_reduction <add>, %190, %cst_111 [1] : vector<16x4xf32> to vector<16xf32>
    %192 = vector.shape_cast %191 : vector<16xf32> to vector<16x1xf32>
    %cst_112 = arith.constant 4.000000e+00 : f32
    %193 = vector.broadcast %cst_112 : f32 to vector<16x1xf32>
    %194 = arith.divf %192, %193 : vector<16x1xf32>
    %cst_113 = arith.constant 9.99999974E-6 : f32
    %195 = vector.broadcast %cst_113 : f32 to vector<16x1xf32>
    %196 = arith.addf %194, %195 : vector<16x1xf32>
    %197 = math.rsqrt %196 : vector<16x1xf32>
    %198 = vector.broadcast %197 : vector<16x1xf32> to vector<16x4xf32>
    %199 = arith.mulf %189, %198 : vector<16x4xf32>
    %cst_114 = arith.constant 0.000000e+00 : f32
    %200 = vector.broadcast %cst_114 : f32 to vector<16x4xf32>
    %201 = arith.maximumf %199, %200 : vector<16x4xf32>
    %202 = arith.truncf %201 : vector<16x4xf32> to vector<16x4xbf16>
    %c0_115 = arith.constant 0 : index
    %c0_116 = arith.constant 0 : index
    %c0_117 = arith.constant 0 : index
    %203 = vector.load %arg8[%c0_115, %c0_116, %c0_117] : memref<1x16x4xbf16, #tpu.memory_space<vmem>>, vector<1x16x4xbf16>
    %204 = vector.shape_cast %203 : vector<1x16x4xbf16> to vector<16x4xbf16>
    %205 = vector.shape_cast %202 : vector<16x4xbf16> to vector<1x16x4xbf16>
    tpu.vector_store %arg8[%c0_115, %c0_116, %c0_117], %205 {strides = array<i32>} : memref<1x16x4xbf16, #tpu.memory_space<vmem>>, vector<1x16x4xbf16>,
    return
  }
  func.func @transform_0(%arg0: i32) -> (i32, i32, i32) {
    %c0_i32 = arith.constant 0 : i32
    %c0_i32_0 = arith.constant 0 : i32
    %c0_i32_1 = arith.constant 0 : i32
    return %arg0, %c0_i32, %c0_i32_0 : i32, i32, i32
  }
  func.func @transform_1(%arg0: i32) -> (i32, i32, i32) {
    %c0_i32 = arith.constant 0 : i32
    %c0_i32_0 = arith.constant 0 : i32
    %c0_i32_1 = arith.constant 0 : i32
    return %arg0, %c0_i32, %c0_i32_0 : i32, i32, i32
  }
  func.func @transform_2(%arg0: i32) -> (i32, i32) {
    %c0_i32 = arith.constant 0 : i32
    %c0_i32_0 = arith.constant 0 : i32
    %c0_i32_1 = arith.constant 0 : i32
    return %c0_i32, %c0_i32_0 : i32, i32
  }
  func.func @transform_3(%arg0: i32) -> (i32, i32) {
    %c0_i32 = arith.constant 0 : i32
    %c0_i32_0 = arith.constant 0 : i32
    %c0_i32_1 = arith.constant 0 : i32
    return %c0_i32, %c0_i32_0 : i32, i32
  }
  func.func @transform_4(%arg0: i32) -> (i32, i32) {
    %c0_i32 = arith.constant 0 : i32
    %c0_i32_0 = arith.constant 0 : i32
    %c0_i32_1 = arith.constant 0 : i32
    return %c0_i32, %c0_i32_0 : i32, i32
  }
  func.func @transform_5(%arg0: i32) -> (i32, i32) {
    %c0_i32 = arith.constant 0 : i32
    %c0_i32_0 = arith.constant 0 : i32
    %c0_i32_1 = arith.constant 0 : i32
    return %c0_i32, %c0_i32_0 : i32, i32
  }
  func.func @transform_6(%arg0: i32) -> (i32, i32) {
    %c0_i32 = arith.constant 0 : i32
    %c0_i32_0 = arith.constant 0 : i32
    %c0_i32_1 = arith.constant 0 : i32
    return %c0_i32, %c0_i32_0 : i32, i32
  }
  func.func @transform_7(%arg0: i32) -> (i32, i32, i32) {
    %c0_i32 = arith.constant 0 : i32
    %c0_i32_0 = arith.constant 0 : i32
    %c0_i32_1 = arith.constant 0 : i32
    return %arg0, %c0_i32, %c0_i32_0 : i32, i32, i32
  }
}

module attributes {stable_mosaic.version = 11 : i64} {
  func.func @kernel(%arg0: i32, %arg1: memref<1x16x4xbf16, #tpu.memory_space<vmem>>, %arg2: memref<16x144xbf16, #tpu.memory_space<vmem>>, %arg3: memref<8x144xbf16, #tpu.memory_space<vmem>>, %arg4: memref<16x216xbf16, #tpu.memory_space<vmem>>, %arg5: memref<16x1xf32, #tpu.memory_space<vmem>>, %arg6: memref<8x144xbf16, #tpu.memory_space<vmem>>, %arg7: memref<1x8x4xbf16, #tpu.memory_space<vmem>>, %arg8: memref<24x10xbf16, #tpu.memory_space<vmem>>) attributes {dimension_semantics = [#tpu.dimension_semantics<parallel>], iteration_bounds = array<i64: 2>, scalar_prefetch = 0 : i64, scratch_operands = 1 : i64, tpu.core_type = #tpu.core_type<tc>, window_params = [{transform_indices = @transform_0, window_bounds = array<i64: 1, 16, 4>}, {pipeline_mode = #tpu.pipeline_mode<synchronous>, transform_indices = @transform_1, window_bounds = array<i64: 16, 144>}, {pipeline_mode = #tpu.pipeline_mode<synchronous>, transform_indices = @transform_2, window_bounds = array<i64: 8, 144>}, {pipeline_mode = #tpu.pipeline_mode<synchronous>, transform_indices = @transform_3, window_bounds = array<i64: 16, 216>}, {pipeline_mode = #tpu.pipeline_mode<synchronous>, transform_indices = @transform_4, window_bounds = array<i64: 16, 1>}, {pipeline_mode = #tpu.pipeline_mode<synchronous>, transform_indices = @transform_5, window_bounds = array<i64: 8, 144>}, {transform_indices = @transform_6, window_bounds = array<i64: 1, 8, 4>}]} {
    %c0_i32 = arith.constant 0 : i32
    %0 = arith.cmpi eq, %arg0, %c0_i32 : i32
    %1 = arith.extui %0 : i1 to i32
    %c0_i32_0 = arith.constant 0 : i32
    %2 = arith.cmpi ne, %1, %c0_i32_0 : i32
    scf.if %2 {
      %cst_141 = arith.constant 0.000000e+00 : bf16
      %240 = vector.broadcast %cst_141 : bf16 to vector<24x3xbf16>
      %c0_142 = arith.constant 0 : index
      %c0_143 = arith.constant 0 : index
      %241 = vector.load %arg8[%c0_142, %c0_143] : memref<24x10xbf16, #tpu.memory_space<vmem>>, vector<24x3xbf16>
      tpu.vector_store %arg8[%c0_142, %c0_143], %240 {strides = array<i32>} : memref<24x10xbf16, #tpu.memory_space<vmem>>, vector<24x3xbf16>,
      %cst_144 = arith.constant 0.000000e+00 : bf16
      %242 = vector.broadcast %cst_144 : bf16 to vector<24x3xbf16>
      %c0_145 = arith.constant 0 : index
      %c7 = arith.constant 7 : index
      %243 = vector.load %arg8[%c0_145, %c7] : memref<24x10xbf16, #tpu.memory_space<vmem>>, vector<24x3xbf16>
      tpu.vector_store %arg8[%c0_145, %c7], %242 {strides = array<i32>} : memref<24x10xbf16, #tpu.memory_space<vmem>>, vector<24x3xbf16>,
    } else {
    }
    %3 = tpu.iota {dimensions = array<i32: 1>} : vector<1x4xi32>
    %c2_i32 = arith.constant 2 : i32
    %c0_i32_1 = arith.constant 0 : i32
    %4 = arith.cmpi eq, %c2_i32, %c0_i32_1 : i32
    %c1_i32 = arith.constant 1 : i32
    %5 = arith.select %4, %c1_i32, %c2_i32 : i32
    %6 = vector.broadcast %5 : i32 to vector<1x4xi32>
    %7 = arith.remsi %3, %6 : vector<1x4xi32>
    %c0_i32_2 = arith.constant 0 : i32
    %8 = vector.broadcast %c0_i32_2 : i32 to vector<1x4xi32>
    %9 = arith.cmpi ne, %7, %8 : vector<1x4xi32>
    %c0_i32_3 = arith.constant 0 : i32
    %10 = vector.broadcast %c0_i32_3 : i32 to vector<1x4xi32>
    %11 = arith.cmpi slt, %7, %10 : vector<1x4xi32>
    %c0_i32_4 = arith.constant 0 : i32
    %12 = arith.cmpi slt, %5, %c0_i32_4 : i32
    %13 = vector.broadcast %12 : i1 to vector<1x4xi1>
    %14 = vector.broadcast %13 : vector<1x4xi1> to vector<1x4xi1>
    %15 = arith.xori %11, %14 : vector<1x4xi1>
    %16 = arith.andi %15, %9 : vector<1x4xi1>
    %17 = vector.broadcast %5 : i32 to vector<1x4xi32>
    %18 = arith.addi %7, %17 : vector<1x4xi32>
    %19 = arith.select %16, %18, %7 : vector<1x4xi1>, vector<1x4xi32>
    %c0_i32_5 = arith.constant 0 : i32
    %20 = vector.broadcast %c0_i32_5 : i32 to vector<1x4xi32>
    %21 = arith.cmpi sgt, %19, %20 : vector<1x4xi32>
    %c1_i32_6 = arith.constant 1 : i32
    %22 = vector.broadcast %c1_i32_6 : i32 to vector<1x4xi32>
    %23 = arith.cmpi slt, %19, %22 : vector<1x4xi32>
    %c0 = arith.constant 0 : index
    %c0_7 = arith.constant 0 : index
    %c0_8 = arith.constant 0 : index
    %24 = vector.load %arg1[%c0, %c0_7, %c0_8] : memref<1x16x4xbf16, #tpu.memory_space<vmem>>, vector<1x16x4xbf16>
    %25 = vector.shape_cast %24 : vector<1x16x4xbf16> to vector<16x4xbf16>
    %c0_9 = arith.constant 0 : index
    %c0_10 = arith.constant 0 : index
    %26 = vector.load %arg2[%c0_9, %c0_10] : memref<16x144xbf16, #tpu.memory_space<vmem>>, vector<16x144xbf16>
    %c0_11 = arith.constant 0 : index
    %c3 = arith.constant 3 : index
    %27 = vector.load %arg8[%c0_11, %c3] : memref<24x10xbf16, #tpu.memory_space<vmem>>, vector<16x4xbf16>
    tpu.vector_store %arg8[%c0_11, %c3], %25 {strides = array<i32>} : memref<24x10xbf16, #tpu.memory_space<vmem>>, vector<16x4xbf16>,
    %c0_12 = arith.constant 0 : index
    %c0_13 = arith.constant 0 : index
    %28 = vector.load %arg8[%c0_12, %c0_13] : memref<24x10xbf16, #tpu.memory_space<vmem>>, vector<16x4xbf16>
    %cst = arith.constant 0.000000e+00 : bf16
    %29 = vector.broadcast %cst : bf16 to vector<16x4xbf16>
    %30 = vector.shape_cast %21 : vector<1x4xi1> to vector<1x4xi1>
    %31 = vector.broadcast %30 : vector<1x4xi1> to vector<16x4xi1>
    %32 = arith.select %31, %28, %29 : vector<16x4xi1>, vector<16x4xbf16>
    %c0_14 = arith.constant 0 : index
    %c1 = arith.constant 1 : index
    %33 = vector.load %arg8[%c0_14, %c1] : memref<24x10xbf16, #tpu.memory_space<vmem>>, vector<16x4xbf16>
    %c0_15 = arith.constant 0 : index
    %c2 = arith.constant 2 : index
    %34 = vector.load %arg8[%c0_15, %c2] : memref<24x10xbf16, #tpu.memory_space<vmem>>, vector<16x4xbf16>
    %cst_16 = arith.constant 0.000000e+00 : bf16
    %35 = vector.broadcast %cst_16 : bf16 to vector<16x4xbf16>
    %36 = vector.shape_cast %23 : vector<1x4xi1> to vector<1x4xi1>
    %37 = vector.broadcast %36 : vector<1x4xi1> to vector<16x4xi1>
    %38 = arith.select %37, %34, %35 : vector<16x4xi1>, vector<16x4xbf16>
    %c0_17 = arith.constant 0 : index
    %c2_18 = arith.constant 2 : index
    %39 = vector.load %arg8[%c0_17, %c2_18] : memref<24x10xbf16, #tpu.memory_space<vmem>>, vector<16x4xbf16>
    %cst_19 = arith.constant 0.000000e+00 : bf16
    %40 = vector.broadcast %cst_19 : bf16 to vector<16x4xbf16>
    %41 = vector.shape_cast %21 : vector<1x4xi1> to vector<1x4xi1>
    %42 = vector.broadcast %41 : vector<1x4xi1> to vector<16x4xi1>
    %43 = arith.select %42, %39, %40 : vector<16x4xi1>, vector<16x4xbf16>
    %c0_20 = arith.constant 0 : index
    %c3_21 = arith.constant 3 : index
    %44 = vector.load %arg8[%c0_20, %c3_21] : memref<24x10xbf16, #tpu.memory_space<vmem>>, vector<16x4xbf16>
    %c0_22 = arith.constant 0 : index
    %c4 = arith.constant 4 : index
    %45 = vector.load %arg8[%c0_22, %c4] : memref<24x10xbf16, #tpu.memory_space<vmem>>, vector<16x4xbf16>
    %cst_23 = arith.constant 0.000000e+00 : bf16
    %46 = vector.broadcast %cst_23 : bf16 to vector<16x4xbf16>
    %47 = vector.shape_cast %23 : vector<1x4xi1> to vector<1x4xi1>
    %48 = vector.broadcast %47 : vector<1x4xi1> to vector<16x4xi1>
    %49 = arith.select %48, %45, %46 : vector<16x4xi1>, vector<16x4xbf16>
    %c0_24 = arith.constant 0 : index
    %c4_25 = arith.constant 4 : index
    %50 = vector.load %arg8[%c0_24, %c4_25] : memref<24x10xbf16, #tpu.memory_space<vmem>>, vector<16x4xbf16>
    %cst_26 = arith.constant 0.000000e+00 : bf16
    %51 = vector.broadcast %cst_26 : bf16 to vector<16x4xbf16>
    %52 = vector.shape_cast %21 : vector<1x4xi1> to vector<1x4xi1>
    %53 = vector.broadcast %52 : vector<1x4xi1> to vector<16x4xi1>
    %54 = arith.select %53, %50, %51 : vector<16x4xi1>, vector<16x4xbf16>
    %c0_27 = arith.constant 0 : index
    %c5 = arith.constant 5 : index
    %55 = vector.load %arg8[%c0_27, %c5] : memref<24x10xbf16, #tpu.memory_space<vmem>>, vector<16x4xbf16>
    %c0_28 = arith.constant 0 : index
    %c6 = arith.constant 6 : index
    %56 = vector.load %arg8[%c0_28, %c6] : memref<24x10xbf16, #tpu.memory_space<vmem>>, vector<16x4xbf16>
    %cst_29 = arith.constant 0.000000e+00 : bf16
    %57 = vector.broadcast %cst_29 : bf16 to vector<16x4xbf16>
    %58 = vector.shape_cast %23 : vector<1x4xi1> to vector<1x4xi1>
    %59 = vector.broadcast %58 : vector<1x4xi1> to vector<16x4xi1>
    %60 = arith.select %59, %56, %57 : vector<16x4xi1>, vector<16x4xbf16>
    %61 = tpu.concatenate %32, %33, %38, %43, %44, %49, %54, %55, %60 in 0 : vector<16x4xbf16>, vector<16x4xbf16>, vector<16x4xbf16>, vector<16x4xbf16>, vector<16x4xbf16>, vector<16x4xbf16>, vector<16x4xbf16>, vector<16x4xbf16>, vector<16x4xbf16> -> vector<144x4xbf16>
    %cst_30 = arith.constant dense<0.000000e+00> : vector<16x4xf32>
    %62 = tpu.matmul %26, %61, %cst_30 {dimension_numbers = #tpu.dot_dimension_numbers<[1], [0], [0], [1], [0, 0, 1, 1], [], []>} : vector<16x144xbf16>, vector<144x4xbf16>, vector<16x4xf32> -> vector<16x4xf32>
    %cst_31 = arith.constant dense<0.000000e+00> : vector<16xf32>
    %63 = vector.multi_reduction <add>, %62, %cst_31 [1] : vector<16x4xf32> to vector<16xf32>
    %64 = vector.shape_cast %63 : vector<16xf32> to vector<16x1xf32>
    %cst_32 = arith.constant 4.000000e+00 : f32
    %65 = vector.broadcast %cst_32 : f32 to vector<16x1xf32>
    %66 = arith.divf %64, %65 : vector<16x1xf32>
    %67 = vector.broadcast %66 : vector<16x1xf32> to vector<16x4xf32>
    %68 = arith.subf %62, %67 : vector<16x4xf32>
    %69 = arith.mulf %68, %68 : vector<16x4xf32>
    %cst_33 = arith.constant dense<0.000000e+00> : vector<16xf32>
    %70 = vector.multi_reduction <add>, %69, %cst_33 [1] : vector<16x4xf32> to vector<16xf32>
    %71 = vector.shape_cast %70 : vector<16xf32> to vector<16x1xf32>
    %cst_34 = arith.constant 4.000000e+00 : f32
    %72 = vector.broadcast %cst_34 : f32 to vector<16x1xf32>
    %73 = arith.divf %71, %72 : vector<16x1xf32>
    %cst_35 = arith.constant 9.99999974E-6 : f32
    %74 = vector.broadcast %cst_35 : f32 to vector<16x1xf32>
    %75 = arith.addf %73, %74 : vector<16x1xf32>
    %76 = math.rsqrt %75 : vector<16x1xf32>
    %77 = vector.broadcast %76 : vector<16x1xf32> to vector<16x4xf32>
    %78 = arith.mulf %68, %77 : vector<16x4xf32>
    %cst_36 = arith.constant 0.000000e+00 : f32
    %79 = vector.broadcast %cst_36 : f32 to vector<16x4xf32>
    %80 = arith.maximumf %78, %79 : vector<16x4xf32>
    %c0_37 = arith.constant 0 : index
    %c0_38 = arith.constant 0 : index
    %81 = vector.load %arg3[%c0_37, %c0_38] : memref<8x144xbf16, #tpu.memory_space<vmem>>, vector<8x144xbf16>
    %82 = arith.truncf %80 : vector<16x4xf32> to vector<16x4xbf16>
    %c0_39 = arith.constant 0 : index
    %c3_40 = arith.constant 3 : index
    %83 = vector.load %arg8[%c0_39, %c3_40] : memref<24x10xbf16, #tpu.memory_space<vmem>>, vector<16x4xbf16>
    tpu.vector_store %arg8[%c0_39, %c3_40], %82 {strides = array<i32>} : memref<24x10xbf16, #tpu.memory_space<vmem>>, vector<16x4xbf16>,
    %c0_41 = arith.constant 0 : index
    %c0_42 = arith.constant 0 : index
    %84 = vector.load %arg8[%c0_41, %c0_42] : memref<24x10xbf16, #tpu.memory_space<vmem>>, vector<16x4xbf16>
    %cst_43 = arith.constant 0.000000e+00 : bf16
    %85 = vector.broadcast %cst_43 : bf16 to vector<16x4xbf16>
    %86 = vector.shape_cast %21 : vector<1x4xi1> to vector<1x4xi1>
    %87 = vector.broadcast %86 : vector<1x4xi1> to vector<16x4xi1>
    %88 = arith.select %87, %84, %85 : vector<16x4xi1>, vector<16x4xbf16>
    %c0_44 = arith.constant 0 : index
    %c1_45 = arith.constant 1 : index
    %89 = vector.load %arg8[%c0_44, %c1_45] : memref<24x10xbf16, #tpu.memory_space<vmem>>, vector<16x4xbf16>
    %c0_46 = arith.constant 0 : index
    %c2_47 = arith.constant 2 : index
    %90 = vector.load %arg8[%c0_46, %c2_47] : memref<24x10xbf16, #tpu.memory_space<vmem>>, vector<16x4xbf16>
    %cst_48 = arith.constant 0.000000e+00 : bf16
    %91 = vector.broadcast %cst_48 : bf16 to vector<16x4xbf16>
    %92 = vector.shape_cast %23 : vector<1x4xi1> to vector<1x4xi1>
    %93 = vector.broadcast %92 : vector<1x4xi1> to vector<16x4xi1>
    %94 = arith.select %93, %90, %91 : vector<16x4xi1>, vector<16x4xbf16>
    %c0_49 = arith.constant 0 : index
    %c2_50 = arith.constant 2 : index
    %95 = vector.load %arg8[%c0_49, %c2_50] : memref<24x10xbf16, #tpu.memory_space<vmem>>, vector<16x4xbf16>
    %cst_51 = arith.constant 0.000000e+00 : bf16
    %96 = vector.broadcast %cst_51 : bf16 to vector<16x4xbf16>
    %97 = vector.shape_cast %21 : vector<1x4xi1> to vector<1x4xi1>
    %98 = vector.broadcast %97 : vector<1x4xi1> to vector<16x4xi1>
    %99 = arith.select %98, %95, %96 : vector<16x4xi1>, vector<16x4xbf16>
    %c0_52 = arith.constant 0 : index
    %c3_53 = arith.constant 3 : index
    %100 = vector.load %arg8[%c0_52, %c3_53] : memref<24x10xbf16, #tpu.memory_space<vmem>>, vector<16x4xbf16>
    %c0_54 = arith.constant 0 : index
    %c4_55 = arith.constant 4 : index
    %101 = vector.load %arg8[%c0_54, %c4_55] : memref<24x10xbf16, #tpu.memory_space<vmem>>, vector<16x4xbf16>
    %cst_56 = arith.constant 0.000000e+00 : bf16
    %102 = vector.broadcast %cst_56 : bf16 to vector<16x4xbf16>
    %103 = vector.shape_cast %23 : vector<1x4xi1> to vector<1x4xi1>
    %104 = vector.broadcast %103 : vector<1x4xi1> to vector<16x4xi1>
    %105 = arith.select %104, %101, %102 : vector<16x4xi1>, vector<16x4xbf16>
    %c0_57 = arith.constant 0 : index
    %c4_58 = arith.constant 4 : index
    %106 = vector.load %arg8[%c0_57, %c4_58] : memref<24x10xbf16, #tpu.memory_space<vmem>>, vector<16x4xbf16>
    %cst_59 = arith.constant 0.000000e+00 : bf16
    %107 = vector.broadcast %cst_59 : bf16 to vector<16x4xbf16>
    %108 = vector.shape_cast %21 : vector<1x4xi1> to vector<1x4xi1>
    %109 = vector.broadcast %108 : vector<1x4xi1> to vector<16x4xi1>
    %110 = arith.select %109, %106, %107 : vector<16x4xi1>, vector<16x4xbf16>
    %c0_60 = arith.constant 0 : index
    %c5_61 = arith.constant 5 : index
    %111 = vector.load %arg8[%c0_60, %c5_61] : memref<24x10xbf16, #tpu.memory_space<vmem>>, vector<16x4xbf16>
    %c0_62 = arith.constant 0 : index
    %c6_63 = arith.constant 6 : index
    %112 = vector.load %arg8[%c0_62, %c6_63] : memref<24x10xbf16, #tpu.memory_space<vmem>>, vector<16x4xbf16>
    %cst_64 = arith.constant 0.000000e+00 : bf16
    %113 = vector.broadcast %cst_64 : bf16 to vector<16x4xbf16>
    %114 = vector.shape_cast %23 : vector<1x4xi1> to vector<1x4xi1>
    %115 = vector.broadcast %114 : vector<1x4xi1> to vector<16x4xi1>
    %116 = arith.select %115, %112, %113 : vector<16x4xi1>, vector<16x4xbf16>
    %117 = tpu.concatenate %88, %89, %94, %99, %100, %105, %110, %111, %116 in 0 : vector<16x4xbf16>, vector<16x4xbf16>, vector<16x4xbf16>, vector<16x4xbf16>, vector<16x4xbf16>, vector<16x4xbf16>, vector<16x4xbf16>, vector<16x4xbf16>, vector<16x4xbf16> -> vector<144x4xbf16>
    %cst_65 = arith.constant dense<0.000000e+00> : vector<8x4xf32>
    %118 = tpu.matmul %81, %117, %cst_65 {dimension_numbers = #tpu.dot_dimension_numbers<[1], [0], [0], [1], [0, 0, 1, 1], [], []>} : vector<8x144xbf16>, vector<144x4xbf16>, vector<8x4xf32> -> vector<8x4xf32>
    %cst_66 = arith.constant dense<0.000000e+00> : vector<8xf32>
    %119 = vector.multi_reduction <add>, %118, %cst_66 [1] : vector<8x4xf32> to vector<8xf32>
    %120 = vector.shape_cast %119 : vector<8xf32> to vector<8x1xf32>
    %cst_67 = arith.constant 4.000000e+00 : f32
    %121 = vector.broadcast %cst_67 : f32 to vector<8x1xf32>
    %122 = arith.divf %120, %121 : vector<8x1xf32>
    %123 = vector.broadcast %122 : vector<8x1xf32> to vector<8x4xf32>
    %124 = arith.subf %118, %123 : vector<8x4xf32>
    %125 = arith.mulf %124, %124 : vector<8x4xf32>
    %cst_68 = arith.constant dense<0.000000e+00> : vector<8xf32>
    %126 = vector.multi_reduction <add>, %125, %cst_68 [1] : vector<8x4xf32> to vector<8xf32>
    %127 = vector.shape_cast %126 : vector<8xf32> to vector<8x1xf32>
    %cst_69 = arith.constant 4.000000e+00 : f32
    %128 = vector.broadcast %cst_69 : f32 to vector<8x1xf32>
    %129 = arith.divf %127, %128 : vector<8x1xf32>
    %cst_70 = arith.constant 9.99999974E-6 : f32
    %130 = vector.broadcast %cst_70 : f32 to vector<8x1xf32>
    %131 = arith.addf %129, %130 : vector<8x1xf32>
    %132 = math.rsqrt %131 : vector<8x1xf32>
    %133 = vector.broadcast %132 : vector<8x1xf32> to vector<8x4xf32>
    %134 = arith.mulf %124, %133 : vector<8x4xf32>
    %cst_71 = arith.constant 0.000000e+00 : f32
    %135 = vector.broadcast %cst_71 : f32 to vector<8x4xf32>
    %136 = arith.maximumf %134, %135 : vector<8x4xf32>
    %137 = arith.extf %25 : vector<16x4xbf16> to vector<16x4xf32>
    %138 = tpu.concatenate %136, %137 in 0 : vector<8x4xf32>, vector<16x4xf32> -> vector<24x4xf32>
    %c0_72 = arith.constant 0 : index
    %c0_73 = arith.constant 0 : index
    %139 = vector.load %arg4[%c0_72, %c0_73] : memref<16x216xbf16, #tpu.memory_space<vmem>>, vector<16x216xbf16>
    %140 = arith.truncf %138 : vector<24x4xf32> to vector<24x4xbf16>
    %c0_74 = arith.constant 0 : index
    %c3_75 = arith.constant 3 : index
    %141 = vector.load %arg8[%c0_74, %c3_75] : memref<24x10xbf16, #tpu.memory_space<vmem>>, vector<24x4xbf16>
    tpu.vector_store %arg8[%c0_74, %c3_75], %140 {strides = array<i32>} : memref<24x10xbf16, #tpu.memory_space<vmem>>, vector<24x4xbf16>,
    %c0_76 = arith.constant 0 : index
    %c0_77 = arith.constant 0 : index
    %142 = vector.load %arg8[%c0_76, %c0_77] : memref<24x10xbf16, #tpu.memory_space<vmem>>, vector<24x4xbf16>
    %cst_78 = arith.constant 0.000000e+00 : bf16
    %143 = vector.broadcast %cst_78 : bf16 to vector<24x4xbf16>
    %144 = vector.shape_cast %21 : vector<1x4xi1> to vector<1x4xi1>
    %145 = vector.broadcast %144 : vector<1x4xi1> to vector<24x4xi1>
    %146 = arith.select %145, %142, %143 : vector<24x4xi1>, vector<24x4xbf16>
    %c0_79 = arith.constant 0 : index
    %c1_80 = arith.constant 1 : index
    %147 = vector.load %arg8[%c0_79, %c1_80] : memref<24x10xbf16, #tpu.memory_space<vmem>>, vector<24x4xbf16>
    %c0_81 = arith.constant 0 : index
    %c2_82 = arith.constant 2 : index
    %148 = vector.load %arg8[%c0_81, %c2_82] : memref<24x10xbf16, #tpu.memory_space<vmem>>, vector<24x4xbf16>
    %cst_83 = arith.constant 0.000000e+00 : bf16
    %149 = vector.broadcast %cst_83 : bf16 to vector<24x4xbf16>
    %150 = vector.shape_cast %23 : vector<1x4xi1> to vector<1x4xi1>
    %151 = vector.broadcast %150 : vector<1x4xi1> to vector<24x4xi1>
    %152 = arith.select %151, %148, %149 : vector<24x4xi1>, vector<24x4xbf16>
    %c0_84 = arith.constant 0 : index
    %c2_85 = arith.constant 2 : index
    %153 = vector.load %arg8[%c0_84, %c2_85] : memref<24x10xbf16, #tpu.memory_space<vmem>>, vector<24x4xbf16>
    %cst_86 = arith.constant 0.000000e+00 : bf16
    %154 = vector.broadcast %cst_86 : bf16 to vector<24x4xbf16>
    %155 = vector.shape_cast %21 : vector<1x4xi1> to vector<1x4xi1>
    %156 = vector.broadcast %155 : vector<1x4xi1> to vector<24x4xi1>
    %157 = arith.select %156, %153, %154 : vector<24x4xi1>, vector<24x4xbf16>
    %c0_87 = arith.constant 0 : index
    %c3_88 = arith.constant 3 : index
    %158 = vector.load %arg8[%c0_87, %c3_88] : memref<24x10xbf16, #tpu.memory_space<vmem>>, vector<24x4xbf16>
    %c0_89 = arith.constant 0 : index
    %c4_90 = arith.constant 4 : index
    %159 = vector.load %arg8[%c0_89, %c4_90] : memref<24x10xbf16, #tpu.memory_space<vmem>>, vector<24x4xbf16>
    %cst_91 = arith.constant 0.000000e+00 : bf16
    %160 = vector.broadcast %cst_91 : bf16 to vector<24x4xbf16>
    %161 = vector.shape_cast %23 : vector<1x4xi1> to vector<1x4xi1>
    %162 = vector.broadcast %161 : vector<1x4xi1> to vector<24x4xi1>
    %163 = arith.select %162, %159, %160 : vector<24x4xi1>, vector<24x4xbf16>
    %c0_92 = arith.constant 0 : index
    %c4_93 = arith.constant 4 : index
    %164 = vector.load %arg8[%c0_92, %c4_93] : memref<24x10xbf16, #tpu.memory_space<vmem>>, vector<24x4xbf16>
    %cst_94 = arith.constant 0.000000e+00 : bf16
    %165 = vector.broadcast %cst_94 : bf16 to vector<24x4xbf16>
    %166 = vector.shape_cast %21 : vector<1x4xi1> to vector<1x4xi1>
    %167 = vector.broadcast %166 : vector<1x4xi1> to vector<24x4xi1>
    %168 = arith.select %167, %164, %165 : vector<24x4xi1>, vector<24x4xbf16>
    %c0_95 = arith.constant 0 : index
    %c5_96 = arith.constant 5 : index
    %169 = vector.load %arg8[%c0_95, %c5_96] : memref<24x10xbf16, #tpu.memory_space<vmem>>, vector<24x4xbf16>
    %c0_97 = arith.constant 0 : index
    %c6_98 = arith.constant 6 : index
    %170 = vector.load %arg8[%c0_97, %c6_98] : memref<24x10xbf16, #tpu.memory_space<vmem>>, vector<24x4xbf16>
    %cst_99 = arith.constant 0.000000e+00 : bf16
    %171 = vector.broadcast %cst_99 : bf16 to vector<24x4xbf16>
    %172 = vector.shape_cast %23 : vector<1x4xi1> to vector<1x4xi1>
    %173 = vector.broadcast %172 : vector<1x4xi1> to vector<24x4xi1>
    %174 = arith.select %173, %170, %171 : vector<24x4xi1>, vector<24x4xbf16>
    %175 = tpu.concatenate %146, %147, %152, %157, %158, %163, %168, %169, %174 in 0 : vector<24x4xbf16>, vector<24x4xbf16>, vector<24x4xbf16>, vector<24x4xbf16>, vector<24x4xbf16>, vector<24x4xbf16>, vector<24x4xbf16>, vector<24x4xbf16>, vector<24x4xbf16> -> vector<216x4xbf16>
    %cst_100 = arith.constant dense<0.000000e+00> : vector<16x4xf32>
    %176 = tpu.matmul %139, %175, %cst_100 {dimension_numbers = #tpu.dot_dimension_numbers<[1], [0], [0], [1], [0, 0, 1, 1], [], []>} : vector<16x216xbf16>, vector<216x4xbf16>, vector<16x4xf32> -> vector<16x4xf32>
    %c0_101 = arith.constant 0 : index
    %c0_102 = arith.constant 0 : index
    %177 = vector.load %arg5[%c0_101, %c0_102] : memref<16x1xf32, #tpu.memory_space<vmem>>, vector<16x1xf32>
    %178 = vector.broadcast %177 : vector<16x1xf32> to vector<16x4xf32>
    %179 = arith.addf %176, %178 : vector<16x4xf32>
    %cst_103 = arith.constant 0.000000e+00 : f32
    %180 = vector.broadcast %cst_103 : f32 to vector<16x4xf32>
    %181 = arith.maximumf %179, %180 : vector<16x4xf32>
    %c0_104 = arith.constant 0 : index
    %c0_105 = arith.constant 0 : index
    %182 = vector.load %arg6[%c0_104, %c0_105] : memref<8x144xbf16, #tpu.memory_space<vmem>>, vector<8x144xbf16>
    %183 = arith.truncf %181 : vector<16x4xf32> to vector<16x4xbf16>
    %c0_106 = arith.constant 0 : index
    %c3_107 = arith.constant 3 : index
    %184 = vector.load %arg8[%c0_106, %c3_107] : memref<24x10xbf16, #tpu.memory_space<vmem>>, vector<16x4xbf16>
    tpu.vector_store %arg8[%c0_106, %c3_107], %183 {strides = array<i32>} : memref<24x10xbf16, #tpu.memory_space<vmem>>, vector<16x4xbf16>,
    %c0_108 = arith.constant 0 : index
    %c0_109 = arith.constant 0 : index
    %185 = vector.load %arg8[%c0_108, %c0_109] : memref<24x10xbf16, #tpu.memory_space<vmem>>, vector<16x4xbf16>
    %cst_110 = arith.constant 0.000000e+00 : bf16
    %186 = vector.broadcast %cst_110 : bf16 to vector<16x4xbf16>
    %187 = vector.shape_cast %21 : vector<1x4xi1> to vector<1x4xi1>
    %188 = vector.broadcast %187 : vector<1x4xi1> to vector<16x4xi1>
    %189 = arith.select %188, %185, %186 : vector<16x4xi1>, vector<16x4xbf16>
    %c0_111 = arith.constant 0 : index
    %c1_112 = arith.constant 1 : index
    %190 = vector.load %arg8[%c0_111, %c1_112] : memref<24x10xbf16, #tpu.memory_space<vmem>>, vector<16x4xbf16>
    %c0_113 = arith.constant 0 : index
    %c2_114 = arith.constant 2 : index
    %191 = vector.load %arg8[%c0_113, %c2_114] : memref<24x10xbf16, #tpu.memory_space<vmem>>, vector<16x4xbf16>
    %cst_115 = arith.constant 0.000000e+00 : bf16
    %192 = vector.broadcast %cst_115 : bf16 to vector<16x4xbf16>
    %193 = vector.shape_cast %23 : vector<1x4xi1> to vector<1x4xi1>
    %194 = vector.broadcast %193 : vector<1x4xi1> to vector<16x4xi1>
    %195 = arith.select %194, %191, %192 : vector<16x4xi1>, vector<16x4xbf16>
    %c0_116 = arith.constant 0 : index
    %c2_117 = arith.constant 2 : index
    %196 = vector.load %arg8[%c0_116, %c2_117] : memref<24x10xbf16, #tpu.memory_space<vmem>>, vector<16x4xbf16>
    %cst_118 = arith.constant 0.000000e+00 : bf16
    %197 = vector.broadcast %cst_118 : bf16 to vector<16x4xbf16>
    %198 = vector.shape_cast %21 : vector<1x4xi1> to vector<1x4xi1>
    %199 = vector.broadcast %198 : vector<1x4xi1> to vector<16x4xi1>
    %200 = arith.select %199, %196, %197 : vector<16x4xi1>, vector<16x4xbf16>
    %c0_119 = arith.constant 0 : index
    %c3_120 = arith.constant 3 : index
    %201 = vector.load %arg8[%c0_119, %c3_120] : memref<24x10xbf16, #tpu.memory_space<vmem>>, vector<16x4xbf16>
    %c0_121 = arith.constant 0 : index
    %c4_122 = arith.constant 4 : index
    %202 = vector.load %arg8[%c0_121, %c4_122] : memref<24x10xbf16, #tpu.memory_space<vmem>>, vector<16x4xbf16>
    %cst_123 = arith.constant 0.000000e+00 : bf16
    %203 = vector.broadcast %cst_123 : bf16 to vector<16x4xbf16>
    %204 = vector.shape_cast %23 : vector<1x4xi1> to vector<1x4xi1>
    %205 = vector.broadcast %204 : vector<1x4xi1> to vector<16x4xi1>
    %206 = arith.select %205, %202, %203 : vector<16x4xi1>, vector<16x4xbf16>
    %c0_124 = arith.constant 0 : index
    %c4_125 = arith.constant 4 : index
    %207 = vector.load %arg8[%c0_124, %c4_125] : memref<24x10xbf16, #tpu.memory_space<vmem>>, vector<16x4xbf16>
    %cst_126 = arith.constant 0.000000e+00 : bf16
    %208 = vector.broadcast %cst_126 : bf16 to vector<16x4xbf16>
    %209 = vector.shape_cast %21 : vector<1x4xi1> to vector<1x4xi1>
    %210 = vector.broadcast %209 : vector<1x4xi1> to vector<16x4xi1>
    %211 = arith.select %210, %207, %208 : vector<16x4xi1>, vector<16x4xbf16>
    %c0_127 = arith.constant 0 : index
    %c5_128 = arith.constant 5 : index
    %212 = vector.load %arg8[%c0_127, %c5_128] : memref<24x10xbf16, #tpu.memory_space<vmem>>, vector<16x4xbf16>
    %c0_129 = arith.constant 0 : index
    %c6_130 = arith.constant 6 : index
    %213 = vector.load %arg8[%c0_129, %c6_130] : memref<24x10xbf16, #tpu.memory_space<vmem>>, vector<16x4xbf16>
    %cst_131 = arith.constant 0.000000e+00 : bf16
    %214 = vector.broadcast %cst_131 : bf16 to vector<16x4xbf16>
    %215 = vector.shape_cast %23 : vector<1x4xi1> to vector<1x4xi1>
    %216 = vector.broadcast %215 : vector<1x4xi1> to vector<16x4xi1>
    %217 = arith.select %216, %213, %214 : vector<16x4xi1>, vector<16x4xbf16>
    %218 = tpu.concatenate %189, %190, %195, %200, %201, %206, %211, %212, %217 in 0 : vector<16x4xbf16>, vector<16x4xbf16>, vector<16x4xbf16>, vector<16x4xbf16>, vector<16x4xbf16>, vector<16x4xbf16>, vector<16x4xbf16>, vector<16x4xbf16>, vector<16x4xbf16> -> vector<144x4xbf16>
    %cst_132 = arith.constant dense<0.000000e+00> : vector<8x4xf32>
    %219 = tpu.matmul %182, %218, %cst_132 {dimension_numbers = #tpu.dot_dimension_numbers<[1], [0], [0], [1], [0, 0, 1, 1], [], []>} : vector<8x144xbf16>, vector<144x4xbf16>, vector<8x4xf32> -> vector<8x4xf32>
    %cst_133 = arith.constant dense<0.000000e+00> : vector<8xf32>
    %220 = vector.multi_reduction <add>, %219, %cst_133 [1] : vector<8x4xf32> to vector<8xf32>
    %221 = vector.shape_cast %220 : vector<8xf32> to vector<8x1xf32>
    %cst_134 = arith.constant 4.000000e+00 : f32
    %222 = vector.broadcast %cst_134 : f32 to vector<8x1xf32>
    %223 = arith.divf %221, %222 : vector<8x1xf32>
    %224 = vector.broadcast %223 : vector<8x1xf32> to vector<8x4xf32>
    %225 = arith.subf %219, %224 : vector<8x4xf32>
    %226 = arith.mulf %225, %225 : vector<8x4xf32>
    %cst_135 = arith.constant dense<0.000000e+00> : vector<8xf32>
    %227 = vector.multi_reduction <add>, %226, %cst_135 [1] : vector<8x4xf32> to vector<8xf32>
    %228 = vector.shape_cast %227 : vector<8xf32> to vector<8x1xf32>
    %cst_136 = arith.constant 4.000000e+00 : f32
    %229 = vector.broadcast %cst_136 : f32 to vector<8x1xf32>
    %230 = arith.divf %228, %229 : vector<8x1xf32>
    %cst_137 = arith.constant 9.99999974E-6 : f32
    %231 = vector.broadcast %cst_137 : f32 to vector<8x1xf32>
    %232 = arith.addf %230, %231 : vector<8x1xf32>
    %233 = math.rsqrt %232 : vector<8x1xf32>
    %234 = vector.broadcast %233 : vector<8x1xf32> to vector<8x4xf32>
    %235 = arith.mulf %225, %234 : vector<8x4xf32>
    %236 = arith.truncf %235 : vector<8x4xf32> to vector<8x4xbf16>
    %c0_138 = arith.constant 0 : index
    %c0_139 = arith.constant 0 : index
    %c0_140 = arith.constant 0 : index
    %237 = vector.load %arg7[%c0_138, %c0_139, %c0_140] : memref<1x8x4xbf16, #tpu.memory_space<vmem>>, vector<1x8x4xbf16>
    %238 = vector.shape_cast %237 : vector<1x8x4xbf16> to vector<8x4xbf16>
    %239 = vector.shape_cast %236 : vector<8x4xbf16> to vector<1x8x4xbf16>
    tpu.vector_store %arg7[%c0_138, %c0_139, %c0_140], %239 {strides = array<i32>} : memref<1x8x4xbf16, #tpu.memory_space<vmem>>, vector<1x8x4xbf16>,
    return
  }
  func.func @transform_0(%arg0: i32) -> (i32, i32, i32) {
    %c0_i32 = arith.constant 0 : i32
    %c0_i32_0 = arith.constant 0 : i32
    %c0_i32_1 = arith.constant 0 : i32
    return %arg0, %c0_i32, %c0_i32_0 : i32, i32, i32
  }
  func.func @transform_1(%arg0: i32) -> (i32, i32) {
    %c0_i32 = arith.constant 0 : i32
    %c0_i32_0 = arith.constant 0 : i32
    %c0_i32_1 = arith.constant 0 : i32
    return %c0_i32, %c0_i32_0 : i32, i32
  }
  func.func @transform_2(%arg0: i32) -> (i32, i32) {
    %c0_i32 = arith.constant 0 : i32
    %c0_i32_0 = arith.constant 0 : i32
    %c0_i32_1 = arith.constant 0 : i32
    return %c0_i32, %c0_i32_0 : i32, i32
  }
  func.func @transform_3(%arg0: i32) -> (i32, i32) {
    %c0_i32 = arith.constant 0 : i32
    %c0_i32_0 = arith.constant 0 : i32
    %c0_i32_1 = arith.constant 0 : i32
    return %c0_i32, %c0_i32_0 : i32, i32
  }
  func.func @transform_4(%arg0: i32) -> (i32, i32) {
    %c0_i32 = arith.constant 0 : i32
    %c0_i32_0 = arith.constant 0 : i32
    %c0_i32_1 = arith.constant 0 : i32
    return %c0_i32, %c0_i32_0 : i32, i32
  }
  func.func @transform_5(%arg0: i32) -> (i32, i32) {
    %c0_i32 = arith.constant 0 : i32
    %c0_i32_0 = arith.constant 0 : i32
    %c0_i32_1 = arith.constant 0 : i32
    return %c0_i32, %c0_i32_0 : i32, i32
  }
  func.func @transform_6(%arg0: i32) -> (i32, i32, i32) {
    %c0_i32 = arith.constant 0 : i32
    %c0_i32_0 = arith.constant 0 : i32
    %c0_i32_1 = arith.constant 0 : i32
    return %arg0, %c0_i32, %c0_i32_0 : i32, i32, i32
  }
}

module attributes {stable_mosaic.version = 11 : i64} {
  func.func @kernel(%arg0: i32, %arg1: memref<1x16x2xbf16, #tpu.memory_space<vmem>>, %arg2: memref<2x4xbf16, #tpu.memory_space<vmem>>, %arg3: memref<1x16x8xbf16, #tpu.memory_space<vmem>>) attributes {dimension_semantics = [#tpu.dimension_semantics<parallel>], iteration_bounds = array<i64: 2>, scalar_prefetch = 0 : i64, scratch_operands = 0 : i64, tpu.core_type = #tpu.core_type<tc>, window_params = [{transform_indices = @transform_0, window_bounds = array<i64: 1, 16, 2>}, {pipeline_mode = #tpu.pipeline_mode<synchronous>, transform_indices = @transform_1, window_bounds = array<i64: 2, 4>}, {transform_indices = @transform_2, window_bounds = array<i64: 1, 16, 8>}]} {
    %c0 = arith.constant 0 : index
    %c0_0 = arith.constant 0 : index
    %c0_1 = arith.constant 0 : index
    %0 = vector.load %arg1[%c0, %c0_0, %c0_1] : memref<1x16x2xbf16, #tpu.memory_space<vmem>>, vector<1x16x2xbf16>
    %1 = vector.shape_cast %0 : vector<1x16x2xbf16> to vector<16x2xbf16>
    %c0_2 = arith.constant 0 : index
    %c0_3 = arith.constant 0 : index
    %2 = vector.load %arg2[%c0_2, %c0_3] : memref<2x4xbf16, #tpu.memory_space<vmem>>, vector<2x4xbf16>
    %cst = arith.constant dense<0.000000e+00> : vector<16x4xf32>
    %3 = tpu.matmul %1, %2, %cst {dimension_numbers = #tpu.dot_dimension_numbers<[1], [0], [0], [1], [0, 0, 1, 1], [], []>} : vector<16x2xbf16>, vector<2x4xbf16>, vector<16x4xf32> -> vector<16x4xf32>
    %4 = tpu.iota {dimensions = array<i32: 0>} : vector<16x1xi32>
    %c2_i32 = arith.constant 2 : i32
    %c0_i32 = arith.constant 0 : i32
    %5 = arith.cmpi eq, %c2_i32, %c0_i32 : i32
    %c1_i32 = arith.constant 1 : i32
    %6 = arith.select %5, %c1_i32, %c2_i32 : i32
    %7 = vector.broadcast %6 : i32 to vector<16x1xi32>
    %8 = arith.remsi %4, %7 : vector<16x1xi32>
    %c0_i32_4 = arith.constant 0 : i32
    %9 = vector.broadcast %c0_i32_4 : i32 to vector<16x1xi32>
    %10 = arith.cmpi ne, %8, %9 : vector<16x1xi32>
    %c0_i32_5 = arith.constant 0 : i32
    %11 = vector.broadcast %c0_i32_5 : i32 to vector<16x1xi32>
    %12 = arith.cmpi slt, %8, %11 : vector<16x1xi32>
    %c0_i32_6 = arith.constant 0 : i32
    %13 = arith.cmpi slt, %6, %c0_i32_6 : i32
    %14 = vector.broadcast %13 : i1 to vector<16x1xi1>
    %15 = vector.broadcast %14 : vector<16x1xi1> to vector<16x1xi1>
    %16 = arith.xori %12, %15 : vector<16x1xi1>
    %17 = arith.andi %16, %10 : vector<16x1xi1>
    %18 = vector.broadcast %6 : i32 to vector<16x1xi32>
    %19 = arith.addi %8, %18 : vector<16x1xi32>
    %20 = arith.select %17, %19, %8 : vector<16x1xi1>, vector<16x1xi32>
    %21 = vector.extract_strided_slice %3 {offsets = [0, 0], sizes = [1, 4], strides = [1, 1]} : vector<16x4xf32> to vector<1x4xf32>
    %22 = vector.extract_strided_slice %3 {offsets = [0, 0], sizes = [15, 4], strides = [1, 1]} : vector<16x4xf32> to vector<15x4xf32>
    %23 = tpu.concatenate %21, %22 in 0 : vector<1x4xf32>, vector<15x4xf32> -> vector<16x4xf32>
    %c0_i32_7 = arith.constant 0 : i32
    %24 = vector.broadcast %c0_i32_7 : i32 to vector<16x1xi32>
    %25 = arith.cmpi eq, %20, %24 : vector<16x1xi32>
    %26 = vector.shape_cast %25 : vector<16x1xi1> to vector<16x1xi1>
    %27 = vector.broadcast %26 : vector<16x1xi1> to vector<16x4xi1>
    %28 = arith.select %27, %3, %23 : vector<16x4xi1>, vector<16x4xf32>
    %29 = vector.extract_strided_slice %3 {offsets = [1, 0], sizes = [15, 4], strides = [1, 1]} : vector<16x4xf32> to vector<15x4xf32>
    %30 = vector.extract_strided_slice %3 {offsets = [15, 0], sizes = [1, 4], strides = [1, 1]} : vector<16x4xf32> to vector<1x4xf32>
    %31 = tpu.concatenate %29, %30 in 0 : vector<15x4xf32>, vector<1x4xf32> -> vector<16x4xf32>
    %c1_i32_8 = arith.constant 1 : i32
    %32 = vector.broadcast %c1_i32_8 : i32 to vector<16x1xi32>
    %33 = arith.cmpi eq, %20, %32 : vector<16x1xi32>
    %34 = vector.shape_cast %33 : vector<16x1xi1> to vector<16x1xi1>
    %35 = vector.broadcast %34 : vector<16x1xi1> to vector<16x4xi1>
    %36 = arith.select %35, %3, %31 : vector<16x4xi1>, vector<16x4xf32>
    %cst_9 = arith.constant 7.500000e-01 : f32
    %37 = vector.broadcast %cst_9 : f32 to vector<16x4xf32>
    %38 = arith.mulf %37, %3 : vector<16x4xf32>
    %cst_10 = arith.constant 2.500000e-01 : f32
    %39 = vector.broadcast %cst_10 : f32 to vector<16x4xf32>
    %40 = arith.mulf %39, %28 : vector<16x4xf32>
    %41 = arith.addf %38, %40 : vector<16x4xf32>
    %cst_11 = arith.constant 7.500000e-01 : f32
    %42 = vector.broadcast %cst_11 : f32 to vector<16x4xf32>
    %43 = arith.mulf %42, %3 : vector<16x4xf32>
    %cst_12 = arith.constant 2.500000e-01 : f32
    %44 = vector.broadcast %cst_12 : f32 to vector<16x4xf32>
    %45 = arith.mulf %44, %36 : vector<16x4xf32>
    %46 = arith.addf %43, %45 : vector<16x4xf32>
    %47 = tpu.concatenate %41, %46 in 1 : vector<16x4xf32>, vector<16x4xf32> -> vector<16x8xf32>
    %cst_13 = arith.constant 0.000000e+00 : f32
    %48 = vector.broadcast %cst_13 : f32 to vector<16x8xf32>
    %49 = arith.maximumf %47, %48 : vector<16x8xf32>
    %50 = arith.truncf %49 : vector<16x8xf32> to vector<16x8xbf16>
    %c0_14 = arith.constant 0 : index
    %c0_15 = arith.constant 0 : index
    %c0_16 = arith.constant 0 : index
    %51 = vector.load %arg3[%c0_14, %c0_15, %c0_16] : memref<1x16x8xbf16, #tpu.memory_space<vmem>>, vector<1x16x8xbf16>
    %52 = vector.shape_cast %51 : vector<1x16x8xbf16> to vector<16x8xbf16>
    %53 = vector.shape_cast %50 : vector<16x8xbf16> to vector<1x16x8xbf16>
    tpu.vector_store %arg3[%c0_14, %c0_15, %c0_16], %53 {strides = array<i32>} : memref<1x16x8xbf16, #tpu.memory_space<vmem>>, vector<1x16x8xbf16>,
    return
  }
  func.func @transform_0(%arg0: i32) -> (i32, i32, i32) {
    %c0_i32 = arith.constant 0 : i32
    %c0_i32_0 = arith.constant 0 : i32
    %c0_i32_1 = arith.constant 0 : i32
    return %arg0, %c0_i32, %c0_i32_0 : i32, i32, i32
  }
  func.func @transform_1(%arg0: i32) -> (i32, i32) {
    %c0_i32 = arith.constant 0 : i32
    %c0_i32_0 = arith.constant 0 : i32
    %c0_i32_1 = arith.constant 0 : i32
    return %c0_i32, %c0_i32_0 : i32, i32
  }
  func.func @transform_2(%arg0: i32) -> (i32, i32, i32) {
    %c0_i32 = arith.constant 0 : i32
    %c0_i32_0 = arith.constant 0 : i32
    %c0_i32_1 = arith.constant 0 : i32
    return %arg0, %c0_i32, %c0_i32_0 : i32, i32, i32
  }
}

module attributes {stable_mosaic.version = 11 : i64} {
  func.func @kernel(%arg0: i32, %arg1: memref<1x8x16xbf16, #tpu.memory_space<vmem>>, %arg2: memref<1x16x16xbf16, #tpu.memory_space<vmem>>, %arg3: memref<16x216xbf16, #tpu.memory_space<vmem>>, %arg4: memref<16x1xf32, #tpu.memory_space<vmem>>, %arg5: memref<8x144xbf16, #tpu.memory_space<vmem>>, %arg6: memref<1x8x16xbf16, #tpu.memory_space<vmem>>, %arg7: memref<24x26xbf16, #tpu.memory_space<vmem>>) attributes {dimension_semantics = [#tpu.dimension_semantics<parallel>], iteration_bounds = array<i64: 2>, scalar_prefetch = 0 : i64, scratch_operands = 1 : i64, tpu.core_type = #tpu.core_type<tc>, window_params = [{transform_indices = @transform_0, window_bounds = array<i64: 1, 8, 16>}, {transform_indices = @transform_1, window_bounds = array<i64: 1, 16, 16>}, {pipeline_mode = #tpu.pipeline_mode<synchronous>, transform_indices = @transform_2, window_bounds = array<i64: 16, 216>}, {pipeline_mode = #tpu.pipeline_mode<synchronous>, transform_indices = @transform_3, window_bounds = array<i64: 16, 1>}, {pipeline_mode = #tpu.pipeline_mode<synchronous>, transform_indices = @transform_4, window_bounds = array<i64: 8, 144>}, {transform_indices = @transform_5, window_bounds = array<i64: 1, 8, 16>}]} {
    %c0_i32 = arith.constant 0 : i32
    %0 = arith.cmpi eq, %arg0, %c0_i32 : i32
    %1 = arith.extui %0 : i1 to i32
    %c0_i32_0 = arith.constant 0 : i32
    %2 = arith.cmpi ne, %1, %c0_i32_0 : i32
    scf.if %2 {
      %cst_71 = arith.constant 0.000000e+00 : bf16
      %129 = vector.broadcast %cst_71 : bf16 to vector<24x5xbf16>
      %c0_72 = arith.constant 0 : index
      %c0_73 = arith.constant 0 : index
      %130 = vector.load %arg7[%c0_72, %c0_73] : memref<24x26xbf16, #tpu.memory_space<vmem>>, vector<24x5xbf16>
      tpu.vector_store %arg7[%c0_72, %c0_73], %129 {strides = array<i32>} : memref<24x26xbf16, #tpu.memory_space<vmem>>, vector<24x5xbf16>,
      %cst_74 = arith.constant 0.000000e+00 : bf16
      %131 = vector.broadcast %cst_74 : bf16 to vector<24x5xbf16>
      %c0_75 = arith.constant 0 : index
      %c21 = arith.constant 21 : index
      %132 = vector.load %arg7[%c0_75, %c21] : memref<24x26xbf16, #tpu.memory_space<vmem>>, vector<24x5xbf16>
      tpu.vector_store %arg7[%c0_75, %c21], %131 {strides = array<i32>} : memref<24x26xbf16, #tpu.memory_space<vmem>>, vector<24x5xbf16>,
    } else {
    }
    %3 = tpu.iota {dimensions = array<i32: 1>} : vector<1x16xi32>
    %c4_i32 = arith.constant 4 : i32
    %c0_i32_1 = arith.constant 0 : i32
    %4 = arith.cmpi eq, %c4_i32, %c0_i32_1 : i32
    %c1_i32 = arith.constant 1 : i32
    %5 = arith.select %4, %c1_i32, %c4_i32 : i32
    %6 = vector.broadcast %5 : i32 to vector<1x16xi32>
    %7 = arith.remsi %3, %6 : vector<1x16xi32>
    %c0_i32_2 = arith.constant 0 : i32
    %8 = vector.broadcast %c0_i32_2 : i32 to vector<1x16xi32>
    %9 = arith.cmpi ne, %7, %8 : vector<1x16xi32>
    %c0_i32_3 = arith.constant 0 : i32
    %10 = vector.broadcast %c0_i32_3 : i32 to vector<1x16xi32>
    %11 = arith.cmpi slt, %7, %10 : vector<1x16xi32>
    %c0_i32_4 = arith.constant 0 : i32
    %12 = arith.cmpi slt, %5, %c0_i32_4 : i32
    %13 = vector.broadcast %12 : i1 to vector<1x16xi1>
    %14 = vector.broadcast %13 : vector<1x16xi1> to vector<1x16xi1>
    %15 = arith.xori %11, %14 : vector<1x16xi1>
    %16 = arith.andi %15, %9 : vector<1x16xi1>
    %17 = vector.broadcast %5 : i32 to vector<1x16xi32>
    %18 = arith.addi %7, %17 : vector<1x16xi32>
    %19 = arith.select %16, %18, %7 : vector<1x16xi1>, vector<1x16xi32>
    %c0_i32_5 = arith.constant 0 : i32
    %20 = vector.broadcast %c0_i32_5 : i32 to vector<1x16xi32>
    %21 = arith.cmpi sgt, %19, %20 : vector<1x16xi32>
    %c3_i32 = arith.constant 3 : i32
    %22 = vector.broadcast %c3_i32 : i32 to vector<1x16xi32>
    %23 = arith.cmpi slt, %19, %22 : vector<1x16xi32>
    %c0 = arith.constant 0 : index
    %c0_6 = arith.constant 0 : index
    %c0_7 = arith.constant 0 : index
    %24 = vector.load %arg1[%c0, %c0_6, %c0_7] : memref<1x8x16xbf16, #tpu.memory_space<vmem>>, vector<1x8x16xbf16>
    %25 = vector.shape_cast %24 : vector<1x8x16xbf16> to vector<8x16xbf16>
    %c0_8 = arith.constant 0 : index
    %c0_9 = arith.constant 0 : index
    %c0_10 = arith.constant 0 : index
    %26 = vector.load %arg2[%c0_8, %c0_9, %c0_10] : memref<1x16x16xbf16, #tpu.memory_space<vmem>>, vector<1x16x16xbf16>
    %27 = vector.shape_cast %26 : vector<1x16x16xbf16> to vector<16x16xbf16>
    %28 = tpu.concatenate %25, %27 in 0 : vector<8x16xbf16>, vector<16x16xbf16> -> vector<24x16xbf16>
    %c0_11 = arith.constant 0 : index
    %c0_12 = arith.constant 0 : index
    %29 = vector.load %arg3[%c0_11, %c0_12] : memref<16x216xbf16, #tpu.memory_space<vmem>>, vector<16x216xbf16>
    %c0_13 = arith.constant 0 : index
    %c5 = arith.constant 5 : index
    %30 = vector.load %arg7[%c0_13, %c5] : memref<24x26xbf16, #tpu.memory_space<vmem>>, vector<24x16xbf16>
    tpu.vector_store %arg7[%c0_13, %c5], %28 {strides = array<i32>} : memref<24x26xbf16, #tpu.memory_space<vmem>>, vector<24x16xbf16>,
    %c0_14 = arith.constant 0 : index
    %c0_15 = arith.constant 0 : index
    %31 = vector.load %arg7[%c0_14, %c0_15] : memref<24x26xbf16, #tpu.memory_space<vmem>>, vector<24x16xbf16>
    %cst = arith.constant 0.000000e+00 : bf16
    %32 = vector.broadcast %cst : bf16 to vector<24x16xbf16>
    %33 = vector.shape_cast %21 : vector<1x16xi1> to vector<1x16xi1>
    %34 = vector.broadcast %33 : vector<1x16xi1> to vector<24x16xi1>
    %35 = arith.select %34, %31, %32 : vector<24x16xi1>, vector<24x16xbf16>
    %c0_16 = arith.constant 0 : index
    %c1 = arith.constant 1 : index
    %36 = vector.load %arg7[%c0_16, %c1] : memref<24x26xbf16, #tpu.memory_space<vmem>>, vector<24x16xbf16>
    %c0_17 = arith.constant 0 : index
    %c2 = arith.constant 2 : index
    %37 = vector.load %arg7[%c0_17, %c2] : memref<24x26xbf16, #tpu.memory_space<vmem>>, vector<24x16xbf16>
    %cst_18 = arith.constant 0.000000e+00 : bf16
    %38 = vector.broadcast %cst_18 : bf16 to vector<24x16xbf16>
    %39 = vector.shape_cast %23 : vector<1x16xi1> to vector<1x16xi1>
    %40 = vector.broadcast %39 : vector<1x16xi1> to vector<24x16xi1>
    %41 = arith.select %40, %37, %38 : vector<24x16xi1>, vector<24x16xbf16>
    %c0_19 = arith.constant 0 : index
    %c4 = arith.constant 4 : index
    %42 = vector.load %arg7[%c0_19, %c4] : memref<24x26xbf16, #tpu.memory_space<vmem>>, vector<24x16xbf16>
    %cst_20 = arith.constant 0.000000e+00 : bf16
    %43 = vector.broadcast %cst_20 : bf16 to vector<24x16xbf16>
    %44 = vector.shape_cast %21 : vector<1x16xi1> to vector<1x16xi1>
    %45 = vector.broadcast %44 : vector<1x16xi1> to vector<24x16xi1>
    %46 = arith.select %45, %42, %43 : vector<24x16xi1>, vector<24x16xbf16>
    %c0_21 = arith.constant 0 : index
    %c5_22 = arith.constant 5 : index
    %47 = vector.load %arg7[%c0_21, %c5_22] : memref<24x26xbf16, #tpu.memory_space<vmem>>, vector<24x16xbf16>
    %c0_23 = arith.constant 0 : index
    %c6 = arith.constant 6 : index
    %48 = vector.load %arg7[%c0_23, %c6] : memref<24x26xbf16, #tpu.memory_space<vmem>>, vector<24x16xbf16>
    %cst_24 = arith.constant 0.000000e+00 : bf16
    %49 = vector.broadcast %cst_24 : bf16 to vector<24x16xbf16>
    %50 = vector.shape_cast %23 : vector<1x16xi1> to vector<1x16xi1>
    %51 = vector.broadcast %50 : vector<1x16xi1> to vector<24x16xi1>
    %52 = arith.select %51, %48, %49 : vector<24x16xi1>, vector<24x16xbf16>
    %c0_25 = arith.constant 0 : index
    %c8 = arith.constant 8 : index
    %53 = vector.load %arg7[%c0_25, %c8] : memref<24x26xbf16, #tpu.memory_space<vmem>>, vector<24x16xbf16>
    %cst_26 = arith.constant 0.000000e+00 : bf16
    %54 = vector.broadcast %cst_26 : bf16 to vector<24x16xbf16>
    %55 = vector.shape_cast %21 : vector<1x16xi1> to vector<1x16xi1>
    %56 = vector.broadcast %55 : vector<1x16xi1> to vector<24x16xi1>
    %57 = arith.select %56, %53, %54 : vector<24x16xi1>, vector<24x16xbf16>
    %c0_27 = arith.constant 0 : index
    %c9 = arith.constant 9 : index
    %58 = vector.load %arg7[%c0_27, %c9] : memref<24x26xbf16, #tpu.memory_space<vmem>>, vector<24x16xbf16>
    %c0_28 = arith.constant 0 : index
    %c10 = arith.constant 10 : index
    %59 = vector.load %arg7[%c0_28, %c10] : memref<24x26xbf16, #tpu.memory_space<vmem>>, vector<24x16xbf16>
    %cst_29 = arith.constant 0.000000e+00 : bf16
    %60 = vector.broadcast %cst_29 : bf16 to vector<24x16xbf16>
    %61 = vector.shape_cast %23 : vector<1x16xi1> to vector<1x16xi1>
    %62 = vector.broadcast %61 : vector<1x16xi1> to vector<24x16xi1>
    %63 = arith.select %62, %59, %60 : vector<24x16xi1>, vector<24x16xbf16>
    %64 = tpu.concatenate %35, %36, %41, %46, %47, %52, %57, %58, %63 in 0 : vector<24x16xbf16>, vector<24x16xbf16>, vector<24x16xbf16>, vector<24x16xbf16>, vector<24x16xbf16>, vector<24x16xbf16>, vector<24x16xbf16>, vector<24x16xbf16>, vector<24x16xbf16> -> vector<216x16xbf16>
    %cst_30 = arith.constant dense<0.000000e+00> : vector<16x16xf32>
    %65 = tpu.matmul %29, %64, %cst_30 {dimension_numbers = #tpu.dot_dimension_numbers<[1], [0], [0], [1], [0, 0, 1, 1], [], []>} : vector<16x216xbf16>, vector<216x16xbf16>, vector<16x16xf32> -> vector<16x16xf32>
    %c0_31 = arith.constant 0 : index
    %c0_32 = arith.constant 0 : index
    %66 = vector.load %arg4[%c0_31, %c0_32] : memref<16x1xf32, #tpu.memory_space<vmem>>, vector<16x1xf32>
    %67 = vector.broadcast %66 : vector<16x1xf32> to vector<16x16xf32>
    %68 = arith.addf %65, %67 : vector<16x16xf32>
    %cst_33 = arith.constant 0.000000e+00 : f32
    %69 = vector.broadcast %cst_33 : f32 to vector<16x16xf32>
    %70 = arith.maximumf %68, %69 : vector<16x16xf32>
    %c0_34 = arith.constant 0 : index
    %c0_35 = arith.constant 0 : index
    %71 = vector.load %arg5[%c0_34, %c0_35] : memref<8x144xbf16, #tpu.memory_space<vmem>>, vector<8x144xbf16>
    %72 = arith.truncf %70 : vector<16x16xf32> to vector<16x16xbf16>
    %c0_36 = arith.constant 0 : index
    %c5_37 = arith.constant 5 : index
    %73 = vector.load %arg7[%c0_36, %c5_37] : memref<24x26xbf16, #tpu.memory_space<vmem>>, vector<16x16xbf16>
    tpu.vector_store %arg7[%c0_36, %c5_37], %72 {strides = array<i32>} : memref<24x26xbf16, #tpu.memory_space<vmem>>, vector<16x16xbf16>,
    %c0_38 = arith.constant 0 : index
    %c0_39 = arith.constant 0 : index
    %74 = vector.load %arg7[%c0_38, %c0_39] : memref<24x26xbf16, #tpu.memory_space<vmem>>, vector<16x16xbf16>
    %cst_40 = arith.constant 0.000000e+00 : bf16
    %75 = vector.broadcast %cst_40 : bf16 to vector<16x16xbf16>
    %76 = vector.shape_cast %21 : vector<1x16xi1> to vector<1x16xi1>
    %77 = vector.broadcast %76 : vector<1x16xi1> to vector<16x16xi1>
    %78 = arith.select %77, %74, %75 : vector<16x16xi1>, vector<16x16xbf16>
    %c0_41 = arith.constant 0 : index
    %c1_42 = arith.constant 1 : index
    %79 = vector.load %arg7[%c0_41, %c1_42] : memref<24x26xbf16, #tpu.memory_space<vmem>>, vector<16x16xbf16>
    %c0_43 = arith.constant 0 : index
    %c2_44 = arith.constant 2 : index
    %80 = vector.load %arg7[%c0_43, %c2_44] : memref<24x26xbf16, #tpu.memory_space<vmem>>, vector<16x16xbf16>
    %cst_45 = arith.constant 0.000000e+00 : bf16
    %81 = vector.broadcast %cst_45 : bf16 to vector<16x16xbf16>
    %82 = vector.shape_cast %23 : vector<1x16xi1> to vector<1x16xi1>
    %83 = vector.broadcast %82 : vector<1x16xi1> to vector<16x16xi1>
    %84 = arith.select %83, %80, %81 : vector<16x16xi1>, vector<16x16xbf16>
    %c0_46 = arith.constant 0 : index
    %c4_47 = arith.constant 4 : index
    %85 = vector.load %arg7[%c0_46, %c4_47] : memref<24x26xbf16, #tpu.memory_space<vmem>>, vector<16x16xbf16>
    %cst_48 = arith.constant 0.000000e+00 : bf16
    %86 = vector.broadcast %cst_48 : bf16 to vector<16x16xbf16>
    %87 = vector.shape_cast %21 : vector<1x16xi1> to vector<1x16xi1>
    %88 = vector.broadcast %87 : vector<1x16xi1> to vector<16x16xi1>
    %89 = arith.select %88, %85, %86 : vector<16x16xi1>, vector<16x16xbf16>
    %c0_49 = arith.constant 0 : index
    %c5_50 = arith.constant 5 : index
    %90 = vector.load %arg7[%c0_49, %c5_50] : memref<24x26xbf16, #tpu.memory_space<vmem>>, vector<16x16xbf16>
    %c0_51 = arith.constant 0 : index
    %c6_52 = arith.constant 6 : index
    %91 = vector.load %arg7[%c0_51, %c6_52] : memref<24x26xbf16, #tpu.memory_space<vmem>>, vector<16x16xbf16>
    %cst_53 = arith.constant 0.000000e+00 : bf16
    %92 = vector.broadcast %cst_53 : bf16 to vector<16x16xbf16>
    %93 = vector.shape_cast %23 : vector<1x16xi1> to vector<1x16xi1>
    %94 = vector.broadcast %93 : vector<1x16xi1> to vector<16x16xi1>
    %95 = arith.select %94, %91, %92 : vector<16x16xi1>, vector<16x16xbf16>
    %c0_54 = arith.constant 0 : index
    %c8_55 = arith.constant 8 : index
    %96 = vector.load %arg7[%c0_54, %c8_55] : memref<24x26xbf16, #tpu.memory_space<vmem>>, vector<16x16xbf16>
    %cst_56 = arith.constant 0.000000e+00 : bf16
    %97 = vector.broadcast %cst_56 : bf16 to vector<16x16xbf16>
    %98 = vector.shape_cast %21 : vector<1x16xi1> to vector<1x16xi1>
    %99 = vector.broadcast %98 : vector<1x16xi1> to vector<16x16xi1>
    %100 = arith.select %99, %96, %97 : vector<16x16xi1>, vector<16x16xbf16>
    %c0_57 = arith.constant 0 : index
    %c9_58 = arith.constant 9 : index
    %101 = vector.load %arg7[%c0_57, %c9_58] : memref<24x26xbf16, #tpu.memory_space<vmem>>, vector<16x16xbf16>
    %c0_59 = arith.constant 0 : index
    %c10_60 = arith.constant 10 : index
    %102 = vector.load %arg7[%c0_59, %c10_60] : memref<24x26xbf16, #tpu.memory_space<vmem>>, vector<16x16xbf16>
    %cst_61 = arith.constant 0.000000e+00 : bf16
    %103 = vector.broadcast %cst_61 : bf16 to vector<16x16xbf16>
    %104 = vector.shape_cast %23 : vector<1x16xi1> to vector<1x16xi1>
    %105 = vector.broadcast %104 : vector<1x16xi1> to vector<16x16xi1>
    %106 = arith.select %105, %102, %103 : vector<16x16xi1>, vector<16x16xbf16>
    %107 = tpu.concatenate %78, %79, %84, %89, %90, %95, %100, %101, %106 in 0 : vector<16x16xbf16>, vector<16x16xbf16>, vector<16x16xbf16>, vector<16x16xbf16>, vector<16x16xbf16>, vector<16x16xbf16>, vector<16x16xbf16>, vector<16x16xbf16>, vector<16x16xbf16> -> vector<144x16xbf16>
    %cst_62 = arith.constant dense<0.000000e+00> : vector<8x16xf32>
    %108 = tpu.matmul %71, %107, %cst_62 {dimension_numbers = #tpu.dot_dimension_numbers<[1], [0], [0], [1], [0, 0, 1, 1], [], []>} : vector<8x144xbf16>, vector<144x16xbf16>, vector<8x16xf32> -> vector<8x16xf32>
    %cst_63 = arith.constant dense<0.000000e+00> : vector<8xf32>
    %109 = vector.multi_reduction <add>, %108, %cst_63 [1] : vector<8x16xf32> to vector<8xf32>
    %110 = vector.shape_cast %109 : vector<8xf32> to vector<8x1xf32>
    %cst_64 = arith.constant 1.600000e+01 : f32
    %111 = vector.broadcast %cst_64 : f32 to vector<8x1xf32>
    %112 = arith.divf %110, %111 : vector<8x1xf32>
    %113 = vector.broadcast %112 : vector<8x1xf32> to vector<8x16xf32>
    %114 = arith.subf %108, %113 : vector<8x16xf32>
    %115 = arith.mulf %114, %114 : vector<8x16xf32>
    %cst_65 = arith.constant dense<0.000000e+00> : vector<8xf32>
    %116 = vector.multi_reduction <add>, %115, %cst_65 [1] : vector<8x16xf32> to vector<8xf32>
    %117 = vector.shape_cast %116 : vector<8xf32> to vector<8x1xf32>
    %cst_66 = arith.constant 1.600000e+01 : f32
    %118 = vector.broadcast %cst_66 : f32 to vector<8x1xf32>
    %119 = arith.divf %117, %118 : vector<8x1xf32>
    %cst_67 = arith.constant 9.99999974E-6 : f32
    %120 = vector.broadcast %cst_67 : f32 to vector<8x1xf32>
    %121 = arith.addf %119, %120 : vector<8x1xf32>
    %122 = math.rsqrt %121 : vector<8x1xf32>
    %123 = vector.broadcast %122 : vector<8x1xf32> to vector<8x16xf32>
    %124 = arith.mulf %114, %123 : vector<8x16xf32>
    %125 = arith.truncf %124 : vector<8x16xf32> to vector<8x16xbf16>
    %c0_68 = arith.constant 0 : index
    %c0_69 = arith.constant 0 : index
    %c0_70 = arith.constant 0 : index
    %126 = vector.load %arg6[%c0_68, %c0_69, %c0_70] : memref<1x8x16xbf16, #tpu.memory_space<vmem>>, vector<1x8x16xbf16>
    %127 = vector.shape_cast %126 : vector<1x8x16xbf16> to vector<8x16xbf16>
    %128 = vector.shape_cast %125 : vector<8x16xbf16> to vector<1x8x16xbf16>
    tpu.vector_store %arg6[%c0_68, %c0_69, %c0_70], %128 {strides = array<i32>} : memref<1x8x16xbf16, #tpu.memory_space<vmem>>, vector<1x8x16xbf16>,
    return
  }
  func.func @transform_0(%arg0: i32) -> (i32, i32, i32) {
    %c0_i32 = arith.constant 0 : i32
    %c0_i32_0 = arith.constant 0 : i32
    %c0_i32_1 = arith.constant 0 : i32
    return %arg0, %c0_i32, %c0_i32_0 : i32, i32, i32
  }
  func.func @transform_1(%arg0: i32) -> (i32, i32, i32) {
    %c0_i32 = arith.constant 0 : i32
    %c0_i32_0 = arith.constant 0 : i32
    %c0_i32_1 = arith.constant 0 : i32
    return %arg0, %c0_i32, %c0_i32_0 : i32, i32, i32
  }
  func.func @transform_2(%arg0: i32) -> (i32, i32) {
    %c0_i32 = arith.constant 0 : i32
    %c0_i32_0 = arith.constant 0 : i32
    %c0_i32_1 = arith.constant 0 : i32
    return %c0_i32, %c0_i32_0 : i32, i32
  }
  func.func @transform_3(%arg0: i32) -> (i32, i32) {
    %c0_i32 = arith.constant 0 : i32
    %c0_i32_0 = arith.constant 0 : i32
    %c0_i32_1 = arith.constant 0 : i32
    return %c0_i32, %c0_i32_0 : i32, i32
  }
  func.func @transform_4(%arg0: i32) -> (i32, i32) {
    %c0_i32 = arith.constant 0 : i32
    %c0_i32_0 = arith.constant 0 : i32
    %c0_i32_1 = arith.constant 0 : i32
    return %c0_i32, %c0_i32_0 : i32, i32
  }
  func.func @transform_5(%arg0: i32) -> (i32, i32, i32) {
    %c0_i32 = arith.constant 0 : i32
    %c0_i32_0 = arith.constant 0 : i32
    %c0_i32_1 = arith.constant 0 : i32
    return %arg0, %c0_i32, %c0_i32_0 : i32, i32, i32
  }
}

module attributes {stable_mosaic.version = 11 : i64} {
  func.func @kernel(%arg0: i32, %arg1: memref<1x32x4xbf16, #tpu.memory_space<vmem>>, %arg2: memref<4x8xbf16, #tpu.memory_space<vmem>>, %arg3: memref<1x32x16xbf16, #tpu.memory_space<vmem>>) attributes {dimension_semantics = [#tpu.dimension_semantics<parallel>], iteration_bounds = array<i64: 2>, scalar_prefetch = 0 : i64, scratch_operands = 0 : i64, tpu.core_type = #tpu.core_type<tc>, window_params = [{transform_indices = @transform_0, window_bounds = array<i64: 1, 32, 4>}, {pipeline_mode = #tpu.pipeline_mode<synchronous>, transform_indices = @transform_1, window_bounds = array<i64: 4, 8>}, {transform_indices = @transform_2, window_bounds = array<i64: 1, 32, 16>}]} {
    %c0 = arith.constant 0 : index
    %c0_0 = arith.constant 0 : index
    %c0_1 = arith.constant 0 : index
    %0 = vector.load %arg1[%c0, %c0_0, %c0_1] : memref<1x32x4xbf16, #tpu.memory_space<vmem>>, vector<1x32x4xbf16>
    %1 = vector.shape_cast %0 : vector<1x32x4xbf16> to vector<32x4xbf16>
    %c0_2 = arith.constant 0 : index
    %c0_3 = arith.constant 0 : index
    %2 = vector.load %arg2[%c0_2, %c0_3] : memref<4x8xbf16, #tpu.memory_space<vmem>>, vector<4x8xbf16>
    %cst = arith.constant dense<0.000000e+00> : vector<32x8xf32>
    %3 = tpu.matmul %1, %2, %cst {dimension_numbers = #tpu.dot_dimension_numbers<[1], [0], [0], [1], [0, 0, 1, 1], [], []>} : vector<32x4xbf16>, vector<4x8xbf16>, vector<32x8xf32> -> vector<32x8xf32>
    %4 = tpu.iota {dimensions = array<i32: 0>} : vector<32x1xi32>
    %c4_i32 = arith.constant 4 : i32
    %c0_i32 = arith.constant 0 : i32
    %5 = arith.cmpi eq, %c4_i32, %c0_i32 : i32
    %c1_i32 = arith.constant 1 : i32
    %6 = arith.select %5, %c1_i32, %c4_i32 : i32
    %7 = vector.broadcast %6 : i32 to vector<32x1xi32>
    %8 = arith.remsi %4, %7 : vector<32x1xi32>
    %c0_i32_4 = arith.constant 0 : i32
    %9 = vector.broadcast %c0_i32_4 : i32 to vector<32x1xi32>
    %10 = arith.cmpi ne, %8, %9 : vector<32x1xi32>
    %c0_i32_5 = arith.constant 0 : i32
    %11 = vector.broadcast %c0_i32_5 : i32 to vector<32x1xi32>
    %12 = arith.cmpi slt, %8, %11 : vector<32x1xi32>
    %c0_i32_6 = arith.constant 0 : i32
    %13 = arith.cmpi slt, %6, %c0_i32_6 : i32
    %14 = vector.broadcast %13 : i1 to vector<32x1xi1>
    %15 = vector.broadcast %14 : vector<32x1xi1> to vector<32x1xi1>
    %16 = arith.xori %12, %15 : vector<32x1xi1>
    %17 = arith.andi %16, %10 : vector<32x1xi1>
    %18 = vector.broadcast %6 : i32 to vector<32x1xi32>
    %19 = arith.addi %8, %18 : vector<32x1xi32>
    %20 = arith.select %17, %19, %8 : vector<32x1xi1>, vector<32x1xi32>
    %21 = vector.extract_strided_slice %3 {offsets = [0, 0], sizes = [1, 8], strides = [1, 1]} : vector<32x8xf32> to vector<1x8xf32>
    %22 = vector.extract_strided_slice %3 {offsets = [0, 0], sizes = [31, 8], strides = [1, 1]} : vector<32x8xf32> to vector<31x8xf32>
    %23 = tpu.concatenate %21, %22 in 0 : vector<1x8xf32>, vector<31x8xf32> -> vector<32x8xf32>
    %c0_i32_7 = arith.constant 0 : i32
    %24 = vector.broadcast %c0_i32_7 : i32 to vector<32x1xi32>
    %25 = arith.cmpi eq, %20, %24 : vector<32x1xi32>
    %26 = vector.shape_cast %25 : vector<32x1xi1> to vector<32x1xi1>
    %27 = vector.broadcast %26 : vector<32x1xi1> to vector<32x8xi1>
    %28 = arith.select %27, %3, %23 : vector<32x8xi1>, vector<32x8xf32>
    %29 = vector.extract_strided_slice %3 {offsets = [1, 0], sizes = [31, 8], strides = [1, 1]} : vector<32x8xf32> to vector<31x8xf32>
    %30 = vector.extract_strided_slice %3 {offsets = [31, 0], sizes = [1, 8], strides = [1, 1]} : vector<32x8xf32> to vector<1x8xf32>
    %31 = tpu.concatenate %29, %30 in 0 : vector<31x8xf32>, vector<1x8xf32> -> vector<32x8xf32>
    %c3_i32 = arith.constant 3 : i32
    %32 = vector.broadcast %c3_i32 : i32 to vector<32x1xi32>
    %33 = arith.cmpi eq, %20, %32 : vector<32x1xi32>
    %34 = vector.shape_cast %33 : vector<32x1xi1> to vector<32x1xi1>
    %35 = vector.broadcast %34 : vector<32x1xi1> to vector<32x8xi1>
    %36 = arith.select %35, %3, %31 : vector<32x8xi1>, vector<32x8xf32>
    %cst_8 = arith.constant 7.500000e-01 : f32
    %37 = vector.broadcast %cst_8 : f32 to vector<32x8xf32>
    %38 = arith.mulf %37, %3 : vector<32x8xf32>
    %cst_9 = arith.constant 2.500000e-01 : f32
    %39 = vector.broadcast %cst_9 : f32 to vector<32x8xf32>
    %40 = arith.mulf %39, %28 : vector<32x8xf32>
    %41 = arith.addf %38, %40 : vector<32x8xf32>
    %cst_10 = arith.constant 7.500000e-01 : f32
    %42 = vector.broadcast %cst_10 : f32 to vector<32x8xf32>
    %43 = arith.mulf %42, %3 : vector<32x8xf32>
    %cst_11 = arith.constant 2.500000e-01 : f32
    %44 = vector.broadcast %cst_11 : f32 to vector<32x8xf32>
    %45 = arith.mulf %44, %36 : vector<32x8xf32>
    %46 = arith.addf %43, %45 : vector<32x8xf32>
    %47 = tpu.concatenate %41, %46 in 1 : vector<32x8xf32>, vector<32x8xf32> -> vector<32x16xf32>
    %cst_12 = arith.constant 0.000000e+00 : f32
    %48 = vector.broadcast %cst_12 : f32 to vector<32x16xf32>
    %49 = arith.maximumf %47, %48 : vector<32x16xf32>
    %50 = arith.truncf %49 : vector<32x16xf32> to vector<32x16xbf16>
    %c0_13 = arith.constant 0 : index
    %c0_14 = arith.constant 0 : index
    %c0_15 = arith.constant 0 : index
    %51 = vector.load %arg3[%c0_13, %c0_14, %c0_15] : memref<1x32x16xbf16, #tpu.memory_space<vmem>>, vector<1x32x16xbf16>
    %52 = vector.shape_cast %51 : vector<1x32x16xbf16> to vector<32x16xbf16>
    %53 = vector.shape_cast %50 : vector<32x16xbf16> to vector<1x32x16xbf16>
    tpu.vector_store %arg3[%c0_13, %c0_14, %c0_15], %53 {strides = array<i32>} : memref<1x32x16xbf16, #tpu.memory_space<vmem>>, vector<1x32x16xbf16>,
    return
  }
  func.func @transform_0(%arg0: i32) -> (i32, i32, i32) {
    %c0_i32 = arith.constant 0 : i32
    %c0_i32_0 = arith.constant 0 : i32
    %c0_i32_1 = arith.constant 0 : i32
    return %arg0, %c0_i32, %c0_i32_0 : i32, i32, i32
  }
  func.func @transform_1(%arg0: i32) -> (i32, i32) {
    %c0_i32 = arith.constant 0 : i32
    %c0_i32_0 = arith.constant 0 : i32
    %c0_i32_1 = arith.constant 0 : i32
    return %c0_i32, %c0_i32_0 : i32, i32
  }
  func.func @transform_2(%arg0: i32) -> (i32, i32, i32) {
    %c0_i32 = arith.constant 0 : i32
    %c0_i32_0 = arith.constant 0 : i32
    %c0_i32_1 = arith.constant 0 : i32
    return %arg0, %c0_i32, %c0_i32_0 : i32, i32, i32
  }
}

module attributes {stable_mosaic.version = 11 : i64} {
  func.func @kernel(%arg0: i32, %arg1: memref<1x8x64xbf16, #tpu.memory_space<vmem>>, %arg2: memref<1x16x64xbf16, #tpu.memory_space<vmem>>, %arg3: memref<16x216xbf16, #tpu.memory_space<vmem>>, %arg4: memref<16x1xf32, #tpu.memory_space<vmem>>, %arg5: memref<8x144xbf16, #tpu.memory_space<vmem>>, %arg6: memref<1x8x64xbf16, #tpu.memory_space<vmem>>, %arg7: memref<24x82xbf16, #tpu.memory_space<vmem>>) attributes {dimension_semantics = [#tpu.dimension_semantics<parallel>], iteration_bounds = array<i64: 2>, scalar_prefetch = 0 : i64, scratch_operands = 1 : i64, tpu.core_type = #tpu.core_type<tc>, window_params = [{transform_indices = @transform_0, window_bounds = array<i64: 1, 8, 64>}, {transform_indices = @transform_1, window_bounds = array<i64: 1, 16, 64>}, {pipeline_mode = #tpu.pipeline_mode<synchronous>, transform_indices = @transform_2, window_bounds = array<i64: 16, 216>}, {pipeline_mode = #tpu.pipeline_mode<synchronous>, transform_indices = @transform_3, window_bounds = array<i64: 16, 1>}, {pipeline_mode = #tpu.pipeline_mode<synchronous>, transform_indices = @transform_4, window_bounds = array<i64: 8, 144>}, {transform_indices = @transform_5, window_bounds = array<i64: 1, 8, 64>}]} {
    %c0_i32 = arith.constant 0 : i32
    %0 = arith.cmpi eq, %arg0, %c0_i32 : i32
    %1 = arith.extui %0 : i1 to i32
    %c0_i32_0 = arith.constant 0 : i32
    %2 = arith.cmpi ne, %1, %c0_i32_0 : i32
    scf.if %2 {
      %cst_71 = arith.constant 0.000000e+00 : bf16
      %129 = vector.broadcast %cst_71 : bf16 to vector<24x9xbf16>
      %c0_72 = arith.constant 0 : index
      %c0_73 = arith.constant 0 : index
      %130 = vector.load %arg7[%c0_72, %c0_73] : memref<24x82xbf16, #tpu.memory_space<vmem>>, vector<24x9xbf16>
      tpu.vector_store %arg7[%c0_72, %c0_73], %129 {strides = array<i32>} : memref<24x82xbf16, #tpu.memory_space<vmem>>, vector<24x9xbf16>,
      %cst_74 = arith.constant 0.000000e+00 : bf16
      %131 = vector.broadcast %cst_74 : bf16 to vector<24x9xbf16>
      %c0_75 = arith.constant 0 : index
      %c73 = arith.constant 73 : index
      %132 = vector.load %arg7[%c0_75, %c73] : memref<24x82xbf16, #tpu.memory_space<vmem>>, vector<24x9xbf16>
      tpu.vector_store %arg7[%c0_75, %c73], %131 {strides = array<i32>} : memref<24x82xbf16, #tpu.memory_space<vmem>>, vector<24x9xbf16>,
    } else {
    }
    %3 = tpu.iota {dimensions = array<i32: 1>} : vector<1x64xi32>
    %c8_i32 = arith.constant 8 : i32
    %c0_i32_1 = arith.constant 0 : i32
    %4 = arith.cmpi eq, %c8_i32, %c0_i32_1 : i32
    %c1_i32 = arith.constant 1 : i32
    %5 = arith.select %4, %c1_i32, %c8_i32 : i32
    %6 = vector.broadcast %5 : i32 to vector<1x64xi32>
    %7 = arith.remsi %3, %6 : vector<1x64xi32>
    %c0_i32_2 = arith.constant 0 : i32
    %8 = vector.broadcast %c0_i32_2 : i32 to vector<1x64xi32>
    %9 = arith.cmpi ne, %7, %8 : vector<1x64xi32>
    %c0_i32_3 = arith.constant 0 : i32
    %10 = vector.broadcast %c0_i32_3 : i32 to vector<1x64xi32>
    %11 = arith.cmpi slt, %7, %10 : vector<1x64xi32>
    %c0_i32_4 = arith.constant 0 : i32
    %12 = arith.cmpi slt, %5, %c0_i32_4 : i32
    %13 = vector.broadcast %12 : i1 to vector<1x64xi1>
    %14 = vector.broadcast %13 : vector<1x64xi1> to vector<1x64xi1>
    %15 = arith.xori %11, %14 : vector<1x64xi1>
    %16 = arith.andi %15, %9 : vector<1x64xi1>
    %17 = vector.broadcast %5 : i32 to vector<1x64xi32>
    %18 = arith.addi %7, %17 : vector<1x64xi32>
    %19 = arith.select %16, %18, %7 : vector<1x64xi1>, vector<1x64xi32>
    %c0_i32_5 = arith.constant 0 : i32
    %20 = vector.broadcast %c0_i32_5 : i32 to vector<1x64xi32>
    %21 = arith.cmpi sgt, %19, %20 : vector<1x64xi32>
    %c7_i32 = arith.constant 7 : i32
    %22 = vector.broadcast %c7_i32 : i32 to vector<1x64xi32>
    %23 = arith.cmpi slt, %19, %22 : vector<1x64xi32>
    %c0 = arith.constant 0 : index
    %c0_6 = arith.constant 0 : index
    %c0_7 = arith.constant 0 : index
    %24 = vector.load %arg1[%c0, %c0_6, %c0_7] : memref<1x8x64xbf16, #tpu.memory_space<vmem>>, vector<1x8x64xbf16>
    %25 = vector.shape_cast %24 : vector<1x8x64xbf16> to vector<8x64xbf16>
    %c0_8 = arith.constant 0 : index
    %c0_9 = arith.constant 0 : index
    %c0_10 = arith.constant 0 : index
    %26 = vector.load %arg2[%c0_8, %c0_9, %c0_10] : memref<1x16x64xbf16, #tpu.memory_space<vmem>>, vector<1x16x64xbf16>
    %27 = vector.shape_cast %26 : vector<1x16x64xbf16> to vector<16x64xbf16>
    %28 = tpu.concatenate %25, %27 in 0 : vector<8x64xbf16>, vector<16x64xbf16> -> vector<24x64xbf16>
    %c0_11 = arith.constant 0 : index
    %c0_12 = arith.constant 0 : index
    %29 = vector.load %arg3[%c0_11, %c0_12] : memref<16x216xbf16, #tpu.memory_space<vmem>>, vector<16x216xbf16>
    %c0_13 = arith.constant 0 : index
    %c9 = arith.constant 9 : index
    %30 = vector.load %arg7[%c0_13, %c9] : memref<24x82xbf16, #tpu.memory_space<vmem>>, vector<24x64xbf16>
    tpu.vector_store %arg7[%c0_13, %c9], %28 {strides = array<i32>} : memref<24x82xbf16, #tpu.memory_space<vmem>>, vector<24x64xbf16>,
    %c0_14 = arith.constant 0 : index
    %c0_15 = arith.constant 0 : index
    %31 = vector.load %arg7[%c0_14, %c0_15] : memref<24x82xbf16, #tpu.memory_space<vmem>>, vector<24x64xbf16>
    %cst = arith.constant 0.000000e+00 : bf16
    %32 = vector.broadcast %cst : bf16 to vector<24x64xbf16>
    %33 = vector.shape_cast %21 : vector<1x64xi1> to vector<1x64xi1>
    %34 = vector.broadcast %33 : vector<1x64xi1> to vector<24x64xi1>
    %35 = arith.select %34, %31, %32 : vector<24x64xi1>, vector<24x64xbf16>
    %c0_16 = arith.constant 0 : index
    %c1 = arith.constant 1 : index
    %36 = vector.load %arg7[%c0_16, %c1] : memref<24x82xbf16, #tpu.memory_space<vmem>>, vector<24x64xbf16>
    %c0_17 = arith.constant 0 : index
    %c2 = arith.constant 2 : index
    %37 = vector.load %arg7[%c0_17, %c2] : memref<24x82xbf16, #tpu.memory_space<vmem>>, vector<24x64xbf16>
    %cst_18 = arith.constant 0.000000e+00 : bf16
    %38 = vector.broadcast %cst_18 : bf16 to vector<24x64xbf16>
    %39 = vector.shape_cast %23 : vector<1x64xi1> to vector<1x64xi1>
    %40 = vector.broadcast %39 : vector<1x64xi1> to vector<24x64xi1>
    %41 = arith.select %40, %37, %38 : vector<24x64xi1>, vector<24x64xbf16>
    %c0_19 = arith.constant 0 : index
    %c8 = arith.constant 8 : index
    %42 = vector.load %arg7[%c0_19, %c8] : memref<24x82xbf16, #tpu.memory_space<vmem>>, vector<24x64xbf16>
    %cst_20 = arith.constant 0.000000e+00 : bf16
    %43 = vector.broadcast %cst_20 : bf16 to vector<24x64xbf16>
    %44 = vector.shape_cast %21 : vector<1x64xi1> to vector<1x64xi1>
    %45 = vector.broadcast %44 : vector<1x64xi1> to vector<24x64xi1>
    %46 = arith.select %45, %42, %43 : vector<24x64xi1>, vector<24x64xbf16>
    %c0_21 = arith.constant 0 : index
    %c9_22 = arith.constant 9 : index
    %47 = vector.load %arg7[%c0_21, %c9_22] : memref<24x82xbf16, #tpu.memory_space<vmem>>, vector<24x64xbf16>
    %c0_23 = arith.constant 0 : index
    %c10 = arith.constant 10 : index
    %48 = vector.load %arg7[%c0_23, %c10] : memref<24x82xbf16, #tpu.memory_space<vmem>>, vector<24x64xbf16>
    %cst_24 = arith.constant 0.000000e+00 : bf16
    %49 = vector.broadcast %cst_24 : bf16 to vector<24x64xbf16>
    %50 = vector.shape_cast %23 : vector<1x64xi1> to vector<1x64xi1>
    %51 = vector.broadcast %50 : vector<1x64xi1> to vector<24x64xi1>
    %52 = arith.select %51, %48, %49 : vector<24x64xi1>, vector<24x64xbf16>
    %c0_25 = arith.constant 0 : index
    %c16 = arith.constant 16 : index
    %53 = vector.load %arg7[%c0_25, %c16] : memref<24x82xbf16, #tpu.memory_space<vmem>>, vector<24x64xbf16>
    %cst_26 = arith.constant 0.000000e+00 : bf16
    %54 = vector.broadcast %cst_26 : bf16 to vector<24x64xbf16>
    %55 = vector.shape_cast %21 : vector<1x64xi1> to vector<1x64xi1>
    %56 = vector.broadcast %55 : vector<1x64xi1> to vector<24x64xi1>
    %57 = arith.select %56, %53, %54 : vector<24x64xi1>, vector<24x64xbf16>
    %c0_27 = arith.constant 0 : index
    %c17 = arith.constant 17 : index
    %58 = vector.load %arg7[%c0_27, %c17] : memref<24x82xbf16, #tpu.memory_space<vmem>>, vector<24x64xbf16>
    %c0_28 = arith.constant 0 : index
    %c18 = arith.constant 18 : index
    %59 = vector.load %arg7[%c0_28, %c18] : memref<24x82xbf16, #tpu.memory_space<vmem>>, vector<24x64xbf16>
    %cst_29 = arith.constant 0.000000e+00 : bf16
    %60 = vector.broadcast %cst_29 : bf16 to vector<24x64xbf16>
    %61 = vector.shape_cast %23 : vector<1x64xi1> to vector<1x64xi1>
    %62 = vector.broadcast %61 : vector<1x64xi1> to vector<24x64xi1>
    %63 = arith.select %62, %59, %60 : vector<24x64xi1>, vector<24x64xbf16>
    %64 = tpu.concatenate %35, %36, %41, %46, %47, %52, %57, %58, %63 in 0 : vector<24x64xbf16>, vector<24x64xbf16>, vector<24x64xbf16>, vector<24x64xbf16>, vector<24x64xbf16>, vector<24x64xbf16>, vector<24x64xbf16>, vector<24x64xbf16>, vector<24x64xbf16> -> vector<216x64xbf16>
    %cst_30 = arith.constant dense<0.000000e+00> : vector<16x64xf32>
    %65 = tpu.matmul %29, %64, %cst_30 {dimension_numbers = #tpu.dot_dimension_numbers<[1], [0], [0], [1], [0, 0, 1, 1], [], []>} : vector<16x216xbf16>, vector<216x64xbf16>, vector<16x64xf32> -> vector<16x64xf32>
    %c0_31 = arith.constant 0 : index
    %c0_32 = arith.constant 0 : index
    %66 = vector.load %arg4[%c0_31, %c0_32] : memref<16x1xf32, #tpu.memory_space<vmem>>, vector<16x1xf32>
    %67 = vector.broadcast %66 : vector<16x1xf32> to vector<16x64xf32>
    %68 = arith.addf %65, %67 : vector<16x64xf32>
    %cst_33 = arith.constant 0.000000e+00 : f32
    %69 = vector.broadcast %cst_33 : f32 to vector<16x64xf32>
    %70 = arith.maximumf %68, %69 : vector<16x64xf32>
    %c0_34 = arith.constant 0 : index
    %c0_35 = arith.constant 0 : index
    %71 = vector.load %arg5[%c0_34, %c0_35] : memref<8x144xbf16, #tpu.memory_space<vmem>>, vector<8x144xbf16>
    %72 = arith.truncf %70 : vector<16x64xf32> to vector<16x64xbf16>
    %c0_36 = arith.constant 0 : index
    %c9_37 = arith.constant 9 : index
    %73 = vector.load %arg7[%c0_36, %c9_37] : memref<24x82xbf16, #tpu.memory_space<vmem>>, vector<16x64xbf16>
    tpu.vector_store %arg7[%c0_36, %c9_37], %72 {strides = array<i32>} : memref<24x82xbf16, #tpu.memory_space<vmem>>, vector<16x64xbf16>,
    %c0_38 = arith.constant 0 : index
    %c0_39 = arith.constant 0 : index
    %74 = vector.load %arg7[%c0_38, %c0_39] : memref<24x82xbf16, #tpu.memory_space<vmem>>, vector<16x64xbf16>
    %cst_40 = arith.constant 0.000000e+00 : bf16
    %75 = vector.broadcast %cst_40 : bf16 to vector<16x64xbf16>
    %76 = vector.shape_cast %21 : vector<1x64xi1> to vector<1x64xi1>
    %77 = vector.broadcast %76 : vector<1x64xi1> to vector<16x64xi1>
    %78 = arith.select %77, %74, %75 : vector<16x64xi1>, vector<16x64xbf16>
    %c0_41 = arith.constant 0 : index
    %c1_42 = arith.constant 1 : index
    %79 = vector.load %arg7[%c0_41, %c1_42] : memref<24x82xbf16, #tpu.memory_space<vmem>>, vector<16x64xbf16>
    %c0_43 = arith.constant 0 : index
    %c2_44 = arith.constant 2 : index
    %80 = vector.load %arg7[%c0_43, %c2_44] : memref<24x82xbf16, #tpu.memory_space<vmem>>, vector<16x64xbf16>
    %cst_45 = arith.constant 0.000000e+00 : bf16
    %81 = vector.broadcast %cst_45 : bf16 to vector<16x64xbf16>
    %82 = vector.shape_cast %23 : vector<1x64xi1> to vector<1x64xi1>
    %83 = vector.broadcast %82 : vector<1x64xi1> to vector<16x64xi1>
    %84 = arith.select %83, %80, %81 : vector<16x64xi1>, vector<16x64xbf16>
    %c0_46 = arith.constant 0 : index
    %c8_47 = arith.constant 8 : index
    %85 = vector.load %arg7[%c0_46, %c8_47] : memref<24x82xbf16, #tpu.memory_space<vmem>>, vector<16x64xbf16>
    %cst_48 = arith.constant 0.000000e+00 : bf16
    %86 = vector.broadcast %cst_48 : bf16 to vector<16x64xbf16>
    %87 = vector.shape_cast %21 : vector<1x64xi1> to vector<1x64xi1>
    %88 = vector.broadcast %87 : vector<1x64xi1> to vector<16x64xi1>
    %89 = arith.select %88, %85, %86 : vector<16x64xi1>, vector<16x64xbf16>
    %c0_49 = arith.constant 0 : index
    %c9_50 = arith.constant 9 : index
    %90 = vector.load %arg7[%c0_49, %c9_50] : memref<24x82xbf16, #tpu.memory_space<vmem>>, vector<16x64xbf16>
    %c0_51 = arith.constant 0 : index
    %c10_52 = arith.constant 10 : index
    %91 = vector.load %arg7[%c0_51, %c10_52] : memref<24x82xbf16, #tpu.memory_space<vmem>>, vector<16x64xbf16>
    %cst_53 = arith.constant 0.000000e+00 : bf16
    %92 = vector.broadcast %cst_53 : bf16 to vector<16x64xbf16>
    %93 = vector.shape_cast %23 : vector<1x64xi1> to vector<1x64xi1>
    %94 = vector.broadcast %93 : vector<1x64xi1> to vector<16x64xi1>
    %95 = arith.select %94, %91, %92 : vector<16x64xi1>, vector<16x64xbf16>
    %c0_54 = arith.constant 0 : index
    %c16_55 = arith.constant 16 : index
    %96 = vector.load %arg7[%c0_54, %c16_55] : memref<24x82xbf16, #tpu.memory_space<vmem>>, vector<16x64xbf16>
    %cst_56 = arith.constant 0.000000e+00 : bf16
    %97 = vector.broadcast %cst_56 : bf16 to vector<16x64xbf16>
    %98 = vector.shape_cast %21 : vector<1x64xi1> to vector<1x64xi1>
    %99 = vector.broadcast %98 : vector<1x64xi1> to vector<16x64xi1>
    %100 = arith.select %99, %96, %97 : vector<16x64xi1>, vector<16x64xbf16>
    %c0_57 = arith.constant 0 : index
    %c17_58 = arith.constant 17 : index
    %101 = vector.load %arg7[%c0_57, %c17_58] : memref<24x82xbf16, #tpu.memory_space<vmem>>, vector<16x64xbf16>
    %c0_59 = arith.constant 0 : index
    %c18_60 = arith.constant 18 : index
    %102 = vector.load %arg7[%c0_59, %c18_60] : memref<24x82xbf16, #tpu.memory_space<vmem>>, vector<16x64xbf16>
    %cst_61 = arith.constant 0.000000e+00 : bf16
    %103 = vector.broadcast %cst_61 : bf16 to vector<16x64xbf16>
    %104 = vector.shape_cast %23 : vector<1x64xi1> to vector<1x64xi1>
    %105 = vector.broadcast %104 : vector<1x64xi1> to vector<16x64xi1>
    %106 = arith.select %105, %102, %103 : vector<16x64xi1>, vector<16x64xbf16>
    %107 = tpu.concatenate %78, %79, %84, %89, %90, %95, %100, %101, %106 in 0 : vector<16x64xbf16>, vector<16x64xbf16>, vector<16x64xbf16>, vector<16x64xbf16>, vector<16x64xbf16>, vector<16x64xbf16>, vector<16x64xbf16>, vector<16x64xbf16>, vector<16x64xbf16> -> vector<144x64xbf16>
    %cst_62 = arith.constant dense<0.000000e+00> : vector<8x64xf32>
    %108 = tpu.matmul %71, %107, %cst_62 {dimension_numbers = #tpu.dot_dimension_numbers<[1], [0], [0], [1], [0, 0, 1, 1], [], []>} : vector<8x144xbf16>, vector<144x64xbf16>, vector<8x64xf32> -> vector<8x64xf32>
    %cst_63 = arith.constant dense<0.000000e+00> : vector<8xf32>
    %109 = vector.multi_reduction <add>, %108, %cst_63 [1] : vector<8x64xf32> to vector<8xf32>
    %110 = vector.shape_cast %109 : vector<8xf32> to vector<8x1xf32>
    %cst_64 = arith.constant 6.400000e+01 : f32
    %111 = vector.broadcast %cst_64 : f32 to vector<8x1xf32>
    %112 = arith.divf %110, %111 : vector<8x1xf32>
    %113 = vector.broadcast %112 : vector<8x1xf32> to vector<8x64xf32>
    %114 = arith.subf %108, %113 : vector<8x64xf32>
    %115 = arith.mulf %114, %114 : vector<8x64xf32>
    %cst_65 = arith.constant dense<0.000000e+00> : vector<8xf32>
    %116 = vector.multi_reduction <add>, %115, %cst_65 [1] : vector<8x64xf32> to vector<8xf32>
    %117 = vector.shape_cast %116 : vector<8xf32> to vector<8x1xf32>
    %cst_66 = arith.constant 6.400000e+01 : f32
    %118 = vector.broadcast %cst_66 : f32 to vector<8x1xf32>
    %119 = arith.divf %117, %118 : vector<8x1xf32>
    %cst_67 = arith.constant 9.99999974E-6 : f32
    %120 = vector.broadcast %cst_67 : f32 to vector<8x1xf32>
    %121 = arith.addf %119, %120 : vector<8x1xf32>
    %122 = math.rsqrt %121 : vector<8x1xf32>
    %123 = vector.broadcast %122 : vector<8x1xf32> to vector<8x64xf32>
    %124 = arith.mulf %114, %123 : vector<8x64xf32>
    %125 = arith.truncf %124 : vector<8x64xf32> to vector<8x64xbf16>
    %c0_68 = arith.constant 0 : index
    %c0_69 = arith.constant 0 : index
    %c0_70 = arith.constant 0 : index
    %126 = vector.load %arg6[%c0_68, %c0_69, %c0_70] : memref<1x8x64xbf16, #tpu.memory_space<vmem>>, vector<1x8x64xbf16>
    %127 = vector.shape_cast %126 : vector<1x8x64xbf16> to vector<8x64xbf16>
    %128 = vector.shape_cast %125 : vector<8x64xbf16> to vector<1x8x64xbf16>
    tpu.vector_store %arg6[%c0_68, %c0_69, %c0_70], %128 {strides = array<i32>} : memref<1x8x64xbf16, #tpu.memory_space<vmem>>, vector<1x8x64xbf16>,
    return
  }
  func.func @transform_0(%arg0: i32) -> (i32, i32, i32) {
    %c0_i32 = arith.constant 0 : i32
    %c0_i32_0 = arith.constant 0 : i32
    %c0_i32_1 = arith.constant 0 : i32
    return %arg0, %c0_i32, %c0_i32_0 : i32, i32, i32
  }
  func.func @transform_1(%arg0: i32) -> (i32, i32, i32) {
    %c0_i32 = arith.constant 0 : i32
    %c0_i32_0 = arith.constant 0 : i32
    %c0_i32_1 = arith.constant 0 : i32
    return %arg0, %c0_i32, %c0_i32_0 : i32, i32, i32
  }
  func.func @transform_2(%arg0: i32) -> (i32, i32) {
    %c0_i32 = arith.constant 0 : i32
    %c0_i32_0 = arith.constant 0 : i32
    %c0_i32_1 = arith.constant 0 : i32
    return %c0_i32, %c0_i32_0 : i32, i32
  }
  func.func @transform_3(%arg0: i32) -> (i32, i32) {
    %c0_i32 = arith.constant 0 : i32
    %c0_i32_0 = arith.constant 0 : i32
    %c0_i32_1 = arith.constant 0 : i32
    return %c0_i32, %c0_i32_0 : i32, i32
  }
  func.func @transform_4(%arg0: i32) -> (i32, i32) {
    %c0_i32 = arith.constant 0 : i32
    %c0_i32_0 = arith.constant 0 : i32
    %c0_i32_1 = arith.constant 0 : i32
    return %c0_i32, %c0_i32_0 : i32, i32
  }
  func.func @transform_5(%arg0: i32) -> (i32, i32, i32) {
    %c0_i32 = arith.constant 0 : i32
    %c0_i32_0 = arith.constant 0 : i32
    %c0_i32_1 = arith.constant 0 : i32
    return %arg0, %c0_i32, %c0_i32_0 : i32, i32, i32
  }
}

module attributes {stable_mosaic.version = 11 : i64} {
  func.func @kernel(%arg0: i32, %arg1: memref<1x64x8xbf16, #tpu.memory_space<vmem>>, %arg2: memref<8x16xbf16, #tpu.memory_space<vmem>>, %arg3: memref<1x64x32xbf16, #tpu.memory_space<vmem>>) attributes {dimension_semantics = [#tpu.dimension_semantics<parallel>], iteration_bounds = array<i64: 2>, scalar_prefetch = 0 : i64, scratch_operands = 0 : i64, tpu.core_type = #tpu.core_type<tc>, window_params = [{transform_indices = @transform_0, window_bounds = array<i64: 1, 64, 8>}, {pipeline_mode = #tpu.pipeline_mode<synchronous>, transform_indices = @transform_1, window_bounds = array<i64: 8, 16>}, {transform_indices = @transform_2, window_bounds = array<i64: 1, 64, 32>}]} {
    %c0 = arith.constant 0 : index
    %c0_0 = arith.constant 0 : index
    %c0_1 = arith.constant 0 : index
    %0 = vector.load %arg1[%c0, %c0_0, %c0_1] : memref<1x64x8xbf16, #tpu.memory_space<vmem>>, vector<1x64x8xbf16>
    %1 = vector.shape_cast %0 : vector<1x64x8xbf16> to vector<64x8xbf16>
    %c0_2 = arith.constant 0 : index
    %c0_3 = arith.constant 0 : index
    %2 = vector.load %arg2[%c0_2, %c0_3] : memref<8x16xbf16, #tpu.memory_space<vmem>>, vector<8x16xbf16>
    %cst = arith.constant dense<0.000000e+00> : vector<64x16xf32>
    %3 = tpu.matmul %1, %2, %cst {dimension_numbers = #tpu.dot_dimension_numbers<[1], [0], [0], [1], [0, 0, 1, 1], [], []>} : vector<64x8xbf16>, vector<8x16xbf16>, vector<64x16xf32> -> vector<64x16xf32>
    %4 = tpu.iota {dimensions = array<i32: 0>} : vector<64x1xi32>
    %c8_i32 = arith.constant 8 : i32
    %c0_i32 = arith.constant 0 : i32
    %5 = arith.cmpi eq, %c8_i32, %c0_i32 : i32
    %c1_i32 = arith.constant 1 : i32
    %6 = arith.select %5, %c1_i32, %c8_i32 : i32
    %7 = vector.broadcast %6 : i32 to vector<64x1xi32>
    %8 = arith.remsi %4, %7 : vector<64x1xi32>
    %c0_i32_4 = arith.constant 0 : i32
    %9 = vector.broadcast %c0_i32_4 : i32 to vector<64x1xi32>
    %10 = arith.cmpi ne, %8, %9 : vector<64x1xi32>
    %c0_i32_5 = arith.constant 0 : i32
    %11 = vector.broadcast %c0_i32_5 : i32 to vector<64x1xi32>
    %12 = arith.cmpi slt, %8, %11 : vector<64x1xi32>
    %c0_i32_6 = arith.constant 0 : i32
    %13 = arith.cmpi slt, %6, %c0_i32_6 : i32
    %14 = vector.broadcast %13 : i1 to vector<64x1xi1>
    %15 = vector.broadcast %14 : vector<64x1xi1> to vector<64x1xi1>
    %16 = arith.xori %12, %15 : vector<64x1xi1>
    %17 = arith.andi %16, %10 : vector<64x1xi1>
    %18 = vector.broadcast %6 : i32 to vector<64x1xi32>
    %19 = arith.addi %8, %18 : vector<64x1xi32>
    %20 = arith.select %17, %19, %8 : vector<64x1xi1>, vector<64x1xi32>
    %21 = vector.extract_strided_slice %3 {offsets = [0, 0], sizes = [1, 16], strides = [1, 1]} : vector<64x16xf32> to vector<1x16xf32>
    %22 = vector.extract_strided_slice %3 {offsets = [0, 0], sizes = [63, 16], strides = [1, 1]} : vector<64x16xf32> to vector<63x16xf32>
    %23 = tpu.concatenate %21, %22 in 0 : vector<1x16xf32>, vector<63x16xf32> -> vector<64x16xf32>
    %c0_i32_7 = arith.constant 0 : i32
    %24 = vector.broadcast %c0_i32_7 : i32 to vector<64x1xi32>
    %25 = arith.cmpi eq, %20, %24 : vector<64x1xi32>
    %26 = vector.shape_cast %25 : vector<64x1xi1> to vector<64x1xi1>
    %27 = vector.broadcast %26 : vector<64x1xi1> to vector<64x16xi1>
    %28 = arith.select %27, %3, %23 : vector<64x16xi1>, vector<64x16xf32>
    %29 = vector.extract_strided_slice %3 {offsets = [1, 0], sizes = [63, 16], strides = [1, 1]} : vector<64x16xf32> to vector<63x16xf32>
    %30 = vector.extract_strided_slice %3 {offsets = [63, 0], sizes = [1, 16], strides = [1, 1]} : vector<64x16xf32> to vector<1x16xf32>
    %31 = tpu.concatenate %29, %30 in 0 : vector<63x16xf32>, vector<1x16xf32> -> vector<64x16xf32>
    %c7_i32 = arith.constant 7 : i32
    %32 = vector.broadcast %c7_i32 : i32 to vector<64x1xi32>
    %33 = arith.cmpi eq, %20, %32 : vector<64x1xi32>
    %34 = vector.shape_cast %33 : vector<64x1xi1> to vector<64x1xi1>
    %35 = vector.broadcast %34 : vector<64x1xi1> to vector<64x16xi1>
    %36 = arith.select %35, %3, %31 : vector<64x16xi1>, vector<64x16xf32>
    %cst_8 = arith.constant 7.500000e-01 : f32
    %37 = vector.broadcast %cst_8 : f32 to vector<64x16xf32>
    %38 = arith.mulf %37, %3 : vector<64x16xf32>
    %cst_9 = arith.constant 2.500000e-01 : f32
    %39 = vector.broadcast %cst_9 : f32 to vector<64x16xf32>
    %40 = arith.mulf %39, %28 : vector<64x16xf32>
    %41 = arith.addf %38, %40 : vector<64x16xf32>
    %cst_10 = arith.constant 7.500000e-01 : f32
    %42 = vector.broadcast %cst_10 : f32 to vector<64x16xf32>
    %43 = arith.mulf %42, %3 : vector<64x16xf32>
    %cst_11 = arith.constant 2.500000e-01 : f32
    %44 = vector.broadcast %cst_11 : f32 to vector<64x16xf32>
    %45 = arith.mulf %44, %36 : vector<64x16xf32>
    %46 = arith.addf %43, %45 : vector<64x16xf32>
    %47 = tpu.concatenate %41, %46 in 1 : vector<64x16xf32>, vector<64x16xf32> -> vector<64x32xf32>
    %cst_12 = arith.constant 0.000000e+00 : f32
    %48 = vector.broadcast %cst_12 : f32 to vector<64x32xf32>
    %49 = arith.maximumf %47, %48 : vector<64x32xf32>
    %50 = arith.truncf %49 : vector<64x32xf32> to vector<64x32xbf16>
    %c0_13 = arith.constant 0 : index
    %c0_14 = arith.constant 0 : index
    %c0_15 = arith.constant 0 : index
    %51 = vector.load %arg3[%c0_13, %c0_14, %c0_15] : memref<1x64x32xbf16, #tpu.memory_space<vmem>>, vector<1x64x32xbf16>
    %52 = vector.shape_cast %51 : vector<1x64x32xbf16> to vector<64x32xbf16>
    %53 = vector.shape_cast %50 : vector<64x32xbf16> to vector<1x64x32xbf16>
    tpu.vector_store %arg3[%c0_13, %c0_14, %c0_15], %53 {strides = array<i32>} : memref<1x64x32xbf16, #tpu.memory_space<vmem>>, vector<1x64x32xbf16>,
    return
  }
  func.func @transform_0(%arg0: i32) -> (i32, i32, i32) {
    %c0_i32 = arith.constant 0 : i32
    %c0_i32_0 = arith.constant 0 : i32
    %c0_i32_1 = arith.constant 0 : i32
    return %arg0, %c0_i32, %c0_i32_0 : i32, i32, i32
  }
  func.func @transform_1(%arg0: i32) -> (i32, i32) {
    %c0_i32 = arith.constant 0 : i32
    %c0_i32_0 = arith.constant 0 : i32
    %c0_i32_1 = arith.constant 0 : i32
    return %c0_i32, %c0_i32_0 : i32, i32
  }
  func.func @transform_2(%arg0: i32) -> (i32, i32, i32) {
    %c0_i32 = arith.constant 0 : i32
    %c0_i32_0 = arith.constant 0 : i32
    %c0_i32_1 = arith.constant 0 : i32
    return %arg0, %c0_i32, %c0_i32_0 : i32, i32, i32
  }
}

module attributes {stable_mosaic.version = 11 : i64} {
  func.func @kernel(%arg0: i32, %arg1: memref<1x8x256xbf16, #tpu.memory_space<vmem>>, %arg2: memref<1x16x256xbf16, #tpu.memory_space<vmem>>, %arg3: memref<16x216xbf16, #tpu.memory_space<vmem>>, %arg4: memref<16x1xf32, #tpu.memory_space<vmem>>, %arg5: memref<3x16xbf16, #tpu.memory_space<vmem>>, %arg6: memref<3x1xf32, #tpu.memory_space<vmem>>, %arg7: memref<1x3x256xf32, #tpu.memory_space<vmem>>, %arg8: memref<24x290xbf16, #tpu.memory_space<vmem>>) attributes {dimension_semantics = [#tpu.dimension_semantics<parallel>], iteration_bounds = array<i64: 2>, scalar_prefetch = 0 : i64, scratch_operands = 1 : i64, tpu.core_type = #tpu.core_type<tc>, window_params = [{transform_indices = @transform_0, window_bounds = array<i64: 1, 8, 256>}, {transform_indices = @transform_1, window_bounds = array<i64: 1, 16, 256>}, {pipeline_mode = #tpu.pipeline_mode<synchronous>, transform_indices = @transform_2, window_bounds = array<i64: 16, 216>}, {pipeline_mode = #tpu.pipeline_mode<synchronous>, transform_indices = @transform_3, window_bounds = array<i64: 16, 1>}, {pipeline_mode = #tpu.pipeline_mode<synchronous>, transform_indices = @transform_4, window_bounds = array<i64: 3, 16>}, {pipeline_mode = #tpu.pipeline_mode<synchronous>, transform_indices = @transform_5, window_bounds = array<i64: 3, 1>}, {transform_indices = @transform_6, window_bounds = array<i64: 1, 3, 256>}]} {
    %c0_i32 = arith.constant 0 : i32
    %0 = arith.cmpi eq, %arg0, %c0_i32 : i32
    %1 = arith.extui %0 : i1 to i32
    %c0_i32_0 = arith.constant 0 : i32
    %2 = arith.cmpi ne, %1, %c0_i32_0 : i32
    scf.if %2 {
      %cst_42 = arith.constant 0.000000e+00 : bf16
      %80 = vector.broadcast %cst_42 : bf16 to vector<24x17xbf16>
      %c0_43 = arith.constant 0 : index
      %c0_44 = arith.constant 0 : index
      %81 = vector.load %arg8[%c0_43, %c0_44] : memref<24x290xbf16, #tpu.memory_space<vmem>>, vector<24x17xbf16>
      tpu.vector_store %arg8[%c0_43, %c0_44], %80 {strides = array<i32>} : memref<24x290xbf16, #tpu.memory_space<vmem>>, vector<24x17xbf16>,
      %cst_45 = arith.constant 0.000000e+00 : bf16
      %82 = vector.broadcast %cst_45 : bf16 to vector<24x17xbf16>
      %c0_46 = arith.constant 0 : index
      %c273 = arith.constant 273 : index
      %83 = vector.load %arg8[%c0_46, %c273] : memref<24x290xbf16, #tpu.memory_space<vmem>>, vector<24x17xbf16>
      tpu.vector_store %arg8[%c0_46, %c273], %82 {strides = array<i32>} : memref<24x290xbf16, #tpu.memory_space<vmem>>, vector<24x17xbf16>,
    } else {
    }
    %3 = tpu.iota {dimensions = array<i32: 1>} : vector<1x256xi32>
    %c16_i32 = arith.constant 16 : i32
    %c0_i32_1 = arith.constant 0 : i32
    %4 = arith.cmpi eq, %c16_i32, %c0_i32_1 : i32
    %c1_i32 = arith.constant 1 : i32
    %5 = arith.select %4, %c1_i32, %c16_i32 : i32
    %6 = vector.broadcast %5 : i32 to vector<1x256xi32>
    %7 = arith.remsi %3, %6 : vector<1x256xi32>
    %c0_i32_2 = arith.constant 0 : i32
    %8 = vector.broadcast %c0_i32_2 : i32 to vector<1x256xi32>
    %9 = arith.cmpi ne, %7, %8 : vector<1x256xi32>
    %c0_i32_3 = arith.constant 0 : i32
    %10 = vector.broadcast %c0_i32_3 : i32 to vector<1x256xi32>
    %11 = arith.cmpi slt, %7, %10 : vector<1x256xi32>
    %c0_i32_4 = arith.constant 0 : i32
    %12 = arith.cmpi slt, %5, %c0_i32_4 : i32
    %13 = vector.broadcast %12 : i1 to vector<1x256xi1>
    %14 = vector.broadcast %13 : vector<1x256xi1> to vector<1x256xi1>
    %15 = arith.xori %11, %14 : vector<1x256xi1>
    %16 = arith.andi %15, %9 : vector<1x256xi1>
    %17 = vector.broadcast %5 : i32 to vector<1x256xi32>
    %18 = arith.addi %7, %17 : vector<1x256xi32>
    %19 = arith.select %16, %18, %7 : vector<1x256xi1>, vector<1x256xi32>
    %c0_i32_5 = arith.constant 0 : i32
    %20 = vector.broadcast %c0_i32_5 : i32 to vector<1x256xi32>
    %21 = arith.cmpi sgt, %19, %20 : vector<1x256xi32>
    %c15_i32 = arith.constant 15 : i32
    %22 = vector.broadcast %c15_i32 : i32 to vector<1x256xi32>
    %23 = arith.cmpi slt, %19, %22 : vector<1x256xi32>
    %c0 = arith.constant 0 : index
    %c0_6 = arith.constant 0 : index
    %c0_7 = arith.constant 0 : index
    %24 = vector.load %arg1[%c0, %c0_6, %c0_7] : memref<1x8x256xbf16, #tpu.memory_space<vmem>>, vector<1x8x256xbf16>
    %25 = vector.shape_cast %24 : vector<1x8x256xbf16> to vector<8x256xbf16>
    %c0_8 = arith.constant 0 : index
    %c0_9 = arith.constant 0 : index
    %c0_10 = arith.constant 0 : index
    %26 = vector.load %arg2[%c0_8, %c0_9, %c0_10] : memref<1x16x256xbf16, #tpu.memory_space<vmem>>, vector<1x16x256xbf16>
    %27 = vector.shape_cast %26 : vector<1x16x256xbf16> to vector<16x256xbf16>
    %28 = tpu.concatenate %25, %27 in 0 : vector<8x256xbf16>, vector<16x256xbf16> -> vector<24x256xbf16>
    %c0_11 = arith.constant 0 : index
    %c0_12 = arith.constant 0 : index
    %29 = vector.load %arg3[%c0_11, %c0_12] : memref<16x216xbf16, #tpu.memory_space<vmem>>, vector<16x216xbf16>
    %c0_13 = arith.constant 0 : index
    %c17 = arith.constant 17 : index
    %30 = vector.load %arg8[%c0_13, %c17] : memref<24x290xbf16, #tpu.memory_space<vmem>>, vector<24x256xbf16>
    tpu.vector_store %arg8[%c0_13, %c17], %28 {strides = array<i32>} : memref<24x290xbf16, #tpu.memory_space<vmem>>, vector<24x256xbf16>,
    %c0_14 = arith.constant 0 : index
    %c0_15 = arith.constant 0 : index
    %31 = vector.load %arg8[%c0_14, %c0_15] : memref<24x290xbf16, #tpu.memory_space<vmem>>, vector<24x256xbf16>
    %cst = arith.constant 0.000000e+00 : bf16
    %32 = vector.broadcast %cst : bf16 to vector<24x256xbf16>
    %33 = vector.shape_cast %21 : vector<1x256xi1> to vector<1x256xi1>
    %34 = vector.broadcast %33 : vector<1x256xi1> to vector<24x256xi1>
    %35 = arith.select %34, %31, %32 : vector<24x256xi1>, vector<24x256xbf16>
    %c0_16 = arith.constant 0 : index
    %c1 = arith.constant 1 : index
    %36 = vector.load %arg8[%c0_16, %c1] : memref<24x290xbf16, #tpu.memory_space<vmem>>, vector<24x256xbf16>
    %c0_17 = arith.constant 0 : index
    %c2 = arith.constant 2 : index
    %37 = vector.load %arg8[%c0_17, %c2] : memref<24x290xbf16, #tpu.memory_space<vmem>>, vector<24x256xbf16>
    %cst_18 = arith.constant 0.000000e+00 : bf16
    %38 = vector.broadcast %cst_18 : bf16 to vector<24x256xbf16>
    %39 = vector.shape_cast %23 : vector<1x256xi1> to vector<1x256xi1>
    %40 = vector.broadcast %39 : vector<1x256xi1> to vector<24x256xi1>
    %41 = arith.select %40, %37, %38 : vector<24x256xi1>, vector<24x256xbf16>
    %c0_19 = arith.constant 0 : index
    %c16 = arith.constant 16 : index
    %42 = vector.load %arg8[%c0_19, %c16] : memref<24x290xbf16, #tpu.memory_space<vmem>>, vector<24x256xbf16>
    %cst_20 = arith.constant 0.000000e+00 : bf16
    %43 = vector.broadcast %cst_20 : bf16 to vector<24x256xbf16>
    %44 = vector.shape_cast %21 : vector<1x256xi1> to vector<1x256xi1>
    %45 = vector.broadcast %44 : vector<1x256xi1> to vector<24x256xi1>
    %46 = arith.select %45, %42, %43 : vector<24x256xi1>, vector<24x256xbf16>
    %c0_21 = arith.constant 0 : index
    %c17_22 = arith.constant 17 : index
    %47 = vector.load %arg8[%c0_21, %c17_22] : memref<24x290xbf16, #tpu.memory_space<vmem>>, vector<24x256xbf16>
    %c0_23 = arith.constant 0 : index
    %c18 = arith.constant 18 : index
    %48 = vector.load %arg8[%c0_23, %c18] : memref<24x290xbf16, #tpu.memory_space<vmem>>, vector<24x256xbf16>
    %cst_24 = arith.constant 0.000000e+00 : bf16
    %49 = vector.broadcast %cst_24 : bf16 to vector<24x256xbf16>
    %50 = vector.shape_cast %23 : vector<1x256xi1> to vector<1x256xi1>
    %51 = vector.broadcast %50 : vector<1x256xi1> to vector<24x256xi1>
    %52 = arith.select %51, %48, %49 : vector<24x256xi1>, vector<24x256xbf16>
    %c0_25 = arith.constant 0 : index
    %c32 = arith.constant 32 : index
    %53 = vector.load %arg8[%c0_25, %c32] : memref<24x290xbf16, #tpu.memory_space<vmem>>, vector<24x256xbf16>
    %cst_26 = arith.constant 0.000000e+00 : bf16
    %54 = vector.broadcast %cst_26 : bf16 to vector<24x256xbf16>
    %55 = vector.shape_cast %21 : vector<1x256xi1> to vector<1x256xi1>
    %56 = vector.broadcast %55 : vector<1x256xi1> to vector<24x256xi1>
    %57 = arith.select %56, %53, %54 : vector<24x256xi1>, vector<24x256xbf16>
    %c0_27 = arith.constant 0 : index
    %c33 = arith.constant 33 : index
    %58 = vector.load %arg8[%c0_27, %c33] : memref<24x290xbf16, #tpu.memory_space<vmem>>, vector<24x256xbf16>
    %c0_28 = arith.constant 0 : index
    %c34 = arith.constant 34 : index
    %59 = vector.load %arg8[%c0_28, %c34] : memref<24x290xbf16, #tpu.memory_space<vmem>>, vector<24x256xbf16>
    %cst_29 = arith.constant 0.000000e+00 : bf16
    %60 = vector.broadcast %cst_29 : bf16 to vector<24x256xbf16>
    %61 = vector.shape_cast %23 : vector<1x256xi1> to vector<1x256xi1>
    %62 = vector.broadcast %61 : vector<1x256xi1> to vector<24x256xi1>
    %63 = arith.select %62, %59, %60 : vector<24x256xi1>, vector<24x256xbf16>
    %64 = tpu.concatenate %35, %36, %41, %46, %47, %52, %57, %58, %63 in 0 : vector<24x256xbf16>, vector<24x256xbf16>, vector<24x256xbf16>, vector<24x256xbf16>, vector<24x256xbf16>, vector<24x256xbf16>, vector<24x256xbf16>, vector<24x256xbf16>, vector<24x256xbf16> -> vector<216x256xbf16>
    %cst_30 = arith.constant dense<0.000000e+00> : vector<16x256xf32>
    %65 = tpu.matmul %29, %64, %cst_30 {dimension_numbers = #tpu.dot_dimension_numbers<[1], [0], [0], [1], [0, 0, 1, 1], [], []>} : vector<16x216xbf16>, vector<216x256xbf16>, vector<16x256xf32> -> vector<16x256xf32>
    %c0_31 = arith.constant 0 : index
    %c0_32 = arith.constant 0 : index
    %66 = vector.load %arg4[%c0_31, %c0_32] : memref<16x1xf32, #tpu.memory_space<vmem>>, vector<16x1xf32>
    %67 = vector.broadcast %66 : vector<16x1xf32> to vector<16x256xf32>
    %68 = arith.addf %65, %67 : vector<16x256xf32>
    %cst_33 = arith.constant 0.000000e+00 : f32
    %69 = vector.broadcast %cst_33 : f32 to vector<16x256xf32>
    %70 = arith.maximumf %68, %69 : vector<16x256xf32>
    %c0_34 = arith.constant 0 : index
    %c0_35 = arith.constant 0 : index
    %71 = vector.load %arg5[%c0_34, %c0_35] : memref<3x16xbf16, #tpu.memory_space<vmem>>, vector<3x16xbf16>
    %72 = arith.truncf %70 : vector<16x256xf32> to vector<16x256xbf16>
    %cst_36 = arith.constant dense<0.000000e+00> : vector<3x256xf32>
    %73 = tpu.matmul %71, %72, %cst_36 {dimension_numbers = #tpu.dot_dimension_numbers<[1], [0], [0], [1], [0, 0, 1, 1], [], []>} : vector<3x16xbf16>, vector<16x256xbf16>, vector<3x256xf32> -> vector<3x256xf32>
    %c0_37 = arith.constant 0 : index
    %c0_38 = arith.constant 0 : index
    %74 = vector.load %arg6[%c0_37, %c0_38] : memref<3x1xf32, #tpu.memory_space<vmem>>, vector<3x1xf32>
    %75 = vector.broadcast %74 : vector<3x1xf32> to vector<3x256xf32>
    %76 = arith.addf %73, %75 : vector<3x256xf32>
    %c0_39 = arith.constant 0 : index
    %c0_40 = arith.constant 0 : index
    %c0_41 = arith.constant 0 : index
    %77 = vector.load %arg7[%c0_39, %c0_40, %c0_41] : memref<1x3x256xf32, #tpu.memory_space<vmem>>, vector<1x3x256xf32>
    %78 = vector.shape_cast %77 : vector<1x3x256xf32> to vector<3x256xf32>
    %79 = vector.shape_cast %76 : vector<3x256xf32> to vector<1x3x256xf32>
    tpu.vector_store %arg7[%c0_39, %c0_40, %c0_41], %79 {strides = array<i32>} : memref<1x3x256xf32, #tpu.memory_space<vmem>>, vector<1x3x256xf32>,
    return
  }
  func.func @transform_0(%arg0: i32) -> (i32, i32, i32) {
    %c0_i32 = arith.constant 0 : i32
    %c0_i32_0 = arith.constant 0 : i32
    %c0_i32_1 = arith.constant 0 : i32
    return %arg0, %c0_i32, %c0_i32_0 : i32, i32, i32
  }
  func.func @transform_1(%arg0: i32) -> (i32, i32, i32) {
    %c0_i32 = arith.constant 0 : i32
    %c0_i32_0 = arith.constant 0 : i32
    %c0_i32_1 = arith.constant 0 : i32
    return %arg0, %c0_i32, %c0_i32_0 : i32, i32, i32
  }
  func.func @transform_2(%arg0: i32) -> (i32, i32) {
    %c0_i32 = arith.constant 0 : i32
    %c0_i32_0 = arith.constant 0 : i32
    %c0_i32_1 = arith.constant 0 : i32
    return %c0_i32, %c0_i32_0 : i32, i32
  }
  func.func @transform_3(%arg0: i32) -> (i32, i32) {
    %c0_i32 = arith.constant 0 : i32
    %c0_i32_0 = arith.constant 0 : i32
    %c0_i32_1 = arith.constant 0 : i32
    return %c0_i32, %c0_i32_0 : i32, i32
  }
  func.func @transform_4(%arg0: i32) -> (i32, i32) {
    %c0_i32 = arith.constant 0 : i32
    %c0_i32_0 = arith.constant 0 : i32
    %c0_i32_1 = arith.constant 0 : i32
    return %c0_i32, %c0_i32_0 : i32, i32
  }
  func.func @transform_5(%arg0: i32) -> (i32, i32) {
    %c0_i32 = arith.constant 0 : i32
    %c0_i32_0 = arith.constant 0 : i32
    %c0_i32_1 = arith.constant 0 : i32
    return %c0_i32, %c0_i32_0 : i32, i32
  }
  func.func @transform_6(%arg0: i32) -> (i32, i32, i32) {
    %c0_i32 = arith.constant 0 : i32
    %c0_i32_0 = arith.constant 0 : i32
    %c0_i32_1 = arith.constant 0 : i32
    return %arg0, %c0_i32, %c0_i32_0 : i32, i32, i32
  }
}

</mosaic_0001>

<bundles_post_ra>
// kernel: unet_forward.14
= control target key start
LH: loop header
LB: loop body
LE: loop exit
PB: predicated region body
PF: predicated region fallthrough
CT: control target
= control target key end

     0   :  { %s1119_s12 = smov 0   ;;  %s1427_s0 = inlined_call_operand.vmem [shape: f32[2,1,256], index: 0, kind: input, shape index: {}]   ;;  %s1428_s1 = inlined_call_operand.vmem [shape: bf16[16,9], index: 1, kind: input, shape index: {}]   ;;  %s1429_s2 = inlined_call_operand.vmem [shape: bf16[16,144], index: 2, kind: input, shape index: {}]   ;;  %s1430_s3 = inlined_call_operand.vmem [shape: bf16[2,16,256], index: 3, kind: output, shape index: {}]  }
   0x1 LB: > { %s995_s13 = sadd.s32 4294967295, %s1080_s12   ;;  %p999_p0 = scmp.ge.s32.totalorder %s1080_s12, 1  ;;  %s1080_s12 = sphi %s1119_s12, %s13_s12  }
   0x2   : > { %p136_p1 = scmp.lt.s32.totalorder %s1080_s12, 3 }
   0x4   : > { %p137_p2 = pnand %p999_p0, %p136_p1 }
   0x5   : > { %p159_p3 = scmp.lt.s32.totalorder (!%p137_p2), %s995_s13, 1  ;;  %p1003_p4 = scmp.ne.s32.totalorder (!%p137_p2), %s995_s13, 0 }
   0x6   : > { %140 = sbr.rel (%p137_p2) target bundleno = 1674 (0x68a), region = 32 }
   0xd   : > { %s160_s14 = scalar_select %p159_p3, %s995_s13, 1 }
   0xe   : > { %174 = sbr.rel (%p1003_p4) target bundleno = 21 (0x15), region = 36  ;;  %vm175_vm0 = vcmask (!%p1003_p4), 138240   ;;  %vm177_vm1 = vcmask (!%p1003_p4), 277640   ;;  %v1082_v0 = vmov (!%p1003_p4), 0  }
   0xf   : > { %s1000_s15 = sshll.u32 %s160_s14, 1  ;;  %s1014_s16 = sshll.u32 %s160_s14, 4  ;;  %176 = vst.msk [vmem:[#allocation2] sm:$0xff] (!%p1003_p4), %vm175_vm0, %v1082_v0 }
  0x10   : > { %s162_s19 = scalar_lea.vmem %s1427_s0, %s1000_s15  ;;  %s1133_s22 = scalar_lea.vmem %s1430_s3, %s1014_s16  ;;  %178 = vst.msk [vmem:[#allocation2 + $0x10] sm:$0xff] (!%p1003_p4), %vm177_vm1, %v1082_v0 }
  0x15 PF: > { %v179_v1 = vlaneseq  ;;  %v1083_v2 = vmov 0   ;;  %v210_v5 = vld [vmem:[%s162_s19] sm:$0x3]  ;;  %s1084_s23 = smov 17   ;;  %s1085_s24 = smov 16   ;;  %vm237_vm8 = vcmask 1040520  }
  0x16   : > { %579 = vmatprep.mubr.bf16.mxu0 %v1083_v2  ;;  %s1086_s25 = smov 2   ;;  %s1087_s26 = smov 18   ;;  %vm238_vm9 = vsmask.f32 256  ;;  %v240_v22 = vld [vmem:[#allocation2] sm:$0x1] }
  0x17   : > { %v215_v3 = vshrl.u32 %v179_v1, 7  ;;  %v180_v4 = vand.u32 127, %v179_v1  ;;  %s1088_s27 = smov 32   ;;  %s1089_s28 = smov 34   ;;  %vm239_vm10 = vmand %vm237_vm8, %vm238_vm9  ;;  %vm248_vm11 = vcmask 131072   ;;  %vm243_vm12 = vcmask 1040384  }
  0x18   : > { %vm232_vm13 = vcmask 138240   ;;  %vm249_vm14 = vmand %vm248_vm11, %vm238_vm9  ;;  %v250_v25 = vld [vmem:[#allocation2 + $0x10] sm:$0x1]  ;;  %v245_v28 = vld [vmem:[#allocation2 + $0x8] sm:$0x1]  ;;  %s1090_s29 = smov 127  }
  0x19   : > { %v216_v6 = vsub.s32 0, %v215_v3  ;;  %v220_v7 = vsub.s32 1, %v215_v3  ;;  %v181_v8 = vadd.s32 128, %v180_v4  ;;  %v186_v9 = vand.u32 15, %v180_v4  ;;  %vm1168_vm15 = vmand %vm243_vm12, %vm238_vm9  ;;  %s1091_s30 = smov 111   ;;  %s1092_s4 = smov 126  }
  0x1a   : > { %v263_v14 = vsub.s32 4, %v215_v3  ;;  %vm1435_vm1 = vcmask 130048   ;;  %vm1433_vm11 = vcmask 146432   ;;  %s1093_s5 = smov 96   ;;  %s1094_s6 = smov 110  }
  0x1b   : > { %v217_v10 = vrot.slane %v210_v5, %v216_v6  ;;  %v221_v11 = vrot.slane %v210_v5, %v220_v7  ;;  %v193_v12 = vand.u32 15, %v181_v8  ;;  %vm206_vm2 = vcmp.gt.s32.totalorder %v186_v9, 0  ;;  %s1095_s7 = smov 95   ;;  %s1096_s8 = smov 112  }
  0x1c   : > { %vm208_vm3 = vcmp.lt.s32.totalorder %v186_v9, 15  ;;  %s1097_s9 = smov 94  }
  0x1d   : > { %v224_v13 = vpack.c.bf16 %v217_v10, %v217_v10  ;;  %vm207_vm4 = vcmp.gt.s32.totalorder %v193_v12, 0  ;;  %vm209_vm5 = vcmp.lt.s32.totalorder %v193_v12, 15  ;;  %v225_v16 = vpack.c.bf16 %v221_v11, %v221_v11 }
  0x1e   : > { %vm255_vm6 = vmpackc.low %vm207_vm4, %vm206_vm2 }
  0x1f   : > { %228 = vrot.lane.b32.xlu0 %v224_v13, %s1084_s23  ;;  %v256_v15 = vsel %vm255_vm6, 65537, %v1083_v2  ;;  %vm270_vm7 = vmpackc.low %vm209_vm5, %vm208_vm3  ;;  %vm1438_vm3 = vcmask 15360  }
  0x20   : > { %v1136_v17 = vrot.slane %v256_v15, %v216_v6  ;;  %v271_v18 = vsel %vm270_vm7, 65537, %v1083_v2  ;;  %v1140_v19 = vrot.slane %v256_v15, %v263_v14 }
  0x21   : > { %v1142_v20 = vrot.slane %v271_v18, %v216_v6  ;;  %v1145_v21 = vrot.slane %v271_v18, %v263_v14 }
  0x22   : > { %292 = vrot.lane.b32.xlu1 %v1136_v17, %s1085_s24 }
  0x23   : > { %230 = vrot.lane.b32.xlu0 %v225_v16, %s1084_s23 }
  0x26   : > { %294 = vrot.lane.b32.xlu1 %v1140_v19, %s1085_s24 }
  0x27   : > { %280 = vrot.lane.b32.xlu0 %v1142_v20, %s1086_s25 }
  0x2a   : > { %282 = vrot.lane.b32.xlu1 %v1145_v21, %s1086_s25 }
  0x2b   : > { %304 = vrot.lane.b32.xlu0 %v1142_v20, %s1087_s26 }
  0x2e   : > { %306 = vrot.lane.b32.xlu1 %v1145_v21, %s1087_s26 }
  0x2f   : > { %316 = vrot.lane.b32.xlu0 %v1136_v17, %s1088_s27 }
  0x32   : > { %318 = vrot.lane.b32.xlu1 %v1140_v19, %s1088_s27 }
  0x33   : > { %328 = vrot.lane.b32.xlu0 %v1142_v20, %s1089_s28 }
  0x36   : > { %330 = vrot.lane.b32.xlu1 %v1145_v21, %s1089_s28 }
  0x91   : > { %v229_v23 = vpop.permute.xlu0 %228 }
  0x92   : > { %v241_v24 = vsel %vm239_vm10, %v229_v23, %v240_v22  ;;  %vm1432_vm10 = vcmask 261120  }
  0x93   : > { %242 = vst [vmem:[#allocation2] sm:$0x1] %v241_v24 }
  0x94   : > { %v1165_v26 = vpop.permute.xlu1 %292 }
  0x95   : > { %v231_v29 = vpop.permute.xlu0 %230 }
  0x96   : > { %v233_v30 = vsel %vm232_vm13, %v229_v23, %v231_v29  ;;  %v251_v31 = vsel %vm249_vm14, %v231_v29, %v250_v25  ;;  %vm1431_vm14 = vcmask 277504  }
  0x97   : > { %v246_v32 = vsel %vm1168_vm15, %v233_v30, %v245_v28  ;;  %252 = vst [vmem:[#allocation2 + $0x10] sm:$0x1] %v251_v31 }
  0x98   : > { %247 = vst [vmem:[#allocation2 + $0x8] sm:$0x1] %v246_v32  ;;  %v295_v33 = vpop.permute.xlu1 %294 }
  0x99   : > { %v281_v35 = vpop.permute.xlu0 %280  ;;  %v297_v50 = vsel %vm1435_vm1, %v1165_v26, %v295_v33  ;;  %vm300_vm6 = vcmp.ne.s16.totalorder %v295_v33, 0  ;;  %vm506_vm1 = vsmask.f32 2304 }
  0x9a   : > { %v1175_v34 = vld [vmem:[#allocation2] sm:$0x1]  ;;  %vm286_vm2 = vcmp.ne.s16.totalorder %v281_v35, 0  ;;  %vm299_vm8 = vcmp.ne.s16.totalorder %v297_v50, 0 }
  0x9b   : > { %v341_v36 = vshll.u32 %v1175_v34, 16  ;;  %v401_v40 = vrot.slane %v1175_v34, 6  ;;  %v289_v52 = vsel %vm286_vm2, %v1175_v34, 0  ;;  %vm298_vm2 = vcmp.ne.s16.totalorder %v1165_v26, 0 }
  0x9c   : > { %v283_v37 = vpop.permute.xlu1 %282  ;;  %v363_v57 = vrot.slane %v289_v52, 7  ;;  %v301_v18 = vsel %vm298_vm2, %v1175_v34, 0  ;;  %vm266_vm2 = vcmp.ne.s16.totalorder %v1140_v19, 0 }
  0x9d   : > { %vm288_vm0 = vcmp.ne.s16.totalorder %v283_v37, 0  ;;  %349 = vrot.lane.b32.xlu1 %v341_v36, %s1090_s29  ;;  %v305_v42 = vpop.permute.xlu0 %304  ;;  %v285_v53 = vsel %vm1438_vm3, %v281_v35, %v283_v37  ;;  %v376_v26 = vshll.u32 %v301_v18, 16  ;;  %v451_v30 = vrot.slane %v341_v36, 5 }
  0x9e   : > { %v1181_v38 = vld [vmem:[#allocation2 + $0x10] sm:$0x1]  ;;  %vm310_vm4 = vcmp.ne.s16.totalorder %v305_v42, 0  ;;  %vm287_vm9 = vcmp.ne.s16.totalorder %v285_v53, 0  ;;  %vm477_vm3 = vcmask 769024  }
  0x9f   : > { %v403_v39 = vrot.slane %v1181_v38, 6  ;;  %v291_v41 = vsel %vm288_vm0, %v1181_v38, 0  ;;  %v1188_v44 = vld [vmem:[#allocation2 + $0x8] sm:$0x1]  ;;  %v347_v48 = vshll.u32 %v1181_v38, 16  ;;  %v313_v55 = vsel %vm310_vm4, %v1175_v34, 0 }
  0xa0   : > { %v1186_v43 = vpop.permute.xlu1 %306  ;;  %v365_v45 = vrot.slane %v291_v41, 7  ;;  %v344_v47 = vshll.u32 %v1188_v44, 16  ;;  %v402_v54 = vrot.slane %v1188_v44, 6  ;;  %v303_v58 = vsel %vm300_vm6, %v1181_v38, 0 }
  0xa1   : > { %408 = vrot.lane.b32.xlu0 %v403_v39, %s1091_s30  ;;  %404 = vrot.lane.b32.xlu1 %v401_v40, %s1091_s30  ;;  %v317_v49 = vpop.permute.xlu0 %316  ;;  %v414_v59 = vshll.u32 %v313_v55, 16  ;;  %v302_v62 = vsel %vm299_vm8, %v1188_v44, 0  ;;  %v384_v0 = vshll.u32 %v303_v58, 16  ;;  %v290_v1 = vsel %vm287_vm9, %v1188_v44, 0 }
  0xa2   : > { %v1042_v51 = vpack.i.bf16 %v347_v48, %v344_v47  ;;  %vm322_vm7 = vcmp.ne.s16.totalorder %v317_v49, 0  ;;  %v380_v3 = vshll.u32 %v302_v62, 16  ;;  %v452_v6 = vrot.slane %v344_v47, 5 }
  0xa3   : > { %v325_v60 = vsel %vm322_vm7, %v1175_v34, 0  ;;  %v416_v4 = vrot.slane %v414_v59, 6  ;;  %v453_v7 = vrot.slane %v347_v48, 5  ;;  %v309_v8 = vsel %vm1433_vm11, %v305_v42, %v1186_v43 }
  0xa4   : > { %v319_v46 = vpop.permute.xlu1 %318  ;;  %v439_v2 = vrot.slane %v325_v60, 5  ;;  %v364_v10 = vrot.slane %v290_v1, 7  ;;  %v382_v12 = vrot.slane %v380_v3, 7  ;;  %v386_v13 = vrot.slane %v384_v0, 7 }
  0xa5   : > { %370 = vrot.lane.b32.xlu1 %v365_v45, %s1092_s4  ;;  %vm324_vm5 = vcmp.ne.s16.totalorder %v319_v46, 0  ;;  %1043 = vrot.lane.b32.xlu0 %v1042_v51, %s1090_s29  ;;  %v321_v63 = vsel %vm1432_vm10, %v317_v49, %v319_v46  ;;  %v329_v9 = vpop.permute.xlu0 %328  ;;  %v1047_v15 = vpack.i.bf16 %v453_v7, %v452_v6  ;;  %vm311_vm4 = vcmp.ne.s16.totalorder %v309_v8, 0 }
  0xa6   : > { %v327_v56 = vsel %vm324_vm5, %v1181_v38, 0  ;;  %vm323_vm0 = vcmp.ne.s16.totalorder %v321_v63, 0  ;;  %vm312_vm5 = vcmp.ne.s16.totalorder %v1186_v43, 0  ;;  %v314_v22 = vsel %vm311_vm4, %v1188_v44, 0 }
  0xa7   : > { %v441_v61 = vrot.slane %v327_v56, 5  ;;  %v326_v14 = vsel %vm323_vm0, %v1188_v44, 0  ;;  %v315_v23 = vsel %vm312_vm5, %v1181_v38, 0  ;;  %v1052_v24 = vpack.i.bf16 %v386_v13, %v382_v12 }
  0xa8   : > { %v331_v5 = vpop.permute.xlu1 %330  ;;  %v440_v16 = vrot.slane %v326_v14, 5  ;;  %vm334_vm7 = vcmp.ne.s16.totalorder %v329_v9, 0  ;;  %v418_v28 = vshll.u32 %v314_v22, 16  ;;  %v422_v29 = vshll.u32 %v315_v23, 16 }
  0xa9   : > { %406 = vrot.lane.b32.xlu1 %v402_v54, %s1091_s30  ;;  %366 = vrot.lane.b32.xlu0 %v363_v57, %s1092_s4  ;;  %v333_v11 = vsel %vm1431_vm14, %v329_v9, %v331_v5  ;;  %v337_v32 = vsel %vm334_vm7, %v1175_v34, 0  ;;  %v378_v33 = vrot.slane %v376_v26, 7  ;;  %vm336_vm8 = vcmp.ne.s16.totalorder %v331_v5, 0 }
  0xaa   : > { %vm335_vm6 = vcmp.ne.s16.totalorder %v333_v11, 0  ;;  %v420_v35 = vrot.slane %v418_v28, 6  ;;  %v424_v37 = vrot.slane %v422_v29, 6  ;;  %v468_v39 = vrot.slane %v337_v32, 4 }
  0xab   : > { %v338_v25 = vsel %vm335_vm6, %v1188_v44, 0  ;;  %v339_v36 = vsel %vm336_vm8, %v1181_v38, 0  ;;  %vm265_vm9 = vcmp.ne.s16.totalorder %v1136_v17, 0  ;;  %vm1434_vm0 = vcmask 1039360  }
  0xac   : > { %v469_v31 = vrot.slane %v338_v25, 4  ;;  %v1057_v40 = vpack.i.bf16 %v424_v37, %v420_v35  ;;  %v470_v41 = vrot.slane %v339_v36, 4  ;;  %vm1437_vm4 = vcmask 1031168  }
  0xad   : > { %446 = vrot.lane.b32.xlu1 %v441_v61, %s1093_s5  ;;  %442 = vrot.lane.b32.xlu0 %v439_v2, %s1093_s5  ;;  %v267_v59 = vsel %vm265_vm9, %v1175_v34, 0  ;;  %vm410_vm5 = vcmask 908288   ;;  %vm1436_vm6 = vcmask 916480   ;;  %vm491_vm7 = vcmask 1041408  }
  0xae   : > { %vm492_vm8 = vsmask.f32 1280  ;;  %v268_v0 = vsel %vm266_vm2, %v1188_v44, 0  ;;  %vm460_vm14 = vcmask 777216   ;;  %vm519_vm10 = vcmask 1043456  }
  0xaf   : > { %vm1256_vm11 = vmand %vm491_vm7, %vm492_vm8  ;;  %vm540_vm8 = vcmask 1044480   ;;  %v1098_v12 = vmov 65535  }
  0xb0   : > { %v541_v13 = vsel %vm519_vm10, 4294967295, %v1098_v12 }
  0xb1   : > { %425 = vrot.lane.b32.xlu1 %v416_v4, %s1094_s6  ;;  %368 = vrot.lane.b32.xlu0 %v364_v10, %s1092_s4  ;;  %v542_v26 = vsel %vm540_vm8, %v541_v13, 0 }
  0xb5   : > { %1048 = vrot.lane.b32.xlu1 %v1047_v15, %s1095_s7  ;;  %444 = vrot.lane.b32.xlu0 %v440_v16, %s1093_s5 }
  0xb9   : > { %1053 = vrot.lane.b32.xlu1 %v1052_v24, %s1096_s8  ;;  %454 = vrot.lane.b32.xlu0 %v451_v30, %s1095_s7 }
  0xbd   : > { %473 = vrot.lane.b32.xlu1 %v469_v31, %s1097_s9  ;;  %387 = vrot.lane.b32.xlu0 %v378_v33, %s1096_s8 }
  0xc1   : > { %471 = vrot.lane.b32.xlu1 %v468_v39, %s1097_s9  ;;  %1058 = vrot.lane.b32.xlu0 %v1057_v40, %s1094_s6 }
  0xc5   : > { %475 = vrot.lane.b32.xlu0 %v470_v41, %s1097_s9 }
 0x10f   : > { %v350_v42 = vpop.permute.xlu1 %349 }
 0x113   : > { %v405_v43 = vpop.permute.xlu1 %404  ;;  %v409_v45 = vpop.permute.xlu0 %408 }
 0x117   : > { %v371_v46 = vpop.permute.xlu1 %370  ;;  %v1044_v47 = vpop.permute.xlu0 %1043 }
 0x118   : > { %v1046_v56 = vunpack.i.h.bf16 %v1044_v47  ;;  %v1045_v57 = vunpack.i.l.bf16 %v1044_v47 }
 0x11a   : > { %v356_v62 = vsel %vm1434_vm0, %v350_v42, %v1045_v57  ;;  %v357_v63 = vsel %vm1434_vm0, %v1045_v57, %v1046_v56  ;;  %vm505_vm0 = vcmask 1042432  }
 0x11b   : > { %v407_v48 = vpop.permute.xlu1 %406  ;;  %v367_v49 = vpop.permute.xlu0 %366  ;;  %v481_v44 = vsel %vm1168_vm15, %v268_v0, %v357_v63  ;;  %v480_v7 = vsel %vm1168_vm15, %v267_v59, %v356_v62  ;;  %vm520_vm15 = vsmask.f32 3328 }
 0x11c   : > { %v411_v23 = vsel %vm410_vm5, %v405_v43, %v407_v48  ;;  %v412_v24 = vsel %vm410_vm5, %v407_v48, %v409_v45 }
 0x11f   : > { %v1237_v50 = vpop.permute.xlu1 %446  ;;  %v1239_v51 = vpop.permute.xlu0 %442 }
 0x123   : > { %v426_v52 = vpop.permute.xlu1 %425  ;;  %v369_v53 = vpop.permute.xlu0 %368 }
 0x124   : > { %v373_v1 = vsel %vm1437_vm4, %v367_v49, %v369_v53  ;;  %v374_v2 = vsel %vm1437_vm4, %v369_v53, %v371_v46  ;;  %vm448_vm4 = vcmask 785408  }
 0x125   : > { %v485_v10 = vsel %vm243_vm12, %v480_v7, %v373_v1  ;;  %v489_v11 = vsel %vm243_vm12, %v481_v44, %v374_v2  ;;  %vm1277_vm12 = vmand %vm505_vm0, %vm506_vm1 }
 0x126   : > { %vm521_vm1 = vmand %vm519_vm10, %vm520_vm15 }
 0x127   : > { %v1241_v54 = vpop.permute.xlu1 %1048  ;;  %v445_v38 = vpop.permute.xlu0 %444 }
 0x128   : > { %v1051_v8 = vunpack.i.h.bf16 %v1241_v54  ;;  %v1050_v9 = vunpack.i.l.bf16 %v1241_v54  ;;  %v449_v33 = vsel %vm448_vm4, %v1239_v51, %v445_v38  ;;  %v450_v35 = vsel %vm448_vm4, %v445_v38, %v1237_v50 }
 0x12a   : > { %v462_v25 = vsel %vm460_vm14, %v1050_v9, %v1051_v8 }
 0x12b   : > { %v1054_v55 = vpop.permute.xlu1 %1053  ;;  %v455_v58 = vpop.permute.xlu0 %454 }
 0x12c   : > { %v1056_v60 = vunpack.i.h.bf16 %v1054_v55  ;;  %v1055_v61 = vunpack.i.l.bf16 %v1054_v55  ;;  %v461_v36 = vsel %vm460_vm14, %v455_v58, %v1050_v9 }
 0x12e   : > { %v395_v5 = vsel %vm1436_vm6, %v1055_v61, %v1056_v60 }
 0x12f   : > { %v388_v34 = vpop.permute.xlu0 %387  ;;  %v474_v6 = vpop.permute.xlu1 %473  ;;  %v495_v15 = vsel %vm1256_vm11, %v489_v11, %v395_v5 }
 0x130   : > { %v394_v4 = vsel %vm1436_vm6, %v388_v34, %v1055_v61  ;;  %vm431_vm6 = vcmask 900096   ;;  %v503_v32 = vsel %vm491_vm7, %v495_v15, %v412_v24 }
 0x131   : > { %v494_v14 = vsel %vm1256_vm11, %v485_v10, %v394_v4  ;;  %vm536_vm11 = vcmask 72704  }
 0x132   : > { %v499_v28 = vsel %vm491_vm7, %v494_v14, %v411_v23 }
 0x133   : > { %v1059_v27 = vpop.permute.xlu0 %1058  ;;  %v472_v31 = vpop.permute.xlu1 %471 }
 0x134   : > { %v1061_v16 = vunpack.i.h.bf16 %v1059_v27  ;;  %v1060_v18 = vunpack.i.l.bf16 %v1059_v27  ;;  %v478_v45 = vsel %vm477_vm3, %v472_v31, %v474_v6 }
 0x136   : > { %v432_v29 = vsel %vm431_vm6, %v426_v52, %v1060_v18  ;;  %v433_v30 = vsel %vm431_vm6, %v1060_v18, %v1061_v16  ;;  %v1062_v52 = vld [vmem:[%s1428_s1] sm:$0xff]  }
 0x137   : > { %v476_v37 = vpop.permute.xlu0 %475  ;;  %v509_v39 = vsel %vm1277_vm12, %v503_v32, %v433_v30  ;;  %v508_v40 = vsel %vm1277_vm12, %v499_v28, %v432_v29  ;;  %vm1446_vm12 = vcmask 130048  }
 0x138   : > { %v479_v41 = vsel %vm477_vm3, %v474_v6, %v476_v37  ;;  %v517_v42 = vsel %vm505_vm0, %v509_v39, %v450_v35  ;;  %v513_v43 = vsel %vm505_vm0, %v508_v40, %v449_v33 }
 0x139   : > { %v523_v46 = vsel %vm521_vm1, %v517_v42, %v462_v25  ;;  %v522_v47 = vsel %vm521_vm1, %v513_v43, %v461_v36 }
 0x13a   : > { %v530_v48 = vsel %vm519_vm10, %v523_v46, %v479_v41  ;;  %v527_v49 = vsel %vm519_vm10, %v522_v47, %v478_v45  ;;  %vm641_vm10 = vcmask 1047688  }
 0x13b   : > { %v545_v50 = vand.u32 %v542_v26, %v530_v48  ;;  %v543_v51 = vand.u32 %v542_v26, %v527_v49 }
 0x13d   : > { %547 = vmatprep.subr.bf16.mxu0 %v545_v50 }
 0x13e   : > { %548 = vmatpush1.bf16.msra.mxu0 %v543_v51 }
 0x141   : > { %1005 = vmatmul.mubr.msk.bf16.vlgmr.msra.gmra.mrb[0].mxu0 %vm536_vm11, %v1062_v52 }
 0x214   : > { %v581_v53 = vpop.f32.mrb[0].mxu0 }
 0x215   : > { %v583_v54 = vpop.f32.mrb[1].mxu0 }
 0x216   : > { %v585_v38 = vpop.f32.mrb[2].mxu0  ;;  %v590_v55 = vadd.f32 %v583_v54, %v581_v53 }
 0x217   : > { %v587_v56 = vpop.f32.mrb[3].mxu0 }
 0x218   : > { %v593_v57 = vadd.f32 %v587_v56, %v585_v38  ;;  %591 = vadd.xlane.f32.xlu0 %v590_v55 }
 0x21a   : > { %594 = vadd.xlane.f32.xlu1 %v593_v57 }
 0x2a5   : > { %v592_v58 = vpop.xlane.xlu0 %591 }
 0x2a6   : > { %v597_v59 = vmul.f32 0.00390625, %v592_v58 }
 0x2a7   : > { %v595_v60 = vpop.xlane.xlu1 %594 }
 0x2a8   : > { %v599_v61 = vsub.f32 %v581_v53, %v597_v59  ;;  %v600_v62 = vsub.f32 %v583_v54, %v597_v59  ;;  %v598_v63 = vmul.f32 0.00390625, %v595_v60  ;;  %v1065_v59 = vld [vmem:[%s1429_s2 + $0x4] ss:$8 sps:$4 sm:$0xff]  }
 0x2aa   : > { %v601_v0 = vsub.f32 %v585_v38, %v598_v63  ;;  %v602_v1 = vsub.f32 %v587_v56, %v598_v63  ;;  %v603_v2 = vmul.f32 %v599_v61, %v599_v61  ;;  %v604_v34 = vmul.f32 %v600_v62, %v600_v62 }
 0x2ac   : > { %v607_v3 = vadd.f32 %v604_v34, %v603_v2  ;;  %v605_v4 = vmul.f32 %v601_v0, %v601_v0  ;;  %v606_v5 = vmul.f32 %v602_v1, %v602_v1 }
 0x2ae   : > { %608 = vadd.xlane.f32.xlu0 %v607_v3  ;;  %v610_v6 = vadd.f32 %v606_v5, %v605_v4 }
 0x2b2   : > { %611 = vadd.xlane.f32.xlu0 %v610_v6 }
 0x33b   : > { %v609_v44 = vpop.xlane.xlu0 %608 }
 0x33c   : > { %v613_v7 = vmul.f32 0.00390625, %v609_v44 }
 0x33e   : > { %v615_v8 = vadd.f32 1e-05, %v613_v7 }
 0x33f   : > { %v612_v9 = vpop.xlane.xlu0 %611 }
 0x340   : > { %1066 = vrsqrt.f32 %v615_v8  ;;  %v614_v10 = vmul.f32 0.00390625, %v612_v9 }
 0x342   : > { %v616_v11 = vadd.f32 1e-05, %v614_v10 }
 0x344   : > { %1068 = vrsqrt.f32 %v616_v11 }
 0x34a   : > { %v1067_v12 = vpop.eup %1066 }
 0x34b   : > { %v620_v13 = vmul.f32 %v1067_v12, %v600_v62  ;;  %v619_v14 = vmul.f32 %v1067_v12, %v599_v61 }
 0x34d   : > { %v624_v18 = vmax.f32 %v620_v13, 0.0  ;;  %v623_v23 = vmax.f32 %v619_v14, 0.0 }
 0x34e   : > { %v1069_v15 = vpop.eup %1068 }
 0x34f   : > { %v622_v27 = vmul.f32 %v1069_v15, %v602_v1  ;;  %v621_v16 = vmul.f32 %v1069_v15, %v601_v0 }
 0x351   : > { %v626_v22 = vmax.f32 %v622_v27, 0.0  ;;  %v625_v24 = vmax.f32 %v621_v16, 0.0 }
 0x353   : > { %v630_v25 = vpack.c.bf16 %v626_v22, %v624_v18  ;;  %v629_v26 = vpack.c.bf16 %v625_v24, %v623_v23 }
 0x355   : > { %635 = vrot.lane.b32.xlu0 %v630_v25, %s1084_s23  ;;  %633 = vrot.lane.b32.xlu1 %v629_v26, %s1084_s23 }
 0x359   : > { %692 = vrot.lane.b32.xlu0 %v1136_v17, %s1085_s24  ;;  %681 = vrot.lane.b32.xlu1 %v1142_v20, %s1086_s25 }
 0x35d   : > { %703 = vrot.lane.b32.xlu0 %v1142_v20, %s1087_s26  ;;  %683 = vrot.lane.b32.xlu1 %v1145_v21, %s1086_s25 }
 0x361   : > { %714 = vrot.lane.b32.xlu0 %v1136_v17, %s1088_s27  ;;  %694 = vrot.lane.b32.xlu1 %v1140_v19, %s1085_s24 }
 0x365   : > { %725 = vrot.lane.b32.xlu0 %v1142_v20, %s1089_s28  ;;  %705 = vrot.lane.b32.xlu1 %v1145_v21, %s1087_s26 }
 0x369   : > { %716 = vrot.lane.b32.xlu1 %v1140_v19, %s1088_s27 }
 0x36d   : > { %727 = vrot.lane.b32.xlu1 %v1145_v21, %s1089_s28 }
 0x3c7   : > { %v636_v28 = vpop.permute.xlu0 %635  ;;  %v634_v29 = vpop.permute.xlu1 %633 }
 0x3c8   : > { %645 = vst.msk [vmem:[#allocation2 + $0x10] sm:$0xff] %vm232_vm13, %v636_v28  ;;  %v1333_v30 = vsel %vm232_vm13, %v634_v29, %v636_v28 }
 0x3c9   : > { %642 = vst.msk [vmem:[#allocation2] sm:$0xff] %vm641_vm10, %v634_v29  ;;  %643 = vst [vmem:[#allocation2 + $0x8] sm:$0xff] %v1333_v30  ;;  %1008 = vmatprep.subr.msk.bf16.mxu1 %vm266_vm2, %v1333_v30 }
 0x3cb   : > { %v682_v20 = vpop.permute.xlu1 %681  ;;  %v693_v37 = vpop.permute.xlu0 %692 }
 0x3cc   : > { %vm686_vm0 = vcmp.ne.s16.totalorder %v682_v20, 0  ;;  %vm697_vm7 = vcmp.ne.s16.totalorder %v693_v37, 0 }
 0x3cf   : > { %v684_v31 = vpop.permute.xlu1 %683  ;;  %v1339_v32 = vld [vmem:[#allocation2 + $0x10] sm:$0xff]  ;;  %v704_v36 = vpop.permute.xlu0 %703 }
 0x3d0   : > { %v1341_v21 = vld [vmem:[#allocation2] sm:$0xff]  ;;  %743 = vrot.lane.b32.xlu1 %v1339_v32, %s1090_s29  ;;  %vm688_vm2 = vcmp.ne.s16.totalorder %v684_v31, 0  ;;  %vm708_vm15 = vcmp.ne.s16.totalorder %v704_v36, 0 }
 0x3d1   : > { %739 = vrot.lane.b32.xlu0 %v1341_v21, %s1090_s29  ;;  %v664_v33 = vsel %vm265_vm9, %v1341_v21, 0  ;;  %v689_v35 = vsel %vm686_vm0, %v1341_v21, 0  ;;  %vm1445_vm9 = vcmask 15360   ;;  %v691_v40 = vsel %vm688_vm2, %v1339_v32, 0 }
 0x3d2   : > { %848 = vmatpush1.bf16.msra.mxu1 %v664_v33  ;;  %v685_v17 = vsel %vm1445_vm9, %v682_v20, %v684_v31  ;;  %v700_v42 = vsel %vm697_vm7, %v1341_v21, 0  ;;  %v711_v46 = vsel %vm708_vm15, %v1341_v21, 0  ;;  %vm1448_vm2 = vcmask 261120   ;;  %vm1450_vm15 = vmmov %vm1446_vm12 }
 0x3d3   : > { %v695_v19 = vpop.permute.xlu1 %694  ;;  %vm687_vm8 = vcmp.ne.s16.totalorder %v685_v17, 0  ;;  %v715_v47 = vpop.permute.xlu0 %714  ;;  %1009 = vmatprep.mubr.msk.bf16.mxu1 %vm1450_vm15, %v1065_v59 }
 0x3d4   : > { %vm699_vm13 = vcmp.ne.s16.totalorder %v695_v19, 0  ;;  %752 = vrot.lane.b32.xlu1 %v689_v35, %s1092_s4  ;;  %v690_v43 = vsel %vm687_vm8, %v1333_v30, 0  ;;  %v696_v45 = vsel %vm1446_vm12, %v693_v37, %v695_v19  ;;  %vm719_vm10 = vcmp.ne.s16.totalorder %v715_v47, 0 }
 0x3d5   : > { %779 = vrot.lane.b32.xlu0 %v1339_v32, %s1091_s30  ;;  %v702_v39 = vsel %vm699_vm13, %v1339_v32, 0  ;;  %vm698_vm1 = vcmp.ne.s16.totalorder %v696_v45, 0  ;;  %vm1447_vm13 = vcmask 146432   ;;  %v722_v53 = vsel %vm719_vm10, %v1341_v21, 0 }
 0x3d6   : > { %v701_v49 = vsel %vm698_vm1, %v1333_v30, 0  ;;  %vm1449_vm8 = vcmask 277504   ;;  %vm1451_vm10 = vcmask 1039360  }
 0x3d7   : > { %v706_v41 = vpop.permute.xlu1 %705  ;;  %v726_v57 = vpop.permute.xlu0 %725 }
 0x3d8   : > { %769 = vrot.lane.b32.xlu1 %v702_v39, %s1096_s8  ;;  %vm710_vm11 = vcmp.ne.s16.totalorder %v706_v41, 0  ;;  %v707_v51 = vsel %vm1447_vm13, %v704_v36, %v706_v41  ;;  %vm730_vm1 = vcmp.ne.s16.totalorder %v726_v57, 0  ;;  %vm1453_vm13 = vcmask 1031168  }
 0x3d9   : > { %741 = vrot.lane.b32.xlu0 %v1333_v30, %s1090_s29  ;;  %v713_v50 = vsel %vm710_vm11, %v1339_v32, 0  ;;  %vm709_vm9 = vcmp.ne.s16.totalorder %v707_v51, 0  ;;  %v733_v62 = vsel %vm730_vm1, %v1341_v21, 0 }
 0x3da   : > { %v712_v55 = vsel %vm709_vm9, %v1333_v30, 0  ;;  %vm1455_vm9 = vcmask 916480  }
 0x3db   : > { %v717_v48 = vpop.permute.xlu1 %716 }
 0x3dc   : > { %777 = vrot.lane.b32.xlu1 %v1333_v30, %s1091_s30  ;;  %vm721_vm0 = vcmp.ne.s16.totalorder %v717_v48, 0  ;;  %v718_v52 = vsel %vm1448_vm2, %v715_v47, %v717_v48  ;;  %vm1454_vm2 = vmmov %vm1453_vm13 }
 0x3dd   : > { %756 = vrot.lane.b32.xlu0 %v691_v40, %s1092_s4  ;;  %v724_v54 = vsel %vm721_vm0, %v1339_v32, 0  ;;  %vm720_vm7 = vcmp.ne.s16.totalorder %v718_v52, 0  ;;  %vm1452_vm0 = vmmov %vm1451_vm10  ;;  %v1063_v40 = vld [vmem:[%s1429_s2] ss:$8 sps:$4 sm:$0xff]  }
 0x3de   : > { %v723_v56 = vsel %vm720_vm7, %v1333_v30, 0  ;;  %vm1456_vm7 = vmmov %vm1455_vm9 }
 0x3df   : > { %v728_v38 = vpop.permute.xlu1 %727 }
 0x3e0   : > { %754 = vrot.lane.b32.xlu1 %v690_v43, %s1092_s4  ;;  %v729_v58 = vsel %vm1449_vm8, %v726_v57, %v728_v38  ;;  %vm732_vm11 = vcmp.ne.s16.totalorder %v728_v38, 0 }
 0x3e1   : > { %765 = vrot.lane.b32.xlu0 %v700_v42, %s1096_s8  ;;  %vm731_vm12 = vcmp.ne.s16.totalorder %v729_v58, 0  ;;  %v735_v61 = vsel %vm732_vm11, %v1339_v32, 0 }
 0x3e2   : > { %v734_v60 = vsel %vm731_vm12, %v1333_v30, 0 }
 0x3e4   : > { %775 = vrot.lane.b32.xlu1 %v1341_v21, %s1091_s30 }
 0x3e5   : > { %788 = vrot.lane.b32.xlu0 %v711_v46, %s1094_s6 }
 0x3e8   : > { %792 = vrot.lane.b32.xlu1 %v713_v50, %s1094_s6 }
 0x3e9   : > { %767 = vrot.lane.b32.xlu0 %v701_v49, %s1096_s8 }
 0x3ec   : > { %801 = vrot.lane.b32.xlu1 %v722_v53, %s1093_s5 }
 0x3ed   : > { %805 = vrot.lane.b32.xlu0 %v724_v54, %s1093_s5 }
 0x3f0   : > { %803 = vrot.lane.b32.xlu1 %v723_v56, %s1093_s5 }
 0x3f1   : > { %790 = vrot.lane.b32.xlu0 %v712_v55, %s1094_s6 }
 0x3f4   : > { %815 = vrot.lane.b32.xlu1 %v1339_v32, %s1095_s7 }
 0x3f5   : > { %813 = vrot.lane.b32.xlu0 %v1333_v30, %s1095_s7 }
 0x3f8   : > { %826 = vrot.lane.b32.xlu1 %v734_v60, %s1097_s9 }
 0x3f9   : > { %811 = vrot.lane.b32.xlu0 %v1341_v21, %s1095_s7 }
 0x3fc   : > { %824 = vrot.lane.b32.xlu1 %v733_v62, %s1097_s9 }
 0x3fd   : > { %828 = vrot.lane.b32.xlu0 %v735_v61, %s1097_s9 }
 0x442   : > { %v744_v0 = vpop.permute.xlu1 %743 }
 0x443   : > { %v740_v63 = vpop.permute.xlu0 %739 }
 0x446   : > { %v753_v2 = vpop.permute.xlu1 %752 }
 0x447   : > { %v780_v1 = vpop.permute.xlu0 %779 }
 0x44a   : > { %v770_v3 = vpop.permute.xlu1 %769 }
 0x44b   : > { %v742_v34 = vpop.permute.xlu0 %741 }
 0x44c   : > { %v746_v4 = vsel %vm1451_vm10, %v742_v34, %v744_v0  ;;  %v745_v5 = vsel %vm1452_vm0, %v740_v63, %v742_v34 }
 0x44d   : > { %849 = vmatprep.subr.bf16.mxu1 %v746_v4 }
 0x44e   : > { %850 = vmatpush1.bf16.msra.mxu1 %v745_v5  ;;  %v778_v44 = vpop.permute.xlu1 %777 }
 0x44f   : > { %v757_v6 = vpop.permute.xlu0 %756  ;;  %v782_v16 = vsel %vm410_vm5, %v778_v44, %v780_v1 }
 0x452   : > { %v755_v8 = vpop.permute.xlu1 %754 }
 0x453   : > { %v766_v7 = vpop.permute.xlu0 %765  ;;  %v759_v9 = vsel %vm1453_vm13, %v755_v8, %v757_v6  ;;  %v758_v10 = vsel %vm1454_vm2, %v753_v2, %v755_v8 }
 0x454   : > { %851 = vmatprep.subr.bf16.mxu1 %v759_v9 }
 0x455   : > { %852 = vmatpush1.bf16.msra.mxu1 %v758_v10 }
 0x456   : > { %v776_v12 = vpop.permute.xlu1 %775 }
 0x457   : > { %v789_v11 = vpop.permute.xlu0 %788  ;;  %v781_v23 = vsel %vm410_vm5, %v776_v12, %v778_v44 }
 0x45a   : > { %v793_v14 = vpop.permute.xlu1 %792 }
 0x45b   : > { %v768_v13 = vpop.permute.xlu0 %767 }
 0x45c   : > { %v772_v15 = vsel %vm1455_vm9, %v768_v13, %v770_v3  ;;  %v771_v27 = vsel %vm1456_vm7, %v766_v7, %v768_v13 }
 0x45d   : > { %853 = vmatprep.subr.bf16.mxu1 %v772_v15 }
 0x45e   : > { %854 = vmatpush1.bf16.msra.mxu1 %v771_v27  ;;  %v802_v22 = vpop.permute.xlu1 %801 }
 0x45f   : > { %v806_v18 = vpop.permute.xlu0 %805  ;;  %855 = vmatprep.subr.bf16.mxu1 %v782_v16 }
 0x462   : > { %856 = vmatpush1.bf16.msra.mxu1 %v781_v23  ;;  %v804_v25 = vpop.permute.xlu1 %803 }
 0x463   : > { %v791_v24 = vpop.permute.xlu0 %790  ;;  %v808_v29 = vsel %vm448_vm4, %v804_v25, %v806_v18  ;;  %v807_v31 = vsel %vm448_vm4, %v802_v22, %v804_v25 }
 0x464   : > { %v795_v26 = vsel %vm431_vm6, %v791_v24, %v793_v14  ;;  %v794_v28 = vsel %vm431_vm6, %v789_v11, %v791_v24 }
 0x465   : > { %857 = vmatprep.subr.bf16.mxu1 %v795_v26 }
 0x466   : > { %858 = vmatpush1.bf16.msra.mxu1 %v794_v28  ;;  %v816_v20 = vpop.permute.xlu1 %815 }
 0x467   : > { %v814_v30 = vpop.permute.xlu0 %813  ;;  %859 = vmatprep.subr.bf16.mxu1 %v808_v29 }
 0x468   : > { %v818_v32 = vsel %vm460_vm14, %v814_v30, %v816_v20 }
 0x46a   : > { %860 = vmatpush1.bf16.msra.mxu1 %v807_v31  ;;  %v827_v33 = vpop.permute.xlu1 %826 }
 0x46b   : > { %v812_v21 = vpop.permute.xlu0 %811  ;;  %861 = vmatprep.subr.bf16.mxu1 %v818_v32 }
 0x46c   : > { %v817_v19 = vsel %vm460_vm14, %v812_v21, %v814_v30 }
 0x46e   : > { %862 = vmatpush1.bf16.msra.mxu1 %v817_v19  ;;  %v825_v37 = vpop.permute.xlu1 %824 }
 0x46f   : > { %v829_v35 = vpop.permute.xlu0 %828  ;;  %v830_v17 = vsel %vm477_vm3, %v825_v37, %v827_v33 }
 0x470   : > { %v831_v39 = vsel %vm477_vm3, %v827_v33, %v829_v35 }
 0x471   : > { %863 = vmatprep.subr.bf16.mxu1 %v831_v39 }
 0x472   : > { %864 = vmatpush1.bf16.msra.mxu1 %v830_v17 }
 0x475   : > { %880 = vmatmul.mubr.bf16.vlgmr.msra.gmra.mrb[0].mxu1 %v1063_v40 }
 0x548   : > { %v881_v36 = vpop.f32.mrb[0].mxu1 }
 0x549   : > { %v883_v41 = vpop.f32.mrb[1].mxu1 }
 0x54a   : > { %v885_v42 = vpop.f32.mrb[2].mxu1  ;;  %v890_v43 = vadd.f32 %v883_v41, %v881_v36 }
 0x54b   : > { %v887_v45 = vpop.f32.mrb[3].mxu1 }
 0x54c   : > { %v893_v46 = vadd.f32 %v887_v45, %v885_v42  ;;  %891 = vadd.xlane.f32.xlu0 %v890_v43 }
 0x54e   : > { %894 = vadd.xlane.f32.xlu1 %v893_v46 }
 0x5d9   : > { %v892_v47 = vpop.xlane.xlu0 %891 }
 0x5da   : > { %v896_v48 = vmul.f32 0.00390625, %v892_v47 }
 0x5db   : > { %v895_v49 = vpop.xlane.xlu1 %894 }
 0x5dc   : > { %v898_v50 = vsub.f32 %v881_v36, %v896_v48  ;;  %v899_v51 = vsub.f32 %v883_v41, %v896_v48  ;;  %v897_v52 = vmul.f32 0.00390625, %v895_v49 }
 0x5de   : > { %v900_v53 = vsub.f32 %v885_v42, %v897_v52  ;;  %v901_v54 = vsub.f32 %v887_v45, %v897_v52  ;;  %v902_v38 = vmul.f32 %v898_v50, %v898_v50  ;;  %v903_v55 = vmul.f32 %v899_v51, %v899_v51 }
 0x5e0   : > { %v906_v56 = vadd.f32 %v903_v55, %v902_v38  ;;  %v904_v57 = vmul.f32 %v900_v53, %v900_v53  ;;  %v905_v58 = vmul.f32 %v901_v54, %v901_v54 }
 0x5e2   : > { %907 = vadd.xlane.f32.xlu0 %v906_v56  ;;  %v909_v59 = vadd.f32 %v905_v58, %v904_v57 }
 0x5e6   : > { %910 = vadd.xlane.f32.xlu0 %v909_v59 }
 0x66f   : > { %v908_v60 = vpop.xlane.xlu0 %907 }
 0x670   : > { %v912_v61 = vmul.f32 0.00390625, %v908_v60 }
 0x672   : > { %v914_v62 = vadd.f32 1e-05, %v912_v61 }
 0x673   : > { %v911_v63 = vpop.xlane.xlu0 %910 }
 0x674   : > { %1070 = vrsqrt.f32 %v914_v62  ;;  %v913_v0 = vmul.f32 0.00390625, %v911_v63 }
 0x676   : > { %v915_v1 = vadd.f32 1e-05, %v913_v0 }
 0x678   : > { %1072 = vrsqrt.f32 %v915_v1 }
 0x67e   : > { %v1071_v2 = vpop.eup %1070 }
 0x67f   : > { %v918_v34 = vmul.f32 %v1071_v2, %v898_v50  ;;  %v919_v3 = vmul.f32 %v1071_v2, %v899_v51 }
 0x681   : > { %v922_v4 = vmax.f32 %v918_v34, 0.0  ;;  %v923_v5 = vmax.f32 %v919_v3, 0.0 }
 0x682   : > { %v1073_v6 = vpop.eup %1072 }
 0x683   : > { %v1015_v44 = vpack.c.bf16 %v923_v5, %v922_v4  ;;  %v920_v7 = vmul.f32 %v1073_v6, %v900_v53  ;;  %v921_v8 = vmul.f32 %v1073_v6, %v901_v54 }
 0x685   : > { %938 = vst [vmem:[%s1133_s22] sm:$0xff] %v1015_v44  ;;  %v924_v9 = vmax.f32 %v920_v7, 0.0  ;;  %v925_v10 = vmax.f32 %v921_v8, 0.0 }
 0x687   : > { %v1016_v11 = vpack.c.bf16 %v925_v10, %v924_v9 }
 0x689   : > { %939 = vst [vmem:[%s1133_s22 + $0x8] sm:$0xff] %v1016_v11 }
 0x68a PF: > { %s13_s12 = sadd.s32 1, %s1080_s12  }
 0x68b   : > { %p10_p5 = scmp.ge.s32.totalorder %s13_s12, 4  }
 0x68d   :  { %12 = sbr.rel (!%p10_p5) target bundleno = 1 (0x1), region = 66 }

// kernel: unet_forward.15
= control target key start
LH: loop header
LB: loop body
LE: loop exit
PB: predicated region body
PF: predicated region fallthrough
CT: control target
= control target key end

     0   :  { %s1059_s12 = smov 0   ;;  %s1270_s0 = inlined_call_operand.vmem [shape: bf16[2,128,32], index: 0, kind: input, shape index: {}]   ;;  %s1271_s1 = inlined_call_operand.vmem [shape: bf16[16,16], index: 1, kind: input, shape index: {}]   ;;  %s1272_s2 = inlined_call_operand.vmem [shape: bf16[2,256,8], index: 2, kind: output, shape index: {0}]   ;;  %s1273_s3 = inlined_call_operand.vmem [shape: bf16[2,256,8], index: 3, kind: output, shape index: {1}]  }
   0x1 LB: > { %s852_s13 = sadd.s32 4294967295, %s1035_s12   ;;  %p856_p0 = scmp.ge.s32.totalorder %s1035_s12, 1  ;;  %s1035_s12 = sphi %s1059_s12, %s14_s12  }
   0x2   : > { %p140_p1 = scmp.lt.s32.totalorder %s1035_s12, 3 }
   0x4   : > { %p141_p2 = pnand %p856_p0, %p140_p1 }
   0x5   : > { %p169_p3 = scmp.lt.s32.totalorder (!%p141_p2), %s852_s13, 1  ;;  %v1028_v0 = vld [vmem:[%s1271_s1] sm:$0xff] (!%p141_p2)   ;;  %vm265_vm0 = vcmask (!%p141_p2), 130048   ;;  %s1037_s20 = smov (!%p141_p2), 112   ;;  %vm603_vm1 = vcmask (!%p141_p2), 60416  }
   0x6   : > { %144 = sbr.rel (%p141_p2) target bundleno = 497 (0x1f1), region = 28  ;;  %974 = vmatprep.subr.bf16.mxu0 (!%p141_p2), %v1028_v0  ;;  %1008 = vmatprep.subr.bf16.mxu1 (!%p141_p2), %v1028_v0  ;;  %s1038_s25 = smov (!%p141_p2), 120  }
   0x7   : > { %975 = vmatpush3.bf16.msra.mxu0 (!%p141_p2), %v1028_v0  ;;  %1009 = vmatpush3.bf16.msra.mxu1 (!%p141_p2), %v1028_v0 }
   0xd   : > { %s1275_s13 = smov (!%p169_p3, %s852_s13), 1 }
   0xe   : > { %s922_s16 = sshll.u32 %s1275_s13, 6  ;;  %s923_s21 = sshll.u32 %s1275_s13, 7 }
   0xf   : > { %s173_s19 = scalar_lea.vmem %s1270_s0, %s922_s16  ;;  %s1098_s24 = scalar_lea.vmem %s1272_s2, %s923_s21 }
  0x10   : > { %v1020_v1 = vld [vmem:[%s173_s19] sm:$0xff]   ;;  %v1021_v2 = vld [vmem:[%s173_s19 + $0x8] sm:$0xff]   ;;  %v1022_v3 = vld [vmem:[%s173_s19 + $0x10] sm:$0xff]   ;;  %s1153_s28 = scalar_lea.vmem %s1273_s3, %s923_s21 }
  0x11   : > { %241 = vrot.lane.b32.xlu0 %v1020_v1, %s1037_s20  ;;  %976 = vmatprep.mubr.msk.bf16.mxu0 %vm265_vm0, %v1020_v1  ;;  %v1023_v4 = vld [vmem:[%s173_s19 + $0x18] sm:$0xff]   ;;  %v1024_v5 = vld [vmem:[%s173_s19 + $0x20] sm:$0xff]   ;;  %v1025_v6 = vld [vmem:[%s173_s19 + $0x28] sm:$0xff]  }
  0x12   : > { %977 = vmatmul.mubr.msk.bf16.vlgmr.msra.gmra.mrb[0].mxu0 %vm265_vm0, %v1021_v2  ;;  %245 = vrot.lane.b32.xlu1 %v1022_v3, %s1037_s20  ;;  %v1026_v7 = vld [vmem:[%s173_s19 + $0x30] sm:$0xff]   ;;  %v1027_v8 = vld [vmem:[%s173_s19 + $0x38] sm:$0xff]  }
  0x13   : > { %980 = vmatprep.mubr.msk.bf16.mxu0 %vm265_vm0, %v1022_v3 }
  0x15   : > { %243 = vrot.lane.b32.xlu0 %v1021_v2, %s1037_s20 }
  0x16   : > { %247 = vrot.lane.b32.xlu1 %v1023_v4, %s1037_s20 }
  0x19   : > { %249 = vrot.lane.b32.xlu0 %v1024_v5, %s1037_s20 }
  0x1a   : > { %981 = vmatmul.mubr.msk.bf16.gmra.mrb[4].mxu0 %vm265_vm0, %v1023_v4  ;;  %251 = vrot.lane.b32.xlu1 %v1025_v6, %s1037_s20 }
  0x1b   : > { %984 = vmatprep.mubr.msk.bf16.mxu0 %vm265_vm0, %v1024_v5 }
  0x1d   : > { %253 = vrot.lane.b32.xlu0 %v1026_v7, %s1037_s20 }
  0x1e   : > { %255 = vrot.lane.b32.xlu1 %v1027_v8, %s1037_s20 }
  0x22   : > { %985 = vmatmul.mubr.msk.bf16.gmra.mrb[8].mxu0 %vm265_vm0, %v1025_v6 }
  0x23   : > { %988 = vmatprep.mubr.msk.bf16.mxu0 %vm265_vm0, %v1026_v7 }
  0x2a   : > { %989 = vmatmul.mubr.msk.bf16.gmra.mrb[12].mxu0 %vm265_vm0, %v1027_v8 }
  0x83   : > { %v242_v9 = vpop.permute.xlu0 %241 }
  0x84   : > { %992 = vmatprep.mubr.msk.bf16.mxu1 %vm265_vm0, %v242_v9  ;;  %v246_v10 = vpop.permute.xlu1 %245 }
  0x87   : > { %v244_v11 = vpop.permute.xlu0 %243 }
  0x88   : > { %993 = vmatmul.mubr.msk.bf16.vlgmr.msra.gmra.mrb[0].mxu1 %vm265_vm0, %v244_v11  ;;  %v248_v12 = vpop.permute.xlu1 %247 }
  0x89   : > { %996 = vmatprep.mubr.msk.bf16.mxu1 %vm265_vm0, %v246_v10 }
  0x8b   : > { %v250_v13 = vpop.permute.xlu0 %249 }
  0x8c   : > { %v252_v14 = vpop.permute.xlu1 %251 }
  0x8f   : > { %v254_v15 = vpop.permute.xlu0 %253 }
  0x90   : > { %997 = vmatmul.mubr.msk.bf16.gmra.mrb[4].mxu1 %vm265_vm0, %v248_v12  ;;  %v256_v16 = vpop.permute.xlu1 %255 }
  0x91   : > { %1000 = vmatprep.mubr.msk.bf16.mxu1 %vm265_vm0, %v250_v13 }
  0x98   : > { %1001 = vmatmul.mubr.msk.bf16.gmra.mrb[8].mxu1 %vm265_vm0, %v252_v14 }
  0x99   : > { %1004 = vmatprep.mubr.msk.bf16.mxu1 %vm265_vm0, %v254_v15 }
  0xa0   : > { %1005 = vmatmul.mubr.msk.bf16.gmra.mrb[12].mxu1 %vm265_vm0, %v256_v16 }
  0xe5   : > { %v978_v17 = vpop.f32.mrb[0].mxu0 }
  0xe6   : > { %v927_v18 = vpack.c.bf16 %v978_v17, %v978_v17  ;;  %v348_v19 = vpop.f32.mrb[1].mxu0 }
  0xe7   : > { %v925_v20 = vpack.c.bf16 %v348_v19, %v348_v19  ;;  %v979_v21 = vpop.f32.mrb[2].mxu0 }
  0xe8   : > { %606 = vst.msk [vmem:[%s1098_s24 + $0x8] sm:$0xf] %vm603_vm1, %v927_v18  ;;  %v928_v22 = vpack.c.bf16 %v979_v21, %v979_v21  ;;  %640 = vrot.lane.b32.xlu0 %v927_v18, %s1038_s25  ;;  %v351_v23 = vpop.f32.mrb[3].mxu0 }
  0xe9   : > { %604 = vst.msk [vmem:[%s1098_s24] sm:$0xf] %vm603_vm1, %v925_v20  ;;  %v926_v24 = vpack.c.bf16 %v351_v23, %v351_v23 }
  0xea   : > { %607 = vst.msk [vmem:[%s1098_s24 + $0xc] sm:$0xf] %vm603_vm1, %v928_v22  ;;  %642 = vrot.lane.b32.xlu1 %v928_v22, %s1038_s25 }
  0xeb   : > { %605 = vst.msk [vmem:[%s1098_s24 + $0x4] sm:$0xf] %vm603_vm1, %v926_v24 }
  0xec   : > { %636 = vrot.lane.b32.xlu0 %v925_v20, %s1038_s25 }
  0xed   : > { %v982_v25 = vpop.f32.mrb[4].mxu0 }
  0xee   : > { %v931_v26 = vpack.c.bf16 %v982_v25, %v982_v25  ;;  %638 = vrot.lane.b32.xlu1 %v926_v24, %s1038_s25  ;;  %v364_v27 = vpop.f32.mrb[5].mxu0 }
  0xef   : > { %v929_v28 = vpack.c.bf16 %v364_v27, %v364_v27  ;;  %v983_v29 = vpop.f32.mrb[6].mxu0 }
  0xf0   : > { %610 = vst.msk [vmem:[%s1098_s24 + $0x18] sm:$0xf] %vm603_vm1, %v931_v26  ;;  %v932_v30 = vpack.c.bf16 %v983_v29, %v983_v29  ;;  %648 = vrot.lane.b32.xlu0 %v931_v26, %s1038_s25  ;;  %v367_v31 = vpop.f32.mrb[7].mxu0 }
  0xf1   : > { %608 = vst.msk [vmem:[%s1098_s24 + $0x10] sm:$0xf] %vm603_vm1, %v929_v28  ;;  %v930_v32 = vpack.c.bf16 %v367_v31, %v367_v31 }
  0xf2   : > { %611 = vst.msk [vmem:[%s1098_s24 + $0x1c] sm:$0xf] %vm603_vm1, %v932_v30  ;;  %650 = vrot.lane.b32.xlu1 %v932_v30, %s1038_s25 }
  0xf3   : > { %609 = vst.msk [vmem:[%s1098_s24 + $0x14] sm:$0xf] %vm603_vm1, %v930_v32 }
  0xf4   : > { %644 = vrot.lane.b32.xlu0 %v929_v28, %s1038_s25 }
  0xf5   : > { %v986_v33 = vpop.f32.mrb[8].mxu0 }
  0xf6   : > { %v935_v34 = vpack.c.bf16 %v986_v33, %v986_v33  ;;  %646 = vrot.lane.b32.xlu1 %v930_v32, %s1038_s25  ;;  %v380_v35 = vpop.f32.mrb[9].mxu0 }
  0xf7   : > { %v933_v36 = vpack.c.bf16 %v380_v35, %v380_v35  ;;  %v987_v37 = vpop.f32.mrb[10].mxu0 }
  0xf8   : > { %614 = vst.msk [vmem:[%s1098_s24 + $0x28] sm:$0xf] %vm603_vm1, %v935_v34  ;;  %v936_v38 = vpack.c.bf16 %v987_v37, %v987_v37  ;;  %656 = vrot.lane.b32.xlu0 %v935_v34, %s1038_s25  ;;  %v383_v39 = vpop.f32.mrb[11].mxu0 }
  0xf9   : > { %612 = vst.msk [vmem:[%s1098_s24 + $0x20] sm:$0xf] %vm603_vm1, %v933_v36  ;;  %v934_v40 = vpack.c.bf16 %v383_v39, %v383_v39 }
  0xfa   : > { %615 = vst.msk [vmem:[%s1098_s24 + $0x2c] sm:$0xf] %vm603_vm1, %v936_v38  ;;  %658 = vrot.lane.b32.xlu1 %v936_v38, %s1038_s25 }
  0xfb   : > { %613 = vst.msk [vmem:[%s1098_s24 + $0x24] sm:$0xf] %vm603_vm1, %v934_v40 }
  0xfc   : > { %652 = vrot.lane.b32.xlu0 %v933_v36, %s1038_s25 }
  0xfd   : > { %v990_v41 = vpop.f32.mrb[12].mxu0 }
  0xfe   : > { %v939_v42 = vpack.c.bf16 %v990_v41, %v990_v41  ;;  %654 = vrot.lane.b32.xlu1 %v934_v40, %s1038_s25  ;;  %v396_v43 = vpop.f32.mrb[13].mxu0 }
  0xff   : > { %v937_v44 = vpack.c.bf16 %v396_v43, %v396_v43  ;;  %v991_v45 = vpop.f32.mrb[14].mxu0 }
 0x100   : > { %618 = vst.msk [vmem:[%s1098_s24 + $0x38] sm:$0xf] %vm603_vm1, %v939_v42  ;;  %v940_v46 = vpack.c.bf16 %v991_v45, %v991_v45  ;;  %664 = vrot.lane.b32.xlu0 %v939_v42, %s1038_s25  ;;  %v399_v47 = vpop.f32.mrb[15].mxu0 }
 0x101   : > { %616 = vst.msk [vmem:[%s1098_s24 + $0x30] sm:$0xf] %vm603_vm1, %v937_v44  ;;  %v938_v48 = vpack.c.bf16 %v399_v47, %v399_v47 }
 0x102   : > { %619 = vst.msk [vmem:[%s1098_s24 + $0x3c] sm:$0xf] %vm603_vm1, %v940_v46  ;;  %666 = vrot.lane.b32.xlu1 %v940_v46, %s1038_s25 }
 0x103   : > { %617 = vst.msk [vmem:[%s1098_s24 + $0x34] sm:$0xf] %vm603_vm1, %v938_v48 }
 0x104   : > { %660 = vrot.lane.b32.xlu0 %v937_v44, %s1038_s25 }
 0x106   : > { %662 = vrot.lane.b32.xlu1 %v938_v48, %s1038_s25 }
 0x15a   : > { %v641_v49 = vpop.permute.xlu0 %640 }
 0x15b   : > { %v994_v50 = vpop.f32.mrb[0].mxu1  ;;  %734 = vst.msk [vmem:[%s1153_s28 + $0x8] sm:$0xf] %vm603_vm1, %v641_v49 }
 0x15c   : > { %v943_v51 = vpack.c.bf16 %v994_v50, %v994_v50  ;;  %v412_v52 = vpop.f32.mrb[1].mxu1  ;;  %v643_v53 = vpop.permute.xlu1 %642 }
 0x15d   : > { %v941_v54 = vpack.c.bf16 %v412_v52, %v412_v52  ;;  %v995_v55 = vpop.f32.mrb[2].mxu1  ;;  %735 = vst.msk [vmem:[%s1153_s28 + $0xc] sm:$0xf] %vm603_vm1, %v643_v53 }
 0x15e   : > { %622 = vst.msk [vmem:[%s1098_s24 + $0x48] sm:$0xf] %vm603_vm1, %v943_v51  ;;  %v944_v56 = vpack.c.bf16 %v995_v55, %v995_v55  ;;  %v415_v57 = vpop.f32.mrb[3].mxu1  ;;  %672 = vrot.lane.b32.xlu0 %v943_v51, %s1038_s25  ;;  %v637_v58 = vpop.permute.xlu0 %636 }
 0x15f   : > { %620 = vst.msk [vmem:[%s1098_s24 + $0x40] sm:$0xf] %vm603_vm1, %v941_v54  ;;  %v942_v59 = vpack.c.bf16 %v415_v57, %v415_v57  ;;  %732 = vst.msk [vmem:[%s1153_s28] sm:$0xf] %vm603_vm1, %v637_v58 }
 0x160   : > { %623 = vst.msk [vmem:[%s1098_s24 + $0x4c] sm:$0xf] %vm603_vm1, %v944_v56  ;;  %674 = vrot.lane.b32.xlu1 %v944_v56, %s1038_s25  ;;  %v639_v60 = vpop.permute.xlu1 %638 }
 0x161   : > { %621 = vst.msk [vmem:[%s1098_s24 + $0x44] sm:$0xf] %vm603_vm1, %v942_v59  ;;  %733 = vst.msk [vmem:[%s1153_s28 + $0x4] sm:$0xf] %vm603_vm1, %v639_v60 }
 0x162   : > { %668 = vrot.lane.b32.xlu0 %v941_v54, %s1038_s25  ;;  %v649_v61 = vpop.permute.xlu0 %648 }
 0x163   : > { %v998_v62 = vpop.f32.mrb[4].mxu1  ;;  %738 = vst.msk [vmem:[%s1153_s28 + $0x18] sm:$0xf] %vm603_vm1, %v649_v61 }
 0x164   : > { %v947_v63 = vpack.c.bf16 %v998_v62, %v998_v62  ;;  %v428_v0 = vpop.f32.mrb[5].mxu1  ;;  %670 = vrot.lane.b32.xlu1 %v942_v59, %s1038_s25  ;;  %v651_v1 = vpop.permute.xlu1 %650 }
 0x165   : > { %v945_v2 = vpack.c.bf16 %v428_v0, %v428_v0  ;;  %v999_v3 = vpop.f32.mrb[6].mxu1  ;;  %739 = vst.msk [vmem:[%s1153_s28 + $0x1c] sm:$0xf] %vm603_vm1, %v651_v1 }
 0x166   : > { %626 = vst.msk [vmem:[%s1098_s24 + $0x58] sm:$0xf] %vm603_vm1, %v947_v63  ;;  %v948_v4 = vpack.c.bf16 %v999_v3, %v999_v3  ;;  %v431_v5 = vpop.f32.mrb[7].mxu1  ;;  %680 = vrot.lane.b32.xlu0 %v947_v63, %s1038_s25  ;;  %v645_v6 = vpop.permute.xlu0 %644 }
 0x167   : > { %624 = vst.msk [vmem:[%s1098_s24 + $0x50] sm:$0xf] %vm603_vm1, %v945_v2  ;;  %v946_v7 = vpack.c.bf16 %v431_v5, %v431_v5  ;;  %736 = vst.msk [vmem:[%s1153_s28 + $0x10] sm:$0xf] %vm603_vm1, %v645_v6 }
 0x168   : > { %627 = vst.msk [vmem:[%s1098_s24 + $0x5c] sm:$0xf] %vm603_vm1, %v948_v4  ;;  %682 = vrot.lane.b32.xlu1 %v948_v4, %s1038_s25  ;;  %v647_v8 = vpop.permute.xlu1 %646 }
 0x169   : > { %625 = vst.msk [vmem:[%s1098_s24 + $0x54] sm:$0xf] %vm603_vm1, %v946_v7  ;;  %737 = vst.msk [vmem:[%s1153_s28 + $0x14] sm:$0xf] %vm603_vm1, %v647_v8 }
 0x16a   : > { %676 = vrot.lane.b32.xlu0 %v945_v2, %s1038_s25  ;;  %v657_v9 = vpop.permute.xlu0 %656 }
 0x16b   : > { %v1002_v10 = vpop.f32.mrb[8].mxu1  ;;  %742 = vst.msk [vmem:[%s1153_s28 + $0x28] sm:$0xf] %vm603_vm1, %v657_v9 }
 0x16c   : > { %v951_v11 = vpack.c.bf16 %v1002_v10, %v1002_v10  ;;  %v444_v12 = vpop.f32.mrb[9].mxu1  ;;  %678 = vrot.lane.b32.xlu1 %v946_v7, %s1038_s25  ;;  %v659_v13 = vpop.permute.xlu1 %658 }
 0x16d   : > { %v949_v14 = vpack.c.bf16 %v444_v12, %v444_v12  ;;  %v1003_v15 = vpop.f32.mrb[10].mxu1  ;;  %743 = vst.msk [vmem:[%s1153_s28 + $0x2c] sm:$0xf] %vm603_vm1, %v659_v13 }
 0x16e   : > { %630 = vst.msk [vmem:[%s1098_s24 + $0x68] sm:$0xf] %vm603_vm1, %v951_v11  ;;  %v952_v16 = vpack.c.bf16 %v1003_v15, %v1003_v15  ;;  %v447_v17 = vpop.f32.mrb[11].mxu1  ;;  %688 = vrot.lane.b32.xlu0 %v951_v11, %s1038_s25  ;;  %v653_v18 = vpop.permute.xlu0 %652 }
 0x16f   : > { %628 = vst.msk [vmem:[%s1098_s24 + $0x60] sm:$0xf] %vm603_vm1, %v949_v14  ;;  %v950_v19 = vpack.c.bf16 %v447_v17, %v447_v17  ;;  %740 = vst.msk [vmem:[%s1153_s28 + $0x20] sm:$0xf] %vm603_vm1, %v653_v18 }
 0x170   : > { %631 = vst.msk [vmem:[%s1098_s24 + $0x6c] sm:$0xf] %vm603_vm1, %v952_v16  ;;  %690 = vrot.lane.b32.xlu1 %v952_v16, %s1038_s25  ;;  %v655_v20 = vpop.permute.xlu1 %654 }
 0x171   : > { %629 = vst.msk [vmem:[%s1098_s24 + $0x64] sm:$0xf] %vm603_vm1, %v950_v19  ;;  %741 = vst.msk [vmem:[%s1153_s28 + $0x24] sm:$0xf] %vm603_vm1, %v655_v20 }
 0x172   : > { %684 = vrot.lane.b32.xlu0 %v949_v14, %s1038_s25  ;;  %v665_v21 = vpop.permute.xlu0 %664 }
 0x173   : > { %v1006_v22 = vpop.f32.mrb[12].mxu1  ;;  %746 = vst.msk [vmem:[%s1153_s28 + $0x38] sm:$0xf] %vm603_vm1, %v665_v21 }
 0x174   : > { %v955_v23 = vpack.c.bf16 %v1006_v22, %v1006_v22  ;;  %v460_v24 = vpop.f32.mrb[13].mxu1  ;;  %686 = vrot.lane.b32.xlu1 %v950_v19, %s1038_s25  ;;  %v667_v25 = vpop.permute.xlu1 %666 }
 0x175   : > { %v953_v26 = vpack.c.bf16 %v460_v24, %v460_v24  ;;  %v1007_v27 = vpop.f32.mrb[14].mxu1  ;;  %747 = vst.msk [vmem:[%s1153_s28 + $0x3c] sm:$0xf] %vm603_vm1, %v667_v25 }
 0x176   : > { %634 = vst.msk [vmem:[%s1098_s24 + $0x78] sm:$0xf] %vm603_vm1, %v955_v23  ;;  %v956_v28 = vpack.c.bf16 %v1007_v27, %v1007_v27  ;;  %v463_v29 = vpop.f32.mrb[15].mxu1  ;;  %v661_v30 = vpop.permute.xlu0 %660 }
 0x177   : > { %632 = vst.msk [vmem:[%s1098_s24 + $0x70] sm:$0xf] %vm603_vm1, %v953_v26  ;;  %v954_v31 = vpack.c.bf16 %v463_v29, %v463_v29  ;;  %692 = vrot.lane.b32.xlu0 %v953_v26, %s1038_s25  ;;  %744 = vst.msk [vmem:[%s1153_s28 + $0x30] sm:$0xf] %vm603_vm1, %v661_v30 }
 0x178   : > { %635 = vst.msk [vmem:[%s1098_s24 + $0x7c] sm:$0xf] %vm603_vm1, %v956_v28  ;;  %v663_v32 = vpop.permute.xlu1 %662 }
 0x179   : > { %633 = vst.msk [vmem:[%s1098_s24 + $0x74] sm:$0xf] %vm603_vm1, %v954_v31  ;;  %694 = vrot.lane.b32.xlu1 %v954_v31, %s1038_s25  ;;  %745 = vst.msk [vmem:[%s1153_s28 + $0x34] sm:$0xf] %vm603_vm1, %v663_v32 }
 0x17b   : > { %696 = vrot.lane.b32.xlu0 %v955_v23, %s1038_s25 }
 0x17d   : > { %698 = vrot.lane.b32.xlu1 %v956_v28, %s1038_s25 }
 0x1d0   : > { %v673_v33 = vpop.permute.xlu0 %672 }
 0x1d1   : > { %750 = vst.msk [vmem:[%s1153_s28 + $0x48] sm:$0xf] %vm603_vm1, %v673_v33 }
 0x1d2   : > { %v675_v34 = vpop.permute.xlu1 %674 }
 0x1d3   : > { %751 = vst.msk [vmem:[%s1153_s28 + $0x4c] sm:$0xf] %vm603_vm1, %v675_v34 }
 0x1d4   : > { %v669_v35 = vpop.permute.xlu0 %668 }
 0x1d5   : > { %748 = vst.msk [vmem:[%s1153_s28 + $0x40] sm:$0xf] %vm603_vm1, %v669_v35 }
 0x1d6   : > { %v671_v36 = vpop.permute.xlu1 %670 }
 0x1d7   : > { %749 = vst.msk [vmem:[%s1153_s28 + $0x44] sm:$0xf] %vm603_vm1, %v671_v36 }
 0x1d8   : > { %v681_v37 = vpop.permute.xlu0 %680 }
 0x1d9   : > { %754 = vst.msk [vmem:[%s1153_s28 + $0x58] sm:$0xf] %vm603_vm1, %v681_v37 }
 0x1da   : > { %v683_v38 = vpop.permute.xlu1 %682 }
 0x1db   : > { %755 = vst.msk [vmem:[%s1153_s28 + $0x5c] sm:$0xf] %vm603_vm1, %v683_v38 }
 0x1dc   : > { %v677_v39 = vpop.permute.xlu0 %676 }
 0x1dd   : > { %752 = vst.msk [vmem:[%s1153_s28 + $0x50] sm:$0xf] %vm603_vm1, %v677_v39 }
 0x1de   : > { %v679_v40 = vpop.permute.xlu1 %678 }
 0x1df   : > { %753 = vst.msk [vmem:[%s1153_s28 + $0x54] sm:$0xf] %vm603_vm1, %v679_v40 }
 0x1e0   : > { %v689_v41 = vpop.permute.xlu0 %688 }
 0x1e1   : > { %758 = vst.msk [vmem:[%s1153_s28 + $0x68] sm:$0xf] %vm603_vm1, %v689_v41 }
 0x1e2   : > { %v691_v42 = vpop.permute.xlu1 %690 }
 0x1e3   : > { %759 = vst.msk [vmem:[%s1153_s28 + $0x6c] sm:$0xf] %vm603_vm1, %v691_v42 }
 0x1e4   : > { %v685_v43 = vpop.permute.xlu0 %684 }
 0x1e5   : > { %756 = vst.msk [vmem:[%s1153_s28 + $0x60] sm:$0xf] %vm603_vm1, %v685_v43 }
 0x1e6   : > { %v687_v44 = vpop.permute.xlu1 %686 }
 0x1e7   : > { %757 = vst.msk [vmem:[%s1153_s28 + $0x64] sm:$0xf] %vm603_vm1, %v687_v44 }
 0x1e9   : > { %v693_v45 = vpop.permute.xlu0 %692 }
 0x1ea   : > { %760 = vst.msk [vmem:[%s1153_s28 + $0x70] sm:$0xf] %vm603_vm1, %v693_v45 }
 0x1eb   : > { %v695_v46 = vpop.permute.xlu1 %694 }
 0x1ec   : > { %761 = vst.msk [vmem:[%s1153_s28 + $0x74] sm:$0xf] %vm603_vm1, %v695_v46 }
 0x1ed   : > { %v697_v47 = vpop.permute.xlu0 %696 }
 0x1ee   : > { %762 = vst.msk [vmem:[%s1153_s28 + $0x78] sm:$0xf] %vm603_vm1, %v697_v47 }
 0x1ef   : > { %v699_v48 = vpop.permute.xlu1 %698 }
 0x1f0   : > { %763 = vst.msk [vmem:[%s1153_s28 + $0x7c] sm:$0xf] %vm603_vm1, %v699_v48 }
 0x1f1 PF: > { %s14_s12 = sadd.s32 1, %s1035_s12  }
 0x1f2   : > { %p11_p4 = scmp.ge.s32.totalorder %s14_s12, 4  }
 0x1f4   :  { %13 = sbr.rel (!%p11_p4) target bundleno = 1 (0x1), region = 70 }

// kernel: unet_forward.16
= control target key start
LH: loop header
LB: loop body
LE: loop exit
PB: predicated region body
PF: predicated region fallthrough
CT: control target
= control target key end

     0   :  { %s917_s21 = smov 0   ;;  %s1058_s0 = inlined_call_operand.vmem [shape: bf16[2,32,64], index: 0, kind: input, shape index: {}]   ;;  %s1059_s1 = inlined_call_operand.vmem [shape: bf16[2,32,64], index: 1, kind: input, shape index: {}]   ;;  %s1060_s2 = inlined_call_operand.vmem [shape: bf16[16,64], index: 2, kind: input, shape index: {}]   ;;  %s1061_s3 = inlined_call_operand.vmem [shape: f32[16,1], index: 3, kind: input, shape index: {}]   ;;  %s1062_s4 = inlined_call_operand.vmem [shape: bf16[16,144], index: 4, kind: input, shape index: {}]   ;;  %s1063_s5 = inlined_call_operand.vmem [shape: bf16[16,144], index: 5, kind: input, shape index: {}]   ;;  %s1064_s6 = inlined_call_operand.vmem [shape: bf16[2,16,64], index: 6, kind: output, shape index: {}]  }
   0x1 LB: > { %s760_s22 = sadd.s32 4294967295, %s862_s21   ;;  %p764_p0 = scmp.ge.s32.totalorder %s862_s21, 1  ;;  %s862_s21 = sphi %s917_s21, %s16_s21  }
   0x2   : > { %p222_p1 = scmp.lt.s32.totalorder %s862_s21, 3 }
   0x4   : > { %p223_p2 = pnand %p764_p0, %p222_p1 }
   0x5   : > { %p257_p3 = scmp.lt.s32.totalorder (!%p223_p2), %s760_s22, 1  ;;  %p771_p4 = scmp.ne.s32.totalorder (!%p223_p2), %s760_s22, 0 }
   0x6   : > { %226 = sbr.rel (%p223_p2) target bundleno = 1851 (0x73b), region = 44 }
   0xd   : > { %s258_s23 = scalar_select %p257_p3, %s760_s22, 1 }
   0xe   : > { %278 = sbr.rel (%p771_p4) target bundleno = 21 (0x15), region = 48  ;;  %vm279_vm0 = vcmask (!%p771_p4), 72704   ;;  %vm281_vm1 = vcmask (!%p771_p4), 671304   ;;  %v864_v0 = vmov (!%p771_p4), 0  }
   0xf   : > { %s788_s24 = sshll.u32 %s258_s23, 4  ;;  %s790_s25 = sshll.u32 %s258_s23, 3  ;;  %280 = vst.msk [vmem:[#allocation2] sm:$0xff] (!%p771_p4), %vm279_vm0, %v864_v0 }
  0x10   : > { %s261_s28 = scalar_lea.vmem %s1058_s0, %s788_s24  ;;  %s266_s7 = scalar_lea.vmem %s1059_s1, %s788_s24  ;;  %282 = vst.msk [vmem:[#allocation2] sm:$0xff] (!%p771_p4), %vm281_vm1, %v864_v0 }
  0x11   : > { %s934_s10 = scalar_lea.vmem %s1064_s6, %s790_s25 }
  0x15 PF: > { %v837_v1 = vld [vmem:[%s261_s28] sm:$0xff]   ;;  %v865_v2 = vmov 0.0   ;;  %v838_v3 = vld [vmem:[%s261_s28 + $0x8] sm:$0xff]   ;;  %vm866_vm2 = vmmov 0   ;;  %v867_v4 = vmov 0   ;;  %vm350_vm3 = vcmask 523264  }
  0x16   : > { %798 = vmatprep.subr.bf16.mxu0 %v865_v2  ;;  %806 = vmatprep.mubr.msk.bf16.mxu0 %vm866_vm2, %v865_v2  ;;  %v839_v5 = vld [vmem:[%s266_s7] sm:$0xff]   ;;  %v334_v7 = vld [vmem:[%s1061_s3 + $0x8] sm:$0xff]  ;;  %v283_v10 = vlaneseq  ;;  %s868_s17 = smov 8   ;;  %s869_s18 = smov 16   ;;  %vm402_vm8 = vcmask 597064   ;;  %vm482_vm15 = vcmask 130048  }
  0x17   : > { %799 = vmatpush3.bf16.msra.mxu0 %v837_v1  ;;  %836 = vset.pattern.permute.xlu0 %v867_v4  ;;  %v333_v6 = vld [vmem:[%s1061_s3] sm:$0xff]  ;;  %v840_v8 = vld [vmem:[%s266_s7 + $0x8] sm:$0xff]   ;;  %s870_s19 = smov 9   ;;  %s871_s20 = smov 2   ;;  %vm690_vm0 = vcmask 519168  }
  0x18   : > { %800 = vmatprep.subr.bf16.mxu0 %v865_v2  ;;  %486 = vmatprep.subr.bf16.mxu1 %v867_v4  ;;  %v841_v9 = vld [vmem:[%s1060_s2] sm:$0xff]   ;;  %v284_v11 = vand.u32 127, %v283_v10  ;;  %v410_v13 = vshrl.u32 %v283_v10, 7  ;;  %s872_s22 = smov 10   ;;  %s873_s23 = smov 18  }
  0x19   : > { %337 = vperm.xlu0 %836, %v333_v6   ;;  %s874_s24 = smov 127   ;;  %s875_s25 = smov 126   ;;  %v844_v41 = vld [vmem:[%s1062_s4 + $0x4] ss:$8 sps:$4 sm:$0xff]   ;;  %v842_v50 = vld [vmem:[%s1062_s4] ss:$8 sps:$4 sm:$0xff]  }
  0x1a   : > { %v289_v12 = vand.u32 7, %v284_v11  ;;  %v411_v14 = vsub.s32 0, %v410_v13  ;;  %s876_s26 = smov 120   ;;  %s877_s27 = smov 119   ;;  %780 = vmatprep.mubr.msk.bf16.mxu1 %vm482_vm15, %v844_v41 }
  0x1b   : > { %801 = vmatpush3.bf16.msra.mxu0 %v838_v3  ;;  %s878_s28 = smov 118   ;;  %s879_s29 = smov 112  }
  0x1c   : > { %802 = vmatprep.subr.bf16.mxu0 %v865_v2  ;;  %vm297_vm4 = vcmp.gt.s32.totalorder %v289_v12, 0  ;;  %vm298_vm6 = vcmp.lt.s32.totalorder %v289_v12, 7  ;;  %s880_s30 = smov 111   ;;  %s881_s7 = smov 110  }
  0x1d   : > { %342 = vperm.xlu0 %836, %v334_v7   ;;  %vm407_vm5 = vmpackc.low %vm297_vm4, %vm297_vm4 }
  0x1e   : > { %v408_v15 = vsel %vm407_vm5, 65537, %v867_v4  ;;  %vm417_vm7 = vmpackc.low %vm298_vm6, %vm298_vm6 }
  0x1f   : > { %803 = vmatpush3.bf16.msra.mxu0 %v839_v5  ;;  %v950_v16 = vrot.slane %v408_v15, %v411_v14  ;;  %v418_v17 = vsel %vm417_vm7, 65537, %v867_v4 }
  0x20   : > { %804 = vmatprep.subr.bf16.mxu0 %v865_v2  ;;  %v422_v18 = vrot.slane %v418_v17, %v411_v14 }
  0x21   : > { %427 = vrot.lane.b32.xlu0 %v950_v16, %s868_s17  ;;  %vm413_vm10 = vcmp.ne.s16.totalorder %v950_v16, 0 }
  0x23   : > { %805 = vmatpush3.bf16.msra.mxu0 %v840_v8 }
  0x24   : > { %613 = vmatprep.subr.bf16.mxu0 %v867_v4 }
  0x25   : > { %435 = vrot.lane.b32.xlu0 %v950_v16, %s869_s18 }
  0x26   : > { %807 = vmatmul.mubr.msk.bf16.vlgmr.msra.gmra.mrb[0].mxu0 %vm350_vm3, %v841_v9 }
  0x98   : > { %v338_v19 = vpop.permute.xlu0 %337 }
  0x9c   : > { %v343_v22 = vpop.permute.xlu0 %342 }
  0xa0   : > { %v959_v30 = vpop.permute.xlu0 %427 }
  0xa1   : > { %vm429_vm11 = vcmp.ne.s16.totalorder %v959_v30, 0 }
  0xa4   : > { %v972_v35 = vpop.permute.xlu0 %435 }
  0xa5   : > { %vm437_vm13 = vcmp.ne.s16.totalorder %v972_v35, 0 }
  0xf9   : > { %v388_v20 = vpop.f32.mrb[0].mxu0 }
  0xfa   : > { %v808_v21 = vpop.f32.mrb[1].mxu0  ;;  %v389_v24 = vadd.f32 %v388_v20, %v338_v19 }
  0xfb   : > { %v391_v23 = vpop.f32.mrb[2].mxu0 }
  0xfc   : > { %v392_v25 = vadd.f32 %v391_v23, %v343_v22  ;;  %v809_v26 = vpop.f32.mrb[3].mxu0 }
  0xfe   : > { %v397_v27 = vpack.c.bf16 %v392_v25, %v389_v24  ;;  %v845_v25 = vld [vmem:[%s1063_s5 + $0x4] ss:$8 sps:$4 sm:$0xff]  }
  0xff   : > { %783 = vmatprep.mubr.msk.bf16.mxu0 %vm482_vm15, %v845_v25 }
 0x100   : > { %399 = vrot.lane.b32.xlu1 %v397_v27, %s870_s19 }
 0x104   : > { %423 = vrot.lane.b32.xlu1 %v422_v18, %s871_s20 }
 0x108   : > { %431 = vrot.lane.b32.xlu1 %v422_v18, %s872_s22 }
 0x10c   : > { %439 = vrot.lane.b32.xlu1 %v422_v18, %s873_s23 }
 0x172   : > { %v400_v28 = vpop.permute.xlu1 %399 }
 0x173   : > { %403 = vst.msk [vmem:[#allocation2] sm:$0xff] %vm402_vm8, %v400_v28 }
 0x176   : > { %v957_v29 = vpop.permute.xlu1 %423 }
 0x177   : > { %vm425_vm9 = vcmp.ne.s16.totalorder %v957_v29, 0 }
 0x17a   : > { %v404_v31 = vld [vmem:[#allocation2] sm:$0xff]  ;;  %v966_v33 = vpop.permute.xlu1 %431 }
 0x17b   : > { %v426_v32 = vsel %vm425_vm9, %v404_v31, 0  ;;  %444 = vrot.lane.b32.xlu0 %v404_v31, %s874_s24  ;;  %v414_v34 = vsel %vm413_vm10, %v404_v31, 0  ;;  %v430_v36 = vsel %vm429_vm11, %v404_v31, 0  ;;  %vm433_vm12 = vcmp.ne.s16.totalorder %v966_v33, 0 }
 0x17c   : > { %448 = vrot.lane.b32.xlu1 %v426_v32, %s875_s25  ;;  %487 = vmatpush1.bf16.msra.mxu1 %v414_v34  ;;  %v434_v38 = vsel %vm433_vm12, %v404_v31, 0  ;;  %v438_v39 = vsel %vm437_vm13, %v404_v31, 0  ;;  %v847_v34 = vld [vmem:[%s1063_s5] ss:$8 sps:$4 sm:$0xff]  }
 0x17d   : > { %488 = vmatprep.subr.bf16.mxu1 %v867_v4 }
 0x17e   : > { %v981_v37 = vpop.permute.xlu1 %439 }
 0x17f   : > { %452 = vrot.lane.b32.xlu0 %v430_v36, %s876_s26  ;;  %vm441_vm14 = vcmp.ne.s16.totalorder %v981_v37, 0 }
 0x180   : > { %455 = vrot.lane.b32.xlu1 %v404_v31, %s877_s27  ;;  %v442_v40 = vsel %vm441_vm14, %v404_v31, 0 }
 0x183   : > { %459 = vrot.lane.b32.xlu0 %v434_v38, %s878_s28 }
 0x184   : > { %463 = vrot.lane.b32.xlu1 %v438_v39, %s879_s29 }
 0x187   : > { %466 = vrot.lane.b32.xlu0 %v404_v31, %s880_s30 }
 0x188   : > { %470 = vrot.lane.b32.xlu1 %v442_v40, %s881_s7 }
 0x1ed   : > { %v445_v42 = vpop.permute.xlu0 %444 }
 0x1ee   : > { %489 = vmatpush1.bf16.msra.mxu1 %v445_v42  ;;  %v449_v43 = vpop.permute.xlu1 %448 }
 0x1ef   : > { %490 = vmatprep.subr.bf16.mxu1 %v867_v4 }
 0x1f1   : > { %v453_v44 = vpop.permute.xlu0 %452 }
 0x1f2   : > { %491 = vmatpush1.bf16.msra.mxu1 %v449_v43  ;;  %v456_v45 = vpop.permute.xlu1 %455 }
 0x1f3   : > { %492 = vmatprep.subr.bf16.mxu1 %v867_v4 }
 0x1f5   : > { %v460_v46 = vpop.permute.xlu0 %459 }
 0x1f6   : > { %493 = vmatpush1.bf16.msra.mxu1 %v453_v44  ;;  %v464_v47 = vpop.permute.xlu1 %463 }
 0x1f7   : > { %494 = vmatprep.subr.bf16.mxu1 %v867_v4 }
 0x1f9   : > { %v467_v48 = vpop.permute.xlu0 %466 }
 0x1fa   : > { %495 = vmatpush1.bf16.msra.mxu1 %v456_v45  ;;  %v471_v49 = vpop.permute.xlu1 %470 }
 0x1fb   : > { %496 = vmatprep.subr.bf16.mxu1 %v867_v4 }
 0x1fe   : > { %497 = vmatpush1.bf16.msra.mxu1 %v460_v46 }
 0x1ff   : > { %498 = vmatprep.subr.bf16.mxu1 %v867_v4 }
 0x202   : > { %499 = vmatpush1.bf16.msra.mxu1 %v464_v47 }
 0x203   : > { %500 = vmatprep.subr.bf16.mxu1 %v867_v4 }
 0x206   : > { %501 = vmatpush1.bf16.msra.mxu1 %v467_v48 }
 0x207   : > { %502 = vmatprep.subr.bf16.mxu1 %v867_v4 }
 0x20a   : > { %503 = vmatpush1.bf16.msra.mxu1 %v471_v49 }
 0x20d   : > { %519 = vmatmul.mubr.bf16.vlgmr.msra.gmra.mrb[0].mxu1 %v842_v50 }
 0x2e0   : > { %v520_v51 = vpop.f32.mrb[0].mxu1 }
 0x2e1   : > { %v522_v52 = vpop.f32.mrb[1].mxu1  ;;  %v527_v53 = vsel %vm350_vm3, %v520_v51, 0.0 }
 0x2e2   : > { %528 = vadd.xlane.f32.xlu0 %v527_v53  ;;  %v523_v54 = vpop.f32.mrb[2].mxu1 }
 0x2e3   : > { %v525_v55 = vpop.f32.mrb[3].mxu1  ;;  %v530_v56 = vsel %vm350_vm3, %v523_v54, 0.0 }
 0x2e4   : > { %531 = vadd.xlane.f32.xlu1 %v530_v56 }
 0x36f   : > { %v529_v57 = vpop.xlane.xlu0 %528 }
 0x370   : > { %v534_v58 = vmul.f32 0.015625, %v529_v57 }
 0x371   : > { %v532_v59 = vpop.xlane.xlu1 %531 }
 0x372   : > { %v536_v60 = vsub.f32 %v520_v51, %v534_v58  ;;  %v535_v61 = vmul.f32 0.015625, %v532_v59 }
 0x374   : > { %v537_v62 = vsub.f32 %v523_v54, %v535_v61  ;;  %v538_v63 = vmul.f32 %v536_v60, %v536_v60 }
 0x376   : > { %v540_v0 = vsel %vm350_vm3, %v538_v63, 0.0  ;;  %v539_v1 = vmul.f32 %v537_v62, %v537_v62 }
 0x377   : > { %541 = vadd.xlane.f32.xlu0 %v540_v0 }
 0x378   : > { %v543_v2 = vsel %vm350_vm3, %v539_v1, 0.0 }
 0x37b   : > { %544 = vadd.xlane.f32.xlu0 %v543_v2 }
 0x404   : > { %v542_v3 = vpop.xlane.xlu0 %541 }
 0x405   : > { %v546_v5 = vmul.f32 0.015625, %v542_v3 }
 0x407   : > { %v548_v6 = vadd.f32 1e-05, %v546_v5 }
 0x408   : > { %v545_v7 = vpop.xlane.xlu0 %544 }
 0x409   : > { %848 = vrsqrt.f32 %v548_v6  ;;  %v547_v8 = vmul.f32 0.015625, %v545_v7 }
 0x40b   : > { %v549_v9 = vadd.f32 1e-05, %v547_v8 }
 0x40d   : > { %850 = vrsqrt.f32 %v549_v9 }
 0x413   : > { %v849_v10 = vpop.eup %848 }
 0x414   : > { %v552_v11 = vmul.f32 %v849_v10, %v536_v60 }
 0x416   : > { %v554_v14 = vmax.f32 %v552_v11, 0.0 }
 0x417   : > { %v851_v12 = vpop.eup %850 }
 0x418   : > { %v553_v13 = vmul.f32 %v851_v12, %v537_v62 }
 0x41a   : > { %v555_v15 = vmax.f32 %v553_v13, 0.0 }
 0x41c   : > { %v558_v17 = vpack.c.bf16 %v555_v15, %v554_v14 }
 0x41e   : > { %560 = vrot.lane.b32.xlu1 %v558_v17, %s870_s19 }
 0x490   : > { %v561_v18 = vpop.permute.xlu1 %560 }
 0x491   : > { %563 = vst.msk [vmem:[#allocation2] sm:$0xff] %vm402_vm8, %v561_v18 }
 0x498   : > { %v564_v19 = vld [vmem:[#allocation2] sm:$0xff] }
 0x499   : > { %572 = vrot.lane.b32.xlu0 %v564_v19, %s874_s24  ;;  %v566_v20 = vsel %vm425_vm9, %v564_v19, 0  ;;  %v565_v21 = vsel %vm413_vm10, %v564_v19, 0  ;;  %v567_v22 = vsel %vm429_vm11, %v564_v19, 0  ;;  %v569_v23 = vsel %vm437_vm13, %v564_v19, 0 }
 0x49a   : > { %576 = vrot.lane.b32.xlu1 %v566_v20, %s875_s25  ;;  %614 = vmatpush1.bf16.msra.mxu0 %v565_v21  ;;  %v568_v16 = vsel %vm433_vm12, %v564_v19, 0  ;;  %v570_v24 = vsel %vm441_vm14, %v564_v19, 0 }
 0x49b   : > { %615 = vmatprep.subr.bf16.mxu0 %v867_v4 }
 0x49d   : > { %583 = vrot.lane.b32.xlu0 %v564_v19, %s877_s27 }
 0x49e   : > { %580 = vrot.lane.b32.xlu1 %v567_v22, %s876_s26 }
 0x4a1   : > { %591 = vrot.lane.b32.xlu0 %v569_v23, %s879_s29 }
 0x4a2   : > { %587 = vrot.lane.b32.xlu1 %v568_v16, %s878_s28 }
 0x4a5   : > { %598 = vrot.lane.b32.xlu0 %v570_v24, %s881_s7 }
 0x4a6   : > { %594 = vrot.lane.b32.xlu1 %v564_v19, %s880_s30 }
 0x50b   : > { %v573_v26 = vpop.permute.xlu0 %572 }
 0x50c   : > { %616 = vmatpush1.bf16.msra.mxu0 %v573_v26  ;;  %v577_v27 = vpop.permute.xlu1 %576 }
 0x50d   : > { %617 = vmatprep.subr.bf16.mxu0 %v867_v4 }
 0x50f   : > { %v584_v29 = vpop.permute.xlu0 %583 }
 0x510   : > { %618 = vmatpush1.bf16.msra.mxu0 %v577_v27  ;;  %v581_v28 = vpop.permute.xlu1 %580 }
 0x511   : > { %619 = vmatprep.subr.bf16.mxu0 %v867_v4 }
 0x513   : > { %v592_v31 = vpop.permute.xlu0 %591 }
 0x514   : > { %620 = vmatpush1.bf16.msra.mxu0 %v581_v28  ;;  %v588_v30 = vpop.permute.xlu1 %587 }
 0x515   : > { %621 = vmatprep.subr.bf16.mxu0 %v867_v4 }
 0x517   : > { %v599_v33 = vpop.permute.xlu0 %598 }
 0x518   : > { %622 = vmatpush1.bf16.msra.mxu0 %v584_v29  ;;  %v595_v32 = vpop.permute.xlu1 %594 }
 0x519   : > { %623 = vmatprep.subr.bf16.mxu0 %v867_v4 }
 0x51c   : > { %624 = vmatpush1.bf16.msra.mxu0 %v588_v30 }
 0x51d   : > { %625 = vmatprep.subr.bf16.mxu0 %v867_v4 }
 0x520   : > { %626 = vmatpush1.bf16.msra.mxu0 %v592_v31 }
 0x521   : > { %627 = vmatprep.subr.bf16.mxu0 %v867_v4 }
 0x524   : > { %628 = vmatpush1.bf16.msra.mxu0 %v595_v32 }
 0x525   : > { %629 = vmatprep.subr.bf16.mxu0 %v867_v4 }
 0x528   : > { %630 = vmatpush1.bf16.msra.mxu0 %v599_v33 }
 0x52b   : > { %646 = vmatmul.mubr.bf16.vlgmr.msra.gmra.mrb[4].mxu0 %v847_v34 }
 0x5fe   : > { %v647_v35 = vpop.f32.mrb[4].mxu0 }
 0x5ff   : > { %v649_v36 = vpop.f32.mrb[5].mxu0  ;;  %v654_v37 = vsel %vm350_vm3, %v647_v35, 0.0 }
 0x600   : > { %655 = vadd.xlane.f32.xlu1 %v654_v37  ;;  %v650_v38 = vpop.f32.mrb[6].mxu0 }
 0x601   : > { %v652_v39 = vpop.f32.mrb[7].mxu0  ;;  %v657_v40 = vsel %vm350_vm3, %v650_v38, 0.0 }
 0x602   : > { %658 = vadd.xlane.f32.xlu0 %v657_v40 }
 0x68d   : > { %v656_v41 = vpop.xlane.xlu1 %655 }
 0x68e   : > { %v660_v42 = vmul.f32 0.015625, %v656_v41 }
 0x68f   : > { %v659_v4 = vpop.xlane.xlu0 %658 }
 0x690   : > { %v662_v43 = vsub.f32 %v647_v35, %v660_v42  ;;  %v661_v44 = vmul.f32 0.015625, %v659_v4 }
 0x692   : > { %v663_v45 = vsub.f32 %v650_v38, %v661_v44  ;;  %v664_v46 = vmul.f32 %v662_v43, %v662_v43 }
 0x694   : > { %v666_v47 = vsel %vm350_vm3, %v664_v46, 0.0  ;;  %v665_v48 = vmul.f32 %v663_v45, %v663_v45 }
 0x695   : > { %667 = vadd.xlane.f32.xlu0 %v666_v47 }
 0x696   : > { %v669_v49 = vsel %vm350_vm3, %v665_v48, 0.0 }
 0x697   : > { %670 = vadd.xlane.f32.xlu1 %v669_v49 }
 0x722   : > { %v668_v50 = vpop.xlane.xlu0 %667 }
 0x723   : > { %v672_v51 = vmul.f32 0.015625, %v668_v50 }
 0x724   : > { %v671_v52 = vpop.xlane.xlu1 %670 }
 0x725   : > { %v674_v53 = vadd.f32 1e-05, %v672_v51  ;;  %v673_v54 = vmul.f32 0.015625, %v671_v52 }
 0x727   : > { %852 = vrsqrt.f32 %v674_v53  ;;  %v675_v55 = vadd.f32 1e-05, %v673_v54 }
 0x729   : > { %854 = vrsqrt.f32 %v675_v55 }
 0x731   : > { %v853_v56 = vpop.eup %852 }
 0x732   : > { %v678_v57 = vmul.f32 %v853_v56, %v662_v43 }
 0x733   : > { %v855_v58 = vpop.eup %854 }
 0x734   : > { %v680_v59 = vmax.f32 %v678_v57, 0.0  ;;  %v679_v60 = vmul.f32 %v855_v58, %v663_v45 }
 0x736   : > { %v791_v61 = vpack.c.bf16 %v680_v59, %v680_v59  ;;  %v681_v62 = vmax.f32 %v679_v60, 0.0 }
 0x738   : > { %691 = vst.msk [vmem:[%s934_s10] sm:$0xf] %vm690_vm0, %v791_v61  ;;  %v792_v63 = vpack.c.bf16 %v681_v62, %v681_v62 }
 0x73a   : > { %692 = vst.msk [vmem:[%s934_s10 + $0x4] sm:$0xf] %vm690_vm0, %v792_v63 }
 0x73b PF: > { %s16_s21 = sadd.s32 1, %s862_s21  }
 0x73c   : > { %p13_p5 = scmp.ge.s32.totalorder %s16_s21, 4  }
 0x73e   :  { %15 = sbr.rel (!%p13_p5) target bundleno = 1 (0x1), region = 81 }

// kernel: unet_forward.17
= control target key start
LH: loop header
LB: loop body
LE: loop exit
PB: predicated region body
PF: predicated region fallthrough
CT: control target
= control target key end

     0   :  { %s716_s12 = smov 0   ;;  %s839_s0 = inlined_call_operand.vmem [shape: bf16[2,64,16], index: 0, kind: input, shape index: {}]   ;;  %s840_s1 = inlined_call_operand.vmem [shape: bf16[8,8], index: 1, kind: input, shape index: {}]   ;;  %s841_s2 = inlined_call_operand.vmem [shape: bf16[2,128,4], index: 2, kind: output, shape index: {0}]   ;;  %s842_s3 = inlined_call_operand.vmem [shape: bf16[2,128,4], index: 3, kind: output, shape index: {1}]  }
   0x1 LB: > { %s581_s13 = sadd.s32 4294967295, %s692_s12   ;;  %p585_p0 = scmp.ge.s32.totalorder %s692_s12, 1  ;;  %s692_s12 = sphi %s716_s12, %s14_s12  }
   0x2   : > { %p140_p1 = scmp.lt.s32.totalorder %s692_s12, 3 }
   0x4   : > { %p141_p2 = pnand %p585_p0, %p140_p1 }
   0x5   : > { %p169_p3 = scmp.lt.s32.totalorder (!%p141_p2), %s581_s13, 1  ;;  %v221_v0 = vld [vmem:[%s840_s1] sm:$0xf] (!%p141_p2)  ;;  %vm247_vm0 = vcmask (!%p141_p2), 1043456   ;;  %vm222_vm1 = vcmask (!%p141_p2), 64512   ;;  %s694_s20 = smov (!%p141_p2), 120  }
   0x6   : > { %144 = sbr.rel (%p141_p2) target bundleno = 481 (0x1e1), region = 28  ;;  %670 = vmatprep.subr.msk.bf16.mxu0 (!%p141_p2), %vm247_vm0, %v221_v0  ;;  %v249_v1 = vsel (!%p141_p2), %vm247_vm0, %v221_v0, 0  ;;  %671 = vmatprep.subr.msk.bf16.mxu1 (!%p141_p2), %vm247_vm0, %v221_v0  ;;  %vm412_vm2 = vcmask (!%p141_p2), 27648   ;;  %s695_s25 = smov (!%p141_p2), 124  }
   0x7   : > { %651 = vmatpush3.bf16.msra.mxu0 (!%p141_p2), %v249_v1  ;;  %669 = vmatpush3.bf16.msra.mxu1 (!%p141_p2), %v249_v1 }
   0xd   : > { %s844_s13 = smov (!%p169_p3, %s581_s13), 1 }
   0xe   : > { %s622_s16 = sshll.u32 %s844_s13, 5  ;;  %s623_s21 = sshll.u32 %s844_s13, 6 }
   0xf   : > { %s173_s19 = scalar_lea.vmem %s839_s0, %s622_s16  ;;  %s747_s24 = scalar_lea.vmem %s841_s2, %s623_s21 }
  0x10   : > { %v682_v2 = vld [vmem:[%s173_s19] sm:$0xff]   ;;  %v683_v3 = vld [vmem:[%s173_s19 + $0x8] sm:$0xff]   ;;  %v684_v4 = vld [vmem:[%s173_s19 + $0x10] sm:$0xff]   ;;  %s778_s28 = scalar_lea.vmem %s842_s3, %s623_s21 }
  0x11   : > { %213 = vrot.lane.b32.xlu0 %v682_v2, %s694_s20  ;;  %652 = vmatprep.mubr.msk.bf16.mxu0 %vm222_vm1, %v682_v2  ;;  %v685_v5 = vld [vmem:[%s173_s19 + $0x18] sm:$0xff]  }
  0x12   : > { %653 = vmatmul.mubr.msk.bf16.vlgmr.msra.gmra.mrb[0].mxu0 %vm222_vm1, %v683_v3  ;;  %217 = vrot.lane.b32.xlu1 %v684_v4, %s694_s20 }
  0x13   : > { %656 = vmatprep.mubr.msk.bf16.mxu0 %vm222_vm1, %v684_v4 }
  0x15   : > { %215 = vrot.lane.b32.xlu0 %v683_v3, %s694_s20 }
  0x16   : > { %219 = vrot.lane.b32.xlu1 %v685_v5, %s694_s20 }
  0x1a   : > { %657 = vmatmul.mubr.msk.bf16.gmra.mrb[4].mxu0 %vm222_vm1, %v685_v5 }
  0x83   : > { %v214_v6 = vpop.permute.xlu0 %213 }
  0x84   : > { %660 = vmatprep.mubr.msk.bf16.mxu1 %vm222_vm1, %v214_v6  ;;  %v218_v7 = vpop.permute.xlu1 %217 }
  0x87   : > { %v216_v8 = vpop.permute.xlu0 %215 }
  0x88   : > { %661 = vmatmul.mubr.msk.bf16.vlgmr.msra.gmra.mrb[0].mxu1 %vm222_vm1, %v216_v8  ;;  %v220_v9 = vpop.permute.xlu1 %219 }
  0x89   : > { %664 = vmatprep.mubr.msk.bf16.mxu1 %vm222_vm1, %v218_v7 }
  0x90   : > { %665 = vmatmul.mubr.msk.bf16.gmra.mrb[4].mxu1 %vm222_vm1, %v220_v9 }
  0xe5   : > { %v654_v10 = vpop.f32.mrb[0].mxu0 }
  0xe6   : > { %v627_v11 = vpack.c.bf16 %v654_v10, %v654_v10  ;;  %v285_v12 = vpop.f32.mrb[1].mxu0 }
  0xe7   : > { %v625_v13 = vpack.c.bf16 %v285_v12, %v285_v12  ;;  %v655_v14 = vpop.f32.mrb[2].mxu0 }
  0xe8   : > { %415 = vst.msk [vmem:[%s747_s24 + $0x8] sm:$0xf] %vm412_vm2, %v627_v11  ;;  %v628_v15 = vpack.c.bf16 %v655_v14, %v655_v14  ;;  %433 = vrot.lane.b32.xlu0 %v627_v11, %s695_s25  ;;  %v288_v16 = vpop.f32.mrb[3].mxu0 }
  0xe9   : > { %413 = vst.msk [vmem:[%s747_s24] sm:$0xf] %vm412_vm2, %v625_v13  ;;  %v626_v17 = vpack.c.bf16 %v288_v16, %v288_v16 }
  0xea   : > { %416 = vst.msk [vmem:[%s747_s24 + $0xc] sm:$0xf] %vm412_vm2, %v628_v15  ;;  %435 = vrot.lane.b32.xlu1 %v628_v15, %s695_s25 }
  0xeb   : > { %414 = vst.msk [vmem:[%s747_s24 + $0x4] sm:$0xf] %vm412_vm2, %v626_v17 }
  0xec   : > { %429 = vrot.lane.b32.xlu0 %v625_v13, %s695_s25 }
  0xed   : > { %v658_v18 = vpop.f32.mrb[4].mxu0 }
  0xee   : > { %v631_v19 = vpack.c.bf16 %v658_v18, %v658_v18  ;;  %431 = vrot.lane.b32.xlu1 %v626_v17, %s695_s25  ;;  %v301_v20 = vpop.f32.mrb[5].mxu0 }
  0xef   : > { %v629_v21 = vpack.c.bf16 %v301_v20, %v301_v20  ;;  %v659_v22 = vpop.f32.mrb[6].mxu0 }
  0xf0   : > { %419 = vst.msk [vmem:[%s747_s24 + $0x18] sm:$0xf] %vm412_vm2, %v631_v19  ;;  %v632_v23 = vpack.c.bf16 %v659_v22, %v659_v22  ;;  %441 = vrot.lane.b32.xlu0 %v631_v19, %s695_s25  ;;  %v304_v24 = vpop.f32.mrb[7].mxu0 }
  0xf1   : > { %417 = vst.msk [vmem:[%s747_s24 + $0x10] sm:$0xf] %vm412_vm2, %v629_v21  ;;  %v630_v25 = vpack.c.bf16 %v304_v24, %v304_v24 }
  0xf2   : > { %420 = vst.msk [vmem:[%s747_s24 + $0x1c] sm:$0xf] %vm412_vm2, %v632_v23  ;;  %443 = vrot.lane.b32.xlu1 %v632_v23, %s695_s25 }
  0xf3   : > { %418 = vst.msk [vmem:[%s747_s24 + $0x14] sm:$0xf] %vm412_vm2, %v630_v25 }
  0xf4   : > { %437 = vrot.lane.b32.xlu0 %v629_v21, %s695_s25 }
  0xf6   : > { %439 = vrot.lane.b32.xlu1 %v630_v25, %s695_s25 }
 0x15a   : > { %v434_v26 = vpop.permute.xlu0 %433 }
 0x15b   : > { %v662_v27 = vpop.f32.mrb[0].mxu1  ;;  %479 = vst.msk [vmem:[%s778_s28 + $0x8] sm:$0xf] %vm412_vm2, %v434_v26 }
 0x15c   : > { %v635_v28 = vpack.c.bf16 %v662_v27, %v662_v27  ;;  %v317_v29 = vpop.f32.mrb[1].mxu1  ;;  %v436_v30 = vpop.permute.xlu1 %435 }
 0x15d   : > { %v633_v31 = vpack.c.bf16 %v317_v29, %v317_v29  ;;  %v663_v32 = vpop.f32.mrb[2].mxu1  ;;  %480 = vst.msk [vmem:[%s778_s28 + $0xc] sm:$0xf] %vm412_vm2, %v436_v30 }
 0x15e   : > { %423 = vst.msk [vmem:[%s747_s24 + $0x28] sm:$0xf] %vm412_vm2, %v635_v28  ;;  %v636_v33 = vpack.c.bf16 %v663_v32, %v663_v32  ;;  %v320_v34 = vpop.f32.mrb[3].mxu1  ;;  %449 = vrot.lane.b32.xlu0 %v635_v28, %s695_s25  ;;  %v430_v35 = vpop.permute.xlu0 %429 }
 0x15f   : > { %421 = vst.msk [vmem:[%s747_s24 + $0x20] sm:$0xf] %vm412_vm2, %v633_v31  ;;  %v634_v36 = vpack.c.bf16 %v320_v34, %v320_v34  ;;  %477 = vst.msk [vmem:[%s778_s28] sm:$0xf] %vm412_vm2, %v430_v35 }
 0x160   : > { %424 = vst.msk [vmem:[%s747_s24 + $0x2c] sm:$0xf] %vm412_vm2, %v636_v33  ;;  %451 = vrot.lane.b32.xlu1 %v636_v33, %s695_s25  ;;  %v432_v37 = vpop.permute.xlu1 %431 }
 0x161   : > { %422 = vst.msk [vmem:[%s747_s24 + $0x24] sm:$0xf] %vm412_vm2, %v634_v36  ;;  %478 = vst.msk [vmem:[%s778_s28 + $0x4] sm:$0xf] %vm412_vm2, %v432_v37 }
 0x162   : > { %445 = vrot.lane.b32.xlu0 %v633_v31, %s695_s25  ;;  %v442_v38 = vpop.permute.xlu0 %441 }
 0x163   : > { %v666_v39 = vpop.f32.mrb[4].mxu1  ;;  %483 = vst.msk [vmem:[%s778_s28 + $0x18] sm:$0xf] %vm412_vm2, %v442_v38 }
 0x164   : > { %v639_v40 = vpack.c.bf16 %v666_v39, %v666_v39  ;;  %v333_v41 = vpop.f32.mrb[5].mxu1  ;;  %447 = vrot.lane.b32.xlu1 %v634_v36, %s695_s25  ;;  %v444_v42 = vpop.permute.xlu1 %443 }
 0x165   : > { %v637_v43 = vpack.c.bf16 %v333_v41, %v333_v41  ;;  %v667_v44 = vpop.f32.mrb[6].mxu1  ;;  %484 = vst.msk [vmem:[%s778_s28 + $0x1c] sm:$0xf] %vm412_vm2, %v444_v42 }
 0x166   : > { %427 = vst.msk [vmem:[%s747_s24 + $0x38] sm:$0xf] %vm412_vm2, %v639_v40  ;;  %v640_v45 = vpack.c.bf16 %v667_v44, %v667_v44  ;;  %v336_v46 = vpop.f32.mrb[7].mxu1  ;;  %v438_v47 = vpop.permute.xlu0 %437 }
 0x167   : > { %425 = vst.msk [vmem:[%s747_s24 + $0x30] sm:$0xf] %vm412_vm2, %v637_v43  ;;  %v638_v48 = vpack.c.bf16 %v336_v46, %v336_v46  ;;  %453 = vrot.lane.b32.xlu0 %v637_v43, %s695_s25  ;;  %481 = vst.msk [vmem:[%s778_s28 + $0x10] sm:$0xf] %vm412_vm2, %v438_v47 }
 0x168   : > { %428 = vst.msk [vmem:[%s747_s24 + $0x3c] sm:$0xf] %vm412_vm2, %v640_v45  ;;  %v440_v49 = vpop.permute.xlu1 %439 }
 0x169   : > { %426 = vst.msk [vmem:[%s747_s24 + $0x34] sm:$0xf] %vm412_vm2, %v638_v48  ;;  %455 = vrot.lane.b32.xlu1 %v638_v48, %s695_s25  ;;  %482 = vst.msk [vmem:[%s778_s28 + $0x14] sm:$0xf] %vm412_vm2, %v440_v49 }
 0x16b   : > { %457 = vrot.lane.b32.xlu0 %v639_v40, %s695_s25 }
 0x16d   : > { %459 = vrot.lane.b32.xlu1 %v640_v45, %s695_s25 }
 0x1d0   : > { %v450_v50 = vpop.permute.xlu0 %449 }
 0x1d1   : > { %487 = vst.msk [vmem:[%s778_s28 + $0x28] sm:$0xf] %vm412_vm2, %v450_v50 }
 0x1d2   : > { %v452_v51 = vpop.permute.xlu1 %451 }
 0x1d3   : > { %488 = vst.msk [vmem:[%s778_s28 + $0x2c] sm:$0xf] %vm412_vm2, %v452_v51 }
 0x1d4   : > { %v446_v52 = vpop.permute.xlu0 %445 }
 0x1d5   : > { %485 = vst.msk [vmem:[%s778_s28 + $0x20] sm:$0xf] %vm412_vm2, %v446_v52 }
 0x1d6   : > { %v448_v53 = vpop.permute.xlu1 %447 }
 0x1d7   : > { %486 = vst.msk [vmem:[%s778_s28 + $0x24] sm:$0xf] %vm412_vm2, %v448_v53 }
 0x1d9   : > { %v454_v54 = vpop.permute.xlu0 %453 }
 0x1da   : > { %489 = vst.msk [vmem:[%s778_s28 + $0x30] sm:$0xf] %vm412_vm2, %v454_v54 }
 0x1db   : > { %v456_v55 = vpop.permute.xlu1 %455 }
 0x1dc   : > { %490 = vst.msk [vmem:[%s778_s28 + $0x34] sm:$0xf] %vm412_vm2, %v456_v55 }
 0x1dd   : > { %v458_v56 = vpop.permute.xlu0 %457 }
 0x1de   : > { %491 = vst.msk [vmem:[%s778_s28 + $0x38] sm:$0xf] %vm412_vm2, %v458_v56 }
 0x1df   : > { %v460_v57 = vpop.permute.xlu1 %459 }
 0x1e0   : > { %492 = vst.msk [vmem:[%s778_s28 + $0x3c] sm:$0xf] %vm412_vm2, %v460_v57 }
 0x1e1 PF: > { %s14_s12 = sadd.s32 1, %s692_s12  }
 0x1e2   : > { %p11_p4 = scmp.ge.s32.totalorder %s14_s12, 4  }
 0x1e4   :  { %13 = sbr.rel (!%p11_p4) target bundleno = 1 (0x1), region = 70 }

// kernel: unet_forward.19
= control target key start
LH: loop header
LB: loop body
LE: loop exit
PB: predicated region body
PF: predicated region fallthrough
CT: control target
= control target key end

     0   :  { %s546_s12 = smov 0   ;;  %s617_s0 = inlined_call_operand.vmem [shape: bf16[2,32,8], index: 0, kind: input, shape index: {}]   ;;  %s618_s1 = inlined_call_operand.vmem [shape: bf16[4,4], index: 1, kind: input, shape index: {}]   ;;  %s619_s2 = inlined_call_operand.vmem [shape: bf16[2,64,2], index: 2, kind: output, shape index: {0}]   ;;  %s620_s3 = inlined_call_operand.vmem [shape: bf16[2,64,2], index: 3, kind: output, shape index: {1}]  }
   0x1 LB: > { %s447_s13 = sadd.s32 4294967295, %s522_s12   ;;  %p451_p0 = scmp.ge.s32.totalorder %s522_s12, 1  ;;  %s522_s12 = sphi %s546_s12, %s14_s12  }
   0x2   : > { %p140_p1 = scmp.lt.s32.totalorder %s522_s12, 3 }
   0x4   : > { %p141_p2 = pnand %p451_p0, %p140_p1 }
   0x5   : > { %p169_p3 = scmp.lt.s32.totalorder (!%p141_p2), %s447_s13, 1  ;;  %v203_v0 = vld [vmem:[%s618_s1] sm:$0x3] (!%p141_p2)  ;;  %vm217_vm0 = vcmask (!%p141_p2), 1041408   ;;  %vm204_vm1 = vcmask (!%p141_p2), 31744   ;;  %s524_s20 = smov (!%p141_p2), 124  }
   0x6   : > { %144 = sbr.rel (%p141_p2) target bundleno = 473 (0x1d9), region = 28  ;;  %502 = vmatprep.subr.msk.bf16.mxu0 (!%p141_p2), %vm217_vm0, %v203_v0  ;;  %v219_v1 = vsel (!%p141_p2), %vm217_vm0, %v203_v0, 0  ;;  %503 = vmatprep.subr.msk.bf16.mxu1 (!%p141_p2), %vm217_vm0, %v203_v0  ;;  %vm318_vm2 = vcmask (!%p141_p2), 11264   ;;  %s525_s25 = smov (!%p141_p2), 126  }
   0x7   : > { %491 = vmatpush3.bf16.msra.mxu0 (!%p141_p2), %v219_v1  ;;  %501 = vmatpush3.bf16.msra.mxu1 (!%p141_p2), %v219_v1 }
   0xd   : > { %s622_s13 = smov (!%p169_p3, %s447_s13), 1 }
   0xe   : > { %s474_s16 = sshll.u32 %s622_s13, 4  ;;  %s475_s21 = sshll.u32 %s622_s13, 5 }
   0xf   : > { %s173_s19 = scalar_lea.vmem %s617_s0, %s474_s16  ;;  %s567_s24 = scalar_lea.vmem %s619_s2, %s475_s21 }
  0x10   : > { %v514_v2 = vld [vmem:[%s173_s19] sm:$0xff]   ;;  %v515_v3 = vld [vmem:[%s173_s19 + $0x8] sm:$0xff]   ;;  %s584_s28 = scalar_lea.vmem %s620_s3, %s475_s21 }
  0x11   : > { %199 = vrot.lane.b32.xlu0 %v514_v2, %s524_s20  ;;  %492 = vmatprep.mubr.msk.bf16.mxu0 %vm204_vm1, %v514_v2 }
  0x12   : > { %493 = vmatmul.mubr.msk.bf16.vlgmr.msra.gmra.mrb[0].mxu0 %vm204_vm1, %v515_v3 }
  0x15   : > { %201 = vrot.lane.b32.xlu0 %v515_v3, %s524_s20 }
  0x83   : > { %v200_v4 = vpop.permute.xlu0 %199 }
  0x84   : > { %496 = vmatprep.mubr.msk.bf16.mxu1 %vm204_vm1, %v200_v4 }
  0x87   : > { %v202_v5 = vpop.permute.xlu0 %201 }
  0x88   : > { %497 = vmatmul.mubr.msk.bf16.vlgmr.msra.gmra.mrb[0].mxu1 %vm204_vm1, %v202_v5 }
  0xe5   : > { %v494_v6 = vpop.f32.mrb[0].mxu0 }
  0xe6   : > { %v479_v7 = vpack.c.bf16 %v494_v6, %v494_v6  ;;  %v255_v8 = vpop.f32.mrb[1].mxu0 }
  0xe7   : > { %v477_v9 = vpack.c.bf16 %v255_v8, %v255_v8  ;;  %v495_v10 = vpop.f32.mrb[2].mxu0 }
  0xe8   : > { %321 = vst.msk [vmem:[%s567_s24 + $0x8] sm:$0xf] %vm318_vm2, %v479_v7  ;;  %v480_v11 = vpack.c.bf16 %v495_v10, %v495_v10  ;;  %v258_v12 = vpop.f32.mrb[3].mxu0  ;;  %331 = vrot.lane.b32.xlu0 %v479_v7, %s525_s25 }
  0xe9   : > { %319 = vst.msk [vmem:[%s567_s24] sm:$0xf] %vm318_vm2, %v477_v9  ;;  %327 = vrot.lane.b32.xlu1 %v477_v9, %s525_s25  ;;  %v478_v13 = vpack.c.bf16 %v258_v12, %v258_v12 }
  0xea   : > { %322 = vst.msk [vmem:[%s567_s24 + $0xc] sm:$0xf] %vm318_vm2, %v480_v11 }
  0xeb   : > { %320 = vst.msk [vmem:[%s567_s24 + $0x4] sm:$0xf] %vm318_vm2, %v478_v13 }
  0xed   : > { %333 = vrot.lane.b32.xlu1 %v480_v11, %s525_s25 }
  0xf1   : > { %329 = vrot.lane.b32.xlu1 %v478_v13, %s525_s25 }
 0x15a   : > { %v332_v14 = vpop.permute.xlu0 %331 }
 0x15b   : > { %v498_v15 = vpop.f32.mrb[0].mxu1  ;;  %v328_v16 = vpop.permute.xlu1 %327  ;;  %353 = vst.msk [vmem:[%s584_s28 + $0x8] sm:$0xf] %vm318_vm2, %v332_v14 }
 0x15c   : > { %v483_v17 = vpack.c.bf16 %v498_v15, %v498_v15  ;;  %v271_v18 = vpop.f32.mrb[1].mxu1  ;;  %351 = vst.msk [vmem:[%s584_s28] sm:$0xf] %vm318_vm2, %v328_v16 }
 0x15d   : > { %v481_v19 = vpack.c.bf16 %v271_v18, %v271_v18  ;;  %v499_v20 = vpop.f32.mrb[2].mxu1 }
 0x15e   : > { %325 = vst.msk [vmem:[%s567_s24 + $0x18] sm:$0xf] %vm318_vm2, %v483_v17  ;;  %v484_v21 = vpack.c.bf16 %v499_v20, %v499_v20  ;;  %v274_v22 = vpop.f32.mrb[3].mxu1 }
 0x15f   : > { %323 = vst.msk [vmem:[%s567_s24 + $0x10] sm:$0xf] %vm318_vm2, %v481_v19  ;;  %v482_v23 = vpack.c.bf16 %v274_v22, %v274_v22  ;;  %335 = vrot.lane.b32.xlu0 %v481_v19, %s525_s25  ;;  %v334_v24 = vpop.permute.xlu1 %333 }
 0x160   : > { %326 = vst.msk [vmem:[%s567_s24 + $0x1c] sm:$0xf] %vm318_vm2, %v484_v21  ;;  %354 = vst.msk [vmem:[%s584_s28 + $0xc] sm:$0xf] %vm318_vm2, %v334_v24 }
 0x161   : > { %324 = vst.msk [vmem:[%s567_s24 + $0x14] sm:$0xf] %vm318_vm2, %v482_v23  ;;  %337 = vrot.lane.b32.xlu1 %v482_v23, %s525_s25 }
 0x163   : > { %339 = vrot.lane.b32.xlu0 %v483_v17, %s525_s25  ;;  %v330_v25 = vpop.permute.xlu1 %329 }
 0x164   : > { %352 = vst.msk [vmem:[%s584_s28 + $0x4] sm:$0xf] %vm318_vm2, %v330_v25 }
 0x165   : > { %341 = vrot.lane.b32.xlu1 %v484_v21, %s525_s25 }
 0x1d1   : > { %v336_v26 = vpop.permute.xlu0 %335 }
 0x1d2   : > { %355 = vst.msk [vmem:[%s584_s28 + $0x10] sm:$0xf] %vm318_vm2, %v336_v26 }
 0x1d3   : > { %v338_v27 = vpop.permute.xlu1 %337 }
 0x1d4   : > { %356 = vst.msk [vmem:[%s584_s28 + $0x14] sm:$0xf] %vm318_vm2, %v338_v27 }
 0x1d5   : > { %v340_v28 = vpop.permute.xlu0 %339 }
 0x1d6   : > { %357 = vst.msk [vmem:[%s584_s28 + $0x18] sm:$0xf] %vm318_vm2, %v340_v28 }
 0x1d7   : > { %v342_v29 = vpop.permute.xlu1 %341 }
 0x1d8   : > { %358 = vst.msk [vmem:[%s584_s28 + $0x1c] sm:$0xf] %vm318_vm2, %v342_v29 }
 0x1d9 PF: > { %s14_s12 = sadd.s32 1, %s522_s12  }
 0x1da   : > { %p11_p4 = scmp.ge.s32.totalorder %s14_s12, 4  }
 0x1dc   :  { %13 = sbr.rel (!%p11_p4) target bundleno = 1 (0x1), region = 70 }

// kernel: unet_forward.18
= control target key start
LH: loop header
LB: loop body
LE: loop exit
PB: predicated region body
PF: predicated region fallthrough
CT: control target
= control target key end

     0   :  { %s1085_s24 = smov 0   ;;  %s1267_s0 = inlined_call_operand.vmem [shape: bf16[2,32,16], index: 0, kind: input, shape index: {}]   ;;  %s1268_s1 = inlined_call_operand.vmem [shape: bf16[2,32,16], index: 1, kind: input, shape index: {}]   ;;  %s1269_s2 = inlined_call_operand.vmem [shape: bf16[16,64], index: 2, kind: input, shape index: {}]   ;;  %s1270_s3 = inlined_call_operand.vmem [shape: f32[16,1], index: 3, kind: input, shape index: {}]   ;;  %s1271_s4 = inlined_call_operand.vmem [shape: bf16[16,144], index: 4, kind: input, shape index: {}]   ;;  %s1272_s5 = inlined_call_operand.vmem [shape: bf16[16,144], index: 5, kind: input, shape index: {}]   ;;  %s1273_s6 = inlined_call_operand.vmem [shape: bf16[16,144], index: 6, kind: input, shape index: {}]   ;;  %s1274_s7 = inlined_call_operand.vmem [shape: bf16[2,16,16], index: 7, kind: output, shape index: {}]  }
   0x1 LB: > { %s913_s25 = sadd.s32 4294967295, %s1025_s24   ;;  %p917_p0 = scmp.ge.s32.totalorder %s1025_s24, 1  ;;  %s1025_s24 = sphi %s1085_s24, %s17_s24  }
   0x2   : > { %p247_p1 = scmp.lt.s32.totalorder %s1025_s24, 3 }
   0x4   : > { %p248_p2 = pnand %p917_p0, %p247_p1 }
   0x5   : > { %p284_p3 = scmp.lt.s32.totalorder (!%p248_p2), %s913_s25, 1  ;;  %p924_p4 = scmp.ne.s32.totalorder (!%p248_p2), %s913_s25, 0 }
   0x6   : > { %251 = sbr.rel (%p248_p2) target bundleno = 2649 (0xa59), region = 48 }
   0xd   : > { %s285_s26 = scalar_select %p284_p3, %s913_s25, 1 }
   0xe   : > { %305 = sbr.rel (%p924_p4) target bundleno = 21 (0x15), region = 52  ;;  %vm306_vm0 = vcmask (!%p924_p4), 39936   ;;  %vm308_vm1 = vcmask (!%p924_p4), 212136   ;;  %v1027_v0 = vmov (!%p924_p4), 0  }
   0xf   : > { %s944_s27 = sshll.u32 %s285_s26, 4  ;;  %s946_s28 = sshll.u32 %s285_s26, 3  ;;  %307 = vst.msk [vmem:[#allocation2] sm:$0xff] (!%p924_p4), %vm306_vm0, %v1027_v0 }
  0x10   : > { %s288_s8 = scalar_lea.vmem %s1267_s0, %s944_s27  ;;  %s293_s11 = scalar_lea.vmem %s1268_s1, %s944_s27  ;;  %309 = vst.msk [vmem:[#allocation2] sm:$0xff] (!%p924_p4), %vm308_vm1, %v1027_v0 }
  0x11   : > { %s1102_s14 = scalar_lea.vmem %s1274_s7, %s946_s28 }
  0x15 PF: > { %v993_v1 = vld [vmem:[%s288_s8] sm:$0xff]   ;;  %v1028_v2 = vmov 0.0   ;;  %v994_v3 = vld [vmem:[%s288_s8 + $0x8] sm:$0xff]   ;;  %vm1029_vm2 = vmmov 0   ;;  %v1030_v4 = vmov 0   ;;  %vm377_vm3 = vcmask 523264  }
  0x16   : > { %954 = vmatprep.subr.bf16.mxu0 %v1028_v2  ;;  %962 = vmatprep.mubr.msk.bf16.mxu0 %vm1029_vm2, %v1028_v2  ;;  %v995_v5 = vld [vmem:[%s293_s11] sm:$0xff]   ;;  %v361_v7 = vld [vmem:[%s1270_s3 + $0x8] sm:$0xff]  ;;  %v310_v10 = vlaneseq  ;;  %s1031_s21 = smov 4   ;;  %s1032_s22 = smov 8   ;;  %vm429_vm8 = vcmask 171048   ;;  %vm509_vm15 = vcmask 130048  }
  0x17   : > { %955 = vmatpush3.bf16.msra.mxu0 %v993_v1  ;;  %992 = vset.pattern.permute.xlu0 %v1030_v4  ;;  %v360_v6 = vld [vmem:[%s1270_s3] sm:$0xff]  ;;  %v996_v8 = vld [vmem:[%s293_s11 + $0x8] sm:$0xff]   ;;  %s1033_s23 = smov 5   ;;  %s1034_s25 = smov 2   ;;  %vm843_vm0 = vcmask 125952  }
  0x18   : > { %956 = vmatprep.subr.bf16.mxu0 %v1028_v2  ;;  %513 = vmatprep.subr.bf16.mxu1 %v1030_v4  ;;  %v997_v9 = vld [vmem:[%s1269_s2] sm:$0xff]   ;;  %v311_v11 = vand.u32 127, %v310_v10  ;;  %v437_v13 = vshrl.u32 %v310_v10, 7  ;;  %s1035_s26 = smov 6   ;;  %s1036_s27 = smov 10  }
  0x19   : > { %364 = vperm.xlu0 %992, %v360_v6   ;;  %s1037_s28 = smov 127   ;;  %s1038_s29 = smov 126   ;;  %v1000_v41 = vld [vmem:[%s1271_s4 + $0x4] ss:$8 sps:$4 sm:$0xff]   ;;  %v998_v50 = vld [vmem:[%s1271_s4] ss:$8 sps:$4 sm:$0xff]  }
  0x1a   : > { %v316_v12 = vand.u32 3, %v311_v11  ;;  %v438_v14 = vsub.s32 0, %v437_v13  ;;  %s1039_s30 = smov 124   ;;  %s1040_s8 = smov 123   ;;  %933 = vmatprep.mubr.msk.bf16.mxu1 %vm509_vm15, %v1000_v41 }
  0x1b   : > { %957 = vmatpush3.bf16.msra.mxu0 %v994_v3  ;;  %s1041_s9 = smov 122   ;;  %s1042_s10 = smov 120  }
  0x1c   : > { %958 = vmatprep.subr.bf16.mxu0 %v1028_v2  ;;  %vm324_vm4 = vcmp.gt.s32.totalorder %v316_v12, 0  ;;  %vm325_vm6 = vcmp.lt.s32.totalorder %v316_v12, 3  ;;  %s1043_s11 = smov 119   ;;  %s1044_s12 = smov 118  }
  0x1d   : > { %369 = vperm.xlu0 %992, %v361_v7   ;;  %vm434_vm5 = vmpackc.low %vm324_vm4, %vm324_vm4 }
  0x1e   : > { %v435_v15 = vsel %vm434_vm5, 65537, %v1030_v4  ;;  %vm444_vm7 = vmpackc.low %vm325_vm6, %vm325_vm6 }
  0x1f   : > { %959 = vmatpush3.bf16.msra.mxu0 %v995_v5  ;;  %v1117_v16 = vrot.slane %v435_v15, %v438_v14  ;;  %v445_v17 = vsel %vm444_vm7, 65537, %v1030_v4 }
  0x20   : > { %960 = vmatprep.subr.bf16.mxu0 %v1028_v2  ;;  %v449_v18 = vrot.slane %v445_v17, %v438_v14 }
  0x21   : > { %454 = vrot.lane.b32.xlu0 %v1117_v16, %s1031_s21  ;;  %vm440_vm10 = vcmp.ne.s16.totalorder %v1117_v16, 0 }
  0x23   : > { %961 = vmatpush3.bf16.msra.mxu0 %v996_v8 }
  0x24   : > { %640 = vmatprep.subr.bf16.mxu0 %v1030_v4 }
  0x25   : > { %462 = vrot.lane.b32.xlu0 %v1117_v16, %s1032_s22 }
  0x26   : > { %963 = vmatmul.mubr.msk.bf16.vlgmr.msra.gmra.mrb[0].mxu0 %vm377_vm3, %v997_v9 }
  0x98   : > { %v365_v19 = vpop.permute.xlu0 %364 }
  0x9c   : > { %v370_v22 = vpop.permute.xlu0 %369 }
  0xa0   : > { %v1126_v30 = vpop.permute.xlu0 %454 }
  0xa1   : > { %vm456_vm11 = vcmp.ne.s16.totalorder %v1126_v30, 0  ;;  %v1004_v30 = vld [vmem:[%s1273_s6 + $0x4] ss:$8 sps:$4 sm:$0xff]  }
  0xa4   : > { %v1139_v35 = vpop.permute.xlu0 %462 }
  0xa5   : > { %vm464_vm13 = vcmp.ne.s16.totalorder %v1139_v35, 0 }
  0xf9   : > { %v415_v20 = vpop.f32.mrb[0].mxu0 }
  0xfa   : > { %v964_v21 = vpop.f32.mrb[1].mxu0  ;;  %v416_v24 = vadd.f32 %v415_v20, %v365_v19 }
  0xfb   : > { %v418_v23 = vpop.f32.mrb[2].mxu0 }
  0xfc   : > { %v419_v25 = vadd.f32 %v418_v23, %v370_v22  ;;  %v965_v26 = vpop.f32.mrb[3].mxu0 }
  0xfd   : > { %v1001_v26 = vld [vmem:[%s1272_s5 + $0x4] ss:$8 sps:$4 sm:$0xff]  }
  0xfe   : > { %v424_v27 = vpack.c.bf16 %v419_v25, %v416_v24  ;;  %936 = vmatprep.mubr.msk.bf16.mxu0 %vm509_vm15, %v1001_v26 }
 0x100   : > { %426 = vrot.lane.b32.xlu1 %v424_v27, %s1033_s23 }
 0x104   : > { %450 = vrot.lane.b32.xlu1 %v449_v18, %s1034_s25 }
 0x108   : > { %458 = vrot.lane.b32.xlu1 %v449_v18, %s1035_s26 }
 0x10c   : > { %466 = vrot.lane.b32.xlu1 %v449_v18, %s1036_s27 }
 0x172   : > { %v427_v28 = vpop.permute.xlu1 %426 }
 0x173   : > { %430 = vst.msk [vmem:[#allocation2] sm:$0xff] %vm429_vm8, %v427_v28 }
 0x176   : > { %v1124_v29 = vpop.permute.xlu1 %450 }
 0x177   : > { %vm452_vm9 = vcmp.ne.s16.totalorder %v1124_v29, 0 }
 0x17a   : > { %v431_v31 = vld [vmem:[#allocation2] sm:$0xff]  ;;  %v1131_v32 = vpop.permute.xlu1 %458 }
 0x17b   : > { %471 = vrot.lane.b32.xlu0 %v431_v31, %s1037_s28  ;;  %v453_v33 = vsel %vm452_vm9, %v431_v31, 0  ;;  %v441_v34 = vsel %vm440_vm10, %v431_v31, 0  ;;  %v457_v36 = vsel %vm456_vm11, %v431_v31, 0  ;;  %vm460_vm12 = vcmp.ne.s16.totalorder %v1131_v32, 0 }
 0x17c   : > { %475 = vrot.lane.b32.xlu1 %v453_v33, %s1038_s29  ;;  %514 = vmatpush1.bf16.msra.mxu1 %v441_v34  ;;  %v461_v38 = vsel %vm460_vm12, %v431_v31, 0  ;;  %v465_v39 = vsel %vm464_vm13, %v431_v31, 0 }
 0x17d   : > { %515 = vmatprep.subr.bf16.mxu1 %v1030_v4 }
 0x17e   : > { %v1148_v37 = vpop.permute.xlu1 %466 }
 0x17f   : > { %479 = vrot.lane.b32.xlu0 %v457_v36, %s1039_s30  ;;  %vm468_vm14 = vcmp.ne.s16.totalorder %v1148_v37, 0 }
 0x180   : > { %482 = vrot.lane.b32.xlu1 %v431_v31, %s1040_s8  ;;  %v469_v40 = vsel %vm468_vm14, %v431_v31, 0 }
 0x183   : > { %486 = vrot.lane.b32.xlu0 %v461_v38, %s1041_s9 }
 0x184   : > { %490 = vrot.lane.b32.xlu1 %v465_v39, %s1042_s10 }
 0x187   : > { %493 = vrot.lane.b32.xlu0 %v431_v31, %s1043_s11 }
 0x188   : > { %497 = vrot.lane.b32.xlu1 %v469_v40, %s1044_s12  ;;  %v1003_v40 = vld [vmem:[%s1272_s5] ss:$8 sps:$4 sm:$0xff]  }
 0x1ed   : > { %v472_v42 = vpop.permute.xlu0 %471 }
 0x1ee   : > { %516 = vmatpush1.bf16.msra.mxu1 %v472_v42  ;;  %v476_v43 = vpop.permute.xlu1 %475 }
 0x1ef   : > { %517 = vmatprep.subr.bf16.mxu1 %v1030_v4 }
 0x1f1   : > { %v480_v44 = vpop.permute.xlu0 %479 }
 0x1f2   : > { %518 = vmatpush1.bf16.msra.mxu1 %v476_v43  ;;  %v483_v45 = vpop.permute.xlu1 %482 }
 0x1f3   : > { %519 = vmatprep.subr.bf16.mxu1 %v1030_v4 }
 0x1f5   : > { %v487_v46 = vpop.permute.xlu0 %486 }
 0x1f6   : > { %520 = vmatpush1.bf16.msra.mxu1 %v480_v44  ;;  %v491_v47 = vpop.permute.xlu1 %490 }
 0x1f7   : > { %521 = vmatprep.subr.bf16.mxu1 %v1030_v4 }
 0x1f9   : > { %v494_v48 = vpop.permute.xlu0 %493 }
 0x1fa   : > { %522 = vmatpush1.bf16.msra.mxu1 %v483_v45  ;;  %v498_v49 = vpop.permute.xlu1 %497 }
 0x1fb   : > { %523 = vmatprep.subr.bf16.mxu1 %v1030_v4 }
 0x1fe   : > { %524 = vmatpush1.bf16.msra.mxu1 %v487_v46 }
 0x1ff   : > { %525 = vmatprep.subr.bf16.mxu1 %v1030_v4 }
 0x202   : > { %526 = vmatpush1.bf16.msra.mxu1 %v491_v47 }
 0x203   : > { %527 = vmatprep.subr.bf16.mxu1 %v1030_v4 }
 0x206   : > { %528 = vmatpush1.bf16.msra.mxu1 %v494_v48 }
 0x207   : > { %529 = vmatprep.subr.bf16.mxu1 %v1030_v4 }
 0x20a   : > { %530 = vmatpush1.bf16.msra.mxu1 %v498_v49 }
 0x20b   : > { %766 = vmatprep.subr.bf16.mxu1 %v1030_v4 }
 0x20d   : > { %546 = vmatmul.mubr.bf16.vlgmr.msra.gmra.mrb[0].mxu1 %v998_v50 }
 0x20e   : > { %939 = vmatprep.mubr.msk.bf16.mxu1 %vm509_vm15, %v1004_v30 }
 0x2e0   : > { %v547_v51 = vpop.f32.mrb[0].mxu1 }
 0x2e1   : > { %v549_v52 = vpop.f32.mrb[1].mxu1  ;;  %v554_v53 = vsel %vm509_vm15, %v547_v51, 0.0 }
 0x2e2   : > { %555 = vadd.xlane.f32.xlu0 %v554_v53  ;;  %v550_v54 = vpop.f32.mrb[2].mxu1 }
 0x2e3   : > { %v552_v55 = vpop.f32.mrb[3].mxu1  ;;  %v557_v56 = vsel %vm509_vm15, %v550_v54, 0.0 }
 0x2e4   : > { %558 = vadd.xlane.f32.xlu1 %v557_v56 }
 0x36f   : > { %v556_v57 = vpop.xlane.xlu0 %555 }
 0x370   : > { %v561_v58 = vmul.f32 0.0625, %v556_v57 }
 0x371   : > { %v559_v59 = vpop.xlane.xlu1 %558 }
 0x372   : > { %v563_v60 = vsub.f32 %v547_v51, %v561_v58  ;;  %v562_v61 = vmul.f32 0.0625, %v559_v59 }
 0x374   : > { %v564_v62 = vsub.f32 %v550_v54, %v562_v61  ;;  %v565_v63 = vmul.f32 %v563_v60, %v563_v60 }
 0x376   : > { %v567_v0 = vsel %vm509_vm15, %v565_v63, 0.0  ;;  %v566_v1 = vmul.f32 %v564_v62, %v564_v62 }
 0x377   : > { %568 = vadd.xlane.f32.xlu0 %v567_v0 }
 0x378   : > { %v570_v2 = vsel %vm509_vm15, %v566_v1, 0.0 }
 0x37b   : > { %571 = vadd.xlane.f32.xlu0 %v570_v2 }
 0x404   : > { %v569_v3 = vpop.xlane.xlu0 %568 }
 0x405   : > { %v573_v5 = vmul.f32 0.0625, %v569_v3 }
 0x407   : > { %v575_v6 = vadd.f32 1e-05, %v573_v5 }
 0x408   : > { %v572_v7 = vpop.xlane.xlu0 %571 }
 0x409   : > { %1007 = vrsqrt.f32 %v575_v6  ;;  %v574_v8 = vmul.f32 0.0625, %v572_v7 }
 0x40b   : > { %v576_v9 = vadd.f32 1e-05, %v574_v8 }
 0x40d   : > { %1009 = vrsqrt.f32 %v576_v9 }
 0x413   : > { %v1008_v10 = vpop.eup %1007 }
 0x414   : > { %v579_v11 = vmul.f32 %v1008_v10, %v563_v60 }
 0x416   : > { %v581_v14 = vmax.f32 %v579_v11, 0.0 }
 0x417   : > { %v1010_v12 = vpop.eup %1009 }
 0x418   : > { %v580_v13 = vmul.f32 %v1010_v12, %v564_v62 }
 0x41a   : > { %v582_v15 = vmax.f32 %v580_v13, 0.0 }
 0x41c   : > { %v585_v17 = vpack.c.bf16 %v582_v15, %v581_v14 }
 0x41e   : > { %587 = vrot.lane.b32.xlu1 %v585_v17, %s1033_s23 }
 0x490   : > { %v588_v18 = vpop.permute.xlu1 %587 }
 0x491   : > { %590 = vst.msk [vmem:[#allocation2] sm:$0xff] %vm429_vm8, %v588_v18 }
 0x498   : > { %v591_v19 = vld [vmem:[#allocation2] sm:$0xff] }
 0x499   : > { %599 = vrot.lane.b32.xlu0 %v591_v19, %s1037_s28  ;;  %v593_v20 = vsel %vm452_vm9, %v591_v19, 0  ;;  %v592_v21 = vsel %vm440_vm10, %v591_v19, 0  ;;  %v594_v22 = vsel %vm456_vm11, %v591_v19, 0  ;;  %v596_v23 = vsel %vm464_vm13, %v591_v19, 0 }
 0x49a   : > { %603 = vrot.lane.b32.xlu1 %v593_v20, %s1038_s29  ;;  %641 = vmatpush1.bf16.msra.mxu0 %v592_v21  ;;  %v595_v24 = vsel %vm460_vm12, %v591_v19, 0  ;;  %v597_v25 = vsel %vm468_vm14, %v591_v19, 0 }
 0x49b   : > { %642 = vmatprep.subr.bf16.mxu0 %v1030_v4 }
 0x49d   : > { %610 = vrot.lane.b32.xlu0 %v591_v19, %s1040_s8 }
 0x49e   : > { %607 = vrot.lane.b32.xlu1 %v594_v22, %s1039_s30 }
 0x4a1   : > { %618 = vrot.lane.b32.xlu0 %v596_v23, %s1042_s10 }
 0x4a2   : > { %614 = vrot.lane.b32.xlu1 %v595_v24, %s1041_s9 }
 0x4a5   : > { %625 = vrot.lane.b32.xlu0 %v597_v25, %s1044_s12 }
 0x4a6   : > { %621 = vrot.lane.b32.xlu1 %v591_v19, %s1043_s11  ;;  %v1006_v19 = vld [vmem:[%s1273_s6] ss:$8 sps:$4 sm:$0xff]  }
 0x50b   : > { %v600_v27 = vpop.permute.xlu0 %599 }
 0x50c   : > { %643 = vmatpush1.bf16.msra.mxu0 %v600_v27  ;;  %v604_v28 = vpop.permute.xlu1 %603 }
 0x50d   : > { %644 = vmatprep.subr.bf16.mxu0 %v1030_v4 }
 0x50f   : > { %v611_v33 = vpop.permute.xlu0 %610 }
 0x510   : > { %645 = vmatpush1.bf16.msra.mxu0 %v604_v28  ;;  %v608_v31 = vpop.permute.xlu1 %607 }
 0x511   : > { %646 = vmatprep.subr.bf16.mxu0 %v1030_v4 }
 0x513   : > { %v619_v36 = vpop.permute.xlu0 %618 }
 0x514   : > { %647 = vmatpush1.bf16.msra.mxu0 %v608_v31  ;;  %v615_v34 = vpop.permute.xlu1 %614 }
 0x515   : > { %648 = vmatprep.subr.bf16.mxu0 %v1030_v4 }
 0x517   : > { %v626_v39 = vpop.permute.xlu0 %625 }
 0x518   : > { %649 = vmatpush1.bf16.msra.mxu0 %v611_v33  ;;  %v622_v38 = vpop.permute.xlu1 %621 }
 0x519   : > { %650 = vmatprep.subr.bf16.mxu0 %v1030_v4 }
 0x51c   : > { %651 = vmatpush1.bf16.msra.mxu0 %v615_v34 }
 0x51d   : > { %652 = vmatprep.subr.bf16.mxu0 %v1030_v4 }
 0x520   : > { %653 = vmatpush1.bf16.msra.mxu0 %v619_v36 }
 0x521   : > { %654 = vmatprep.subr.bf16.mxu0 %v1030_v4 }
 0x524   : > { %655 = vmatpush1.bf16.msra.mxu0 %v622_v38 }
 0x525   : > { %656 = vmatprep.subr.bf16.mxu0 %v1030_v4 }
 0x528   : > { %657 = vmatpush1.bf16.msra.mxu0 %v626_v39 }
 0x52b   : > { %673 = vmatmul.mubr.bf16.vlgmr.msra.gmra.mrb[4].mxu0 %v1003_v40 }
 0x5fe   : > { %v674_v41 = vpop.f32.mrb[4].mxu0 }
 0x5ff   : > { %v676_v42 = vpop.f32.mrb[5].mxu0  ;;  %v681_v43 = vsel %vm509_vm15, %v674_v41, 0.0 }
 0x600   : > { %682 = vadd.xlane.f32.xlu1 %v681_v43  ;;  %v677_v44 = vpop.f32.mrb[6].mxu0 }
 0x601   : > { %v679_v45 = vpop.f32.mrb[7].mxu0  ;;  %v684_v46 = vsel %vm509_vm15, %v677_v44, 0.0 }
 0x602   : > { %685 = vadd.xlane.f32.xlu0 %v684_v46 }
 0x68d   : > { %v683_v47 = vpop.xlane.xlu1 %682 }
 0x68e   : > { %v687_v48 = vmul.f32 0.0625, %v683_v47 }
 0x68f   : > { %v686_v49 = vpop.xlane.xlu0 %685 }
 0x690   : > { %v689_v50 = vsub.f32 %v674_v41, %v687_v48  ;;  %v688_v51 = vmul.f32 0.0625, %v686_v49 }
 0x692   : > { %v690_v52 = vsub.f32 %v677_v44, %v688_v51  ;;  %v691_v53 = vmul.f32 %v689_v50, %v689_v50 }
 0x694   : > { %v693_v54 = vsel %vm509_vm15, %v691_v53, 0.0  ;;  %v692_v55 = vmul.f32 %v690_v52, %v690_v52 }
 0x695   : > { %694 = vadd.xlane.f32.xlu0 %v693_v54 }
 0x696   : > { %v696_v56 = vsel %vm509_vm15, %v692_v55, 0.0 }
 0x697   : > { %697 = vadd.xlane.f32.xlu1 %v696_v56 }
 0x722   : > { %v695_v57 = vpop.xlane.xlu0 %694 }
 0x723   : > { %v699_v58 = vmul.f32 0.0625, %v695_v57 }
 0x724   : > { %v698_v59 = vpop.xlane.xlu1 %697 }
 0x725   : > { %v701_v60 = vadd.f32 1e-05, %v699_v58  ;;  %v700_v61 = vmul.f32 0.0625, %v698_v59 }
 0x727   : > { %1011 = vrsqrt.f32 %v701_v60  ;;  %v702_v62 = vadd.f32 1e-05, %v700_v61 }
 0x729   : > { %1013 = vrsqrt.f32 %v702_v62 }
 0x731   : > { %v1012_v63 = vpop.eup %1011 }
 0x732   : > { %v705_v0 = vmul.f32 %v1012_v63, %v689_v50 }
 0x733   : > { %v1014_v1 = vpop.eup %1013 }
 0x734   : > { %v706_v2 = vmul.f32 %v1014_v1, %v690_v52  ;;  %v707_v3 = vmax.f32 %v705_v0, 0.0 }
 0x736   : > { %v708_v5 = vmax.f32 %v706_v2, 0.0 }
 0x738   : > { %v711_v6 = vpack.c.bf16 %v708_v5, %v707_v3 }
 0x73a   : > { %713 = vrot.lane.b32.xlu0 %v711_v6, %s1033_s23 }
 0x7ac   : > { %v714_v7 = vpop.permute.xlu0 %713 }
 0x7ad   : > { %716 = vst.msk [vmem:[#allocation2] sm:$0xff] %vm429_vm8, %v714_v7 }
 0x7b4   : > { %v717_v8 = vld [vmem:[#allocation2] sm:$0xff] }
 0x7b5   : > { %725 = vrot.lane.b32.xlu1 %v717_v8, %s1037_s28  ;;  %v720_v9 = vsel %vm456_vm11, %v717_v8, 0  ;;  %v718_v10 = vsel %vm440_vm10, %v717_v8, 0  ;;  %v719_v11 = vsel %vm452_vm9, %v717_v8, 0  ;;  %v721_v12 = vsel %vm460_vm12, %v717_v8, 0 }
 0x7b6   : > { %733 = vrot.lane.b32.xlu0 %v720_v9, %s1039_s30  ;;  %767 = vmatpush1.bf16.msra.mxu1 %v718_v10  ;;  %v722_v16 = vsel %vm464_vm13, %v717_v8, 0  ;;  %v723_v29 = vsel %vm468_vm14, %v717_v8, 0 }
 0x7b7   : > { %768 = vmatprep.subr.bf16.mxu1 %v1030_v4 }
 0x7b9   : > { %729 = vrot.lane.b32.xlu1 %v719_v11, %s1038_s29 }
 0x7ba   : > { %740 = vrot.lane.b32.xlu0 %v721_v12, %s1041_s9 }
 0x7bd   : > { %736 = vrot.lane.b32.xlu1 %v717_v8, %s1040_s8 }
 0x7be   : > { %747 = vrot.lane.b32.xlu0 %v717_v8, %s1043_s11 }
 0x7c1   : > { %744 = vrot.lane.b32.xlu1 %v722_v16, %s1042_s10 }
 0x7c5   : > { %751 = vrot.lane.b32.xlu1 %v723_v29, %s1044_s12 }
 0x827   : > { %v726_v32 = vpop.permute.xlu1 %725 }
 0x828   : > { %769 = vmatpush1.bf16.msra.mxu1 %v726_v32  ;;  %v734_v35 = vpop.permute.xlu0 %733 }
 0x829   : > { %770 = vmatprep.subr.bf16.mxu1 %v1030_v4 }
 0x82b   : > { %v730_v13 = vpop.permute.xlu1 %729 }
 0x82c   : > { %771 = vmatpush1.bf16.msra.mxu1 %v730_v13  ;;  %v741_v14 = vpop.permute.xlu0 %740 }
 0x82d   : > { %772 = vmatprep.subr.bf16.mxu1 %v1030_v4 }
 0x82f   : > { %v737_v37 = vpop.permute.xlu1 %736 }
 0x830   : > { %773 = vmatpush1.bf16.msra.mxu1 %v734_v35  ;;  %v748_v17 = vpop.permute.xlu0 %747 }
 0x831   : > { %774 = vmatprep.subr.bf16.mxu1 %v1030_v4 }
 0x833   : > { %v745_v15 = vpop.permute.xlu1 %744 }
 0x834   : > { %775 = vmatpush1.bf16.msra.mxu1 %v737_v37 }
 0x835   : > { %776 = vmatprep.subr.bf16.mxu1 %v1030_v4 }
 0x837   : > { %v752_v18 = vpop.permute.xlu1 %751 }
 0x838   : > { %777 = vmatpush1.bf16.msra.mxu1 %v741_v14 }
 0x839   : > { %778 = vmatprep.subr.bf16.mxu1 %v1030_v4 }
 0x83c   : > { %779 = vmatpush1.bf16.msra.mxu1 %v745_v15 }
 0x83d   : > { %780 = vmatprep.subr.bf16.mxu1 %v1030_v4 }
 0x840   : > { %781 = vmatpush1.bf16.msra.mxu1 %v748_v17 }
 0x841   : > { %782 = vmatprep.subr.bf16.mxu1 %v1030_v4 }
 0x844   : > { %783 = vmatpush1.bf16.msra.mxu1 %v752_v18 }
 0x847   : > { %799 = vmatmul.mubr.bf16.vlgmr.msra.gmra.mrb[4].mxu1 %v1006_v19 }
 0x91a   : > { %v800_v20 = vpop.f32.mrb[4].mxu1 }
 0x91b   : > { %v802_v21 = vpop.f32.mrb[5].mxu1  ;;  %v807_v22 = vsel %vm509_vm15, %v800_v20, 0.0 }
 0x91c   : > { %808 = vadd.xlane.f32.xlu0 %v807_v22  ;;  %v803_v23 = vpop.f32.mrb[6].mxu1 }
 0x91d   : > { %v805_v24 = vpop.f32.mrb[7].mxu1  ;;  %v810_v25 = vsel %vm509_vm15, %v803_v23, 0.0 }
 0x91e   : > { %811 = vadd.xlane.f32.xlu1 %v810_v25 }
 0x9a9   : > { %v809_v26 = vpop.xlane.xlu0 %808 }
 0x9aa   : > { %v813_v27 = vmul.f32 0.0625, %v809_v26 }
 0x9ab   : > { %v812_v4 = vpop.xlane.xlu1 %811 }
 0x9ac   : > { %v815_v28 = vsub.f32 %v800_v20, %v813_v27  ;;  %v814_v31 = vmul.f32 0.0625, %v812_v4 }
 0x9ae   : > { %v816_v33 = vsub.f32 %v803_v23, %v814_v31  ;;  %v817_v34 = vmul.f32 %v815_v28, %v815_v28 }
 0x9b0   : > { %v819_v36 = vsel %vm509_vm15, %v817_v34, 0.0  ;;  %v818_v38 = vmul.f32 %v816_v33, %v816_v33 }
 0x9b1   : > { %820 = vadd.xlane.f32.xlu0 %v819_v36 }
 0x9b2   : > { %v822_v39 = vsel %vm509_vm15, %v818_v38, 0.0 }
 0x9b5   : > { %823 = vadd.xlane.f32.xlu0 %v822_v39 }
 0xa3e   : > { %v821_v40 = vpop.xlane.xlu0 %820 }
 0xa3f   : > { %v825_v41 = vmul.f32 0.0625, %v821_v40 }
 0xa41   : > { %v827_v42 = vadd.f32 1e-05, %v825_v41 }
 0xa42   : > { %v824_v43 = vpop.xlane.xlu0 %823 }
 0xa43   : > { %1015 = vrsqrt.f32 %v827_v42  ;;  %v826_v44 = vmul.f32 0.0625, %v824_v43 }
 0xa45   : > { %v828_v45 = vadd.f32 1e-05, %v826_v44 }
 0xa47   : > { %1017 = vrsqrt.f32 %v828_v45 }
 0xa4d   : > { %v1016_v46 = vpop.eup %1015 }
 0xa4e   : > { %v831_v47 = vmul.f32 %v1016_v46, %v815_v28 }
 0xa50   : > { %v833_v48 = vmax.f32 %v831_v47, 0.0 }
 0xa51   : > { %v1018_v49 = vpop.eup %1017 }
 0xa52   : > { %v947_v50 = vpack.c.bf16 %v833_v48, %v833_v48  ;;  %v832_v51 = vmul.f32 %v1018_v49, %v816_v33 }
 0xa54   : > { %844 = vst.msk [vmem:[%s1102_s14] sm:$0xf] %vm843_vm0, %v947_v50  ;;  %v834_v52 = vmax.f32 %v832_v51, 0.0 }
 0xa56   : > { %v948_v53 = vpack.c.bf16 %v834_v52, %v834_v52 }
 0xa58   : > { %845 = vst.msk [vmem:[%s1102_s14 + $0x4] sm:$0xf] %vm843_vm0, %v948_v53 }
 0xa59 PF: > { %s17_s24 = sadd.s32 1, %s1025_s24  }
 0xa5a   : > { %p14_p5 = scmp.ge.s32.totalorder %s17_s24, 4  }
 0xa5c   :  { %16 = sbr.rel (!%p14_p5) target bundleno = 1 (0x1), region = 85 }

// kernel: unet_forward.22
= control target key start
LH: loop header
LB: loop body
LE: loop exit
PB: predicated region body
PF: predicated region fallthrough
CT: control target
= control target key end

     0   :  { %s419_s9 = smov 0   ;;  %s467_s0 = inlined_call_operand.vmem [shape: bf16[2,16,2], index: 0, kind: input, shape index: {}]   ;;  %s468_s1 = inlined_call_operand.vmem [shape: bf16[2,4], index: 1, kind: input, shape index: {}]   ;;  %s469_s2 = inlined_call_operand.vmem [shape: bf16[2,16,8], index: 2, kind: output, shape index: {}]  }
   0x1 LB: > { %s349_s10 = sadd.s32 4294967295, %s399_s9   ;;  %p353_p0 = scmp.ge.s32.totalorder %s399_s9, 1  ;;  %s399_s9 = sphi %s419_s9, %s12_s9  }
   0x2   : > { %p112_p1 = scmp.lt.s32.totalorder %s399_s9, 3 }
   0x4   : > { %p113_p2 = pnand %p353_p0, %p112_p1 }
   0x5   : > { %v147_v0 = vld [vmem:[%s468_s1] sm:$0x1] (!%p113_p2)  ;;  %vm157_vm0 = vcmask (!%p113_p2), 1040384   ;;  %p134_p3 = scmp.lt.s32.totalorder (!%p113_p2), %s349_s10, 1  ;;  %v401_v1 = vmov (!%p113_p2), 0.0   ;;  %vm402_vm1 = vmmov (!%p113_p2), 0   ;;  %v202_v4 = vlaneseq (!%p113_p2) }
   0x6   : > { %116 = sbr.rel (%p113_p2) target bundleno = 364 (0x16c), region = 28  ;;  %370 = vmatprep.subr.bf16.mxu0 (!%p113_p2), %v401_v1  ;;  %v159_v2 = vsel (!%p113_p2), %vm157_vm0, %v147_v0, 0  ;;  %372 = vmatprep.mubr.msk.bf16.mxu0 (!%p113_p2), %vm402_vm1, %v401_v1  ;;  %vm153_vm2 = vcmask (!%p113_p2), 15360   ;;  %vm245_vm5 = vcmask (!%p113_p2), 1046528   ;;  %s403_s17 = smov (!%p113_p2), 4   ;;  %vm278_vm8 = vcmask (!%p113_p2), 31744  }
   0x7   : > { %371 = vmatpush3.bf16.msra.mxu0 (!%p113_p2), %v159_v2  ;;  %v203_v5 = vshrl.u32 (!%p113_p2), %v202_v4, 7  ;;  %vm291_vm9 = vcmask (!%p113_p2), 60416  }
   0x9   : > { %v204_v6 = vadd.s32 (!%p113_p2), 8, %v203_v5  ;;  %v209_v7 = vand.u32 (!%p113_p2), 1, %v203_v5 }
   0xb   : > { %v216_v8 = vand.u32 (!%p113_p2), 1, %v204_v6  ;;  %vm237_vm3 = vcmp.eq.s32.totalorder (!%p113_p2), %v209_v7, 0  ;;  %vm443_vm6 = vcmp.eq.s32.totalorder (!%p113_p2), %v209_v7, 1 }
   0xd   : > { %s477_s10 = smov (!%p134_p3, %s349_s10), 1  ;;  %vm439_vm4 = vcmp.eq.s32.totalorder %v216_v8, 0  ;;  %vm447_vm7 = vcmp.eq.s32.totalorder %v216_v8, 1 }
   0xe   : > { %s364_s13 = sshll.u32 %s477_s10, 3 }
   0xf   : > { %s138_s16 = scalar_lea.vmem %s467_s0, %s364_s13  ;;  %s143_s20 = scalar_lea.vmem %s469_s2, %s364_s13 }
  0x10   : > { %v392_v3 = vld [vmem:[%s138_s16] sm:$0xff]  }
  0x11   : > { %373 = vmatmul.mubr.msk.bf16.vlgmr.msra.gmra.mrb[0].mxu0 %vm153_vm2, %v392_v3 }
  0xe4   : > { %v195_v9 = vpop.f32.mrb[0].mxu0 }
  0xe5   : > { %v231_v10 = vrot.slane %v195_v9, 7  ;;  %v374_v11 = vpop.f32.mrb[1].mxu0  ;;  %v246_v17 = vrot.slane %v195_v9, 1  ;;  %v260_v22 = vmul.f32 0.75, %v195_v9 }
  0xe6   : > { %v198_v12 = vpop.f32.mrb[2].mxu0 }
  0xe7   : > { %v236_v16 = vsel %vm157_vm0, %v195_v9, %v231_v10  ;;  %v232_v18 = vrot.slane %v198_v12, 7  ;;  %v247_v19 = vrot.slane %v198_v12, 1  ;;  %v375_v20 = vpop.f32.mrb[3].mxu0  ;;  %v261_v29 = vmul.f32 0.75, %v198_v12 }
  0xe8   : > { %v243_v21 = vsel %vm237_vm3, %v195_v9, %v236_v16 }
  0xe9   : > { %v248_v23 = vsel %vm245_vm5, %v246_v17, %v247_v19  ;;  %v251_v24 = vsel %vm245_vm5, %v247_v19, %v198_v12  ;;  %v262_v25 = vmul.f32 0.25, %v243_v21  ;;  %v233_v26 = vsel %vm157_vm0, %v231_v10, %v232_v18 }
  0xea   : > { %v258_v27 = vsel %vm443_vm6, %v195_v9, %v248_v23  ;;  %v259_v28 = vsel %vm447_vm7, %v198_v12, %v251_v24  ;;  %v244_v30 = vsel %vm439_vm4, %v198_v12, %v233_v26 }
  0xeb   : > { %v264_v31 = vadd.f32 %v262_v25, %v260_v22  ;;  %v266_v32 = vmul.f32 0.25, %v258_v27  ;;  %v267_v33 = vmul.f32 0.25, %v259_v28  ;;  %v263_v34 = vmul.f32 0.25, %v244_v30 }
  0xed   : > { %v268_v35 = vadd.f32 %v266_v32, %v260_v22  ;;  %v269_v36 = vadd.f32 %v267_v33, %v261_v29  ;;  %v265_v37 = vadd.f32 %v263_v34, %v261_v29 }
  0xef   : > { %v387_v38 = vpack.i.bf16 %v269_v36, %v268_v35 }
  0xf1   : > { %388 = vrot.lane.b32.xlu0 %v387_v38, %s403_s17 }
 0x163   : > { %v389_v39 = vpop.permute.xlu0 %388 }
 0x164   : > { %v391_v40 = vunpack.i.h.bf16 %v389_v39  ;;  %v390_v41 = vunpack.i.l.bf16 %v389_v39 }
 0x166   : > { %v279_v42 = vsel %vm278_vm8, %v264_v31, %v390_v41  ;;  %v280_v43 = vsel %vm278_vm8, %v265_v37, %v391_v40 }
 0x167   : > { %v281_v44 = vmax.f32 %v279_v42, 0.0  ;;  %v282_v45 = vmax.f32 %v280_v43, 0.0 }
 0x169   : > { %v366_v46 = vpack.c.bf16 %v281_v44, %v281_v44  ;;  %v367_v47 = vpack.c.bf16 %v282_v45, %v282_v45 }
 0x16b   : > { %292 = vst.msk [vmem:[%s143_s20] sm:$0xf] %vm291_vm9, %v366_v46  ;;  %293 = vst.msk [vmem:[%s143_s20 + $0x4] sm:$0xf] %vm291_vm9, %v367_v47 }
 0x16c PF: > { %s12_s9 = sadd.s32 1, %s399_s9  }
 0x16d   : > { %p9_p4 = scmp.ge.s32.totalorder %s12_s9, 4  }
 0x16f   :  { %11 = sbr.rel (!%p9_p4) target bundleno = 1 (0x1), region = 58 }

// kernel: unet_forward.20
= control target key start
LH: loop header
LB: loop body
LE: loop exit
PB: predicated region body
PF: predicated region fallthrough
CT: control target
= control target key end

     0   :  { %s1078_s24 = smov 0   ;;  %s1260_s0 = inlined_call_operand.vmem [shape: bf16[2,32,4], index: 0, kind: input, shape index: {}]   ;;  %s1261_s1 = inlined_call_operand.vmem [shape: bf16[2,32,4], index: 1, kind: input, shape index: {}]   ;;  %s1262_s2 = inlined_call_operand.vmem [shape: bf16[16,64], index: 2, kind: input, shape index: {}]   ;;  %s1263_s3 = inlined_call_operand.vmem [shape: f32[16,1], index: 3, kind: input, shape index: {}]   ;;  %s1264_s4 = inlined_call_operand.vmem [shape: bf16[16,144], index: 4, kind: input, shape index: {}]   ;;  %s1265_s5 = inlined_call_operand.vmem [shape: bf16[16,144], index: 5, kind: input, shape index: {}]   ;;  %s1266_s6 = inlined_call_operand.vmem [shape: bf16[16,144], index: 6, kind: input, shape index: {}]   ;;  %s1267_s7 = inlined_call_operand.vmem [shape: bf16[2,16,4], index: 7, kind: output, shape index: {}]  }
   0x1 LB: > { %s914_s25 = sadd.s32 4294967295, %s1022_s24   ;;  %p918_p0 = scmp.ge.s32.totalorder %s1022_s24, 1  ;;  %s1022_s24 = sphi %s1078_s24, %s17_s24  }
   0x2   : > { %p247_p1 = scmp.lt.s32.totalorder %s1022_s24, 3 }
   0x4   : > { %p248_p2 = pnand %p918_p0, %p247_p1 }
   0x5   : > { %p284_p3 = scmp.lt.s32.totalorder (!%p248_p2), %s914_s25, 1  ;;  %p925_p4 = scmp.ne.s32.totalorder (!%p248_p2), %s914_s25, 0 }
   0x6   : > { %251 = sbr.rel (%p248_p2) target bundleno = 2649 (0xa59), region = 48 }
   0xd   : > { %s285_s26 = scalar_select %p284_p3, %s914_s25, 1 }
   0xe   : > { %305 = sbr.rel (%p925_p4) target bundleno = 21 (0x15), region = 52  ;;  %vm306_vm0 = vcmask (!%p925_p4), 23552   ;;  %vm308_vm1 = vcmask (!%p925_p4), 80952   ;;  %v1024_v0 = vmov (!%p925_p4), 0  }
   0xf   : > { %s945_s27 = sshll.u32 %s285_s26, 4  ;;  %s947_s28 = sshll.u32 %s285_s26, 3  ;;  %307 = vst.msk [vmem:[#allocation2] sm:$0xff] (!%p925_p4), %vm306_vm0, %v1024_v0 }
  0x10   : > { %s288_s8 = scalar_lea.vmem %s1260_s0, %s945_s27  ;;  %s293_s11 = scalar_lea.vmem %s1261_s1, %s945_s27  ;;  %309 = vst.msk [vmem:[#allocation2] sm:$0xff] (!%p925_p4), %vm308_vm1, %v1024_v0 }
  0x11   : > { %s1095_s14 = scalar_lea.vmem %s1267_s7, %s947_s28 }
  0x15 PF: > { %v990_v1 = vld [vmem:[%s288_s8] sm:$0xff]   ;;  %v1025_v2 = vmov 0.0   ;;  %v991_v3 = vld [vmem:[%s288_s8 + $0x8] sm:$0xff]   ;;  %vm1026_vm2 = vmmov 0   ;;  %v1027_v4 = vmov 0   ;;  %vm377_vm3 = vcmask 523264  }
  0x16   : > { %955 = vmatprep.subr.bf16.mxu0 %v1025_v2  ;;  %963 = vmatprep.mubr.msk.bf16.mxu0 %vm1026_vm2, %v1025_v2  ;;  %v992_v5 = vld [vmem:[%s293_s11] sm:$0xff]   ;;  %v361_v7 = vld [vmem:[%s1263_s3 + $0x8] sm:$0xff]  ;;  %v310_v10 = vlaneseq  ;;  %s1028_s21 = smov 2   ;;  %s1029_s22 = smov 4   ;;  %vm429_vm8 = vcmask 56344   ;;  %vm509_vm15 = vcmask 130048  }
  0x17   : > { %956 = vmatpush3.bf16.msra.mxu0 %v990_v1  ;;  %989 = vset.pattern.permute.xlu0 %v1027_v4  ;;  %v360_v6 = vld [vmem:[%s1263_s3] sm:$0xff]  ;;  %v993_v8 = vld [vmem:[%s293_s11 + $0x8] sm:$0xff]   ;;  %s1030_s23 = smov 3   ;;  %s1031_s25 = smov 6   ;;  %vm554_vm0 = vcmask 31744   ;;  %vm844_vm1 = vcmask 27648  }
  0x18   : > { %957 = vmatprep.subr.bf16.mxu0 %v1025_v2  ;;  %513 = vmatprep.subr.bf16.mxu1 %v1027_v4  ;;  %v994_v9 = vld [vmem:[%s1262_s2] sm:$0xff]   ;;  %v311_v11 = vand.u32 127, %v310_v10  ;;  %v437_v13 = vshrl.u32 %v310_v10, 7  ;;  %s1032_s26 = smov 127   ;;  %s1033_s27 = smov 126  }
  0x19   : > { %364 = vperm.xlu0 %989, %v360_v6   ;;  %s1034_s28 = smov 125   ;;  %s1035_s29 = smov 124   ;;  %v997_v41 = vld [vmem:[%s1264_s4 + $0x4] ss:$8 sps:$4 sm:$0xff]   ;;  %v995_v50 = vld [vmem:[%s1264_s4] ss:$8 sps:$4 sm:$0xff]  }
  0x1a   : > { %v316_v12 = vand.u32 1, %v311_v11  ;;  %v438_v14 = vsub.s32 0, %v437_v13  ;;  %s1036_s30 = smov 123   ;;  %s1037_s8 = smov 122   ;;  %934 = vmatprep.mubr.msk.bf16.mxu1 %vm509_vm15, %v997_v41 }
  0x1b   : > { %958 = vmatpush3.bf16.msra.mxu0 %v991_v3 }
  0x1c   : > { %959 = vmatprep.subr.bf16.mxu0 %v1025_v2  ;;  %vm324_vm4 = vcmp.gt.s32.totalorder %v316_v12, 0  ;;  %vm325_vm6 = vcmp.lt.s32.totalorder %v316_v12, 1 }
  0x1d   : > { %369 = vperm.xlu0 %989, %v361_v7   ;;  %vm434_vm5 = vmpackc.low %vm324_vm4, %vm324_vm4 }
  0x1e   : > { %v435_v15 = vsel %vm434_vm5, 65537, %v1027_v4  ;;  %vm444_vm7 = vmpackc.low %vm325_vm6, %vm325_vm6 }
  0x1f   : > { %960 = vmatpush3.bf16.msra.mxu0 %v992_v5  ;;  %v1110_v16 = vrot.slane %v435_v15, %v438_v14  ;;  %v445_v17 = vsel %vm444_vm7, 65537, %v1027_v4 }
  0x20   : > { %961 = vmatprep.subr.bf16.mxu0 %v1025_v2  ;;  %v449_v18 = vrot.slane %v445_v17, %v438_v14 }
  0x21   : > { %454 = vrot.lane.b32.xlu0 %v1110_v16, %s1028_s21  ;;  %vm440_vm10 = vcmp.ne.s16.totalorder %v1110_v16, 0 }
  0x23   : > { %962 = vmatpush3.bf16.msra.mxu0 %v993_v8 }
  0x24   : > { %641 = vmatprep.subr.bf16.mxu0 %v1027_v4 }
  0x25   : > { %462 = vrot.lane.b32.xlu0 %v1110_v16, %s1029_s22 }
  0x26   : > { %964 = vmatmul.mubr.msk.bf16.vlgmr.msra.gmra.mrb[0].mxu0 %vm377_vm3, %v994_v9 }
  0x98   : > { %v365_v19 = vpop.permute.xlu0 %364 }
  0x9c   : > { %v370_v22 = vpop.permute.xlu0 %369 }
  0xa0   : > { %v1119_v30 = vpop.permute.xlu0 %454 }
  0xa1   : > { %vm456_vm11 = vcmp.ne.s16.totalorder %v1119_v30, 0  ;;  %v1001_v30 = vld [vmem:[%s1266_s6 + $0x4] ss:$8 sps:$4 sm:$0xff]  }
  0xa4   : > { %v1132_v35 = vpop.permute.xlu0 %462 }
  0xa5   : > { %vm464_vm13 = vcmp.ne.s16.totalorder %v1132_v35, 0 }
  0xf9   : > { %v415_v20 = vpop.f32.mrb[0].mxu0 }
  0xfa   : > { %v965_v21 = vpop.f32.mrb[1].mxu0  ;;  %v416_v24 = vadd.f32 %v415_v20, %v365_v19 }
  0xfb   : > { %v418_v23 = vpop.f32.mrb[2].mxu0 }
  0xfc   : > { %v419_v25 = vadd.f32 %v418_v23, %v370_v22  ;;  %v966_v26 = vpop.f32.mrb[3].mxu0 }
  0xfd   : > { %v998_v26 = vld [vmem:[%s1265_s5 + $0x4] ss:$8 sps:$4 sm:$0xff]  }
  0xfe   : > { %v424_v27 = vpack.c.bf16 %v419_v25, %v416_v24  ;;  %937 = vmatprep.mubr.msk.bf16.mxu0 %vm509_vm15, %v998_v26 }
 0x100   : > { %426 = vrot.lane.b32.xlu1 %v424_v27, %s1030_s23 }
 0x104   : > { %450 = vrot.lane.b32.xlu1 %v449_v18, %s1028_s21 }
 0x108   : > { %458 = vrot.lane.b32.xlu1 %v449_v18, %s1029_s22 }
 0x10c   : > { %466 = vrot.lane.b32.xlu1 %v449_v18, %s1031_s25 }
 0x172   : > { %v427_v28 = vpop.permute.xlu1 %426 }
 0x173   : > { %430 = vst.msk [vmem:[#allocation2] sm:$0xff] %vm429_vm8, %v427_v28 }
 0x176   : > { %v1117_v29 = vpop.permute.xlu1 %450 }
 0x177   : > { %vm452_vm9 = vcmp.ne.s16.totalorder %v1117_v29, 0 }
 0x17a   : > { %v431_v31 = vld [vmem:[#allocation2] sm:$0xff]  ;;  %v1124_v32 = vpop.permute.xlu1 %458 }
 0x17b   : > { %471 = vrot.lane.b32.xlu0 %v431_v31, %s1032_s26  ;;  %v453_v33 = vsel %vm452_vm9, %v431_v31, 0  ;;  %v441_v34 = vsel %vm440_vm10, %v431_v31, 0  ;;  %v457_v36 = vsel %vm456_vm11, %v431_v31, 0  ;;  %vm460_vm12 = vcmp.ne.s16.totalorder %v1124_v32, 0 }
 0x17c   : > { %475 = vrot.lane.b32.xlu1 %v453_v33, %s1033_s27  ;;  %514 = vmatpush1.bf16.msra.mxu1 %v441_v34  ;;  %v461_v38 = vsel %vm460_vm12, %v431_v31, 0  ;;  %v465_v39 = vsel %vm464_vm13, %v431_v31, 0 }
 0x17d   : > { %515 = vmatprep.subr.bf16.mxu1 %v1027_v4 }
 0x17e   : > { %v1141_v37 = vpop.permute.xlu1 %466 }
 0x17f   : > { %479 = vrot.lane.b32.xlu0 %v457_v36, %s1033_s27  ;;  %vm468_vm14 = vcmp.ne.s16.totalorder %v1141_v37, 0 }
 0x180   : > { %482 = vrot.lane.b32.xlu1 %v431_v31, %s1034_s28  ;;  %v469_v40 = vsel %vm468_vm14, %v431_v31, 0 }
 0x183   : > { %486 = vrot.lane.b32.xlu0 %v461_v38, %s1035_s29 }
 0x184   : > { %490 = vrot.lane.b32.xlu1 %v465_v39, %s1035_s29 }
 0x187   : > { %493 = vrot.lane.b32.xlu0 %v431_v31, %s1036_s30 }
 0x188   : > { %497 = vrot.lane.b32.xlu1 %v469_v40, %s1037_s8  ;;  %v1000_v40 = vld [vmem:[%s1265_s5] ss:$8 sps:$4 sm:$0xff]  }
 0x1ed   : > { %v472_v42 = vpop.permute.xlu0 %471 }
 0x1ee   : > { %516 = vmatpush1.bf16.msra.mxu1 %v472_v42  ;;  %v476_v43 = vpop.permute.xlu1 %475 }
 0x1ef   : > { %517 = vmatprep.subr.bf16.mxu1 %v1027_v4 }
 0x1f1   : > { %v480_v44 = vpop.permute.xlu0 %479 }
 0x1f2   : > { %518 = vmatpush1.bf16.msra.mxu1 %v476_v43  ;;  %v483_v45 = vpop.permute.xlu1 %482 }
 0x1f3   : > { %519 = vmatprep.subr.bf16.mxu1 %v1027_v4 }
 0x1f5   : > { %v487_v46 = vpop.permute.xlu0 %486 }
 0x1f6   : > { %520 = vmatpush1.bf16.msra.mxu1 %v480_v44  ;;  %v491_v47 = vpop.permute.xlu1 %490 }
 0x1f7   : > { %521 = vmatprep.subr.bf16.mxu1 %v1027_v4 }
 0x1f9   : > { %v494_v48 = vpop.permute.xlu0 %493 }
 0x1fa   : > { %522 = vmatpush1.bf16.msra.mxu1 %v483_v45  ;;  %v498_v49 = vpop.permute.xlu1 %497 }
 0x1fb   : > { %523 = vmatprep.subr.bf16.mxu1 %v1027_v4 }
 0x1fe   : > { %524 = vmatpush1.bf16.msra.mxu1 %v487_v46 }
 0x1ff   : > { %525 = vmatprep.subr.bf16.mxu1 %v1027_v4 }
 0x202   : > { %526 = vmatpush1.bf16.msra.mxu1 %v491_v47 }
 0x203   : > { %527 = vmatprep.subr.bf16.mxu1 %v1027_v4 }
 0x206   : > { %528 = vmatpush1.bf16.msra.mxu1 %v494_v48 }
 0x207   : > { %529 = vmatprep.subr.bf16.mxu1 %v1027_v4 }
 0x20a   : > { %530 = vmatpush1.bf16.msra.mxu1 %v498_v49 }
 0x20b   : > { %767 = vmatprep.subr.bf16.mxu1 %v1027_v4 }
 0x20d   : > { %546 = vmatmul.mubr.bf16.vlgmr.msra.gmra.mrb[0].mxu1 %v995_v50 }
 0x20e   : > { %940 = vmatprep.mubr.msk.bf16.mxu1 %vm509_vm15, %v1001_v30 }
 0x2e0   : > { %v547_v51 = vpop.f32.mrb[0].mxu1 }
 0x2e1   : > { %v549_v52 = vpop.f32.mrb[1].mxu1  ;;  %v555_v53 = vsel %vm554_vm0, %v547_v51, 0.0 }
 0x2e2   : > { %556 = vadd.xlane.f32.xlu0 %v555_v53  ;;  %v550_v54 = vpop.f32.mrb[2].mxu1 }
 0x2e3   : > { %v552_v55 = vpop.f32.mrb[3].mxu1  ;;  %v558_v56 = vsel %vm554_vm0, %v550_v54, 0.0 }
 0x2e4   : > { %559 = vadd.xlane.f32.xlu1 %v558_v56 }
 0x36f   : > { %v557_v57 = vpop.xlane.xlu0 %556 }
 0x370   : > { %v562_v58 = vmul.f32 0.25, %v557_v57 }
 0x371   : > { %v560_v59 = vpop.xlane.xlu1 %559 }
 0x372   : > { %v564_v60 = vsub.f32 %v547_v51, %v562_v58  ;;  %v563_v61 = vmul.f32 0.25, %v560_v59 }
 0x374   : > { %v565_v62 = vsub.f32 %v550_v54, %v563_v61  ;;  %v566_v63 = vmul.f32 %v564_v60, %v564_v60 }
 0x376   : > { %v568_v0 = vsel %vm554_vm0, %v566_v63, 0.0  ;;  %v567_v1 = vmul.f32 %v565_v62, %v565_v62 }
 0x377   : > { %569 = vadd.xlane.f32.xlu0 %v568_v0 }
 0x378   : > { %v571_v2 = vsel %vm554_vm0, %v567_v1, 0.0 }
 0x37b   : > { %572 = vadd.xlane.f32.xlu0 %v571_v2 }
 0x404   : > { %v570_v3 = vpop.xlane.xlu0 %569 }
 0x405   : > { %v574_v5 = vmul.f32 0.25, %v570_v3 }
 0x407   : > { %v576_v6 = vadd.f32 1e-05, %v574_v5 }
 0x408   : > { %v573_v7 = vpop.xlane.xlu0 %572 }
 0x409   : > { %1004 = vrsqrt.f32 %v576_v6  ;;  %v575_v8 = vmul.f32 0.25, %v573_v7 }
 0x40b   : > { %v577_v9 = vadd.f32 1e-05, %v575_v8 }
 0x40d   : > { %1006 = vrsqrt.f32 %v577_v9 }
 0x413   : > { %v1005_v10 = vpop.eup %1004 }
 0x414   : > { %v580_v11 = vmul.f32 %v1005_v10, %v564_v60 }
 0x416   : > { %v582_v14 = vmax.f32 %v580_v11, 0.0 }
 0x417   : > { %v1007_v12 = vpop.eup %1006 }
 0x418   : > { %v581_v13 = vmul.f32 %v1007_v12, %v565_v62 }
 0x41a   : > { %v583_v15 = vmax.f32 %v581_v13, 0.0 }
 0x41c   : > { %v586_v17 = vpack.c.bf16 %v583_v15, %v582_v14 }
 0x41e   : > { %588 = vrot.lane.b32.xlu1 %v586_v17, %s1030_s23 }
 0x490   : > { %v589_v18 = vpop.permute.xlu1 %588 }
 0x491   : > { %591 = vst.msk [vmem:[#allocation2] sm:$0xff] %vm429_vm8, %v589_v18 }
 0x498   : > { %v592_v19 = vld [vmem:[#allocation2] sm:$0xff] }
 0x499   : > { %600 = vrot.lane.b32.xlu0 %v592_v19, %s1032_s26  ;;  %v594_v20 = vsel %vm452_vm9, %v592_v19, 0  ;;  %v593_v21 = vsel %vm440_vm10, %v592_v19, 0  ;;  %v595_v22 = vsel %vm456_vm11, %v592_v19, 0  ;;  %v597_v23 = vsel %vm464_vm13, %v592_v19, 0 }
 0x49a   : > { %604 = vrot.lane.b32.xlu1 %v594_v20, %s1033_s27  ;;  %642 = vmatpush1.bf16.msra.mxu0 %v593_v21  ;;  %v596_v24 = vsel %vm460_vm12, %v592_v19, 0  ;;  %v598_v25 = vsel %vm468_vm14, %v592_v19, 0 }
 0x49b   : > { %643 = vmatprep.subr.bf16.mxu0 %v1027_v4 }
 0x49d   : > { %611 = vrot.lane.b32.xlu0 %v592_v19, %s1034_s28 }
 0x49e   : > { %608 = vrot.lane.b32.xlu1 %v595_v22, %s1033_s27 }
 0x4a1   : > { %619 = vrot.lane.b32.xlu0 %v597_v23, %s1035_s29 }
 0x4a2   : > { %615 = vrot.lane.b32.xlu1 %v596_v24, %s1035_s29 }
 0x4a5   : > { %626 = vrot.lane.b32.xlu0 %v598_v25, %s1037_s8 }
 0x4a6   : > { %622 = vrot.lane.b32.xlu1 %v592_v19, %s1036_s30  ;;  %v1003_v19 = vld [vmem:[%s1266_s6] ss:$8 sps:$4 sm:$0xff]  }
 0x50b   : > { %v601_v27 = vpop.permute.xlu0 %600 }
 0x50c   : > { %644 = vmatpush1.bf16.msra.mxu0 %v601_v27  ;;  %v605_v28 = vpop.permute.xlu1 %604 }
 0x50d   : > { %645 = vmatprep.subr.bf16.mxu0 %v1027_v4 }
 0x50f   : > { %v612_v33 = vpop.permute.xlu0 %611 }
 0x510   : > { %646 = vmatpush1.bf16.msra.mxu0 %v605_v28  ;;  %v609_v31 = vpop.permute.xlu1 %608 }
 0x511   : > { %647 = vmatprep.subr.bf16.mxu0 %v1027_v4 }
 0x513   : > { %v620_v36 = vpop.permute.xlu0 %619 }
 0x514   : > { %648 = vmatpush1.bf16.msra.mxu0 %v609_v31  ;;  %v616_v34 = vpop.permute.xlu1 %615 }
 0x515   : > { %649 = vmatprep.subr.bf16.mxu0 %v1027_v4 }
 0x517   : > { %v627_v39 = vpop.permute.xlu0 %626 }
 0x518   : > { %650 = vmatpush1.bf16.msra.mxu0 %v612_v33  ;;  %v623_v38 = vpop.permute.xlu1 %622 }
 0x519   : > { %651 = vmatprep.subr.bf16.mxu0 %v1027_v4 }
 0x51c   : > { %652 = vmatpush1.bf16.msra.mxu0 %v616_v34 }
 0x51d   : > { %653 = vmatprep.subr.bf16.mxu0 %v1027_v4 }
 0x520   : > { %654 = vmatpush1.bf16.msra.mxu0 %v620_v36 }
 0x521   : > { %655 = vmatprep.subr.bf16.mxu0 %v1027_v4 }
 0x524   : > { %656 = vmatpush1.bf16.msra.mxu0 %v623_v38 }
 0x525   : > { %657 = vmatprep.subr.bf16.mxu0 %v1027_v4 }
 0x528   : > { %658 = vmatpush1.bf16.msra.mxu0 %v627_v39 }
 0x52b   : > { %674 = vmatmul.mubr.bf16.vlgmr.msra.gmra.mrb[4].mxu0 %v1000_v40 }
 0x5fe   : > { %v675_v41 = vpop.f32.mrb[4].mxu0 }
 0x5ff   : > { %v677_v42 = vpop.f32.mrb[5].mxu0  ;;  %v682_v43 = vsel %vm554_vm0, %v675_v41, 0.0 }
 0x600   : > { %683 = vadd.xlane.f32.xlu1 %v682_v43  ;;  %v678_v44 = vpop.f32.mrb[6].mxu0 }
 0x601   : > { %v680_v45 = vpop.f32.mrb[7].mxu0  ;;  %v685_v46 = vsel %vm554_vm0, %v678_v44, 0.0 }
 0x602   : > { %686 = vadd.xlane.f32.xlu0 %v685_v46 }
 0x68d   : > { %v684_v47 = vpop.xlane.xlu1 %683 }
 0x68e   : > { %v688_v48 = vmul.f32 0.25, %v684_v47 }
 0x68f   : > { %v687_v49 = vpop.xlane.xlu0 %686 }
 0x690   : > { %v690_v50 = vsub.f32 %v675_v41, %v688_v48  ;;  %v689_v51 = vmul.f32 0.25, %v687_v49 }
 0x692   : > { %v691_v52 = vsub.f32 %v678_v44, %v689_v51  ;;  %v692_v53 = vmul.f32 %v690_v50, %v690_v50 }
 0x694   : > { %v694_v54 = vsel %vm554_vm0, %v692_v53, 0.0  ;;  %v693_v55 = vmul.f32 %v691_v52, %v691_v52 }
 0x695   : > { %695 = vadd.xlane.f32.xlu0 %v694_v54 }
 0x696   : > { %v697_v56 = vsel %vm554_vm0, %v693_v55, 0.0 }
 0x697   : > { %698 = vadd.xlane.f32.xlu1 %v697_v56 }
 0x722   : > { %v696_v57 = vpop.xlane.xlu0 %695 }
 0x723   : > { %v700_v58 = vmul.f32 0.25, %v696_v57 }
 0x724   : > { %v699_v59 = vpop.xlane.xlu1 %698 }
 0x725   : > { %v702_v60 = vadd.f32 1e-05, %v700_v58  ;;  %v701_v61 = vmul.f32 0.25, %v699_v59 }
 0x727   : > { %1008 = vrsqrt.f32 %v702_v60  ;;  %v703_v62 = vadd.f32 1e-05, %v701_v61 }
 0x729   : > { %1010 = vrsqrt.f32 %v703_v62 }
 0x731   : > { %v1009_v63 = vpop.eup %1008 }
 0x732   : > { %v706_v0 = vmul.f32 %v1009_v63, %v690_v50 }
 0x733   : > { %v1011_v1 = vpop.eup %1010 }
 0x734   : > { %v707_v2 = vmul.f32 %v1011_v1, %v691_v52  ;;  %v708_v3 = vmax.f32 %v706_v0, 0.0 }
 0x736   : > { %v709_v5 = vmax.f32 %v707_v2, 0.0 }
 0x738   : > { %v712_v6 = vpack.c.bf16 %v709_v5, %v708_v3 }
 0x73a   : > { %714 = vrot.lane.b32.xlu0 %v712_v6, %s1030_s23 }
 0x7ac   : > { %v715_v7 = vpop.permute.xlu0 %714 }
 0x7ad   : > { %717 = vst.msk [vmem:[#allocation2] sm:$0xff] %vm429_vm8, %v715_v7 }
 0x7b4   : > { %v718_v8 = vld [vmem:[#allocation2] sm:$0xff] }
 0x7b5   : > { %726 = vrot.lane.b32.xlu1 %v718_v8, %s1032_s26  ;;  %v721_v9 = vsel %vm456_vm11, %v718_v8, 0  ;;  %v719_v10 = vsel %vm440_vm10, %v718_v8, 0  ;;  %v720_v11 = vsel %vm452_vm9, %v718_v8, 0  ;;  %v722_v12 = vsel %vm460_vm12, %v718_v8, 0 }
 0x7b6   : > { %734 = vrot.lane.b32.xlu0 %v721_v9, %s1033_s27  ;;  %768 = vmatpush1.bf16.msra.mxu1 %v719_v10  ;;  %v723_v16 = vsel %vm464_vm13, %v718_v8, 0  ;;  %v724_v29 = vsel %vm468_vm14, %v718_v8, 0 }
 0x7b7   : > { %769 = vmatprep.subr.bf16.mxu1 %v1027_v4 }
 0x7b9   : > { %730 = vrot.lane.b32.xlu1 %v720_v11, %s1033_s27 }
 0x7ba   : > { %741 = vrot.lane.b32.xlu0 %v722_v12, %s1035_s29 }
 0x7bd   : > { %737 = vrot.lane.b32.xlu1 %v718_v8, %s1034_s28 }
 0x7be   : > { %748 = vrot.lane.b32.xlu0 %v718_v8, %s1036_s30 }
 0x7c1   : > { %745 = vrot.lane.b32.xlu1 %v723_v16, %s1035_s29 }
 0x7c5   : > { %752 = vrot.lane.b32.xlu1 %v724_v29, %s1037_s8 }
 0x827   : > { %v727_v32 = vpop.permute.xlu1 %726 }
 0x828   : > { %770 = vmatpush1.bf16.msra.mxu1 %v727_v32  ;;  %v735_v35 = vpop.permute.xlu0 %734 }
 0x829   : > { %771 = vmatprep.subr.bf16.mxu1 %v1027_v4 }
 0x82b   : > { %v731_v13 = vpop.permute.xlu1 %730 }
 0x82c   : > { %772 = vmatpush1.bf16.msra.mxu1 %v731_v13  ;;  %v742_v14 = vpop.permute.xlu0 %741 }
 0x82d   : > { %773 = vmatprep.subr.bf16.mxu1 %v1027_v4 }
 0x82f   : > { %v738_v37 = vpop.permute.xlu1 %737 }
 0x830   : > { %774 = vmatpush1.bf16.msra.mxu1 %v735_v35  ;;  %v749_v17 = vpop.permute.xlu0 %748 }
 0x831   : > { %775 = vmatprep.subr.bf16.mxu1 %v1027_v4 }
 0x833   : > { %v746_v15 = vpop.permute.xlu1 %745 }
 0x834   : > { %776 = vmatpush1.bf16.msra.mxu1 %v738_v37 }
 0x835   : > { %777 = vmatprep.subr.bf16.mxu1 %v1027_v4 }
 0x837   : > { %v753_v18 = vpop.permute.xlu1 %752 }
 0x838   : > { %778 = vmatpush1.bf16.msra.mxu1 %v742_v14 }
 0x839   : > { %779 = vmatprep.subr.bf16.mxu1 %v1027_v4 }
 0x83c   : > { %780 = vmatpush1.bf16.msra.mxu1 %v746_v15 }
 0x83d   : > { %781 = vmatprep.subr.bf16.mxu1 %v1027_v4 }
 0x840   : > { %782 = vmatpush1.bf16.msra.mxu1 %v749_v17 }
 0x841   : > { %783 = vmatprep.subr.bf16.mxu1 %v1027_v4 }
 0x844   : > { %784 = vmatpush1.bf16.msra.mxu1 %v753_v18 }
 0x847   : > { %800 = vmatmul.mubr.bf16.vlgmr.msra.gmra.mrb[4].mxu1 %v1003_v19 }
 0x91a   : > { %v801_v20 = vpop.f32.mrb[4].mxu1 }
 0x91b   : > { %v803_v21 = vpop.f32.mrb[5].mxu1  ;;  %v808_v22 = vsel %vm554_vm0, %v801_v20, 0.0 }
 0x91c   : > { %809 = vadd.xlane.f32.xlu0 %v808_v22  ;;  %v804_v23 = vpop.f32.mrb[6].mxu1 }
 0x91d   : > { %v806_v24 = vpop.f32.mrb[7].mxu1  ;;  %v811_v25 = vsel %vm554_vm0, %v804_v23, 0.0 }
 0x91e   : > { %812 = vadd.xlane.f32.xlu1 %v811_v25 }
 0x9a9   : > { %v810_v26 = vpop.xlane.xlu0 %809 }
 0x9aa   : > { %v814_v27 = vmul.f32 0.25, %v810_v26 }
 0x9ab   : > { %v813_v4 = vpop.xlane.xlu1 %812 }
 0x9ac   : > { %v816_v28 = vsub.f32 %v801_v20, %v814_v27  ;;  %v815_v31 = vmul.f32 0.25, %v813_v4 }
 0x9ae   : > { %v817_v33 = vsub.f32 %v804_v23, %v815_v31  ;;  %v818_v34 = vmul.f32 %v816_v28, %v816_v28 }
 0x9b0   : > { %v820_v36 = vsel %vm554_vm0, %v818_v34, 0.0  ;;  %v819_v38 = vmul.f32 %v817_v33, %v817_v33 }
 0x9b1   : > { %821 = vadd.xlane.f32.xlu0 %v820_v36 }
 0x9b2   : > { %v823_v39 = vsel %vm554_vm0, %v819_v38, 0.0 }
 0x9b5   : > { %824 = vadd.xlane.f32.xlu0 %v823_v39 }
 0xa3e   : > { %v822_v40 = vpop.xlane.xlu0 %821 }
 0xa3f   : > { %v826_v41 = vmul.f32 0.25, %v822_v40 }
 0xa41   : > { %v828_v42 = vadd.f32 1e-05, %v826_v41 }
 0xa42   : > { %v825_v43 = vpop.xlane.xlu0 %824 }
 0xa43   : > { %1012 = vrsqrt.f32 %v828_v42  ;;  %v827_v44 = vmul.f32 0.25, %v825_v43 }
 0xa45   : > { %v829_v45 = vadd.f32 1e-05, %v827_v44 }
 0xa47   : > { %1014 = vrsqrt.f32 %v829_v45 }
 0xa4d   : > { %v1013_v46 = vpop.eup %1012 }
 0xa4e   : > { %v832_v47 = vmul.f32 %v1013_v46, %v816_v28 }
 0xa50   : > { %v834_v48 = vmax.f32 %v832_v47, 0.0 }
 0xa51   : > { %v1015_v49 = vpop.eup %1014 }
 0xa52   : > { %v948_v50 = vpack.c.bf16 %v834_v48, %v834_v48  ;;  %v833_v51 = vmul.f32 %v1015_v49, %v817_v33 }
 0xa54   : > { %845 = vst.msk [vmem:[%s1095_s14] sm:$0xf] %vm844_vm1, %v948_v50  ;;  %v835_v52 = vmax.f32 %v833_v51, 0.0 }
 0xa56   : > { %v949_v53 = vpack.c.bf16 %v835_v52, %v835_v52 }
 0xa58   : > { %846 = vst.msk [vmem:[%s1095_s14 + $0x4] sm:$0xf] %vm844_vm1, %v949_v53 }
 0xa59 PF: > { %s17_s24 = sadd.s32 1, %s1022_s24  }
 0xa5a   : > { %p14_p5 = scmp.ge.s32.totalorder %s17_s24, 4  }
 0xa5c   :  { %16 = sbr.rel (!%p14_p5) target bundleno = 1 (0x1), region = 85 }

// kernel: unet_forward.21
= control target key start
LH: loop header
LB: loop body
LE: loop exit
PB: predicated region body
PF: predicated region fallthrough
CT: control target
= control target key end

     0   :  { %s1250_s21 = smov 0   ;;  %s1563_s0 = inlined_call_operand.vmem [shape: bf16[2,16,4], index: 0, kind: input, shape index: {}]   ;;  %s1564_s1 = inlined_call_operand.vmem [shape: bf16[16,144], index: 1, kind: input, shape index: {}]   ;;  %s1565_s2 = inlined_call_operand.vmem [shape: bf16[8,144], index: 2, kind: input, shape index: {}]   ;;  %s1566_s3 = inlined_call_operand.vmem [shape: bf16[16,216], index: 3, kind: input, shape index: {}]   ;;  %s1567_s4 = inlined_call_operand.vmem [shape: f32[16,1], index: 4, kind: input, shape index: {}]   ;;  %s1568_s5 = inlined_call_operand.vmem [shape: bf16[8,144], index: 5, kind: input, shape index: {}]   ;;  %s1569_s6 = inlined_call_operand.vmem [shape: bf16[2,8,4], index: 6, kind: output, shape index: {}]  }
   0x1 LB: > { %s1070_s22 = sadd.s32 4294967295, %s1201_s21   ;;  %p1074_p0 = scmp.ge.s32.totalorder %s1201_s21, 1  ;;  %s1201_s21 = sphi %s1250_s21, %s16_s21  }
   0x2   : > { %p212_p1 = scmp.lt.s32.totalorder %s1201_s21, 3 }
   0x4   : > { %p213_p2 = pnand %p1074_p0, %p212_p1 }
   0x5   : > { %p241_p3 = scmp.lt.s32.totalorder (!%p213_p2), %s1070_s22, 1  ;;  %p1078_p4 = scmp.ne.s32.totalorder (!%p213_p2), %s1070_s22, 0 }
   0x6   : > { %216 = sbr.rel (%p213_p2) target bundleno = 2927 (0xb6f), region = 44 }
   0xd   : > { %s242_s23 = scalar_select %p241_p3, %s1070_s22, 1 }
   0xe   : > { %256 = sbr.rel (%p1078_p4) target bundleno = 21 (0x15), region = 48  ;;  %vm257_vm0 = vcmask (!%p1078_p4), 19456   ;;  %vm261_vm1 = vcmask (!%p1078_p4), 76856   ;;  %v1203_v0 = vmov (!%p1078_p4), 0  }
   0xf   : > { %s1138_s24 = sshll.u32 %s242_s23, 3  ;;  %s1077_s25 = sshll.u32 %s242_s23, 2  ;;  %258 = vst.msk [vmem:[#allocation2] sm:$0xf] (!%p1078_p4), %vm257_vm0, %v1203_v0  ;;  %259 = vst.msk [vmem:[#allocation2 + $0x4] sm:$0xf] (!%p1078_p4), %vm257_vm0, %v1203_v0 }
  0x10   : > { %s245_s28 = scalar_lea.vmem %s1563_s0, %s1138_s24  ;;  %s1264_s7 = scalar_lea.vmem %s1569_s6, %s1077_s25  ;;  %260 = vst.msk [vmem:[#allocation2 + $0x8] sm:$0xf] (!%p1078_p4), %vm257_vm0, %v1203_v0 }
  0x11   : > { %262 = vst.msk [vmem:[#allocation2] sm:$0xf] (!%p1078_p4), %vm261_vm1, %v1203_v0  ;;  %263 = vst.msk [vmem:[#allocation2 + $0x4] sm:$0xf] (!%p1078_p4), %vm261_vm1, %v1203_v0 }
  0x12   : > { %264 = vst.msk [vmem:[#allocation2 + $0x8] sm:$0xf] (!%p1078_p4), %vm261_vm1, %v1203_v0 }
  0x15 PF: > { %v1266_v1 = vld [vmem:[%s245_s28] sm:$0xf]  ;;  %v265_v2 = vlaneseq  ;;  %s1204_s8 = smov 3   ;;  %v1205_v3 = vmov 0   ;;  %v1271_v4 = vld [vmem:[%s245_s28 + $0x4] sm:$0xf] }
  0x16   : > { %287 = vrot.lane.b32.xlu0 %v1266_v1, %s1204_s8  ;;  %406 = vmatprep.subr.bf16.mxu0 %v1205_v3  ;;  %s1206_s9 = smov 4   ;;  %s1207_s10 = smov 2   ;;  %vm293_vm6 = vcmask 52248   ;;  %v1174_v38 = vld [vmem:[%s1564_s1 + $0x4] ss:$8 sps:$4 sm:$0xff]   ;;  %vm402_vm12 = vcmask 130048  }
  0x17   : > { %v266_v5 = vand.u32 127, %v265_v2  ;;  %575 = vmatprep.subr.bf16.mxu1 %v1205_v3  ;;  %1167 = vset.pattern.permute.xlu0 %v1205_v3  ;;  %s1208_s11 = smov 6   ;;  %s1209_s12 = smov 127   ;;  %v1172_v47 = vld [vmem:[%s1564_s1] ss:$8 sps:$4 sm:$0xff]   ;;  %vm447_vm13 = vcmask 31744  }
  0x18   : > { %1168 = vset.pattern.permute.xlu1 %v1205_v3  ;;  %s1210_s13 = smov 126   ;;  %s1211_s14 = smov 125   ;;  %1088 = vmatprep.mubr.msk.bf16.mxu0 %vm402_vm12, %v1174_v38  ;;  %vm813_vm14 = vcmask 719872   ;;  %vm775_vm15 = vcmask 1043456   ;;  %vm1015_vm0 = vcmask 27648  }
  0x19   : > { %v271_v6 = vand.u32 1, %v266_v5  ;;  %s1212_s15 = smov 124   ;;  %s1213_s16 = smov 123  }
  0x1a   : > { %289 = vrot.lane.b32.xlu0 %v1271_v4, %s1204_s8  ;;  %s1214_s17 = smov 122  }
  0x1b   : > { %vm280_vm2 = vcmp.lt.s32.totalorder %v271_v6, 1  ;;  %vm279_vm3 = vcmp.gt.s32.totalorder %v271_v6, 0 }
  0x1c   : > { %vm305_vm4 = vmpackc.low %vm280_vm2, %vm280_vm2 }
  0x1d   : > { %v306_v7 = vsel %vm305_vm4, 65537, %v1205_v3  ;;  %vm1279_vm5 = vmpackc.low %vm279_vm3, %vm279_vm3 }
  0x1e   : > { %318 = vrot.lane.b32.xlu0 %v306_v7, %s1206_s9  ;;  %307 = vrot.lane.b32.xlu1 %v306_v7, %s1207_s10  ;;  %v312_v9 = vsel %vm1279_vm5, 65537, %v1205_v3 }
  0x22   : > { %328 = vrot.lane.b32.xlu0 %v306_v7, %s1208_s11  ;;  %313 = vrot.lane.b32.xlu1 %v312_v9, %s1207_s10 }
  0x26   : > { %323 = vrot.lane.b32.xlu1 %v312_v9, %s1206_s9 }
  0x88   : > { %v288_v10 = vpop.permute.xlu0 %287 }
  0x89   : > { %294 = vst.msk [vmem:[#allocation2] sm:$0xf] %vm293_vm6, %v288_v10 }
  0x8c   : > { %v290_v11 = vpop.permute.xlu0 %289 }
  0x8d   : > { %295 = vst.msk [vmem:[#allocation2 + $0x4] sm:$0xf] %vm293_vm6, %v290_v11 }
  0x90   : > { %v1288_v12 = vpop.permute.xlu1 %307  ;;  %v296_v13 = vld [vmem:[#allocation2] sm:$0xf]  ;;  %v1291_v14 = vpop.permute.xlu0 %318 }
  0x91   : > { %vm309_vm7 = vcmp.ne.s16.totalorder %v1288_v12, 0  ;;  %v301_v17 = vsel %vm1279_vm5, %v296_v13, 0  ;;  %vm320_vm9 = vcmp.ne.s16.totalorder %v1291_v14, 0  ;;  %v863_v14 = vld [vmem:[%s1568_s5] sm:$0xff] }
  0x92   : > { %v310_v19 = vsel %vm309_vm7, %v296_v13, 0  ;;  %v321_v32 = vsel %vm320_vm9, %v296_v13, 0 }
  0x94   : > { %v1293_v15 = vpop.permute.xlu1 %313  ;;  %v297_v16 = vld [vmem:[#allocation2 + $0x4] sm:$0xf]  ;;  %v1313_v27 = vpop.permute.xlu0 %328 }
  0x95   : > { %vm315_vm8 = vcmp.ne.s16.totalorder %v1293_v15, 0  ;;  %v1080_v18 = vcombine.low %v296_v13, %v297_v16  ;;  %v311_v20 = vsel %vm309_vm7, %v297_v16, 0  ;;  %v302_v22 = vsel %vm1279_vm5, %v297_v16, 0 }
  0x96   : > { %v1081_v21 = vcombine.low %v310_v19, %v311_v20  ;;  %v316_v23 = vsel %vm315_vm8, %v296_v13, 0  ;;  %v317_v24 = vsel %vm315_vm8, %v297_v16, 0  ;;  %v1079_v25 = vcombine.low %v301_v17, %v302_v22 }
  0x97   : > { %344 = vrot.lane.b32.xlu1 %v1080_v18, %s1209_s12  ;;  %v1082_v28 = vcombine.low %v316_v23, %v317_v24  ;;  %v322_v29 = vsel %vm320_vm9, %v297_v16, 0  ;;  %vm330_vm11 = vcmp.ne.s16.totalorder %v1313_v27, 0 }
  0x98   : > { %352 = vrot.lane.b32.xlu0 %v1081_v21, %s1210_s13  ;;  %v1310_v26 = vpop.permute.xlu1 %323  ;;  %407 = vmatpush1.bf16.msra.mxu0 %v1079_v25  ;;  %v1083_v33 = vcombine.low %v321_v32, %v322_v29  ;;  %v331_v35 = vsel %vm330_vm11, %v296_v13, 0  ;;  %v332_v36 = vsel %vm330_vm11, %v297_v16, 0 }
  0x99   : > { %vm325_vm10 = vcmp.ne.s16.totalorder %v1310_v26, 0  ;;  %408 = vmatprep.subr.bf16.mxu0 %v1205_v3  ;;  %v1085_v37 = vcombine.low %v331_v35, %v332_v36  ;;  %v1134_v26 = vcombine.high %v863_v14, %v863_v14 }
  0x9a   : > { %v326_v30 = vsel %vm325_vm10, %v296_v13, 0  ;;  %v327_v31 = vsel %vm325_vm10, %v297_v16, 0 }
  0x9b   : > { %360 = vrot.lane.b32.xlu1 %v1082_v28, %s1210_s13  ;;  %v1084_v34 = vcombine.low %v326_v30, %v327_v31 }
  0x9c   : > { %363 = vrot.lane.b32.xlu0 %v1080_v18, %s1211_s14 }
  0x9f   : > { %371 = vrot.lane.b32.xlu1 %v1083_v33, %s1212_s15 }
  0xa0   : > { %379 = vrot.lane.b32.xlu0 %v1084_v34, %s1212_s15 }
  0xa3   : > { %382 = vrot.lane.b32.xlu1 %v1080_v18, %s1213_s16 }
  0xa4   : > { %390 = vrot.lane.b32.xlu0 %v1085_v37, %s1214_s17 }
 0x109   : > { %v345_v39 = vpop.permute.xlu1 %344 }
 0x10a   : > { %409 = vmatpush1.bf16.msra.mxu0 %v345_v39  ;;  %v353_v40 = vpop.permute.xlu0 %352 }
 0x10b   : > { %410 = vmatprep.subr.bf16.mxu0 %v1205_v3 }
 0x10d   : > { %v361_v41 = vpop.permute.xlu1 %360 }
 0x10e   : > { %411 = vmatpush1.bf16.msra.mxu0 %v353_v40  ;;  %v364_v42 = vpop.permute.xlu0 %363 }
 0x10f   : > { %412 = vmatprep.subr.bf16.mxu0 %v1205_v3 }
 0x111   : > { %v372_v43 = vpop.permute.xlu1 %371 }
 0x112   : > { %413 = vmatpush1.bf16.msra.mxu0 %v361_v41  ;;  %v380_v44 = vpop.permute.xlu0 %379 }
 0x113   : > { %414 = vmatprep.subr.bf16.mxu0 %v1205_v3 }
 0x115   : > { %v383_v45 = vpop.permute.xlu1 %382 }
 0x116   : > { %415 = vmatpush1.bf16.msra.mxu0 %v364_v42  ;;  %v391_v46 = vpop.permute.xlu0 %390 }
 0x117   : > { %416 = vmatprep.subr.bf16.mxu0 %v1205_v3 }
 0x11a   : > { %417 = vmatpush1.bf16.msra.mxu0 %v372_v43 }
 0x11b   : > { %418 = vmatprep.subr.bf16.mxu0 %v1205_v3 }
 0x11e   : > { %419 = vmatpush1.bf16.msra.mxu0 %v380_v44 }
 0x11f   : > { %420 = vmatprep.subr.bf16.mxu0 %v1205_v3 }
 0x122   : > { %421 = vmatpush1.bf16.msra.mxu0 %v383_v45 }
 0x123   : > { %422 = vmatprep.subr.bf16.mxu0 %v1205_v3 }
 0x126   : > { %423 = vmatpush1.bf16.msra.mxu0 %v391_v46  ;;  %v477_v46 = vld [vmem:[%s1565_s2] sm:$0xff] }
 0x127   : > { %820 = vmatprep.subr.bf16.mxu0 %v1205_v3 }
 0x129   : > { %439 = vmatmul.mubr.bf16.vlgmr.msra.gmra.mrb[0].mxu0 %v1172_v47  ;;  %v1099_v47 = vcombine.high %v477_v46, %v477_v46 }
 0x12b   : > { %1100 = vmatprep.mubr.msk.bf16.mxu1 %vm402_vm12, %v1099_v47 }
 0x1fc   : > { %v440_v48 = vpop.f32.mrb[0].mxu0 }
 0x1fd   : > { %v442_v49 = vpop.f32.mrb[1].mxu0  ;;  %v448_v50 = vsel %vm447_vm13, %v440_v48, 0.0 }
 0x1fe   : > { %449 = vadd.xlane.f32.xlu1 %v448_v50  ;;  %v443_v51 = vpop.f32.mrb[2].mxu0 }
 0x1ff   : > { %v445_v52 = vpop.f32.mrb[3].mxu0  ;;  %v451_v53 = vsel %vm447_vm13, %v443_v51, 0.0 }
 0x200   : > { %452 = vadd.xlane.f32.xlu0 %v451_v53 }
 0x28b   : > { %v450_v54 = vpop.xlane.xlu1 %449 }
 0x28c   : > { %v455_v55 = vmul.f32 0.25, %v450_v54 }
 0x28d   : > { %v453_v56 = vpop.xlane.xlu0 %452 }
 0x28e   : > { %v457_v57 = vsub.f32 %v440_v48, %v455_v55  ;;  %v456_v58 = vmul.f32 0.25, %v453_v56  ;;  %v1098_v56 = vcombine.low %v477_v46, %v477_v46 }
 0x290   : > { %v458_v59 = vsub.f32 %v443_v51, %v456_v58  ;;  %v459_v60 = vmul.f32 %v457_v57, %v457_v57 }
 0x292   : > { %v461_v61 = vsel %vm447_vm13, %v459_v60, 0.0  ;;  %v460_v62 = vmul.f32 %v458_v59, %v458_v59 }
 0x293   : > { %462 = vadd.xlane.f32.xlu0 %v461_v61 }
 0x294   : > { %v464_v63 = vsel %vm447_vm13, %v460_v62, 0.0  ;;  %v1146_v62 = vcombine.low %v1266_v1, %v1266_v1 }
 0x295   : > { %465 = vadd.xlane.f32.xlu1 %v464_v63  ;;  %v1143_v63 = vcombine.low %v1271_v4, %v1271_v4 }
 0x320   : > { %v463_v0 = vpop.xlane.xlu0 %462 }
 0x321   : > { %v467_v2 = vmul.f32 0.25, %v463_v0 }
 0x322   : > { %v466_v5 = vpop.xlane.xlu1 %465 }
 0x323   : > { %v469_v6 = vadd.f32 1e-05, %v467_v2  ;;  %v468_v7 = vmul.f32 0.25, %v466_v5 }
 0x325   : > { %1187 = vrsqrt.f32 %v469_v6  ;;  %v470_v9 = vadd.f32 1e-05, %v468_v7 }
 0x327   : > { %1189 = vrsqrt.f32 %v470_v9 }
 0x32f   : > { %v1188_v10 = vpop.eup %1187 }
 0x330   : > { %v473_v11 = vmul.f32 %v1188_v10, %v457_v57 }
 0x331   : > { %v1190_v13 = vpop.eup %1189 }
 0x332   : > { %v475_v16 = vmax.f32 %v473_v11, 0.0  ;;  %v474_v17 = vmul.f32 %v1190_v13, %v458_v59 }
 0x334   : > { %v1139_v18 = vpack.c.bf16 %v475_v16, %v475_v16  ;;  %v476_v19 = vmax.f32 %v474_v17, 0.0 }
 0x336   : > { %484 = vrot.lane.b32.xlu0 %v1139_v18, %s1204_s8  ;;  %v1140_v20 = vpack.c.bf16 %v476_v19, %v476_v19 }
 0x338   : > { %486 = vrot.lane.b32.xlu1 %v1140_v20, %s1204_s8 }
 0x3a8   : > { %v485_v21 = vpop.permute.xlu0 %484 }
 0x3a9   : > { %490 = vst.msk [vmem:[#allocation2] sm:$0xf] %vm293_vm6, %v485_v21 }
 0x3aa   : > { %v487_v22 = vpop.permute.xlu1 %486 }
 0x3ab   : > { %491 = vst.msk [vmem:[#allocation2 + $0x4] sm:$0xf] %vm293_vm6, %v487_v22 }
 0x3b0   : > { %v492_v23 = vld [vmem:[#allocation2] sm:$0xf] }
 0x3b1   : > { %v496_v25 = vsel %vm309_vm7, %v492_v23, 0  ;;  %v494_v30 = vsel %vm1279_vm5, %v492_v23, 0  ;;  %v498_v35 = vsel %vm315_vm8, %v492_v23, 0  ;;  %v500_v39 = vsel %vm320_vm9, %v492_v23, 0 }
 0x3b2   : > { %v493_v24 = vld [vmem:[#allocation2 + $0x4] sm:$0xf]  ;;  %v502_v41 = vsel %vm325_vm10, %v492_v23, 0  ;;  %v504_v44 = vsel %vm330_vm11, %v492_v23, 0 }
 0x3b3   : > { %v1092_v28 = vcombine.low %v492_v23, %v493_v24  ;;  %v497_v29 = vsel %vm309_vm7, %v493_v24, 0  ;;  %v495_v31 = vsel %vm1279_vm5, %v493_v24, 0  ;;  %v499_v34 = vsel %vm315_vm8, %v493_v24, 0 }
 0x3b4   : > { %v1093_v32 = vcombine.low %v496_v25, %v497_v29  ;;  %v1091_v33 = vcombine.low %v494_v30, %v495_v31  ;;  %v1094_v36 = vcombine.low %v498_v35, %v499_v34  ;;  %v501_v37 = vsel %vm320_vm9, %v493_v24, 0 }
 0x3b5   : > { %517 = vrot.lane.b32.xlu1 %v1092_v28, %s1209_s12  ;;  %v503_v38 = vsel %vm325_vm10, %v493_v24, 0  ;;  %v1095_v40 = vcombine.low %v500_v39, %v501_v37  ;;  %v505_v43 = vsel %vm330_vm11, %v493_v24, 0 }
 0x3b6   : > { %525 = vrot.lane.b32.xlu0 %v1093_v32, %s1210_s13  ;;  %576 = vmatpush1.bf16.msra.mxu1 %v1091_v33  ;;  %v1096_v42 = vcombine.low %v502_v41, %v503_v38  ;;  %v1097_v45 = vcombine.low %v504_v44, %v505_v43 }
 0x3b7   : > { %577 = vmatprep.subr.bf16.mxu1 %v1205_v3 }
 0x3b9   : > { %533 = vrot.lane.b32.xlu1 %v1094_v36, %s1210_s13 }
 0x3ba   : > { %536 = vrot.lane.b32.xlu0 %v1092_v28, %s1211_s14 }
 0x3bd   : > { %544 = vrot.lane.b32.xlu1 %v1095_v40, %s1212_s15 }
 0x3be   : > { %552 = vrot.lane.b32.xlu0 %v1096_v42, %s1212_s15 }
 0x3c1   : > { %555 = vrot.lane.b32.xlu1 %v1092_v28, %s1213_s16 }
 0x3c2   : > { %563 = vrot.lane.b32.xlu0 %v1097_v45, %s1214_s17 }
 0x427   : > { %v518_v48 = vpop.permute.xlu1 %517 }
 0x428   : > { %578 = vmatpush1.bf16.msra.mxu1 %v518_v48  ;;  %v526_v49 = vpop.permute.xlu0 %525 }
 0x429   : > { %579 = vmatprep.subr.bf16.mxu1 %v1205_v3 }
 0x42b   : > { %v534_v50 = vpop.permute.xlu1 %533 }
 0x42c   : > { %580 = vmatpush1.bf16.msra.mxu1 %v526_v49  ;;  %v537_v51 = vpop.permute.xlu0 %536 }
 0x42d   : > { %581 = vmatprep.subr.bf16.mxu1 %v1205_v3 }
 0x42f   : > { %v545_v52 = vpop.permute.xlu1 %544 }
 0x430   : > { %582 = vmatpush1.bf16.msra.mxu1 %v534_v50  ;;  %v553_v53 = vpop.permute.xlu0 %552 }
 0x431   : > { %583 = vmatprep.subr.bf16.mxu1 %v1205_v3 }
 0x433   : > { %v556_v54 = vpop.permute.xlu1 %555 }
 0x434   : > { %584 = vmatpush1.bf16.msra.mxu1 %v537_v51  ;;  %v564_v55 = vpop.permute.xlu0 %563 }
 0x435   : > { %585 = vmatprep.subr.bf16.mxu1 %v1205_v3 }
 0x438   : > { %586 = vmatpush1.bf16.msra.mxu1 %v545_v52 }
 0x439   : > { %587 = vmatprep.subr.bf16.mxu1 %v1205_v3 }
 0x43c   : > { %588 = vmatpush1.bf16.msra.mxu1 %v553_v53 }
 0x43d   : > { %589 = vmatprep.subr.bf16.mxu1 %v1205_v3 }
 0x440   : > { %590 = vmatpush1.bf16.msra.mxu1 %v556_v54 }
 0x441   : > { %591 = vmatprep.subr.bf16.mxu1 %v1205_v3 }
 0x444   : > { %592 = vmatpush1.bf16.msra.mxu1 %v564_v55 }
 0x445   : > { %961 = vmatprep.subr.bf16.mxu1 %v1205_v3 }
 0x447   : > { %608 = vmatmul.mubr.bf16.vlgmr.msra.gmra.mrb[0].mxu1 %v1098_v56 }
 0x448   : > { %1135 = vmatprep.mubr.msk.bf16.mxu1 %vm402_vm12, %v1134_v26 }
 0x51a   : > { %v609_v57 = vpop.f32.mrb[0].mxu1 }
 0x51b   : > { %v611_v58 = vpop.f32.mrb[1].mxu1  ;;  %v615_v59 = vsel %vm447_vm13, %v609_v57, 0.0 }
 0x51c   : > { %616 = vadd.xlane.f32.xlu1 %v615_v59  ;;  %v612_v60 = vpop.f32.mrb[2].mxu1  ;;  %v792_v58 = vld [vmem:[%s1567_s4] sm:$0xff]  ;;  %v793_v59 = vld [vmem:[%s1567_s4 + $0x8] sm:$0xff] }
 0x51d   : > { %v613_v61 = vpop.f32.mrb[3].mxu1 }
 0x52d   : > { %645 = vrot.lane.b32.xlu1 %v1146_v62, %s1204_s8 }
 0x531   : > { %647 = vrot.lane.b32.xlu1 %v1143_v63, %s1204_s8 }
 0x5a9   : > { %v617_v0 = vpop.xlane.xlu1 %616 }
 0x5aa   : > { %v618_v2 = vmul.f32 0.25, %v617_v0 }
 0x5ac   : > { %v619_v5 = vsub.f32 %v609_v57, %v618_v2  ;;  %v1181_v57 = vld [vmem:[%s1566_s3 + $0x4] ss:$8 sps:$4 sm:$0xff]  }
 0x5ad   : > { %v646_v6 = vpop.permute.xlu1 %645  ;;  %1123 = vmatprep.mubr.msk.bf16.mxu0 %vm813_vm14, %v1181_v57 }
 0x5ae   : > { %653 = vst.msk [vmem:[#allocation2 + $0x4] sm:$0xf] %vm293_vm6, %v646_v6  ;;  %v620_v7 = vmul.f32 %v619_v5, %v619_v5 }
 0x5b0   : > { %v621_v9 = vsel %vm447_vm13, %v620_v7, 0.0 }
 0x5b1   : > { %622 = vadd.xlane.f32.xlu0 %v621_v9  ;;  %v648_v10 = vpop.permute.xlu1 %647 }
 0x5b2   : > { %654 = vst.msk [vmem:[#allocation2 + $0x8] sm:$0xf] %vm293_vm6, %v648_v10 }
 0x5b5   : > { %v656_v1 = vld [vmem:[#allocation2 + $0x4] sm:$0xf] }
 0x5b6   : > { %v665_v18 = vsel %vm315_vm8, %v656_v1, 0  ;;  %v668_v22 = vsel %vm320_vm9, %v656_v1, 0  ;;  %v659_v38 = vsel %vm1279_vm5, %v656_v1, 0  ;;  %v662_v44 = vsel %vm309_vm7, %v656_v1, 0 }
 0x5b7   : > { %v671_v52 = vsel %vm325_vm10, %v656_v1, 0  ;;  %v674_v55 = vsel %vm330_vm11, %v656_v1, 0 }
 0x5b9   : > { %v1414_v11 = vld [vmem:[#allocation2 + $0x8] sm:$0xf] }
 0x5ba   : > { %v1108_v4 = vcombine.low %v656_v1, %v1414_v11  ;;  %v663_v13 = vsel %vm309_vm7, %v1414_v11, 0  ;;  %v666_v17 = vsel %vm315_vm8, %v1414_v11, 0  ;;  %v1114_v20 = vcombine.low %v1414_v11, %v1414_v11 }
 0x5bb   : > { %v1110_v16 = vcombine.low %v663_v13, %v663_v13  ;;  %v1112_v19 = vcombine.low %v665_v18, %v666_v17  ;;  %v669_v21 = vsel %vm320_vm9, %v1414_v11, 0  ;;  %v672_v24 = vsel %vm325_vm10, %v1414_v11, 0 }
 0x5bc   : > { %695 = vrot.lane.b32.xlu1 %v1108_v4, %s1209_s12  ;;  %v1116_v23 = vcombine.low %v668_v22, %v669_v21  ;;  %v1118_v25 = vcombine.low %v672_v24, %v672_v24  ;;  %v675_v28 = vsel %vm330_vm11, %v1414_v11, 0  ;;  %v660_v60 = vsel %vm1279_vm5, %v1414_v11, 0  ;;  %v1183_v24 = vld [vmem:[%s1566_s3] ss:$8 sps:$4 sm:$0xff]  }
 0x5bd   : > { %v1120_v29 = vcombine.low %v675_v28, %v675_v28  ;;  %v1106_v61 = vcombine.low %v660_v60, %v660_v60 }
 0x5c0   : > { %708 = vrot.lane.b32.xlu1 %v1110_v16, %s1210_s13 }
 0x5c4   : > { %721 = vrot.lane.b32.xlu1 %v1112_v19, %s1210_s13 }
 0x5c8   : > { %728 = vrot.lane.b32.xlu1 %v1114_v20, %s1211_s14 }
 0x5cc   : > { %741 = vrot.lane.b32.xlu1 %v1116_v23, %s1212_s15 }
 0x5d0   : > { %754 = vrot.lane.b32.xlu1 %v1118_v25, %s1212_s15 }
 0x5d4   : > { %759 = vrot.lane.b32.xlu1 %v1108_v4, %s1213_s16 }
 0x5d8   : > { %772 = vrot.lane.b32.xlu1 %v1120_v29, %s1214_s17 }
 0x5dc   : > { %801 = vperm.xlu1 %1168, %v793_v59  }
 0x62e   : > { %v696_v0 = vpop.permute.xlu1 %695 }
 0x63e   : > { %v623_v30 = vpop.xlane.xlu0 %622 }
 0x63f   : > { %v624_v31 = vmul.f32 0.25, %v623_v30 }
 0x641   : > { %v625_v32 = vadd.f32 1e-05, %v624_v31 }
 0x643   : > { %1191 = vrsqrt.f32 %v625_v32 }
 0x64d   : > { %v1192_v33 = vpop.eup %1191 }
 0x64e   : > { %v627_v34 = vmul.f32 %v1192_v33, %v619_v5  ;;  %v709_v5 = vpop.permute.xlu1 %708 }
 0x650   : > { %v628_v35 = vmax.f32 %v627_v34, 0.0 }
 0x652   : > { %v1141_v36 = vpack.c.bf16 %v628_v35, %v628_v35  ;;  %v722_v9 = vpop.permute.xlu1 %721 }
 0x654   : > { %643 = vrot.lane.b32.xlu0 %v1141_v36, %s1204_s8 }
 0x6c6   : > { %v644_v37 = vpop.permute.xlu0 %643 }
 0x6c7   : > { %652 = vst.msk [vmem:[#allocation2] sm:$0xf] %vm293_vm6, %v644_v37 }
 0x6ce   : > { %v655_v39 = vld [vmem:[#allocation2] sm:$0xf] }
 0x6cf   : > { %v1107_v40 = vcombine.low %v655_v39, %v655_v39  ;;  %v658_v41 = vsel %vm1279_vm5, %v655_v39, 0  ;;  %v661_v43 = vsel %vm309_vm7, %v655_v39, 0  ;;  %v664_v46 = vsel %vm315_vm8, %v655_v39, 0 }
 0x6d0   : > { %v1105_v42 = vcombine.low %v658_v41, %v659_v38  ;;  %v1109_v45 = vcombine.low %v661_v43, %v662_v44  ;;  %v1111_v47 = vcombine.low %v664_v46, %v664_v46  ;;  %v1113_v48 = vcombine.low %v655_v39, %v656_v1  ;;  %v729_v1 = vpop.permute.xlu1 %728 }
 0x6d1   : > { %693 = vrot.lane.b32.xlu0 %v1107_v40, %s1209_s12  ;;  %v667_v49 = vsel %vm320_vm9, %v655_v39, 0  ;;  %v670_v51 = vsel %vm325_vm10, %v655_v39, 0  ;;  %v673_v54 = vsel %vm330_vm11, %v655_v39, 0 }
 0x6d2   : > { %821 = vmatpush1.bf16.msra.mxu0 %v1105_v42  ;;  %v1115_v50 = vcombine.low %v667_v49, %v667_v49  ;;  %v1117_v53 = vcombine.low %v670_v51, %v671_v52  ;;  %v1119_v56 = vcombine.low %v673_v54, %v674_v55 }
 0x6d3   : > { %822 = vmatprep.subr.bf16.mxu0 %v1205_v3 }
 0x6d4   : > { %v742_v13 = vpop.permute.xlu1 %741 }
 0x6d5   : > { %706 = vrot.lane.b32.xlu0 %v1109_v45, %s1210_s13 }
 0x6d8   : > { %v755_v17 = vpop.permute.xlu1 %754 }
 0x6d9   : > { %719 = vrot.lane.b32.xlu0 %v1111_v47, %s1210_s13 }
 0x6dc   : > { %v760_v20 = vpop.permute.xlu1 %759 }
 0x6dd   : > { %726 = vrot.lane.b32.xlu0 %v1113_v48, %s1211_s14 }
 0x6e0   : > { %v773_v22 = vpop.permute.xlu1 %772 }
 0x6e1   : > { %739 = vrot.lane.b32.xlu0 %v1115_v50, %s1212_s15  ;;  %v818_v23 = vsel %vm775_vm15, %v773_v22, 0 }
 0x6e4   : > { %v802_v29 = vpop.permute.xlu1 %801 }
 0x6e5   : > { %752 = vrot.lane.b32.xlu0 %v1117_v53, %s1212_s15 }
 0x6e9   : > { %757 = vrot.lane.b32.xlu0 %v1107_v40, %s1213_s16 }
 0x6ed   : > { %770 = vrot.lane.b32.xlu0 %v1119_v56, %s1214_s17 }
 0x6f1   : > { %796 = vperm.xlu0 %1167, %v792_v58  }
 0x743   : > { %v694_v62 = vpop.permute.xlu0 %693 }
 0x744   : > { %v778_v63 = vsel %vm775_vm15, %v1106_v61, %v694_v62 }
 0x745   : > { %823 = vmatpush1.bf16.msra.mxu0 %v778_v63 }
 0x746   : > { %824 = vmatprep.subr.bf16.mxu0 %v1205_v3 }
 0x747   : > { %v707_v2 = vpop.permute.xlu0 %706 }
 0x749   : > { %825 = vmatpush1.bf16.msra.mxu0 %v696_v0 }
 0x74a   : > { %826 = vmatprep.subr.bf16.mxu0 %v1205_v3 }
 0x74b   : > { %v720_v6 = vpop.permute.xlu0 %719 }
 0x74c   : > { %v782_v7 = vsel %vm775_vm15, %v709_v5, %v720_v6  ;;  %v1133_v5 = vcombine.low %v863_v14, %v863_v14 }
 0x74d   : > { %827 = vmatpush1.bf16.msra.mxu0 %v707_v2 }
 0x74e   : > { %828 = vmatprep.subr.bf16.mxu0 %v1205_v3 }
 0x74f   : > { %v727_v10 = vpop.permute.xlu0 %726 }
 0x751   : > { %829 = vmatpush1.bf16.msra.mxu0 %v782_v7 }
 0x752   : > { %830 = vmatprep.subr.bf16.mxu0 %v1205_v3 }
 0x753   : > { %v740_v11 = vpop.permute.xlu0 %739 }
 0x754   : > { %v786_v4 = vsel %vm775_vm15, %v729_v1, %v740_v11 }
 0x755   : > { %831 = vmatpush1.bf16.msra.mxu0 %v722_v9 }
 0x756   : > { %832 = vmatprep.subr.bf16.mxu0 %v1205_v3 }
 0x757   : > { %v753_v16 = vpop.permute.xlu0 %752 }
 0x759   : > { %833 = vmatpush1.bf16.msra.mxu0 %v727_v10 }
 0x75a   : > { %834 = vmatprep.subr.bf16.mxu0 %v1205_v3 }
 0x75b   : > { %v758_v18 = vpop.permute.xlu0 %757 }
 0x75c   : > { %v790_v19 = vsel %vm775_vm15, %v755_v17, %v758_v18 }
 0x75d   : > { %835 = vmatpush1.bf16.msra.mxu0 %v786_v4 }
 0x75e   : > { %836 = vmatprep.subr.bf16.mxu0 %v1205_v3 }
 0x75f   : > { %v771_v21 = vpop.permute.xlu0 %770 }
 0x761   : > { %837 = vmatpush1.bf16.msra.mxu0 %v742_v13 }
 0x762   : > { %838 = vmatprep.subr.bf16.mxu0 %v1205_v3 }
 0x765   : > { %839 = vmatpush1.bf16.msra.mxu0 %v753_v16 }
 0x766   : > { %840 = vmatprep.subr.bf16.mxu0 %v1205_v3 }
 0x769   : > { %841 = vmatpush1.bf16.msra.mxu0 %v790_v19 }
 0x76a   : > { %842 = vmatprep.subr.bf16.mxu0 %v1205_v3 }
 0x76d   : > { %843 = vmatpush1.bf16.msra.mxu0 %v760_v20 }
 0x76e   : > { %844 = vmatprep.subr.bf16.mxu0 %v1205_v3 }
 0x770   : > { %v797_v25 = vpop.permute.xlu0 %796 }
 0x771   : > { %845 = vmatpush1.bf16.msra.mxu0 %v771_v21 }
 0x772   : > { %846 = vmatprep.subr.bf16.mxu0 %v1205_v3 }
 0x775   : > { %847 = vmatpush1.bf16.msra.mxu0 %v818_v23 }
 0x778   : > { %853 = vmatmul.mubr.bf16.vlgmr.msra.gmra.mrb[4].mxu0 %v1183_v24 }
 0x84b   : > { %v854_v28 = vpop.f32.mrb[4].mxu0 }
 0x84c   : > { %v855_v30 = vadd.f32 %v854_v28, %v797_v25  ;;  %v856_v31 = vpop.f32.mrb[5].mxu0 }
 0x84d   : > { %v857_v32 = vpop.f32.mrb[6].mxu0 }
 0x84e   : > { %v861_v33 = vmax.f32 %v855_v30, 0.0  ;;  %v858_v34 = vadd.f32 %v857_v32, %v802_v29  ;;  %v859_v35 = vpop.f32.mrb[7].mxu0 }
 0x850   : > { %v1144_v36 = vpack.c.bf16 %v861_v33, %v861_v33  ;;  %v862_v37 = vmax.f32 %v858_v34, 0.0 }
 0x852   : > { %v1145_v38 = vpack.c.bf16 %v862_v37, %v862_v37  ;;  %870 = vrot.lane.b32.xlu1 %v1144_v36, %s1204_s8 }
 0x854   : > { %872 = vrot.lane.b32.xlu0 %v1145_v38, %s1204_s8 }
 0x8c4   : > { %v871_v39 = vpop.permute.xlu1 %870 }
 0x8c5   : > { %876 = vst.msk [vmem:[#allocation2] sm:$0xf] %vm293_vm6, %v871_v39 }
 0x8c6   : > { %v873_v40 = vpop.permute.xlu0 %872 }
 0x8c7   : > { %877 = vst.msk [vmem:[#allocation2 + $0x4] sm:$0xf] %vm293_vm6, %v873_v40 }
 0x8cc   : > { %v878_v41 = vld [vmem:[#allocation2] sm:$0xf] }
 0x8cd   : > { %v882_v43 = vsel %vm309_vm7, %v878_v41, 0  ;;  %v880_v46 = vsel %vm1279_vm5, %v878_v41, 0  ;;  %v884_v12 = vsel %vm315_vm8, %v878_v41, 0  ;;  %v886_v53 = vsel %vm320_vm9, %v878_v41, 0 }
 0x8ce   : > { %v879_v42 = vld [vmem:[#allocation2 + $0x4] sm:$0xf]  ;;  %v888_v15 = vsel %vm325_vm10, %v878_v41, 0  ;;  %v890_v57 = vsel %vm330_vm11, %v878_v41, 0 }
 0x8cf   : > { %v1127_v44 = vcombine.low %v878_v41, %v879_v42  ;;  %v883_v45 = vsel %vm309_vm7, %v879_v42, 0  ;;  %v881_v47 = vsel %vm1279_vm5, %v879_v42, 0  ;;  %v885_v50 = vsel %vm315_vm8, %v879_v42, 0 }
 0x8d0   : > { %v1128_v48 = vcombine.low %v882_v43, %v883_v45  ;;  %v1126_v49 = vcombine.low %v880_v46, %v881_v47  ;;  %v1129_v51 = vcombine.low %v884_v12, %v885_v50  ;;  %v887_v8 = vsel %vm320_vm9, %v879_v42, 0 }
 0x8d1   : > { %903 = vrot.lane.b32.xlu1 %v1127_v44, %s1209_s12  ;;  %v889_v52 = vsel %vm325_vm10, %v879_v42, 0  ;;  %v1130_v54 = vcombine.low %v886_v53, %v887_v8  ;;  %v891_v56 = vsel %vm330_vm11, %v879_v42, 0 }
 0x8d2   : > { %911 = vrot.lane.b32.xlu0 %v1128_v48, %s1210_s13  ;;  %962 = vmatpush1.bf16.msra.mxu1 %v1126_v49  ;;  %v1131_v55 = vcombine.low %v888_v15, %v889_v52  ;;  %v1132_v58 = vcombine.low %v890_v57, %v891_v56 }
 0x8d3   : > { %963 = vmatprep.subr.bf16.mxu1 %v1205_v3 }
 0x8d5   : > { %919 = vrot.lane.b32.xlu1 %v1129_v51, %s1210_s13 }
 0x8d6   : > { %922 = vrot.lane.b32.xlu0 %v1127_v44, %s1211_s14 }
 0x8d9   : > { %930 = vrot.lane.b32.xlu1 %v1130_v54, %s1212_s15 }
 0x8da   : > { %938 = vrot.lane.b32.xlu0 %v1131_v55, %s1212_s15 }
 0x8dd   : > { %941 = vrot.lane.b32.xlu1 %v1127_v44, %s1213_s16 }
 0x8de   : > { %949 = vrot.lane.b32.xlu0 %v1132_v58, %s1214_s17 }
 0x943   : > { %v904_v59 = vpop.permute.xlu1 %903 }
 0x944   : > { %964 = vmatpush1.bf16.msra.mxu1 %v904_v59  ;;  %v912_v60 = vpop.permute.xlu0 %911 }
 0x945   : > { %965 = vmatprep.subr.bf16.mxu1 %v1205_v3 }
 0x947   : > { %v920_v27 = vpop.permute.xlu1 %919 }
 0x948   : > { %966 = vmatpush1.bf16.msra.mxu1 %v912_v60  ;;  %v923_v61 = vpop.permute.xlu0 %922 }
 0x949   : > { %967 = vmatprep.subr.bf16.mxu1 %v1205_v3 }
 0x94b   : > { %v931_v62 = vpop.permute.xlu1 %930 }
 0x94c   : > { %968 = vmatpush1.bf16.msra.mxu1 %v920_v27  ;;  %v939_v63 = vpop.permute.xlu0 %938 }
 0x94d   : > { %969 = vmatprep.subr.bf16.mxu1 %v1205_v3 }
 0x94f   : > { %v942_v0 = vpop.permute.xlu1 %941 }
 0x950   : > { %970 = vmatpush1.bf16.msra.mxu1 %v923_v61  ;;  %v950_v2 = vpop.permute.xlu0 %949 }
 0x951   : > { %971 = vmatprep.subr.bf16.mxu1 %v1205_v3 }
 0x954   : > { %972 = vmatpush1.bf16.msra.mxu1 %v931_v62 }
 0x955   : > { %973 = vmatprep.subr.bf16.mxu1 %v1205_v3 }
 0x958   : > { %974 = vmatpush1.bf16.msra.mxu1 %v939_v63 }
 0x959   : > { %975 = vmatprep.subr.bf16.mxu1 %v1205_v3 }
 0x95c   : > { %976 = vmatpush1.bf16.msra.mxu1 %v942_v0 }
 0x95d   : > { %977 = vmatprep.subr.bf16.mxu1 %v1205_v3 }
 0x960   : > { %978 = vmatpush1.bf16.msra.mxu1 %v950_v2 }
 0x963   : > { %994 = vmatmul.mubr.bf16.vlgmr.msra.gmra.mrb[4].mxu1 %v1133_v5 }
 0xa36   : > { %v995_v6 = vpop.f32.mrb[4].mxu1 }
 0xa37   : > { %v997_v7 = vpop.f32.mrb[5].mxu1  ;;  %v1001_v9 = vsel %vm447_vm13, %v995_v6, 0.0 }
 0xa38   : > { %1002 = vadd.xlane.f32.xlu1 %v1001_v9  ;;  %v998_v10 = vpop.f32.mrb[6].mxu1 }
 0xa39   : > { %v999_v1 = vpop.f32.mrb[7].mxu1 }
 0xac5   : > { %v1003_v11 = vpop.xlane.xlu1 %1002 }
 0xac6   : > { %v1004_v4 = vmul.f32 0.25, %v1003_v11 }
 0xac8   : > { %v1005_v13 = vsub.f32 %v995_v6, %v1004_v4 }
 0xaca   : > { %v1006_v16 = vmul.f32 %v1005_v13, %v1005_v13 }
 0xacc   : > { %v1007_v17 = vsel %vm447_vm13, %v1006_v16, 0.0 }
 0xacd   : > { %1008 = vadd.xlane.f32.xlu0 %v1007_v17 }
 0xb5a   : > { %v1009_v3 = vpop.xlane.xlu0 %1008 }
 0xb5b   : > { %v1010_v18 = vmul.f32 0.25, %v1009_v3 }
 0xb5d   : > { %v1011_v19 = vadd.f32 1e-05, %v1010_v18 }
 0xb5f   : > { %1193 = vrsqrt.f32 %v1011_v19 }
 0xb69   : > { %v1194_v20 = vpop.eup %1193 }
 0xb6a   : > { %v1013_v21 = vmul.f32 %v1194_v20, %v1005_v13 }
 0xb6c   : > { %v1014_v22 = vpack.c.bf16 %v1013_v21, %v1013_v21 }
 0xb6e   : > { %1016 = vst.msk [vmem:[%s1264_s7] sm:$0xf] %vm1015_vm0, %v1014_v22 }
 0xb6f PF: > { %s16_s21 = sadd.s32 1, %s1201_s21  }
 0xb70   : > { %p13_p5 = scmp.ge.s32.totalorder %s16_s21, 4  }
 0xb72   :  { %15 = sbr.rel (!%p13_p5) target bundleno = 1 (0x1), region = 78 }

// kernel: unet_forward.24
= control target key start
LH: loop header
LB: loop body
LE: loop exit
PB: predicated region body
PF: predicated region fallthrough
CT: control target
= control target key end

     0   :  { %s536_s9 = smov 0   ;;  %s623_s0 = inlined_call_operand.vmem [shape: bf16[2,32,4], index: 0, kind: input, shape index: {}]   ;;  %s624_s1 = inlined_call_operand.vmem [shape: bf16[4,8], index: 1, kind: input, shape index: {}]   ;;  %s625_s2 = inlined_call_operand.vmem [shape: bf16[2,32,16], index: 2, kind: output, shape index: {}]  }
   0x1 LB: > { %s456_s10 = sadd.s32 4294967295, %s518_s9   ;;  %p460_p0 = scmp.ge.s32.totalorder %s518_s9, 1  ;;  %s518_s9 = sphi %s536_s9, %s12_s9  }
   0x2   : > { %p112_p1 = scmp.lt.s32.totalorder %s518_s9, 3 }
   0x4   : > { %p113_p2 = pnand %p460_p0, %p112_p1 }
   0x5   : > { %v149_v0 = vld [vmem:[%s624_s1] sm:$0x3] (!%p113_p2)  ;;  %vm167_vm0 = vcmask (!%p113_p2), 1041408   ;;  %p134_p3 = scmp.lt.s32.totalorder (!%p113_p2), %s456_s10, 1  ;;  %vm160_vm1 = vcmask (!%p113_p2), 31744   ;;  %v220_v4 = vlaneseq (!%p113_p2)  ;;  %vm277_vm2 = vcmask (!%p113_p2), 1040384  }
   0x6   : > { %116 = sbr.rel (%p113_p2) target bundleno = 370 (0x172), region = 28  ;;  %490 = vmatprep.subr.msk.bf16.mxu0 (!%p113_p2), %vm167_vm0, %v149_v0  ;;  %v169_v1 = vsel (!%p113_p2), %vm167_vm0, %v149_v0, 0  ;;  %vm306_vm4 = vcmask (!%p113_p2), 1046528   ;;  %s520_s17 = smov (!%p113_p2), 8   ;;  %vm371_vm12 = vcmask (!%p113_p2), 64512   ;;  %vm396_vm13 = vcmask (!%p113_p2), 125952  }
   0x7   : > { %485 = vmatpush3.bf16.msra.mxu0 (!%p113_p2), %v169_v1  ;;  %v221_v5 = vshrl.u32 (!%p113_p2), %v220_v4, 7 }
   0x9   : > { %v222_v6 = vadd.s32 (!%p113_p2), 8, %v221_v5  ;;  %v223_v7 = vadd.s32 (!%p113_p2), 16, %v221_v5  ;;  %v224_v8 = vadd.s32 (!%p113_p2), 24, %v221_v5  ;;  %v229_v9 = vand.u32 (!%p113_p2), 3, %v221_v5 }
   0xb   : > { %v236_v10 = vand.u32 (!%p113_p2), 3, %v222_v6  ;;  %v243_v11 = vand.u32 (!%p113_p2), 3, %v223_v7  ;;  %v250_v12 = vand.u32 (!%p113_p2), 3, %v224_v8  ;;  %vm555_vm3 = vcmp.eq.s32.totalorder (!%p113_p2), %v229_v9, 0 }
   0xc   : > { %vm563_vm6 = vcmp.eq.s32.totalorder (!%p113_p2), %v229_v9, 3 }
   0xd   : > { %s643_s10 = smov (!%p134_p3, %s456_s10), 1  ;;  %vm559_vm5 = vcmp.eq.s32.totalorder %v236_v10, 0  ;;  %vm567_vm7 = vcmp.eq.s32.totalorder %v236_v10, 3  ;;  %vm571_vm8 = vcmp.eq.s32.totalorder %v243_v11, 3  ;;  %vm575_vm9 = vcmp.eq.s32.totalorder %v250_v12, 3 }
   0xe   : > { %s475_s13 = sshll.u32 %s643_s10, 4  ;;  %vm579_vm10 = vcmp.eq.s32.totalorder %v243_v11, 0  ;;  %vm583_vm11 = vcmp.eq.s32.totalorder %v250_v12, 0 }
   0xf   : > { %s138_s16 = scalar_lea.vmem %s623_s0, %s475_s13  ;;  %s143_s20 = scalar_lea.vmem %s625_s2, %s475_s13 }
  0x10   : > { %v510_v2 = vld [vmem:[%s138_s16] sm:$0xff]   ;;  %v511_v3 = vld [vmem:[%s138_s16 + $0x8] sm:$0xff]  }
  0x11   : > { %486 = vmatprep.mubr.msk.bf16.mxu0 %vm160_vm1, %v510_v2 }
  0x12   : > { %487 = vmatmul.mubr.msk.bf16.vlgmr.msra.gmra.mrb[0].mxu0 %vm160_vm1, %v511_v3 }
  0xe5   : > { %v488_v14 = vpop.f32.mrb[0].mxu0 }
  0xe6   : > { %v281_v19 = vrot.slane %v488_v14, 7  ;;  %v205_v20 = vpop.f32.mrb[1].mxu0  ;;  %v310_v24 = vrot.slane %v488_v14, 1  ;;  %v337_v28 = vmul.f32 0.75, %v488_v14 }
  0xe7   : > { %v278_v25 = vrot.slane %v205_v20, 7  ;;  %v307_v26 = vrot.slane %v205_v20, 1  ;;  %v489_v27 = vpop.f32.mrb[2].mxu0  ;;  %v335_v32 = vmul.f32 0.75, %v205_v20 }
  0xe8   : > { %v283_v29 = vrot.slane %v489_v27, 7  ;;  %v312_v30 = vrot.slane %v489_v27, 1  ;;  %v208_v31 = vpop.f32.mrb[3].mxu0  ;;  %v338_v33 = vmul.f32 0.75, %v489_v27 }
  0xe9   : > { %v289_v34 = vsel %vm277_vm2, %v205_v20, %v278_v25  ;;  %v279_v35 = vrot.slane %v208_v31, 7  ;;  %v308_v36 = vrot.slane %v208_v31, 1  ;;  %v336_v37 = vmul.f32 0.75, %v208_v31 }
  0xea   : > { %v302_v38 = vsel %vm555_vm3, %v205_v20, %v289_v34  ;;  %v313_v39 = vsel %vm306_vm4, %v310_v24, %v312_v30  ;;  %v318_v40 = vsel %vm306_vm4, %v312_v30, %v489_v27  ;;  %v284_v41 = vsel %vm277_vm2, %v281_v19, %v283_v29 }
  0xeb   : > { %v280_v42 = vsel %vm277_vm2, %v278_v25, %v279_v35  ;;  %v282_v43 = vsel %vm277_vm2, %v279_v35, %v281_v19  ;;  %v309_v44 = vsel %vm306_vm4, %v307_v26, %v308_v36  ;;  %v311_v45 = vsel %vm306_vm4, %v308_v36, %v310_v24 }
  0xec   : > { %v303_v46 = vsel %vm559_vm5, %v208_v31, %v280_v42  ;;  %v331_v47 = vsel %vm563_vm6, %v205_v20, %v309_v44  ;;  %v332_v48 = vsel %vm567_vm7, %v208_v31, %v311_v45  ;;  %v339_v49 = vmul.f32 0.25, %v302_v38 }
  0xed   : > { %v340_v50 = vmul.f32 0.25, %v303_v46  ;;  %v347_v51 = vmul.f32 0.25, %v331_v47  ;;  %v348_v52 = vmul.f32 0.25, %v332_v48  ;;  %v333_v53 = vsel %vm571_vm8, %v488_v14, %v313_v39 }
  0xee   : > { %v343_v54 = vadd.f32 %v339_v49, %v335_v32  ;;  %v334_v55 = vsel %vm575_vm9, %v489_v27, %v318_v40  ;;  %v349_v56 = vmul.f32 0.25, %v333_v53  ;;  %v305_v57 = vsel %vm583_vm11, %v489_v27, %v284_v41 }
  0xef   : > { %v351_v58 = vadd.f32 %v347_v51, %v335_v32  ;;  %v352_v59 = vadd.f32 %v348_v52, %v336_v37  ;;  %v344_v60 = vadd.f32 %v340_v50, %v336_v37  ;;  %v350_v61 = vmul.f32 0.25, %v334_v55 }
  0xf0   : > { %v353_v62 = vadd.f32 %v349_v56, %v337_v28  ;;  %v342_v63 = vmul.f32 0.25, %v305_v57  ;;  %v304_v0 = vsel %vm579_vm10, %v488_v14, %v282_v43 }
  0xf1   : > { %v500_v1 = vpack.i.bf16 %v352_v59, %v351_v58  ;;  %v354_v2 = vadd.f32 %v350_v61, %v338_v33  ;;  %v341_v3 = vmul.f32 0.25, %v304_v0 }
  0xf2   : > { %v346_v4 = vadd.f32 %v342_v63, %v338_v33 }
  0xf3   : > { %501 = vrot.lane.b32.xlu0 %v500_v1, %s520_s17  ;;  %v505_v5 = vpack.i.bf16 %v354_v2, %v353_v62  ;;  %v345_v6 = vadd.f32 %v341_v3, %v337_v28 }
  0xf7   : > { %506 = vrot.lane.b32.xlu0 %v505_v5, %s520_s17 }
 0x165   : > { %v502_v7 = vpop.permute.xlu0 %501 }
 0x166   : > { %v504_v8 = vunpack.i.h.bf16 %v502_v7  ;;  %v503_v9 = vunpack.i.l.bf16 %v502_v7 }
 0x168   : > { %v372_v10 = vsel %vm371_vm12, %v343_v54, %v503_v9  ;;  %v373_v11 = vsel %vm371_vm12, %v344_v60, %v504_v8 }
 0x169   : > { %v376_v12 = vmax.f32 %v372_v10, 0.0  ;;  %v377_v13 = vmax.f32 %v373_v11, 0.0  ;;  %v507_v14 = vpop.permute.xlu0 %506 }
 0x16a   : > { %v509_v15 = vunpack.i.h.bf16 %v507_v14  ;;  %v508_v16 = vunpack.i.l.bf16 %v507_v14 }
 0x16b   : > { %v477_v17 = vpack.c.bf16 %v376_v12, %v376_v12  ;;  %v478_v18 = vpack.c.bf16 %v377_v13, %v377_v13 }
 0x16c   : > { %v375_v19 = vsel %vm371_vm12, %v346_v4, %v509_v15  ;;  %v374_v20 = vsel %vm371_vm12, %v345_v6, %v508_v16 }
 0x16d   : > { %397 = vst.msk [vmem:[%s143_s20] sm:$0xf] %vm396_vm13, %v477_v17  ;;  %398 = vst.msk [vmem:[%s143_s20 + $0x4] sm:$0xf] %vm396_vm13, %v478_v18  ;;  %v379_v21 = vmax.f32 %v375_v19, 0.0  ;;  %v378_v22 = vmax.f32 %v374_v20, 0.0 }
 0x16f   : > { %v480_v23 = vpack.c.bf16 %v379_v21, %v379_v21  ;;  %v479_v24 = vpack.c.bf16 %v378_v22, %v378_v22 }
 0x171   : > { %400 = vst.msk [vmem:[%s143_s20 + $0xc] sm:$0xf] %vm396_vm13, %v480_v23  ;;  %399 = vst.msk [vmem:[%s143_s20 + $0x8] sm:$0xf] %vm396_vm13, %v479_v24 }
 0x172 PF: > { %s12_s9 = sadd.s32 1, %s518_s9  }
 0x173   : > { %p9_p4 = scmp.ge.s32.totalorder %s12_s9, 4  }
 0x175   :  { %11 = sbr.rel (!%p9_p4) target bundleno = 1 (0x1), region = 58 }

// kernel: unet_forward.23
= control target key start
LH: loop header
LB: loop body
LE: loop exit
PB: predicated region body
PF: predicated region fallthrough
CT: control target
= control target key end

     0   :  { %s899_s18 = smov 0   ;;  %s1099_s0 = inlined_call_operand.vmem [shape: bf16[2,8,16], index: 0, kind: input, shape index: {}]   ;;  %s1100_s1 = inlined_call_operand.vmem [shape: bf16[2,16,16], index: 1, kind: input, shape index: {}]   ;;  %s1101_s2 = inlined_call_operand.vmem [shape: bf16[16,216], index: 2, kind: input, shape index: {}]   ;;  %s1102_s3 = inlined_call_operand.vmem [shape: f32[16,1], index: 3, kind: input, shape index: {}]   ;;  %s1103_s4 = inlined_call_operand.vmem [shape: bf16[8,144], index: 4, kind: input, shape index: {}]   ;;  %s1104_s5 = inlined_call_operand.vmem [shape: bf16[2,8,16], index: 5, kind: output, shape index: {}]  }
   0x1 LB: > { %s755_s19 = sadd.s32 4294967295, %s851_s18   ;;  %p759_p0 = scmp.ge.s32.totalorder %s851_s18, 1  ;;  %s851_s18 = sphi %s899_s18, %s15_s18  }
   0x2   : > { %p196_p1 = scmp.lt.s32.totalorder %s851_s18, 3 }
   0x4   : > { %p197_p2 = pnand %p759_p0, %p196_p1 }
   0x5   : > { %p227_p3 = scmp.lt.s32.totalorder (!%p197_p2), %s755_s19, 1  ;;  %p764_p4 = scmp.ne.s32.totalorder (!%p197_p2), %s755_s19, 0 }
   0x6   : > { %200 = sbr.rel (%p197_p2) target bundleno = 1333 (0x535), region = 40 }
   0xd   : > { %s228_s20 = scalar_select %p227_p3, %s755_s19, 1 }
   0xe   : > { %246 = sbr.rel (%p764_p4) target bundleno = 21 (0x15), region = 44  ;;  %vm247_vm0 = vcmask (!%p764_p4), 35840   ;;  %vm251_vm1 = vcmask (!%p764_p4), 208040   ;;  %v853_v0 = vmov (!%p764_p4), 0  }
   0xf   : > { %s760_s21 = sshll.u32 %s228_s20, 2  ;;  %s802_s22 = sshll.u32 %s228_s20, 3  ;;  %248 = vst.msk [vmem:[#allocation2] sm:$0xf] (!%p764_p4), %vm247_vm0, %v853_v0  ;;  %249 = vst.msk [vmem:[#allocation2 + $0x4] sm:$0xf] (!%p764_p4), %vm247_vm0, %v853_v0 }
  0x10   : > { %s230_s25 = scalar_lea.vmem %s1099_s0, %s760_s21  ;;  %s235_s28 = scalar_lea.vmem %s1100_s1, %s802_s22  ;;  %250 = vst.msk [vmem:[#allocation2 + $0x8] sm:$0xf] (!%p764_p4), %vm247_vm0, %v853_v0 }
  0x11   : > { %s916_s6 = scalar_lea.vmem %s1104_s5, %s760_s21  ;;  %252 = vst.msk [vmem:[#allocation2] sm:$0xf] (!%p764_p4), %vm251_vm1, %v853_v0  ;;  %253 = vst.msk [vmem:[#allocation2 + $0x4] sm:$0xf] (!%p764_p4), %vm251_vm1, %v853_v0 }
  0x12   : > { %254 = vst.msk [vmem:[#allocation2 + $0x8] sm:$0xf] (!%p764_p4), %vm251_vm1, %v853_v0 }
  0x15 PF: > { %v831_v1 = vld [vmem:[%s235_s28 + $0x4] ss:$0 sps:$4 sm:$0xff]   ;;  %vm279_vm2 = vcmask 1043456   ;;  %v255_v2 = vlaneseq  ;;  %v271_v3 = vld [vmem:[%s230_s25] sm:$0xf]  ;;  %s854_s7 = smov 5  }
  0x16   : > { %v832_v4 = vld [vmem:[%s235_s28] ss:$0 sps:$4 sm:$0xff]   ;;  %295 = vrot.lane.b32.xlu1 %v831_v1, %s854_s7  ;;  %v855_v7 = vmov 0   ;;  %s856_s8 = smov 2   ;;  %s857_s9 = smov 6   ;;  %vm300_vm7 = vcmask 166952  }
  0x17   : > { %v256_v5 = vand.u32 127, %v255_v2  ;;  %v282_v6 = vsel %vm279_vm2, %v271_v3, %v832_v4  ;;  %491 = vmatprep.subr.bf16.mxu0 %v855_v7  ;;  %829 = vset.pattern.permute.xlu0 %v855_v7  ;;  %s858_s10 = smov 4   ;;  %s859_s11 = smov 10   ;;  %v839_v57 = vld [vmem:[%s1101_s2 + $0x4] ss:$8 sps:$4 sm:$0xff]   ;;  %vm484_vm13 = vcmask 719872  }
  0x18   : > { %v766_v8 = vcombine.low %v282_v6, %v282_v6  ;;  %830 = vset.pattern.permute.xlu1 %v855_v7  ;;  %633 = vmatprep.subr.bf16.mxu1 %v855_v7  ;;  %v767_v10 = vcombine.high %v282_v6, %v282_v6  ;;  %s860_s12 = smov 8   ;;  %s861_s13 = smov 127   ;;  %v463_v58 = vld [vmem:[%s1102_s3] sm:$0xff]  ;;  %v464_v59 = vld [vmem:[%s1102_s3 + $0x8] sm:$0xff]  ;;  %vm629_vm14 = vcmask 130048   ;;  %vm688_vm15 = vcmask 125952  }
  0x19   : > { %v261_v9 = vand.u32 3, %v256_v5  ;;  %s862_s14 = smov 126   ;;  %s863_s15 = smov 124   ;;  %787 = vmatprep.mubr.msk.bf16.mxu0 %vm484_vm13, %v839_v57 }
  0x1a   : > { %291 = vrot.lane.b32.xlu0 %v766_v8, %s854_s7  ;;  %s864_s16 = smov 123   ;;  %s865_s17 = smov 122  }
  0x1b   : > { %vm270_vm3 = vcmp.lt.s32.totalorder %v261_v9, 3  ;;  %vm269_vm4 = vcmp.gt.s32.totalorder %v261_v9, 0  ;;  %s866_s19 = smov 120   ;;  %s867_s20 = smov 119  }
  0x1c   : > { %vm315_vm5 = vmpackc.low %vm270_vm3, %vm270_vm3  ;;  %s868_s21 = smov 118  }
  0x1d   : > { %v316_v11 = vsel %vm315_vm5, 65537, %v855_v7  ;;  %vm926_vm6 = vmpackc.low %vm269_vm4, %vm269_vm4 }
  0x1e   : > { %317 = vrot.lane.b32.xlu1 %v316_v11, %s856_s8  ;;  %293 = vrot.lane.b32.xlu0 %v767_v10, %s854_s7  ;;  %v323_v13 = vsel %vm926_vm6, 65537, %v855_v7 }
  0x22   : > { %330 = vrot.lane.b32.xlu1 %v316_v11, %s857_s9  ;;  %324 = vrot.lane.b32.xlu0 %v323_v13, %s858_s10 }
  0x26   : > { %342 = vrot.lane.b32.xlu1 %v316_v11, %s859_s11  ;;  %336 = vrot.lane.b32.xlu0 %v323_v13, %s860_s12 }
  0x88   : > { %v296_v14 = vpop.permute.xlu1 %295 }
  0x89   : > { %303 = vst.msk [vmem:[#allocation2 + $0x8] sm:$0xf] %vm300_vm7, %v296_v14 }
  0x8c   : > { %v292_v15 = vpop.permute.xlu0 %291 }
  0x8d   : > { %301 = vst.msk [vmem:[#allocation2] sm:$0xf] %vm300_vm7, %v292_v15 }
  0x90   : > { %v294_v16 = vpop.permute.xlu0 %293  ;;  %v937_v17 = vpop.permute.xlu1 %317  ;;  %v942_v21 = vld [vmem:[#allocation2 + $0x8] sm:$0xf] }
  0x91   : > { %302 = vst.msk [vmem:[#allocation2 + $0x4] sm:$0xf] %vm300_vm7, %v294_v16  ;;  %vm319_vm8 = vcmp.ne.s16.totalorder %v937_v17, 0  ;;  %v778_v41 = vcombine.low %v942_v21, %v942_v21  ;;  %v312_v60 = vsel %vm926_vm6, %v942_v21, 0 }
  0x92   : > { %v322_v30 = vsel %vm319_vm8, %v942_v21, 0  ;;  %v770_v61 = vcombine.low %v312_v60, %v312_v60 }
  0x93   : > { %v774_v33 = vcombine.low %v322_v30, %v322_v30 }
  0x94   : > { %v304_v18 = vld [vmem:[#allocation2] sm:$0xf]  ;;  %v940_v19 = vpop.permute.xlu0 %324  ;;  %v962_v32 = vpop.permute.xlu1 %330 }
  0x95   : > { %v771_v20 = vcombine.low %v304_v18, %v304_v18  ;;  %vm326_vm9 = vcmp.ne.s16.totalorder %v940_v19, 0  ;;  %v320_v23 = vsel %vm319_vm8, %v304_v18, 0  ;;  %v310_v26 = vsel %vm926_vm6, %v304_v18, 0 }
  0x96   : > { %v327_v31 = vsel %vm326_vm9, %v304_v18, 0  ;;  %v329_v36 = vsel %vm326_vm9, %v942_v21, 0  ;;  %vm332_vm10 = vcmp.ne.s16.totalorder %v962_v32, 0  ;;  %v534_v32 = vld [vmem:[%s1103_s4] sm:$0xff] }
  0x97   : > { %365 = vrot.lane.b32.xlu0 %v771_v20, %s861_s13  ;;  %v775_v34 = vcombine.low %v327_v31, %v327_v31  ;;  %v333_v40 = vsel %vm332_vm10, %v304_v18, 0  ;;  %v335_v44 = vsel %vm332_vm10, %v942_v21, 0 }
  0x98   : > { %v305_v22 = vld [vmem:[#allocation2 + $0x4] sm:$0xf]  ;;  %v973_v37 = vpop.permute.xlu0 %336  ;;  %v779_v42 = vcombine.low %v333_v40, %v333_v40  ;;  %v993_v47 = vpop.permute.xlu1 %342 }
  0x99   : > { %v772_v24 = vcombine.low %v305_v22, %v942_v21  ;;  %v321_v25 = vsel %vm319_vm8, %v305_v22, 0  ;;  %v311_v27 = vsel %vm926_vm6, %v305_v22, 0  ;;  %v328_v35 = vsel %vm326_vm9, %v305_v22, 0 }
  0x9a   : > { %v773_v28 = vcombine.low %v320_v23, %v321_v25  ;;  %v769_v29 = vcombine.low %v310_v26, %v311_v27  ;;  %v776_v38 = vcombine.low %v328_v35, %v329_v36  ;;  %v777_v39 = vcombine.low %v304_v18, %v305_v22  ;;  %v837_v23 = vld [vmem:[%s1101_s2] ss:$8 sps:$4 sm:$0xff]  }
  0x9b   : > { %367 = vrot.lane.b32.xlu1 %v772_v24, %s861_s13  ;;  %vm338_vm11 = vcmp.ne.s16.totalorder %v973_v37, 0  ;;  %v334_v43 = vsel %vm332_vm10, %v305_v22, 0  ;;  %vm344_vm12 = vcmp.ne.s16.totalorder %v993_v47, 0  ;;  %v798_v37 = vcombine.high %v534_v32, %v534_v32 }
  0x9c   : > { %378 = vrot.lane.b32.xlu0 %v773_v28, %s862_s14  ;;  %492 = vmatpush1.bf16.msra.mxu0 %v769_v29  ;;  %v339_v45 = vsel %vm338_vm11, %v304_v18, 0  ;;  %v340_v46 = vsel %vm338_vm11, %v305_v22, 0  ;;  %v780_v48 = vcombine.low %v334_v43, %v335_v44  ;;  %v341_v50 = vsel %vm338_vm11, %v942_v21, 0 }
  0x9d   : > { %493 = vmatprep.subr.bf16.mxu0 %v855_v7  ;;  %v781_v49 = vcombine.low %v339_v45, %v340_v46  ;;  %v782_v51 = vcombine.low %v341_v50, %v341_v50  ;;  %v345_v52 = vsel %vm344_vm12, %v304_v18, 0  ;;  %v346_v53 = vsel %vm344_vm12, %v305_v22, 0  ;;  %799 = vmatprep.mubr.msk.bf16.mxu1 %vm629_vm14, %v798_v37 }
  0x9e   : > { %v783_v54 = vcombine.low %v345_v52, %v346_v53  ;;  %v347_v55 = vsel %vm344_vm12, %v942_v21, 0 }
  0x9f   : > { %380 = vrot.lane.b32.xlu1 %v774_v33, %s862_s14  ;;  %v784_v56 = vcombine.low %v347_v55, %v347_v55 }
  0xa0   : > { %391 = vrot.lane.b32.xlu0 %v775_v34, %s863_s15 }
  0xa3   : > { %393 = vrot.lane.b32.xlu1 %v776_v38, %s863_s15 }
  0xa4   : > { %398 = vrot.lane.b32.xlu0 %v777_v39, %s864_s16 }
  0xa7   : > { %400 = vrot.lane.b32.xlu1 %v778_v41, %s864_s16 }
  0xa8   : > { %411 = vrot.lane.b32.xlu0 %v779_v42, %s865_s17 }
  0xab   : > { %413 = vrot.lane.b32.xlu1 %v780_v48, %s865_s17 }
  0xac   : > { %424 = vrot.lane.b32.xlu0 %v781_v49, %s866_s19 }
  0xaf   : > { %426 = vrot.lane.b32.xlu1 %v782_v51, %s866_s19 }
  0xb0   : > { %429 = vrot.lane.b32.xlu0 %v771_v20, %s867_s20 }
  0xb3   : > { %431 = vrot.lane.b32.xlu1 %v772_v24, %s867_s20 }
  0xb4   : > { %442 = vrot.lane.b32.xlu0 %v783_v54, %s868_s21 }
  0xb7   : > { %444 = vrot.lane.b32.xlu1 %v784_v56, %s868_s21 }
  0xb8   : > { %467 = vperm.xlu0 %829, %v463_v58  }
  0xbb   : > { %472 = vperm.xlu1 %830, %v464_v59  }
 0x109   : > { %v366_v62 = vpop.permute.xlu0 %365 }
 0x10a   : > { %v449_v63 = vsel %vm279_vm2, %v770_v61, %v366_v62 }
 0x10b   : > { %494 = vmatpush1.bf16.msra.mxu0 %v449_v63 }
 0x10c   : > { %495 = vmatprep.subr.bf16.mxu0 %v855_v7 }
 0x10d   : > { %v368_v0 = vpop.permute.xlu1 %367 }
 0x10e   : > { %v379_v1 = vpop.permute.xlu0 %378 }
 0x10f   : > { %496 = vmatpush1.bf16.msra.mxu0 %v368_v0 }
 0x110   : > { %497 = vmatprep.subr.bf16.mxu0 %v855_v7 }
 0x111   : > { %v381_v2 = vpop.permute.xlu1 %380 }
 0x112   : > { %v392_v3 = vpop.permute.xlu0 %391 }
 0x113   : > { %498 = vmatpush1.bf16.msra.mxu0 %v379_v1  ;;  %v453_v4 = vsel %vm279_vm2, %v381_v2, %v392_v3  ;;  %v797_v2 = vcombine.low %v534_v32, %v534_v32 }
 0x114   : > { %499 = vmatprep.subr.bf16.mxu0 %v855_v7 }
 0x115   : > { %v394_v5 = vpop.permute.xlu1 %393 }
 0x116   : > { %v399_v6 = vpop.permute.xlu0 %398 }
 0x117   : > { %500 = vmatpush1.bf16.msra.mxu0 %v453_v4 }
 0x118   : > { %501 = vmatprep.subr.bf16.mxu0 %v855_v7 }
 0x119   : > { %v401_v8 = vpop.permute.xlu1 %400 }
 0x11a   : > { %v412_v9 = vpop.permute.xlu0 %411 }
 0x11b   : > { %502 = vmatpush1.bf16.msra.mxu0 %v394_v5  ;;  %v457_v10 = vsel %vm279_vm2, %v401_v8, %v412_v9 }
 0x11c   : > { %503 = vmatprep.subr.bf16.mxu0 %v855_v7 }
 0x11d   : > { %v414_v11 = vpop.permute.xlu1 %413 }
 0x11e   : > { %v425_v13 = vpop.permute.xlu0 %424 }
 0x11f   : > { %504 = vmatpush1.bf16.msra.mxu0 %v399_v6 }
 0x120   : > { %505 = vmatprep.subr.bf16.mxu0 %v855_v7 }
 0x121   : > { %v427_v14 = vpop.permute.xlu1 %426 }
 0x122   : > { %v430_v15 = vpop.permute.xlu0 %429 }
 0x123   : > { %506 = vmatpush1.bf16.msra.mxu0 %v457_v10  ;;  %v461_v16 = vsel %vm279_vm2, %v427_v14, %v430_v15 }
 0x124   : > { %507 = vmatprep.subr.bf16.mxu0 %v855_v7 }
 0x125   : > { %v432_v18 = vpop.permute.xlu1 %431 }
 0x126   : > { %v443_v20 = vpop.permute.xlu0 %442 }
 0x127   : > { %508 = vmatpush1.bf16.msra.mxu0 %v414_v11 }
 0x128   : > { %509 = vmatprep.subr.bf16.mxu0 %v855_v7 }
 0x129   : > { %v445_v21 = vpop.permute.xlu1 %444 }
 0x12a   : > { %v489_v22 = vsel %vm279_vm2, %v445_v21, 0 }
 0x12b   : > { %510 = vmatpush1.bf16.msra.mxu0 %v425_v13 }
 0x12c   : > { %511 = vmatprep.subr.bf16.mxu0 %v855_v7 }
 0x12f   : > { %512 = vmatpush1.bf16.msra.mxu0 %v461_v16 }
 0x130   : > { %513 = vmatprep.subr.bf16.mxu0 %v855_v7 }
 0x133   : > { %514 = vmatpush1.bf16.msra.mxu0 %v432_v18 }
 0x134   : > { %515 = vmatprep.subr.bf16.mxu0 %v855_v7 }
 0x137   : > { %516 = vmatpush1.bf16.msra.mxu0 %v443_v20  ;;  %v468_v24 = vpop.permute.xlu0 %467 }
 0x138   : > { %517 = vmatprep.subr.bf16.mxu0 %v855_v7 }
 0x13a   : > { %v473_v26 = vpop.permute.xlu1 %472 }
 0x13b   : > { %518 = vmatpush1.bf16.msra.mxu0 %v489_v22 }
 0x13e   : > { %524 = vmatmul.mubr.bf16.vlgmr.msra.gmra.mrb[0].mxu0 %v837_v23 }
 0x211   : > { %v525_v25 = vpop.f32.mrb[0].mxu0 }
 0x212   : > { %v526_v27 = vadd.f32 %v525_v25, %v468_v24  ;;  %v527_v28 = vpop.f32.mrb[1].mxu0 }
 0x213   : > { %v528_v29 = vpop.f32.mrb[2].mxu0 }
 0x214   : > { %v532_v30 = vmax.f32 %v526_v27, 0.0  ;;  %v529_v31 = vadd.f32 %v528_v29, %v473_v26  ;;  %v530_v33 = vpop.f32.mrb[3].mxu0 }
 0x216   : > { %v803_v34 = vpack.c.bf16 %v532_v30, %v532_v30  ;;  %v533_v35 = vmax.f32 %v529_v31, 0.0 }
 0x218   : > { %v804_v36 = vpack.c.bf16 %v533_v35, %v533_v35  ;;  %541 = vrot.lane.b32.xlu1 %v803_v34, %s854_s7 }
 0x21a   : > { %543 = vrot.lane.b32.xlu0 %v804_v36, %s854_s7 }
 0x28a   : > { %v542_v38 = vpop.permute.xlu1 %541 }
 0x28b   : > { %547 = vst.msk [vmem:[#allocation2] sm:$0xf] %vm300_vm7, %v542_v38 }
 0x28c   : > { %v544_v39 = vpop.permute.xlu0 %543 }
 0x28d   : > { %548 = vst.msk [vmem:[#allocation2 + $0x4] sm:$0xf] %vm300_vm7, %v544_v39 }
 0x292   : > { %v549_v40 = vld [vmem:[#allocation2] sm:$0xf] }
 0x293   : > { %v553_v42 = vsel %vm319_vm8, %v549_v40, 0  ;;  %v551_v45 = vsel %vm926_vm6, %v549_v40, 0  ;;  %v555_v17 = vsel %vm326_vm9, %v549_v40, 0  ;;  %v557_v53 = vsel %vm332_vm10, %v549_v40, 0 }
 0x294   : > { %v550_v41 = vld [vmem:[#allocation2 + $0x4] sm:$0xf]  ;;  %v559_v19 = vsel %vm338_vm11, %v549_v40, 0  ;;  %v561_v57 = vsel %vm344_vm12, %v549_v40, 0 }
 0x295   : > { %v791_v43 = vcombine.low %v549_v40, %v550_v41  ;;  %v554_v44 = vsel %vm319_vm8, %v550_v41, 0  ;;  %v552_v46 = vsel %vm926_vm6, %v550_v41, 0  ;;  %v556_v50 = vsel %vm326_vm9, %v550_v41, 0 }
 0x296   : > { %v792_v48 = vcombine.low %v553_v42, %v554_v44  ;;  %v790_v49 = vcombine.low %v551_v45, %v552_v46  ;;  %v793_v51 = vcombine.low %v555_v17, %v556_v50  ;;  %v558_v12 = vsel %vm332_vm10, %v550_v41, 0 }
 0x297   : > { %574 = vrot.lane.b32.xlu1 %v791_v43, %s861_s13  ;;  %v560_v52 = vsel %vm338_vm11, %v550_v41, 0  ;;  %v794_v54 = vcombine.low %v557_v53, %v558_v12  ;;  %v562_v56 = vsel %vm344_vm12, %v550_v41, 0 }
 0x298   : > { %582 = vrot.lane.b32.xlu0 %v792_v48, %s862_s14  ;;  %634 = vmatpush1.bf16.msra.mxu1 %v790_v49  ;;  %v795_v55 = vcombine.low %v559_v19, %v560_v52  ;;  %v796_v58 = vcombine.low %v561_v57, %v562_v56 }
 0x299   : > { %635 = vmatprep.subr.bf16.mxu1 %v855_v7 }
 0x29b   : > { %590 = vrot.lane.b32.xlu1 %v793_v51, %s863_s15 }
 0x29c   : > { %593 = vrot.lane.b32.xlu0 %v791_v43, %s864_s16 }
 0x29f   : > { %601 = vrot.lane.b32.xlu1 %v794_v54, %s865_s17 }
 0x2a0   : > { %609 = vrot.lane.b32.xlu0 %v795_v55, %s866_s19 }
 0x2a3   : > { %612 = vrot.lane.b32.xlu1 %v791_v43, %s867_s20 }
 0x2a4   : > { %620 = vrot.lane.b32.xlu0 %v796_v58, %s868_s21 }
 0x309   : > { %v575_v59 = vpop.permute.xlu1 %574 }
 0x30a   : > { %636 = vmatpush1.bf16.msra.mxu1 %v575_v59  ;;  %v583_v60 = vpop.permute.xlu0 %582 }
 0x30b   : > { %637 = vmatprep.subr.bf16.mxu1 %v855_v7 }
 0x30d   : > { %v591_v47 = vpop.permute.xlu1 %590 }
 0x30e   : > { %638 = vmatpush1.bf16.msra.mxu1 %v583_v60  ;;  %v594_v61 = vpop.permute.xlu0 %593 }
 0x30f   : > { %639 = vmatprep.subr.bf16.mxu1 %v855_v7 }
 0x311   : > { %v602_v62 = vpop.permute.xlu1 %601 }
 0x312   : > { %640 = vmatpush1.bf16.msra.mxu1 %v591_v47  ;;  %v610_v63 = vpop.permute.xlu0 %609 }
 0x313   : > { %641 = vmatprep.subr.bf16.mxu1 %v855_v7 }
 0x315   : > { %v613_v0 = vpop.permute.xlu1 %612 }
 0x316   : > { %642 = vmatpush1.bf16.msra.mxu1 %v594_v61  ;;  %v621_v1 = vpop.permute.xlu0 %620 }
 0x317   : > { %643 = vmatprep.subr.bf16.mxu1 %v855_v7 }
 0x31a   : > { %644 = vmatpush1.bf16.msra.mxu1 %v602_v62 }
 0x31b   : > { %645 = vmatprep.subr.bf16.mxu1 %v855_v7 }
 0x31e   : > { %646 = vmatpush1.bf16.msra.mxu1 %v610_v63 }
 0x31f   : > { %647 = vmatprep.subr.bf16.mxu1 %v855_v7 }
 0x322   : > { %648 = vmatpush1.bf16.msra.mxu1 %v613_v0 }
 0x323   : > { %649 = vmatprep.subr.bf16.mxu1 %v855_v7 }
 0x326   : > { %650 = vmatpush1.bf16.msra.mxu1 %v621_v1 }
 0x329   : > { %666 = vmatmul.mubr.bf16.vlgmr.msra.gmra.mrb[0].mxu1 %v797_v2 }
 0x3fc   : > { %v667_v3 = vpop.f32.mrb[0].mxu1 }
 0x3fd   : > { %v669_v4 = vpop.f32.mrb[1].mxu1  ;;  %v673_v5 = vsel %vm629_vm14, %v667_v3, 0.0 }
 0x3fe   : > { %674 = vadd.xlane.f32.xlu1 %v673_v5  ;;  %v670_v6 = vpop.f32.mrb[2].mxu1 }
 0x3ff   : > { %v671_v8 = vpop.f32.mrb[3].mxu1 }
 0x48b   : > { %v675_v9 = vpop.xlane.xlu1 %674 }
 0x48c   : > { %v677_v10 = vmul.f32 0.0625, %v675_v9 }
 0x48e   : > { %v678_v11 = vsub.f32 %v667_v3, %v677_v10 }
 0x490   : > { %v679_v13 = vmul.f32 %v678_v11, %v678_v11 }
 0x492   : > { %v680_v14 = vsel %vm629_vm14, %v679_v13, 0.0 }
 0x493   : > { %681 = vadd.xlane.f32.xlu0 %v680_v14 }
 0x520   : > { %v682_v7 = vpop.xlane.xlu0 %681 }
 0x521   : > { %v683_v15 = vmul.f32 0.0625, %v682_v7 }
 0x523   : > { %v684_v16 = vadd.f32 1e-05, %v683_v15 }
 0x525   : > { %843 = vrsqrt.f32 %v684_v16 }
 0x52f   : > { %v844_v18 = vpop.eup %843 }
 0x530   : > { %v686_v20 = vmul.f32 %v844_v18, %v678_v11 }
 0x532   : > { %v687_v21 = vpack.c.bf16 %v686_v20, %v686_v20 }
 0x534   : > { %689 = vst.msk [vmem:[%s916_s6] sm:$0xf] %vm688_vm15, %v687_v21 }
 0x535 PF: > { %s15_s18 = sadd.s32 1, %s851_s18  }
 0x536   : > { %p12_p5 = scmp.ge.s32.totalorder %s15_s18, 4  }
 0x538   :  { %14 = sbr.rel (!%p12_p5) target bundleno = 1 (0x1), region = 77 }

// kernel: unet_forward.25
= control target key start
LH: loop header
LB: loop body
LE: loop exit
PB: predicated region body
PF: predicated region fallthrough
CT: control target
= control target key end

     0   :  { %s900_s18 = smov 0   ;;  %s1097_s0 = inlined_call_operand.vmem [shape: bf16[2,8,64], index: 0, kind: input, shape index: {}]   ;;  %s1098_s1 = inlined_call_operand.vmem [shape: bf16[2,16,64], index: 1, kind: input, shape index: {}]   ;;  %s1099_s2 = inlined_call_operand.vmem [shape: bf16[16,216], index: 2, kind: input, shape index: {}]   ;;  %s1100_s3 = inlined_call_operand.vmem [shape: f32[16,1], index: 3, kind: input, shape index: {}]   ;;  %s1101_s4 = inlined_call_operand.vmem [shape: bf16[8,144], index: 4, kind: input, shape index: {}]   ;;  %s1102_s5 = inlined_call_operand.vmem [shape: bf16[2,8,64], index: 5, kind: output, shape index: {}]  }
   0x1 LB: > { %s756_s19 = sadd.s32 4294967295, %s852_s18   ;;  %p760_p0 = scmp.ge.s32.totalorder %s852_s18, 1  ;;  %s852_s18 = sphi %s900_s18, %s15_s18  }
   0x2   : > { %p196_p1 = scmp.lt.s32.totalorder %s852_s18, 3 }
   0x4   : > { %p197_p2 = pnand %p760_p0, %p196_p1 }
   0x5   : > { %p227_p3 = scmp.lt.s32.totalorder (!%p197_p2), %s756_s19, 1  ;;  %p765_p4 = scmp.ne.s32.totalorder (!%p197_p2), %s756_s19, 0 }
   0x6   : > { %200 = sbr.rel (%p197_p2) target bundleno = 1333 (0x535), region = 40 }
   0xd   : > { %s228_s20 = scalar_select %p227_p3, %s756_s19, 1 }
   0xe   : > { %246 = sbr.rel (%p765_p4) target bundleno = 21 (0x15), region = 44  ;;  %vm247_vm0 = vcmask (!%p765_p4), 68608   ;;  %vm251_vm1 = vcmask (!%p765_p4), 667208   ;;  %v854_v0 = vmov (!%p765_p4), 0  }
   0xf   : > { %s761_s21 = sshll.u32 %s228_s20, 2  ;;  %s803_s22 = sshll.u32 %s228_s20, 3  ;;  %248 = vst.msk [vmem:[#allocation2] sm:$0xf] (!%p765_p4), %vm247_vm0, %v854_v0  ;;  %249 = vst.msk [vmem:[#allocation2 + $0x4] sm:$0xf] (!%p765_p4), %vm247_vm0, %v854_v0 }
  0x10   : > { %s230_s25 = scalar_lea.vmem %s1097_s0, %s761_s21  ;;  %s235_s28 = scalar_lea.vmem %s1098_s1, %s803_s22  ;;  %250 = vst.msk [vmem:[#allocation2 + $0x8] sm:$0xf] (!%p765_p4), %vm247_vm0, %v854_v0 }
  0x11   : > { %s917_s6 = scalar_lea.vmem %s1102_s5, %s761_s21  ;;  %252 = vst.msk [vmem:[#allocation2] sm:$0xf] (!%p765_p4), %vm251_vm1, %v854_v0  ;;  %253 = vst.msk [vmem:[#allocation2 + $0x4] sm:$0xf] (!%p765_p4), %vm251_vm1, %v854_v0 }
  0x12   : > { %254 = vst.msk [vmem:[#allocation2 + $0x8] sm:$0xf] (!%p765_p4), %vm251_vm1, %v854_v0 }
  0x15 PF: > { %v832_v1 = vld [vmem:[%s235_s28 + $0x4] ss:$0 sps:$4 sm:$0xff]   ;;  %vm279_vm2 = vcmask 1043456   ;;  %v255_v2 = vlaneseq  ;;  %v271_v3 = vld [vmem:[%s230_s25] sm:$0xf]  ;;  %s855_s7 = smov 9  }
  0x16   : > { %v833_v4 = vld [vmem:[%s235_s28] ss:$0 sps:$4 sm:$0xff]   ;;  %295 = vrot.lane.b32.xlu1 %v832_v1, %s855_s7  ;;  %v856_v7 = vmov 0   ;;  %s857_s8 = smov 2   ;;  %s858_s9 = smov 10   ;;  %vm300_vm7 = vcmask 592968  }
  0x17   : > { %v256_v5 = vand.u32 127, %v255_v2  ;;  %v282_v6 = vsel %vm279_vm2, %v271_v3, %v833_v4  ;;  %491 = vmatprep.subr.bf16.mxu0 %v856_v7  ;;  %830 = vset.pattern.permute.xlu0 %v856_v7  ;;  %s859_s10 = smov 8   ;;  %s860_s11 = smov 18   ;;  %v840_v57 = vld [vmem:[%s1099_s2 + $0x4] ss:$8 sps:$4 sm:$0xff]   ;;  %vm484_vm13 = vcmask 719872  }
  0x18   : > { %v767_v8 = vcombine.low %v282_v6, %v282_v6  ;;  %831 = vset.pattern.permute.xlu1 %v856_v7  ;;  %633 = vmatprep.subr.bf16.mxu1 %v856_v7  ;;  %v768_v10 = vcombine.high %v282_v6, %v282_v6  ;;  %s861_s12 = smov 16   ;;  %s862_s13 = smov 127   ;;  %v463_v58 = vld [vmem:[%s1100_s3] sm:$0xff]  ;;  %v464_v59 = vld [vmem:[%s1100_s3 + $0x8] sm:$0xff]  ;;  %vm629_vm14 = vcmask 130048   ;;  %vm673_vm15 = vcmask 523264  }
  0x19   : > { %v261_v9 = vand.u32 7, %v256_v5  ;;  %s863_s14 = smov 126   ;;  %s864_s15 = smov 120   ;;  %788 = vmatprep.mubr.msk.bf16.mxu0 %vm484_vm13, %v840_v57  ;;  %vm689_vm0 = vcmask 519168  }
  0x1a   : > { %291 = vrot.lane.b32.xlu0 %v767_v8, %s855_s7  ;;  %s865_s16 = smov 119   ;;  %s866_s17 = smov 118  }
  0x1b   : > { %vm270_vm3 = vcmp.lt.s32.totalorder %v261_v9, 7  ;;  %vm269_vm4 = vcmp.gt.s32.totalorder %v261_v9, 0  ;;  %s867_s19 = smov 112   ;;  %s868_s20 = smov 111  }
  0x1c   : > { %vm315_vm5 = vmpackc.low %vm270_vm3, %vm270_vm3  ;;  %s869_s21 = smov 110  }
  0x1d   : > { %v316_v11 = vsel %vm315_vm5, 65537, %v856_v7  ;;  %vm927_vm6 = vmpackc.low %vm269_vm4, %vm269_vm4 }
  0x1e   : > { %317 = vrot.lane.b32.xlu1 %v316_v11, %s857_s8  ;;  %293 = vrot.lane.b32.xlu0 %v768_v10, %s855_s7  ;;  %v323_v13 = vsel %vm927_vm6, 65537, %v856_v7 }
  0x22   : > { %330 = vrot.lane.b32.xlu1 %v316_v11, %s858_s9  ;;  %324 = vrot.lane.b32.xlu0 %v323_v13, %s859_s10 }
  0x26   : > { %342 = vrot.lane.b32.xlu1 %v316_v11, %s860_s11  ;;  %336 = vrot.lane.b32.xlu0 %v323_v13, %s861_s12 }
  0x88   : > { %v296_v14 = vpop.permute.xlu1 %295 }
  0x89   : > { %303 = vst.msk [vmem:[#allocation2 + $0x8] sm:$0xf] %vm300_vm7, %v296_v14 }
  0x8c   : > { %v292_v15 = vpop.permute.xlu0 %291 }
  0x8d   : > { %301 = vst.msk [vmem:[#allocation2] sm:$0xf] %vm300_vm7, %v292_v15 }
  0x90   : > { %v294_v16 = vpop.permute.xlu0 %293  ;;  %v938_v17 = vpop.permute.xlu1 %317  ;;  %v943_v21 = vld [vmem:[#allocation2 + $0x8] sm:$0xf] }
  0x91   : > { %302 = vst.msk [vmem:[#allocation2 + $0x4] sm:$0xf] %vm300_vm7, %v294_v16  ;;  %vm319_vm8 = vcmp.ne.s16.totalorder %v938_v17, 0  ;;  %v779_v41 = vcombine.low %v943_v21, %v943_v21  ;;  %v312_v60 = vsel %vm927_vm6, %v943_v21, 0 }
  0x92   : > { %v322_v30 = vsel %vm319_vm8, %v943_v21, 0  ;;  %v771_v61 = vcombine.low %v312_v60, %v312_v60 }
  0x93   : > { %v775_v33 = vcombine.low %v322_v30, %v322_v30 }
  0x94   : > { %v304_v18 = vld [vmem:[#allocation2] sm:$0xf]  ;;  %v941_v19 = vpop.permute.xlu0 %324  ;;  %v963_v32 = vpop.permute.xlu1 %330 }
  0x95   : > { %v772_v20 = vcombine.low %v304_v18, %v304_v18  ;;  %vm326_vm9 = vcmp.ne.s16.totalorder %v941_v19, 0  ;;  %v320_v23 = vsel %vm319_vm8, %v304_v18, 0  ;;  %v310_v26 = vsel %vm927_vm6, %v304_v18, 0 }
  0x96   : > { %v327_v31 = vsel %vm326_vm9, %v304_v18, 0  ;;  %v329_v36 = vsel %vm326_vm9, %v943_v21, 0  ;;  %vm332_vm10 = vcmp.ne.s16.totalorder %v963_v32, 0  ;;  %v534_v32 = vld [vmem:[%s1101_s4] sm:$0xff] }
  0x97   : > { %365 = vrot.lane.b32.xlu0 %v772_v20, %s862_s13  ;;  %v776_v34 = vcombine.low %v327_v31, %v327_v31  ;;  %v333_v40 = vsel %vm332_vm10, %v304_v18, 0  ;;  %v335_v44 = vsel %vm332_vm10, %v943_v21, 0 }
  0x98   : > { %v305_v22 = vld [vmem:[#allocation2 + $0x4] sm:$0xf]  ;;  %v974_v37 = vpop.permute.xlu0 %336  ;;  %v780_v42 = vcombine.low %v333_v40, %v333_v40  ;;  %v994_v47 = vpop.permute.xlu1 %342 }
  0x99   : > { %v773_v24 = vcombine.low %v305_v22, %v943_v21  ;;  %v321_v25 = vsel %vm319_vm8, %v305_v22, 0  ;;  %v311_v27 = vsel %vm927_vm6, %v305_v22, 0  ;;  %v328_v35 = vsel %vm326_vm9, %v305_v22, 0 }
  0x9a   : > { %v774_v28 = vcombine.low %v320_v23, %v321_v25  ;;  %v770_v29 = vcombine.low %v310_v26, %v311_v27  ;;  %v777_v38 = vcombine.low %v328_v35, %v329_v36  ;;  %v778_v39 = vcombine.low %v304_v18, %v305_v22  ;;  %v838_v23 = vld [vmem:[%s1099_s2] ss:$8 sps:$4 sm:$0xff]  }
  0x9b   : > { %367 = vrot.lane.b32.xlu1 %v773_v24, %s862_s13  ;;  %vm338_vm11 = vcmp.ne.s16.totalorder %v974_v37, 0  ;;  %v334_v43 = vsel %vm332_vm10, %v305_v22, 0  ;;  %vm344_vm12 = vcmp.ne.s16.totalorder %v994_v47, 0  ;;  %v799_v37 = vcombine.high %v534_v32, %v534_v32 }
  0x9c   : > { %378 = vrot.lane.b32.xlu0 %v774_v28, %s863_s14  ;;  %492 = vmatpush1.bf16.msra.mxu0 %v770_v29  ;;  %v339_v45 = vsel %vm338_vm11, %v304_v18, 0  ;;  %v340_v46 = vsel %vm338_vm11, %v305_v22, 0  ;;  %v781_v48 = vcombine.low %v334_v43, %v335_v44  ;;  %v341_v50 = vsel %vm338_vm11, %v943_v21, 0 }
  0x9d   : > { %493 = vmatprep.subr.bf16.mxu0 %v856_v7  ;;  %v782_v49 = vcombine.low %v339_v45, %v340_v46  ;;  %v783_v51 = vcombine.low %v341_v50, %v341_v50  ;;  %v345_v52 = vsel %vm344_vm12, %v304_v18, 0  ;;  %v346_v53 = vsel %vm344_vm12, %v305_v22, 0  ;;  %800 = vmatprep.mubr.msk.bf16.mxu1 %vm629_vm14, %v799_v37 }
  0x9e   : > { %v784_v54 = vcombine.low %v345_v52, %v346_v53  ;;  %v347_v55 = vsel %vm344_vm12, %v943_v21, 0 }
  0x9f   : > { %380 = vrot.lane.b32.xlu1 %v775_v33, %s863_s14  ;;  %v785_v56 = vcombine.low %v347_v55, %v347_v55 }
  0xa0   : > { %391 = vrot.lane.b32.xlu0 %v776_v34, %s864_s15 }
  0xa3   : > { %393 = vrot.lane.b32.xlu1 %v777_v38, %s864_s15 }
  0xa4   : > { %398 = vrot.lane.b32.xlu0 %v778_v39, %s865_s16 }
  0xa7   : > { %400 = vrot.lane.b32.xlu1 %v779_v41, %s865_s16 }
  0xa8   : > { %411 = vrot.lane.b32.xlu0 %v780_v42, %s866_s17 }
  0xab   : > { %413 = vrot.lane.b32.xlu1 %v781_v48, %s866_s17 }
  0xac   : > { %424 = vrot.lane.b32.xlu0 %v782_v49, %s867_s19 }
  0xaf   : > { %426 = vrot.lane.b32.xlu1 %v783_v51, %s867_s19 }
  0xb0   : > { %429 = vrot.lane.b32.xlu0 %v772_v20, %s868_s20 }
  0xb3   : > { %431 = vrot.lane.b32.xlu1 %v773_v24, %s868_s20 }
  0xb4   : > { %442 = vrot.lane.b32.xlu0 %v784_v54, %s869_s21 }
  0xb7   : > { %444 = vrot.lane.b32.xlu1 %v785_v56, %s869_s21 }
  0xb8   : > { %467 = vperm.xlu0 %830, %v463_v58  }
  0xbb   : > { %472 = vperm.xlu1 %831, %v464_v59  }
 0x109   : > { %v366_v62 = vpop.permute.xlu0 %365 }
 0x10a   : > { %v449_v63 = vsel %vm279_vm2, %v771_v61, %v366_v62 }
 0x10b   : > { %494 = vmatpush1.bf16.msra.mxu0 %v449_v63 }
 0x10c   : > { %495 = vmatprep.subr.bf16.mxu0 %v856_v7 }
 0x10d   : > { %v368_v0 = vpop.permute.xlu1 %367 }
 0x10e   : > { %v379_v1 = vpop.permute.xlu0 %378 }
 0x10f   : > { %496 = vmatpush1.bf16.msra.mxu0 %v368_v0 }
 0x110   : > { %497 = vmatprep.subr.bf16.mxu0 %v856_v7 }
 0x111   : > { %v381_v2 = vpop.permute.xlu1 %380 }
 0x112   : > { %v392_v3 = vpop.permute.xlu0 %391 }
 0x113   : > { %498 = vmatpush1.bf16.msra.mxu0 %v379_v1  ;;  %v453_v4 = vsel %vm279_vm2, %v381_v2, %v392_v3  ;;  %v798_v2 = vcombine.low %v534_v32, %v534_v32 }
 0x114   : > { %499 = vmatprep.subr.bf16.mxu0 %v856_v7 }
 0x115   : > { %v394_v5 = vpop.permute.xlu1 %393 }
 0x116   : > { %v399_v6 = vpop.permute.xlu0 %398 }
 0x117   : > { %500 = vmatpush1.bf16.msra.mxu0 %v453_v4 }
 0x118   : > { %501 = vmatprep.subr.bf16.mxu0 %v856_v7 }
 0x119   : > { %v401_v8 = vpop.permute.xlu1 %400 }
 0x11a   : > { %v412_v9 = vpop.permute.xlu0 %411 }
 0x11b   : > { %502 = vmatpush1.bf16.msra.mxu0 %v394_v5  ;;  %v457_v10 = vsel %vm279_vm2, %v401_v8, %v412_v9 }
 0x11c   : > { %503 = vmatprep.subr.bf16.mxu0 %v856_v7 }
 0x11d   : > { %v414_v11 = vpop.permute.xlu1 %413 }
 0x11e   : > { %v425_v13 = vpop.permute.xlu0 %424 }
 0x11f   : > { %504 = vmatpush1.bf16.msra.mxu0 %v399_v6 }
 0x120   : > { %505 = vmatprep.subr.bf16.mxu0 %v856_v7 }
 0x121   : > { %v427_v14 = vpop.permute.xlu1 %426 }
 0x122   : > { %v430_v15 = vpop.permute.xlu0 %429 }
 0x123   : > { %506 = vmatpush1.bf16.msra.mxu0 %v457_v10  ;;  %v461_v16 = vsel %vm279_vm2, %v427_v14, %v430_v15 }
 0x124   : > { %507 = vmatprep.subr.bf16.mxu0 %v856_v7 }
 0x125   : > { %v432_v18 = vpop.permute.xlu1 %431 }
 0x126   : > { %v443_v20 = vpop.permute.xlu0 %442 }
 0x127   : > { %508 = vmatpush1.bf16.msra.mxu0 %v414_v11 }
 0x128   : > { %509 = vmatprep.subr.bf16.mxu0 %v856_v7 }
 0x129   : > { %v445_v21 = vpop.permute.xlu1 %444 }
 0x12a   : > { %v489_v22 = vsel %vm279_vm2, %v445_v21, 0 }
 0x12b   : > { %510 = vmatpush1.bf16.msra.mxu0 %v425_v13 }
 0x12c   : > { %511 = vmatprep.subr.bf16.mxu0 %v856_v7 }
 0x12f   : > { %512 = vmatpush1.bf16.msra.mxu0 %v461_v16 }
 0x130   : > { %513 = vmatprep.subr.bf16.mxu0 %v856_v7 }
 0x133   : > { %514 = vmatpush1.bf16.msra.mxu0 %v432_v18 }
 0x134   : > { %515 = vmatprep.subr.bf16.mxu0 %v856_v7 }
 0x137   : > { %516 = vmatpush1.bf16.msra.mxu0 %v443_v20  ;;  %v468_v24 = vpop.permute.xlu0 %467 }
 0x138   : > { %517 = vmatprep.subr.bf16.mxu0 %v856_v7 }
 0x13a   : > { %v473_v26 = vpop.permute.xlu1 %472 }
 0x13b   : > { %518 = vmatpush1.bf16.msra.mxu0 %v489_v22 }
 0x13e   : > { %524 = vmatmul.mubr.bf16.vlgmr.msra.gmra.mrb[0].mxu0 %v838_v23 }
 0x211   : > { %v525_v25 = vpop.f32.mrb[0].mxu0 }
 0x212   : > { %v526_v27 = vadd.f32 %v525_v25, %v468_v24  ;;  %v527_v28 = vpop.f32.mrb[1].mxu0 }
 0x213   : > { %v528_v29 = vpop.f32.mrb[2].mxu0 }
 0x214   : > { %v532_v30 = vmax.f32 %v526_v27, 0.0  ;;  %v529_v31 = vadd.f32 %v528_v29, %v473_v26  ;;  %v530_v33 = vpop.f32.mrb[3].mxu0 }
 0x216   : > { %v804_v34 = vpack.c.bf16 %v532_v30, %v532_v30  ;;  %v533_v35 = vmax.f32 %v529_v31, 0.0 }
 0x218   : > { %v805_v36 = vpack.c.bf16 %v533_v35, %v533_v35  ;;  %541 = vrot.lane.b32.xlu1 %v804_v34, %s855_s7 }
 0x21a   : > { %543 = vrot.lane.b32.xlu0 %v805_v36, %s855_s7 }
 0x28a   : > { %v542_v38 = vpop.permute.xlu1 %541 }
 0x28b   : > { %547 = vst.msk [vmem:[#allocation2] sm:$0xf] %vm300_vm7, %v542_v38 }
 0x28c   : > { %v544_v39 = vpop.permute.xlu0 %543 }
 0x28d   : > { %548 = vst.msk [vmem:[#allocation2 + $0x4] sm:$0xf] %vm300_vm7, %v544_v39 }
 0x292   : > { %v549_v40 = vld [vmem:[#allocation2] sm:$0xf] }
 0x293   : > { %v553_v42 = vsel %vm319_vm8, %v549_v40, 0  ;;  %v551_v45 = vsel %vm927_vm6, %v549_v40, 0  ;;  %v555_v17 = vsel %vm326_vm9, %v549_v40, 0  ;;  %v557_v53 = vsel %vm332_vm10, %v549_v40, 0 }
 0x294   : > { %v550_v41 = vld [vmem:[#allocation2 + $0x4] sm:$0xf]  ;;  %v559_v19 = vsel %vm338_vm11, %v549_v40, 0  ;;  %v561_v57 = vsel %vm344_vm12, %v549_v40, 0 }
 0x295   : > { %v792_v43 = vcombine.low %v549_v40, %v550_v41  ;;  %v554_v44 = vsel %vm319_vm8, %v550_v41, 0  ;;  %v552_v46 = vsel %vm927_vm6, %v550_v41, 0  ;;  %v556_v50 = vsel %vm326_vm9, %v550_v41, 0 }
 0x296   : > { %v793_v48 = vcombine.low %v553_v42, %v554_v44  ;;  %v791_v49 = vcombine.low %v551_v45, %v552_v46  ;;  %v794_v51 = vcombine.low %v555_v17, %v556_v50  ;;  %v558_v12 = vsel %vm332_vm10, %v550_v41, 0 }
 0x297   : > { %574 = vrot.lane.b32.xlu1 %v792_v43, %s862_s13  ;;  %v560_v52 = vsel %vm338_vm11, %v550_v41, 0  ;;  %v795_v54 = vcombine.low %v557_v53, %v558_v12  ;;  %v562_v56 = vsel %vm344_vm12, %v550_v41, 0 }
 0x298   : > { %582 = vrot.lane.b32.xlu0 %v793_v48, %s863_s14  ;;  %634 = vmatpush1.bf16.msra.mxu1 %v791_v49  ;;  %v796_v55 = vcombine.low %v559_v19, %v560_v52  ;;  %v797_v58 = vcombine.low %v561_v57, %v562_v56 }
 0x299   : > { %635 = vmatprep.subr.bf16.mxu1 %v856_v7 }
 0x29b   : > { %590 = vrot.lane.b32.xlu1 %v794_v51, %s864_s15 }
 0x29c   : > { %593 = vrot.lane.b32.xlu0 %v792_v43, %s865_s16 }
 0x29f   : > { %601 = vrot.lane.b32.xlu1 %v795_v54, %s866_s17 }
 0x2a0   : > { %609 = vrot.lane.b32.xlu0 %v796_v55, %s867_s19 }
 0x2a3   : > { %612 = vrot.lane.b32.xlu1 %v792_v43, %s868_s20 }
 0x2a4   : > { %620 = vrot.lane.b32.xlu0 %v797_v58, %s869_s21 }
 0x309   : > { %v575_v59 = vpop.permute.xlu1 %574 }
 0x30a   : > { %636 = vmatpush1.bf16.msra.mxu1 %v575_v59  ;;  %v583_v60 = vpop.permute.xlu0 %582 }
 0x30b   : > { %637 = vmatprep.subr.bf16.mxu1 %v856_v7 }
 0x30d   : > { %v591_v47 = vpop.permute.xlu1 %590 }
 0x30e   : > { %638 = vmatpush1.bf16.msra.mxu1 %v583_v60  ;;  %v594_v61 = vpop.permute.xlu0 %593 }
 0x30f   : > { %639 = vmatprep.subr.bf16.mxu1 %v856_v7 }
 0x311   : > { %v602_v62 = vpop.permute.xlu1 %601 }
 0x312   : > { %640 = vmatpush1.bf16.msra.mxu1 %v591_v47  ;;  %v610_v63 = vpop.permute.xlu0 %609 }
 0x313   : > { %641 = vmatprep.subr.bf16.mxu1 %v856_v7 }
 0x315   : > { %v613_v0 = vpop.permute.xlu1 %612 }
 0x316   : > { %642 = vmatpush1.bf16.msra.mxu1 %v594_v61  ;;  %v621_v1 = vpop.permute.xlu0 %620 }
 0x317   : > { %643 = vmatprep.subr.bf16.mxu1 %v856_v7 }
 0x31a   : > { %644 = vmatpush1.bf16.msra.mxu1 %v602_v62 }
 0x31b   : > { %645 = vmatprep.subr.bf16.mxu1 %v856_v7 }
 0x31e   : > { %646 = vmatpush1.bf16.msra.mxu1 %v610_v63 }
 0x31f   : > { %647 = vmatprep.subr.bf16.mxu1 %v856_v7 }
 0x322   : > { %648 = vmatpush1.bf16.msra.mxu1 %v613_v0 }
 0x323   : > { %649 = vmatprep.subr.bf16.mxu1 %v856_v7 }
 0x326   : > { %650 = vmatpush1.bf16.msra.mxu1 %v621_v1 }
 0x329   : > { %666 = vmatmul.mubr.bf16.vlgmr.msra.gmra.mrb[0].mxu1 %v798_v2 }
 0x3fc   : > { %v667_v3 = vpop.f32.mrb[0].mxu1 }
 0x3fd   : > { %v669_v4 = vpop.f32.mrb[1].mxu1  ;;  %v674_v5 = vsel %vm673_vm15, %v667_v3, 0.0 }
 0x3fe   : > { %675 = vadd.xlane.f32.xlu1 %v674_v5  ;;  %v670_v6 = vpop.f32.mrb[2].mxu1 }
 0x3ff   : > { %v671_v8 = vpop.f32.mrb[3].mxu1 }
 0x48b   : > { %v676_v9 = vpop.xlane.xlu1 %675 }
 0x48c   : > { %v678_v10 = vmul.f32 0.015625, %v676_v9 }
 0x48e   : > { %v679_v11 = vsub.f32 %v667_v3, %v678_v10 }
 0x490   : > { %v680_v13 = vmul.f32 %v679_v11, %v679_v11 }
 0x492   : > { %v681_v14 = vsel %vm673_vm15, %v680_v13, 0.0 }
 0x493   : > { %682 = vadd.xlane.f32.xlu0 %v681_v14 }
 0x520   : > { %v683_v15 = vpop.xlane.xlu0 %682 }
 0x521   : > { %v684_v7 = vmul.f32 0.015625, %v683_v15 }
 0x523   : > { %v685_v16 = vadd.f32 1e-05, %v684_v7 }
 0x525   : > { %844 = vrsqrt.f32 %v685_v16 }
 0x52f   : > { %v845_v18 = vpop.eup %844 }
 0x530   : > { %v687_v20 = vmul.f32 %v845_v18, %v679_v11 }
 0x532   : > { %v688_v21 = vpack.c.bf16 %v687_v20, %v687_v20 }
 0x534   : > { %690 = vst.msk [vmem:[%s917_s6] sm:$0xf] %vm689_vm0, %v688_v21 }
 0x535 PF: > { %s15_s18 = sadd.s32 1, %s852_s18  }
 0x536   : > { %p12_p5 = scmp.ge.s32.totalorder %s15_s18, 4  }
 0x538   :  { %14 = sbr.rel (!%p12_p5) target bundleno = 1 (0x1), region = 77 }

// kernel: unet_forward.26
= control target key start
LH: loop header
LB: loop body
LE: loop exit
PB: predicated region body
PF: predicated region fallthrough
CT: control target
= control target key end

     0   :  { %s781_s9 = smov 0   ;;  %s1048_s0 = inlined_call_operand.vmem [shape: bf16[2,64,8], index: 0, kind: input, shape index: {}]   ;;  %s1049_s1 = inlined_call_operand.vmem [shape: bf16[8,16], index: 1, kind: input, shape index: {}]   ;;  %s1050_s2 = inlined_call_operand.vmem [shape: bf16[2,64,32], index: 2, kind: output, shape index: {}]  }
   0x1 LB: > { %s668_s10 = sadd.s32 4294967295, %s763_s9   ;;  %p672_p0 = scmp.ge.s32.totalorder %s763_s9, 1  ;;  %s763_s9 = sphi %s781_s9, %s12_s9  }
   0x2   : > { %p112_p1 = scmp.lt.s32.totalorder %s763_s9, 3 }
   0x4   : > { %p113_p2 = pnand %p672_p0, %p112_p1 }
   0x5   : > { %v153_v0 = vld [vmem:[%s1049_s1] sm:$0xf] (!%p113_p2)  ;;  %vm187_vm0 = vcmask (!%p113_p2), 1043456   ;;  %p134_p3 = scmp.lt.s32.totalorder (!%p113_p2), %s668_s10, 1  ;;  %vm174_vm1 = vcmask (!%p113_p2), 64512   ;;  %v256_v6 = vlaneseq (!%p113_p2)  ;;  %vm369_vm2 = vcmask (!%p113_p2), 1040384  }
   0x6   : > { %116 = sbr.rel (%p113_p2) target bundleno = 379 (0x17b), region = 28  ;;  %722 = vmatprep.subr.msk.bf16.mxu0 (!%p113_p2), %vm187_vm0, %v153_v0  ;;  %723 = vmatprep.subr.msk.bf16.mxu1 (!%p113_p2), %vm187_vm0, %v153_v0  ;;  %v189_v1 = vsel (!%p113_p2), %vm187_vm0, %v153_v0, 0  ;;  %vm426_vm3 = vcmask (!%p113_p2), 1046528   ;;  %s765_s17 = smov (!%p113_p2), 16  }
   0x7   : > { %711 = vmatpush3.bf16.msra.mxu0 (!%p113_p2), %v189_v1  ;;  %721 = vmatpush3.bf16.msra.mxu1 (!%p113_p2), %v189_v1  ;;  %v257_v7 = vshrl.u32 (!%p113_p2), %v256_v6, 7 }
   0x9   : > { %v800_v8 = vadd.s32 (!%p113_p2), 24, %v257_v7  ;;  %v258_v9 = vadd.s32 (!%p113_p2), 8, %v257_v7  ;;  %v262_v10 = vadd.s32 (!%p113_p2), 40, %v257_v7  ;;  %v261_v11 = vadd.s32 (!%p113_p2), 32, %v257_v7 }
   0xa   : > { %v269_v16 = vand.u32 (!%p113_p2), 7, %v257_v7  ;;  %v803_v17 = vadd.s32 (!%p113_p2), 48, %v257_v7  ;;  %v805_v18 = vadd.s32 (!%p113_p2), 56, %v257_v7  ;;  %v807_v19 = vadd.s32 (!%p113_p2), 16, %v257_v7 }
   0xb   : > { %v290_v12 = vand.u32 (!%p113_p2), 7, %v800_v8  ;;  %v276_v13 = vand.u32 (!%p113_p2), 7, %v258_v9  ;;  %v304_v14 = vand.u32 (!%p113_p2), 7, %v262_v10  ;;  %v297_v15 = vand.u32 (!%p113_p2), 7, %v261_v11 }
   0xc   : > { %vm837_vm10 = vcmp.eq.s32.totalorder (!%p113_p2), %v269_v16, 0  ;;  %v311_v28 = vand.u32 (!%p113_p2), 7, %v803_v17  ;;  %v318_v29 = vand.u32 (!%p113_p2), 7, %v805_v18  ;;  %vm849_vm11 = vcmp.eq.s32.totalorder (!%p113_p2), %v269_v16, 7 }
   0xd   : > { %s1084_s10 = smov (!%p134_p3, %s668_s10), 1  ;;  %vm811_vm4 = vcmp.eq.s32.totalorder %v290_v12, 0  ;;  %vm815_vm5 = vcmp.eq.s32.totalorder %v276_v13, 0  ;;  %vm819_vm6 = vcmp.eq.s32.totalorder %v304_v14, 0  ;;  %vm823_vm7 = vcmp.eq.s32.totalorder %v297_v15, 7 }
   0xe   : > { %s695_s13 = sshll.u32 %s1084_s10, 5  ;;  %vm829_vm8 = vcmp.eq.s32.totalorder %v297_v15, 0  ;;  %vm833_vm9 = vcmp.eq.s32.totalorder %v304_v14, 7  ;;  %v283_v35 = vand.u32 7, %v807_v19  ;;  %vm865_vm12 = vcmp.eq.s32.totalorder %v276_v13, 7 }
   0xf   : > { %s138_s16 = scalar_lea.vmem %s1048_s0, %s695_s13  ;;  %vm880_vm13 = vcmp.eq.s32.totalorder %v311_v28, 7  ;;  %vm884_vm14 = vcmp.eq.s32.totalorder %v318_v29, 7  ;;  %vm920_vm0 = vcmp.eq.s32.totalorder %v290_v12, 7  ;;  %s1021_s20 = scalar_lea.vmem %s1050_s2, %s695_s13 }
  0x10   : > { %v753_v2 = vld [vmem:[%s138_s16] sm:$0xff]   ;;  %v754_v3 = vld [vmem:[%s138_s16 + $0x10] sm:$0xff]   ;;  %v755_v4 = vld [vmem:[%s138_s16 + $0x8] sm:$0xff]   ;;  %vm914_vm15 = vcmp.eq.s32.totalorder %v283_v35, 7 }
  0x11   : > { %712 = vmatprep.mubr.msk.bf16.mxu0 %vm174_vm1, %v753_v2  ;;  %716 = vmatprep.mubr.msk.bf16.mxu1 %vm174_vm1, %v754_v3  ;;  %v756_v5 = vld [vmem:[%s138_s16 + $0x18] sm:$0xff]  }
  0x12   : > { %713 = vmatmul.mubr.msk.bf16.vlgmr.msra.gmra.mrb[0].mxu0 %vm174_vm1, %v755_v4  ;;  %717 = vmatmul.mubr.msk.bf16.vlgmr.msra.gmra.mrb[0].mxu1 %vm174_vm1, %v756_v5  ;;  %vm929_vm1 = vcmp.eq.s32.totalorder %v311_v28, 0 }
  0xe5   : > { %v827_v24 = vpop.f32.mrb[0].mxu0  ;;  %v845_v32 = vpop.f32.mrb[0].mxu1 }
  0xe6   : > { %v373_v30 = vrot.slane %v827_v24, 7  ;;  %v430_v31 = vrot.slane %v827_v24, 1  ;;  %v847_v33 = vpop.f32.mrb[1].mxu0  ;;  %v855_v36 = vmul.f32 0.75, %v827_v24  ;;  %v381_v37 = vrot.slane %v845_v32, 7  ;;  %v861_v41 = vpop.f32.mrb[1].mxu1 }
  0xe7   : > { %v438_v38 = vrot.slane %v845_v32, 1  ;;  %v370_v39 = vrot.slane %v847_v33, 7  ;;  %v427_v40 = vrot.slane %v847_v33, 1  ;;  %v863_v42 = vpop.f32.mrb[2].mxu0  ;;  %v377_v44 = vrot.slane %v861_v41, 7  ;;  %v873_v48 = vpop.f32.mrb[2].mxu1 }
  0xe8   : > { %v434_v45 = vrot.slane %v861_v41, 1  ;;  %v375_v46 = vrot.slane %v863_v42, 7  ;;  %v432_v47 = vrot.slane %v863_v42, 1  ;;  %v228_v49 = vpop.f32.mrb[3].mxu0  ;;  %v383_v51 = vrot.slane %v873_v48, 7  ;;  %v244_v54 = vpop.f32.mrb[3].mxu1 }
  0xe9   : > { %v393_v50 = vsel %vm369_vm2, %v847_v33, %v370_v39  ;;  %v440_v52 = vrot.slane %v873_v48, 1  ;;  %v371_v53 = vrot.slane %v228_v49, 7  ;;  %v428_v56 = vrot.slane %v228_v49, 1 }
  0xea   : > { %v376_v55 = vsel %vm369_vm2, %v373_v30, %v375_v46  ;;  %v379_v57 = vrot.slane %v244_v54, 7  ;;  %v436_v58 = vrot.slane %v244_v54, 1  ;;  %v487_v0 = vmul.f32 0.75, %v861_v41 }
  0xeb   : > { %v421_v61 = vsel %vm811_vm4, %v863_v42, %v376_v55  ;;  %v372_v62 = vsel %vm369_vm2, %v370_v39, %v371_v53  ;;  %v893_v63 = vsel %vm369_vm2, %v371_v53, %v373_v30  ;;  %v488_v16 = vmul.f32 0.75, %v244_v54 }
  0xec   : > { %v896_v1 = vmul.f32 0.25, %v421_v61  ;;  %v419_v2 = vsel %vm815_vm5, %v228_v49, %v372_v62  ;;  %v380_v3 = vsel %vm369_vm2, %v377_v44, %v379_v57  ;;  %v904_v4 = vsel %vm369_vm2, %v379_v57, %v381_v37 }
  0xed   : > { %v492_v5 = vmul.f32 0.25, %v419_v2  ;;  %v423_v6 = vsel %vm819_vm6, %v244_v54, %v380_v3  ;;  %v437_v7 = vsel %vm426_vm3, %v434_v45, %v436_v58  ;;  %v439_v9 = vsel %vm426_vm3, %v436_v58, %v438_v38 }
  0xee   : > { %v496_v13 = vmul.f32 0.25, %v423_v6  ;;  %v479_v14 = vsel %vm823_vm7, %v861_v41, %v437_v7  ;;  %v480_v15 = vsel %vm833_vm9, %v244_v54, %v439_v9  ;;  %v378_v8 = vsel %vm369_vm2, %v375_v46, %v377_v44 }
  0xef   : > { %v511_v18 = vmul.f32 0.25, %v479_v14  ;;  %v512_v19 = vmul.f32 0.25, %v480_v15  ;;  %v418_v12 = vsel %vm837_vm10, %v847_v33, %v393_v50  ;;  %vm937_vm4 = vcmp.eq.s32.totalorder %v318_v29, 0 }
  0xf0   : > { %v422_v21 = vsel %vm829_vm8, %v861_v41, %v378_v8  ;;  %v944_v22 = vadd.f32 %v496_v13, %v488_v16  ;;  %v429_v23 = vsel %vm426_vm3, %v427_v40, %v428_v56  ;;  %v431_v26 = vsel %vm426_vm3, %v428_v56, %v430_v31 }
  0xf1   : > { %vm950_vm5 = vcmp.eq.s32.totalorder %v283_v35, 0  ;;  %v519_v27 = vadd.f32 %v511_v18, %v487_v0  ;;  %v520_v29 = vadd.f32 %v512_v19, %v488_v16  ;;  %v495_v30 = vmul.f32 0.25, %v422_v21 }
  0xf2   : > { %v475_v25 = vsel %vm849_vm11, %v847_v33, %v429_v23  ;;  %v476_v39 = vsel %vm865_vm12, %v228_v49, %v431_v26  ;;  %v483_v40 = vmul.f32 0.75, %v847_v33  ;;  %v484_v44 = vmul.f32 0.75, %v228_v49 }
  0xf3   : > { %v491_v46 = vmul.f32 0.25, %v418_v12  ;;  %v743_v50 = vpack.i.bf16 %v520_v29, %v519_v27  ;;  %v503_v53 = vadd.f32 %v495_v30, %v487_v0  ;;  %v507_v35 = vmul.f32 0.25, %v475_v25 }
  0xf4   : > { %v508_v54 = vmul.f32 0.25, %v476_v39  ;;  %v500_v56 = vadd.f32 %v492_v5, %v484_v44  ;;  %v441_v57 = vsel %vm426_vm3, %v438_v38, %v440_v52  ;;  %v450_v34 = vsel %vm426_vm3, %v440_v52, %v873_v48 }
  0xf5   : > { %v499_v55 = vadd.f32 %v491_v46, %v483_v40  ;;  %744 = vrot.lane.b32.xlu1 %v743_v50, %s765_s17  ;;  %v515_v43 = vadd.f32 %v507_v35, %v483_v40  ;;  %v481_v49 = vsel %vm880_vm13, %v845_v32, %v441_v57  ;;  %v482_v58 = vsel %vm884_vm14, %v873_v48, %v450_v34 }
  0xf6   : > { %v516_v33 = vadd.f32 %v508_v54, %v484_v44  ;;  %v489_v61 = vmul.f32 0.75, %v845_v32  ;;  %v490_v38 = vmul.f32 0.75, %v873_v48  ;;  %v513_v62 = vmul.f32 0.25, %v481_v49 }
  0xf7   : > { %v514_v0 = vmul.f32 0.25, %v482_v58  ;;  %v433_v2 = vsel %vm426_vm3, %v430_v31, %v432_v47  ;;  %v435_v59 = vsel %vm426_vm3, %v432_v47, %v434_v45  ;;  %v486_v60 = vmul.f32 0.75, %v863_v42 }
  0xf8   : > { %v733_v52 = vpack.i.bf16 %v516_v33, %v515_v43  ;;  %v521_v3 = vadd.f32 %v513_v62, %v489_v61  ;;  %v477_v6 = vsel %vm914_vm15, %v827_v24, %v433_v2  ;;  %v478_v7 = vsel %vm920_vm0, %v863_v42, %v435_v59 }
  0xf9   : > { %v522_v5 = vadd.f32 %v514_v0, %v490_v38  ;;  %v509_v31 = vmul.f32 0.25, %v477_v6  ;;  %v510_v41 = vmul.f32 0.25, %v478_v7  ;;  %v384_v45 = vsel %vm369_vm2, %v381_v37, %v383_v51 }
  0xfa   : > { %734 = vrot.lane.b32.xlu0 %v733_v52, %s765_s17  ;;  %v424_v47 = vsel %vm929_vm1, %v845_v32, %v904_v4  ;;  %v425_v42 = vsel %vm937_vm4, %v873_v48, %v384_v45  ;;  %v502_v11 = vadd.f32 %v896_v1, %v486_v60  ;;  %v420_v37 = vsel %vm950_vm5, %v827_v24, %v893_v63 }
  0xfb   : > { %v748_v9 = vpack.i.bf16 %v522_v5, %v521_v3  ;;  %v497_v10 = vmul.f32 0.25, %v424_v47  ;;  %v517_v13 = vadd.f32 %v509_v31, %v855_v36  ;;  %v518_v14 = vadd.f32 %v510_v41, %v486_v60 }
  0xfc   : > { %v498_v15 = vmul.f32 0.25, %v425_v42  ;;  %v493_v51 = vmul.f32 0.25, %v420_v37  ;;  %vm555_vm2 = vcmask 130048   ;;  %vm604_vm3 = vcmask 257024  }
  0xfd   : > { %749 = vrot.lane.b32.xlu1 %v748_v9, %s765_s17  ;;  %v505_v32 = vadd.f32 %v497_v10, %v489_v61  ;;  %v738_v4 = vpack.i.bf16 %v518_v14, %v517_v13 }
  0xfe   : > { %v506_v16 = vadd.f32 %v498_v15, %v490_v38  ;;  %v501_v48 = vadd.f32 %v493_v51, %v855_v36 }
  0xff   : > { %739 = vrot.lane.b32.xlu0 %v738_v4, %s765_s17 }
 0x167   : > { %v745_v1 = vpop.permute.xlu1 %744 }
 0x168   : > { %v747_v17 = vunpack.i.h.bf16 %v745_v1  ;;  %v746_v18 = vunpack.i.l.bf16 %v745_v1 }
 0x16a   : > { %v560_v19 = vsel %vm555_vm2, %v503_v53, %v746_v18  ;;  %v561_v24 = vsel %vm555_vm2, %v944_v22, %v747_v17 }
 0x16b   : > { %v568_v63 = vmax.f32 %v560_v19, 0.0  ;;  %v569_v8 = vmax.f32 %v561_v24, 0.0 }
 0x16c   : > { %v735_v12 = vpop.permute.xlu0 %734 }
 0x16d   : > { %v737_v36 = vunpack.i.h.bf16 %v735_v12  ;;  %v736_v20 = vunpack.i.l.bf16 %v735_v12  ;;  %v701_v21 = vpack.c.bf16 %v568_v63, %v568_v63  ;;  %v702_v23 = vpack.c.bf16 %v569_v8, %v569_v8 }
 0x16f   : > { %v556_v26 = vsel %vm555_vm2, %v499_v55, %v736_v20  ;;  %v557_v22 = vsel %vm555_vm2, %v500_v56, %v737_v36  ;;  %v750_v28 = vpop.permute.xlu1 %749  ;;  %609 = vst.msk [vmem:[%s1021_s20 + $0x10] sm:$0xf] %vm604_vm3, %v701_v21  ;;  %610 = vst.msk [vmem:[%s1021_s20 + $0x14] sm:$0xf] %vm604_vm3, %v702_v23 }
 0x170   : > { %v564_v27 = vmax.f32 %v556_v26, 0.0  ;;  %v565_v29 = vmax.f32 %v557_v22, 0.0  ;;  %v752_v30 = vunpack.i.h.bf16 %v750_v28  ;;  %v751_v25 = vunpack.i.l.bf16 %v750_v28 }
 0x171   : > { %v740_v50 = vpop.permute.xlu0 %739 }
 0x172   : > { %v697_v39 = vpack.c.bf16 %v564_v27, %v564_v27  ;;  %v698_v40 = vpack.c.bf16 %v565_v29, %v565_v29  ;;  %v563_v44 = vsel %vm555_vm2, %v506_v16, %v752_v30  ;;  %v562_v46 = vsel %vm555_vm2, %v505_v32, %v751_v25 }
 0x173   : > { %v571_v53 = vmax.f32 %v563_v44, 0.0  ;;  %v570_v35 = vmax.f32 %v562_v46, 0.0  ;;  %v742_v54 = vunpack.i.h.bf16 %v740_v50  ;;  %v741_v55 = vunpack.i.l.bf16 %v740_v50 }
 0x174   : > { %605 = vst.msk [vmem:[%s1021_s20] sm:$0xf] %vm604_vm3, %v697_v39  ;;  %606 = vst.msk [vmem:[%s1021_s20 + $0x4] sm:$0xf] %vm604_vm3, %v698_v40 }
 0x175   : > { %v704_v56 = vpack.c.bf16 %v571_v53, %v571_v53  ;;  %v703_v57 = vpack.c.bf16 %v570_v35, %v570_v35  ;;  %v559_v34 = vsel %vm555_vm2, %v502_v11, %v742_v54  ;;  %v558_v43 = vsel %vm555_vm2, %v501_v48, %v741_v55 }
 0x176   : > { %v567_v33 = vmax.f32 %v559_v34, 0.0  ;;  %v566_v49 = vmax.f32 %v558_v43, 0.0 }
 0x177   : > { %612 = vst.msk [vmem:[%s1021_s20 + $0x1c] sm:$0xf] %vm604_vm3, %v704_v56  ;;  %611 = vst.msk [vmem:[%s1021_s20 + $0x18] sm:$0xf] %vm604_vm3, %v703_v57 }
 0x178   : > { %v700_v58 = vpack.c.bf16 %v567_v33, %v567_v33  ;;  %v699_v61 = vpack.c.bf16 %v566_v49, %v566_v49 }
 0x17a   : > { %608 = vst.msk [vmem:[%s1021_s20 + $0xc] sm:$0xf] %vm604_vm3, %v700_v58  ;;  %607 = vst.msk [vmem:[%s1021_s20 + $0x8] sm:$0xf] %vm604_vm3, %v699_v61 }
 0x17b PF: > { %s12_s9 = sadd.s32 1, %s763_s9  }
 0x17c   : > { %p9_p4 = scmp.ge.s32.totalorder %s12_s9, 4  }
 0x17e   :  { %11 = sbr.rel (!%p9_p4) target bundleno = 1 (0x1), region = 58 }

// kernel: unet_forward.27
= control target key start
LH: loop header
LB: loop body
LE: loop exit
PB: predicated region body
PF: predicated region fallthrough
CT: control target
= control target key end

     0   :  { %s1180_s21 = smov 0   ;;  %s1540_s0 = inlined_call_operand.vmem [shape: bf16[2,8,256], index: 0, kind: input, shape index: {}]   ;;  %s1541_s1 = inlined_call_operand.vmem [shape: bf16[2,16,256], index: 1, kind: input, shape index: {}]   ;;  %s1542_s2 = inlined_call_operand.vmem [shape: bf16[16,216], index: 2, kind: input, shape index: {}]   ;;  %s1543_s3 = inlined_call_operand.vmem [shape: f32[16,1], index: 3, kind: input, shape index: {}]   ;;  %s1544_s4 = inlined_call_operand.vmem [shape: bf16[3,16], index: 4, kind: input, shape index: {}]   ;;  %s1545_s5 = inlined_call_operand.vmem [shape: f32[3,1], index: 5, kind: input, shape index: {}]   ;;  %s1546_s6 = inlined_call_operand.vmem [shape: f32[2,3,256], index: 6, kind: output, shape index: {}]  }
   0x1 LB: > { %s1002_s22 = sadd.s32 4294967295, %s1127_s21   ;;  %p1006_p0 = scmp.ge.s32.totalorder %s1127_s21, 1  ;;  %s1127_s21 = sphi %s1180_s21, %s16_s21  }
   0x2   : > { %p222_p1 = scmp.lt.s32.totalorder %s1127_s21, 3 }
   0x4   : > { %p223_p2 = pnand %p1006_p0, %p222_p1 }
   0x5   : > { %p257_p3 = scmp.lt.s32.totalorder (!%p223_p2), %s1002_s22, 1  ;;  %p1013_p4 = scmp.ne.s32.totalorder (!%p223_p2), %s1002_s22, 0 }
   0x6   : > { %226 = sbr.rel (%p223_p2) target bundleno = 808 (0x328), region = 44 }
   0xd   : > { %s258_s23 = scalar_select %p257_p3, %s1002_s22, 1 }
   0xe   : > { %278 = sbr.rel (%p1013_p4) target bundleno = 21 (0x15), region = 48  ;;  %vm279_vm0 = vcmask (!%p1013_p4), 134144   ;;  %vm283_vm1 = vcmask (!%p1013_p4), 273544   ;;  %v1129_v0 = vmov (!%p1013_p4), 0  }
   0xf   : > { %s1073_s24 = sshll.u32 %s258_s23, 3  ;;  %s1074_s25 = sshll.u32 %s258_s23, 4  ;;  %280 = vst.msk [vmem:[#allocation2] sm:$0xf] (!%p1013_p4), %vm279_vm0, %v1129_v0  ;;  %281 = vst.msk [vmem:[#allocation2 + $0xc] sm:$0xf] (!%p1013_p4), %vm279_vm0, %v1129_v0 }
  0x10   : > { %s261_s28 = scalar_lea.vmem %s1540_s0, %s1073_s24  ;;  %s266_s7 = scalar_lea.vmem %s1541_s1, %s1074_s25  ;;  %282 = vst.msk [vmem:[#allocation2 + $0x18] sm:$0xf] (!%p1013_p4), %vm279_vm0, %v1129_v0 }
  0x11   : > { %s1197_s10 = scalar_lea.vmem %s1546_s6, %s1073_s24  ;;  %284 = vst.msk [vmem:[#allocation2 + $0x8] sm:$0xf] (!%p1013_p4), %vm283_vm1, %v1129_v0  ;;  %285 = vst.msk [vmem:[#allocation2 + $0x14] sm:$0xf] (!%p1013_p4), %vm283_vm1, %v1129_v0 }
  0x12   : > { %286 = vst.msk [vmem:[#allocation2 + $0x20] sm:$0xf] (!%p1013_p4), %vm283_vm1, %v1129_v0 }
  0x15 PF: > { %v320_v1 = vld [vmem:[%s266_s7 + $0x8] sm:$0xff]  ;;  %v318_v2 = vld [vmem:[%s261_s28] sm:$0xff]  ;;  %vm334_vm2 = vcmask 1043456   ;;  %v287_v4 = vlaneseq  ;;  %s1130_s11 = smov 17   ;;  %v1131_v10 = vmov 0   ;;  %s1132_s12 = smov 2  }
  0x16   : > { %v319_v3 = vld [vmem:[%s266_s7] sm:$0xff]  ;;  %356 = vrot.lane.b32.xlu1 %v320_v1, %s1130_s11  ;;  %v1014_v5 = vcombine.low %v318_v2, %v318_v2  ;;  %v1015_v6 = vcombine.high %v318_v2, %v318_v2  ;;  %1100 = vset.pattern.permute.xlu0 %v1131_v10  ;;  %s1133_s13 = smov 16   ;;  %s1134_s14 = smov 18   ;;  %vm371_vm9 = vcmask 1043592   ;;  %vm372_vm10 = vcmask 1047556  }
  0x17   : > { %v1016_v7 = vcombine.low %v319_v3, %v319_v3  ;;  %v1017_v8 = vcombine.high %v319_v3, %v319_v3  ;;  %v288_v9 = vand.u32 127, %v287_v4  ;;  %1101 = vset.pattern.permute.xlu1 %v1131_v10  ;;  %921 = vmatprep.mubr.bf16.mxu1 %v1131_v10  ;;  %s1135_s15 = smov 32   ;;  %s1136_s16 = smov 34   ;;  %vm361_vm11 = vcmask 138240   ;;  %vm1207_vm13 = vmor %vm372_vm10, %vm371_vm9  ;;  %v879_v3 = vld [vmem:[%s1545_s5] sm:$0x7] }
  0x18   : > { %vm375_vm12 = vcmask 134144   ;;  %vm404_vm14 = vcmask 15360   ;;  %s1137_s17 = smov 111   ;;  %s1138_s18 = smov 126   ;;  %vm418_vm10 = vcmask 130048  }
  0x19   : > { %v337_v11 = vsel %vm334_vm2, %v1014_v5, %v1016_v7  ;;  %v340_v12 = vsel %vm334_vm2, %v1015_v6, %v1017_v8  ;;  %v289_v14 = vadd.s32 128, %v288_v9  ;;  %v294_v15 = vand.u32 15, %v288_v9  ;;  %s1139_s19 = smov 127   ;;  %s1140_s20 = smov 96  }
  0x1a   : > { %v1018_v13 = vcombine.low %v337_v11, %v340_v12  ;;  %v1019_v16 = vcombine.high %v337_v11, %v340_v12  ;;  %s1141_s22 = smov 112   ;;  %s1142_s23 = smov 110  }
  0x1b   : > { %v301_v17 = vand.u32 15, %v289_v14  ;;  %vm316_vm3 = vcmp.lt.s32.totalorder %v294_v15, 15  ;;  %vm314_vm4 = vcmp.gt.s32.totalorder %v294_v15, 0  ;;  %s1143_s24 = smov 95   ;;  %s1144_s25 = smov 94  }
  0x1c   : > { %352 = vrot.lane.b32.xlu0 %v1018_v13, %s1130_s11 }
  0x1d   : > { %vm317_vm5 = vcmp.lt.s32.totalorder %v301_v17, 15  ;;  %vm315_vm6 = vcmp.gt.s32.totalorder %v301_v17, 0 }
  0x1e   : > { %vm399_vm7 = vmpackc.low %vm317_vm5, %vm316_vm3  ;;  %vm457_vm3 = vcmask 277504  }
  0x1f   : > { %v400_v18 = vsel %vm399_vm7, 65537, %v1131_v10  ;;  %vm1201_vm8 = vmpackc.low %vm315_vm6, %vm314_vm4  ;;  %vm444_vm4 = vcmask 261120  }
  0x20   : > { %354 = vrot.lane.b32.xlu0 %v1019_v16, %s1130_s11  ;;  %401 = vrot.lane.b32.xlu1 %v400_v18, %s1132_s12  ;;  %v414_v20 = vsel %vm1201_vm8, 65537, %v1131_v10 }
  0x24   : > { %415 = vrot.lane.b32.xlu0 %v414_v20, %s1133_s13  ;;  %428 = vrot.lane.b32.xlu1 %v400_v18, %s1134_s14 }
  0x28   : > { %441 = vrot.lane.b32.xlu0 %v414_v20, %s1135_s15  ;;  %454 = vrot.lane.b32.xlu1 %v400_v18, %s1136_s16 }
  0x88   : > { %v357_v21 = vpop.permute.xlu1 %356 }
  0x89   : > { %v360_v23 = vrot.slane %v357_v21, 4 }
  0x8b   : > { %v364_v24 = vsel %vm361_vm11, %v360_v23, %v357_v21  ;;  %380 = vst.msk [vmem:[#allocation2 + $0x20] sm:$0xf] %vm375_vm12, %v360_v23 }
  0x8c   : > { %379 = vst.msk [vmem:[#allocation2 + $0x18] sm:$0xff] %vm1207_vm13, %v364_v24 }
  0x8e   : > { %v353_v25 = vpop.permute.xlu0 %352 }
  0x8f   : > { %v358_v26 = vrot.slane %v353_v25, 4 }
  0x91   : > { %v362_v27 = vsel %vm361_vm11, %v358_v26, %v353_v25  ;;  %376 = vst.msk [vmem:[#allocation2 + $0x8] sm:$0xf] %vm375_vm12, %v358_v26 }
  0x92   : > { %374 = vst.msk [vmem:[#allocation2] sm:$0xff] %vm1207_vm13, %v362_v27  ;;  %v355_v28 = vpop.permute.xlu0 %354  ;;  %v402_v30 = vpop.permute.xlu1 %401  ;;  %v1219_v31 = vld [vmem:[#allocation2 + $0x20] sm:$0xf] }
  0x93   : > { %v359_v29 = vrot.slane %v355_v28, 4  ;;  %v1221_v32 = vld [vmem:[#allocation2 + $0x18] sm:$0xff]  ;;  %v403_v33 = vrot.slane %v402_v30, 4  ;;  %v1047_v34 = vcombine.low %v1219_v31, %v1219_v31 }
  0x94   : > { %v1046_v36 = vcombine.high %v1221_v32, %v1221_v32  ;;  %v1045_v43 = vcombine.low %v1221_v32, %v1221_v32 }
  0x95   : > { %v363_v35 = vsel %vm361_vm11, %v359_v29, %v355_v28  ;;  %378 = vst.msk [vmem:[#allocation2 + $0x14] sm:$0xf] %vm375_vm12, %v359_v29  ;;  %vm1231_vm15 = vcmp.ne.s16.totalorder %v403_v33, 0  ;;  %618 = vrot.lane.b32.xlu0 %v1047_v34, %s1137_s17  ;;  %v1244_v41 = vsel %vm404_vm14, %v403_v33, %v402_v30 }
  0x96   : > { %377 = vst.msk [vmem:[#allocation2 + $0xc] sm:$0xff] %vm1207_vm13, %v363_v35  ;;  %v1236_v38 = vpop.permute.xlu0 %415  ;;  %616 = vrot.lane.b32.xlu1 %v1046_v36, %s1137_s17  ;;  %v1239_v39 = vpop.permute.xlu1 %428  ;;  %v413_v40 = vsel %vm1231_vm15, %v1219_v31, 0  ;;  %vm406_vm0 = vcmp.ne.s16.totalorder %v1244_v41, 0  ;;  %vm431_vm13 = vcmask 146432  }
  0x97   : > { %v1035_v42 = vcombine.low %v413_v40, %v413_v40  ;;  %v412_v52 = vsel %vm406_vm0, %v1221_v32, 0  ;;  %v417_v2 = vrot.slane %v1236_v38, 4  ;;  %v430_v26 = vrot.slane %v1239_v39, 4 }
  0x98   : > { %v1249_v45 = vld [vmem:[#allocation2 + $0x8] sm:$0xf]  ;;  %v1034_v58 = vcombine.high %v412_v52, %v412_v52  ;;  %v1033_v1 = vcombine.low %v412_v52, %v412_v52 }
  0x99   : > { %553 = vrot.lane.b32.xlu0 %v1035_v42, %s1138_s18  ;;  %v1261_v50 = vcombine.low %v1249_v45, %v1249_v45  ;;  %v1263_v51 = vld [vmem:[#allocation2] sm:$0xff]  ;;  %vm1318_vm9 = vcmp.ne.s16.totalorder %v417_v2, 0  ;;  %v409_v27 = vsel %vm1231_vm15, %v1249_v45, 0  ;;  %vm1381_vm11 = vcmp.ne.s16.totalorder %v430_v26, 0 }
  0x9a   : > { %v442_v44 = vpop.permute.xlu0 %441  ;;  %614 = vrot.lane.b32.xlu1 %v1045_v43, %s1137_s17  ;;  %v455_v47 = vpop.permute.xlu1 %454  ;;  %v389_v57 = vsel %vm1201_vm8, %v1263_v51, 0  ;;  %v1025_v6 = vcombine.high %v1263_v51, %v1263_v51  ;;  %v1336_v14 = vcombine.low %v1263_v51, %v1263_v51  ;;  %v423_v17 = vsel %vm1318_vm9, %v1249_v45, 0 }
  0x9b   : > { %v443_v46 = vrot.slane %v442_v44, 4  ;;  %v456_v53 = vrot.slane %v455_v47, 4  ;;  %v1038_v18 = vcombine.low %v423_v17, %v423_v17  ;;  %v427_v22 = vsel %vm1318_vm9, %v1219_v31, 0 }
  0x9c   : > { %v1279_v61 = vld [vmem:[#allocation2 + $0x14] sm:$0xf]  ;;  %v419_v35 = vsel %vm418_vm10, %v417_v2, %v1236_v38  ;;  %v436_v40 = vsel %vm1381_vm11, %v1249_v45, 0  ;;  %v408_v49 = vsel %vm406_vm0, %v1263_v51, 0 }
  0x9d   : > { %v1253_v48 = vld [vmem:[#allocation2 + $0xc] sm:$0xff]  ;;  %vm1255_vm1 = vcmp.ne.s16.totalorder %v443_v46, 0  ;;  %v1281_v62 = vsel %vm457_vm3, %v456_v53, %v455_v47  ;;  %v1285_v63 = vsel %vm444_vm4, %v443_v46, %v442_v44  ;;  %v1289_v0 = vcombine.low %v1279_v61, %v1219_v31 }
  0x9e   : > { %507 = vrot.lane.b32.xlu1 %v1261_v50, %s1139_s19  ;;  %v453_v54 = vsel %vm1255_vm1, %v1219_v31, 0  ;;  %v390_v55 = vsel %vm1201_vm8, %v1253_v48, 0  ;;  %vm459_vm5 = vcmp.ne.s16.totalorder %v1281_v62, 0  ;;  %vm446_vm6 = vcmp.ne.s16.totalorder %v1285_v63, 0 }
  0x9f   : > { %v1059_v56 = vcombine.low %v453_v54, %v453_v54  ;;  %v1021_v59 = vcombine.high %v389_v57, %v390_v55  ;;  %v1020_v60 = vcombine.low %v389_v57, %v390_v55  ;;  %vm1297_vm7 = vcmp.ne.s16.totalorder %v456_v53, 0 }
  0xa0   : > { %v1304_v4 = vsel %vm459_vm5, %v1263_v51, 0  ;;  %v1309_v5 = vsel %vm459_vm5, %v1253_v48, 0  ;;  %v1044_v7 = vcombine.low %v1249_v45, %v1279_v61  ;;  %v452_v8 = vsel %vm446_vm6, %v1221_v32, 0 }
  0xa1   : > { %698 = vrot.lane.b32.xlu0 %v1059_v56, %s1140_s20  ;;  %829 = vmatprep.subr.bf16.mxu0 %v1021_v59  ;;  %v462_v10 = vsel %vm1297_vm7, %v1249_v45, 0  ;;  %v464_v11 = vsel %vm1297_vm7, %v1279_v61, 0  ;;  %v1061_v12 = vcombine.high %v1304_v4, %v1309_v5  ;;  %v1060_v13 = vcombine.low %v1304_v4, %v1309_v5 }
  0xa2   : > { %551 = vrot.lane.b32.xlu1 %v1034_v58, %s1138_s18  ;;  %830 = vmatpush1.bf16.msra.mxu0 %v1020_v60  ;;  %v1058_v15 = vcombine.high %v452_v8, %v452_v8  ;;  %v1338_v16 = vcombine.low %v462_v10, %v464_v11  ;;  %v1348_v20 = vcombine.high %v1253_v48, %v1221_v32  ;;  %v425_v21 = vsel %vm1318_vm9, %v1279_v61, 0 }
  0xa3   : > { %v1041_v23 = vcombine.low %v425_v21, %v427_v22  ;;  %v1361_v24 = vcombine.low %v1253_v48, %v1221_v32  ;;  %v411_v25 = vsel %vm1231_vm15, %v1279_v61, 0  ;;  %v1043_v28 = vcombine.high %v1263_v51, %v1253_v48 }
  0xa4   : > { %v1032_v29 = vcombine.low %v409_v27, %v411_v25  ;;  %v449_v30 = vsel %vm1255_vm1, %v1249_v45, 0  ;;  %v451_v33 = vsel %vm1255_vm1, %v1279_v61, 0  ;;  %v1042_v36 = vcombine.low %v1263_v51, %v1253_v48 }
  0xa5   : > { %513 = vrot.lane.b32.xlu0 %v1289_v0, %s1139_s19  ;;  %v1056_v37 = vcombine.low %v449_v30, %v451_v33  ;;  %vm420_vm12 = vcmp.ne.s16.totalorder %v419_v35, 0  ;;  %v1050_v42 = vcombine.low %v436_v40, %v436_v40  ;;  %v438_v38 = vsel %vm1381_vm11, %v1279_v61, 0 }
  0xa6   : > { %549 = vrot.lane.b32.xlu1 %v1033_v1, %s1138_s18  ;;  %v422_v43 = vsel %vm420_vm12, %v1263_v51, 0  ;;  %v440_v44 = vsel %vm1381_vm11, %v1219_v31, 0  ;;  %v410_v47 = vsel %vm406_vm0, %v1253_v48, 0  ;;  %v1057_v53 = vcombine.low %v452_v8, %v452_v8 }
  0xa7   : > { %v1053_v45 = vcombine.low %v438_v38, %v440_v44  ;;  %v1037_v46 = vcombine.high %v422_v43, %v422_v43  ;;  %v1031_v52 = vcombine.high %v408_v49, %v410_v47  ;;  %v424_v54 = vsel %vm420_vm12, %v1253_v48, 0 }
  0xa8   : > { %v426_v55 = vsel %vm420_vm12, %v1221_v32, 0  ;;  %v432_v56 = vsel %vm431_vm13, %v430_v26, %v1239_v39  ;;  %v1030_v57 = vcombine.low %v408_v49, %v410_v47  ;;  %v1036_v41 = vcombine.low %v422_v43, %v422_v43 }
  0xa9   : > { %505 = vrot.lane.b32.xlu0 %v1025_v6, %s1139_s19  ;;  %v1040_v58 = vcombine.high %v424_v54, %v426_v55  ;;  %vm433_vm14 = vcmp.ne.s16.totalorder %v432_v56, 0  ;;  %v1039_v59 = vcombine.low %v424_v54, %v426_v55  ;;  %v448_v8 = vsel %vm446_vm6, %v1263_v51, 0 }
  0xaa   : > { %612 = vrot.lane.b32.xlu1 %v1044_v7, %s1137_s17  ;;  %v435_v60 = vsel %vm433_vm14, %v1263_v51, 0  ;;  %v437_v1 = vsel %vm433_vm14, %v1253_v48, 0  ;;  %v439_v39 = vsel %vm433_vm14, %v1221_v32, 0  ;;  %v1120_v51 = vld [vmem:[%s1542_s2 + $0x4] ss:$8 sps:$4 sm:$0xff]   ;;  %vm819_vm15 = vcmask 719872  }
  0xab   : > { %v1049_v61 = vcombine.high %v435_v60, %v435_v60  ;;  %v1052_v2 = vcombine.high %v437_v1, %v439_v39  ;;  %v1051_v7 = vcombine.low %v437_v1, %v439_v39  ;;  %v466_v11 = vsel %vm1297_vm7, %v1219_v31, 0  ;;  %1069 = vmatprep.mubr.msk.bf16.mxu0 %vm819_vm15, %v1120_v51  ;;  %v798_v31 = vld [vmem:[%s1543_s3] sm:$0xff] }
  0xac   : > { %v1065_v62 = vcombine.low %v466_v11, %v466_v11  ;;  %vm620_vm0 = vcmask 908288   ;;  %vm515_vm1 = vcmask 1039360   ;;  %vm595_vm3 = vcmask 916480  }
  0xad   : > { %503 = vrot.lane.b32.xlu0 %v1336_v14, %s1139_s19  ;;  %vm660_vm4 = vcmask 900096   ;;  %vm759_vm7 = vcmask 769024  }
  0xae   : > { %696 = vrot.lane.b32.xlu1 %v1058_v15, %s1140_s20 }
  0xb1   : > { %587 = vrot.lane.b32.xlu0 %v1038_v18, %s1141_s22 }
  0xb2   : > { %511 = vrot.lane.b32.xlu1 %v1348_v20, %s1139_s19 }
  0xb5   : > { %593 = vrot.lane.b32.xlu0 %v1041_v23, %s1141_s22  ;;  %v391_v23 = vsel %vm1201_vm8, %v1221_v32, 0  ;;  %vm555_vm8 = vcmask 1031168  }
  0xb6   : > { %509 = vrot.lane.b32.xlu1 %v1361_v24, %s1139_s19  ;;  %v1023_v26 = vcombine.high %v391_v23, %v391_v23  ;;  %v1022_v33 = vcombine.low %v391_v23, %v391_v23 }
  0xb9   : > { %610 = vrot.lane.b32.xlu0 %v1043_v28, %s1137_s17 }
  0xba   : > { %547 = vrot.lane.b32.xlu1 %v1032_v29, %s1138_s18 }
  0xbd   : > { %608 = vrot.lane.b32.xlu0 %v1042_v36, %s1137_s17 }
  0xbe   : > { %692 = vrot.lane.b32.xlu1 %v1056_v37, %s1140_s20 }
  0xc1   : > { %652 = vrot.lane.b32.xlu0 %v1050_v42, %s1142_s23 }
  0xc2   : > { %709 = vrot.lane.b32.xlu1 %v1025_v6, %s1143_s24  ;;  %v1048_v6 = vcombine.low %v435_v60, %v435_v60 }
  0xc5   : > { %658 = vrot.lane.b32.xlu0 %v1053_v45, %s1142_s23 }
  0xc6   : > { %585 = vrot.lane.b32.xlu1 %v1037_v46, %s1141_s22 }
  0xc9   : > { %545 = vrot.lane.b32.xlu0 %v1031_v52, %s1138_s18 }
  0xca   : > { %694 = vrot.lane.b32.xlu1 %v1057_v53, %s1140_s20 }
  0xcd   : > { %543 = vrot.lane.b32.xlu0 %v1030_v57, %s1138_s18 }
  0xce   : > { %591 = vrot.lane.b32.xlu1 %v1040_v58, %s1141_s22 }
  0xd1   : > { %583 = vrot.lane.b32.xlu0 %v1036_v41, %s1141_s22 }
  0xd2   : > { %589 = vrot.lane.b32.xlu1 %v1039_v59, %s1141_s22 }
  0xd5   : > { %711 = vrot.lane.b32.xlu0 %v1261_v50, %s1143_s24  ;;  %v450_v50 = vsel %vm446_vm6, %v1253_v48, 0  ;;  %v465_v48 = vsel %vm459_vm5, %v1221_v32, 0  ;;  %vm719_vm5 = vcmask 777216   ;;  %vm700_vm6 = vcmask 785408  }
  0xd6   : > { %650 = vrot.lane.b32.xlu1 %v1049_v61, %s1142_s23  ;;  %v1055_v9 = vcombine.high %v448_v8, %v450_v50  ;;  %v1054_v10 = vcombine.low %v448_v8, %v450_v50  ;;  %v1063_v63 = vcombine.low %v465_v48, %v465_v48 }
  0xd9   : > { %707 = vrot.lane.b32.xlu0 %v1336_v14, %s1143_s24  ;;  %v1064_v14 = vcombine.high %v465_v48, %v465_v48 }
  0xda   : > { %656 = vrot.lane.b32.xlu1 %v1052_v2, %s1142_s23 }
  0xdd   : > { %648 = vrot.lane.b32.xlu0 %v1048_v6, %s1142_s23 }
  0xde   : > { %654 = vrot.lane.b32.xlu1 %v1051_v7, %s1142_s23 }
  0xe1   : > { %690 = vrot.lane.b32.xlu0 %v1055_v9, %s1140_s20 }
  0xe2   : > { %715 = vrot.lane.b32.xlu1 %v1348_v20, %s1143_s24 }
  0xe5   : > { %688 = vrot.lane.b32.xlu0 %v1054_v10, %s1140_s20 }
  0xe6   : > { %713 = vrot.lane.b32.xlu1 %v1361_v24, %s1143_s24 }
  0xe9   : > { %717 = vrot.lane.b32.xlu0 %v1289_v0, %s1143_s24  ;;  %v799_v0 = vld [vmem:[%s1543_s3 + $0x8] sm:$0xff] }
  0xea   : > { %751 = vrot.lane.b32.xlu1 %v1338_v16, %s1144_s25 }
  0xed   : > { %749 = vrot.lane.b32.xlu0 %v1061_v12, %s1144_s25 }
  0xee   : > { %753 = vrot.lane.b32.xlu1 %v1063_v63, %s1144_s25 }
  0xf1   : > { %747 = vrot.lane.b32.xlu0 %v1060_v13, %s1144_s25 }
  0xf2   : > { %757 = vrot.lane.b32.xlu1 %v1065_v62, %s1144_s25 }
  0xf5   : > { %755 = vrot.lane.b32.xlu0 %v1064_v14, %s1144_s25 }
  0xf6   : > { %807 = vperm.xlu1 %1101, %v799_v0  }
  0xf9   : > { %802 = vperm.xlu0 %1100, %v798_v31  }
  0xfa   : > { %882 = vperm.xlu1 %1101, %v879_v3  }
 0x107   : > { %v619_v4 = vpop.permute.xlu0 %618 }
 0x108   : > { %v617_v5 = vpop.permute.xlu1 %616 }
 0x109   : > { %v1476_v12 = vsel %vm620_vm0, %v617_v5, %v619_v4 }
 0x10b   : > { %v554_v16 = vpop.permute.xlu0 %553 }
 0x10c   : > { %v615_v13 = vpop.permute.xlu1 %614 }
 0x10d   : > { %v1479_v15 = vsel %vm620_vm0, %v615_v13, %v617_v5 }
 0x110   : > { %v508_v17 = vpop.permute.xlu1 %507 }
 0x113   : > { %v1481_v18 = vpop.permute.xlu0 %698 }
 0x114   : > { %v552_v20 = vpop.permute.xlu1 %551 }
 0x115   : > { %v559_v41 = vsel %vm555_vm8, %v552_v20, %v554_v16 }
 0x117   : > { %v514_v21 = vpop.permute.xlu0 %513 }
 0x118   : > { %v550_v22 = vpop.permute.xlu1 %549 }
 0x119   : > { %v558_v39 = vsel %vm555_vm8, %v550_v22, %v552_v20 }
 0x11b   : > { %v506_v24 = vpop.permute.xlu0 %505 }
 0x11c   : > { %v613_v25 = vpop.permute.xlu1 %612  ;;  %v517_v27 = vsel %vm515_vm1, %v506_v24, %v508_v17 }
 0x11d   : > { %v772_v28 = vsel %vm334_vm2, %v1023_v26, %v517_v27 }
 0x11e   : > { %831 = vmatprep.subr.bf16.mxu0 %v772_v28 }
 0x11f   : > { %v504_v29 = vpop.permute.xlu0 %503 }
 0x120   : > { %v1488_v30 = vpop.permute.xlu1 %696  ;;  %v516_v34 = vsel %vm515_vm1, %v504_v29, %v506_v24 }
 0x121   : > { %v768_v35 = vsel %vm334_vm2, %v1022_v33, %v516_v34  ;;  %v704_v22 = vsel %vm700_vm6, %v1488_v30, %v1481_v18 }
 0x122   : > { %832 = vmatpush1.bf16.msra.mxu0 %v768_v35 }
 0x123   : > { %v588_v19 = vpop.permute.xlu0 %587 }
 0x124   : > { %v512_v32 = vpop.permute.xlu1 %511 }
 0x125   : > { %v519_v36 = vsel %vm515_vm1, %v512_v32, %v514_v21 }
 0x126   : > { %833 = vmatprep.subr.bf16.mxu0 %v519_v36 }
 0x127   : > { %v594_v37 = vpop.permute.xlu0 %593 }
 0x128   : > { %v510_v40 = vpop.permute.xlu1 %509 }
 0x129   : > { %v518_v42 = vsel %vm515_vm1, %v510_v40, %v512_v32 }
 0x12a   : > { %834 = vmatpush1.bf16.msra.mxu0 %v518_v42 }
 0x12b   : > { %v611_v43 = vpop.permute.xlu0 %610 }
 0x12c   : > { %v548_v38 = vpop.permute.xlu1 %547  ;;  %v622_v10 = vsel %vm620_vm0, %v611_v43, %v613_v25 }
 0x12f   : > { %v609_v44 = vpop.permute.xlu0 %608 }
 0x130   : > { %v693_v45 = vpop.permute.xlu1 %692  ;;  %v621_v11 = vsel %vm620_vm0, %v609_v44, %v611_v43  ;;  %v1118_v43 = vld [vmem:[%s1542_s2] ss:$8 sps:$4 sm:$0xff]  }
 0x133   : > { %v653_v46 = vpop.permute.xlu0 %652 }
 0x134   : > { %v710_v47 = vpop.permute.xlu1 %709 }
 0x137   : > { %v659_v49 = vpop.permute.xlu0 %658 }
 0x138   : > { %v586_v52 = vpop.permute.xlu1 %585 }
 0x139   : > { %v597_v56 = vsel %vm595_vm3, %v586_v52, %v588_v19 }
 0x13a   : > { %v780_v60 = vsel %vm334_vm2, %v559_v41, %v597_v56 }
 0x13b   : > { %v546_v53 = vpop.permute.xlu0 %545 }
 0x13c   : > { %v695_v54 = vpop.permute.xlu1 %694  ;;  %v557_v55 = vsel %vm555_vm8, %v546_v53, %v548_v38 }
 0x13d   : > { %835 = vmatprep.subr.bf16.mxu0 %v557_v55  ;;  %v703_v27 = vsel %vm700_vm6, %v695_v54, %v1488_v30 }
 0x13f   : > { %v544_v57 = vpop.permute.xlu0 %543 }
 0x140   : > { %v592_v58 = vpop.permute.xlu1 %591  ;;  %v556_v59 = vsel %vm555_vm8, %v544_v57, %v546_v53 }
 0x141   : > { %836 = vmatpush1.bf16.msra.mxu0 %v556_v59  ;;  %v599_v7 = vsel %vm595_vm3, %v592_v58, %v594_v37 }
 0x142   : > { %837 = vmatprep.subr.bf16.mxu0 %v780_v60 }
 0x143   : > { %v584_v61 = vpop.permute.xlu0 %583 }
 0x144   : > { %v590_v1 = vpop.permute.xlu1 %589  ;;  %v596_v2 = vsel %vm595_vm3, %v584_v61, %v586_v52  ;;  %v876_v61 = vld [vmem:[%s1544_s4] sm:$0x3] }
 0x145   : > { %v776_v6 = vsel %vm334_vm2, %v558_v39, %v596_v2  ;;  %v598_v9 = vsel %vm595_vm3, %v590_v1, %v592_v58 }
 0x146   : > { %838 = vmatpush1.bf16.msra.mxu0 %v776_v6 }
 0x147   : > { %v712_v8 = vpop.permute.xlu0 %711  ;;  %839 = vmatprep.subr.bf16.mxu0 %v599_v7 }
 0x148   : > { %v651_v50 = vpop.permute.xlu1 %650  ;;  %v721_v17 = vsel %vm719_vm5, %v710_v47, %v712_v8 }
 0x149   : > { %v662_v48 = vsel %vm660_vm4, %v651_v50, %v653_v46  ;;  %v796_v24 = vsel %vm334_vm2, %v704_v22, %v721_v17 }
 0x14a   : > { %840 = vmatpush1.bf16.msra.mxu0 %v598_v9  ;;  %v788_v62 = vsel %vm334_vm2, %v1476_v12, %v662_v48 }
 0x14b   : > { %v708_v51 = vpop.permute.xlu0 %707  ;;  %841 = vmatprep.subr.bf16.mxu0 %v622_v10 }
 0x14c   : > { %v657_v63 = vpop.permute.xlu1 %656  ;;  %v720_v23 = vsel %vm719_vm5, %v708_v51, %v710_v47 }
 0x14d   : > { %v664_v4 = vsel %vm660_vm4, %v657_v63, %v659_v49  ;;  %v792_v28 = vsel %vm334_vm2, %v703_v27, %v720_v23 }
 0x14e   : > { %842 = vmatpush1.bf16.msra.mxu0 %v621_v11 }
 0x14f   : > { %v649_v0 = vpop.permute.xlu0 %648  ;;  %843 = vmatprep.subr.bf16.mxu0 %v788_v62 }
 0x150   : > { %v655_v14 = vpop.permute.xlu1 %654  ;;  %v661_v31 = vsel %vm660_vm4, %v649_v0, %v651_v50 }
 0x151   : > { %v784_v3 = vsel %vm334_vm2, %v1479_v15, %v661_v31  ;;  %v663_v16 = vsel %vm660_vm4, %v655_v14, %v657_v63 }
 0x152   : > { %844 = vmatpush1.bf16.msra.mxu0 %v784_v3 }
 0x153   : > { %v691_v5 = vpop.permute.xlu0 %690  ;;  %845 = vmatprep.subr.bf16.mxu0 %v664_v4 }
 0x154   : > { %v716_v13 = vpop.permute.xlu1 %715  ;;  %v702_v12 = vsel %vm700_vm6, %v691_v5, %v693_v45 }
 0x156   : > { %846 = vmatpush1.bf16.msra.mxu0 %v663_v16 }
 0x157   : > { %v689_v20 = vpop.permute.xlu0 %688  ;;  %847 = vmatprep.subr.bf16.mxu0 %v702_v12 }
 0x158   : > { %v714_v21 = vpop.permute.xlu1 %713  ;;  %v701_v15 = vsel %vm700_vm6, %v689_v20, %v691_v5 }
 0x159   : > { %v722_v34 = vsel %vm719_vm5, %v714_v21, %v716_v13 }
 0x15a   : > { %848 = vmatpush1.bf16.msra.mxu0 %v701_v15 }
 0x15b   : > { %v718_v25 = vpop.permute.xlu0 %717  ;;  %849 = vmatprep.subr.bf16.mxu0 %v796_v24 }
 0x15c   : > { %v752_v26 = vpop.permute.xlu1 %751  ;;  %v723_v29 = vsel %vm719_vm5, %v716_v13, %v718_v25 }
 0x15e   : > { %850 = vmatpush1.bf16.msra.mxu0 %v792_v28 }
 0x15f   : > { %v750_v33 = vpop.permute.xlu0 %749  ;;  %851 = vmatprep.subr.bf16.mxu0 %v723_v29 }
 0x160   : > { %v754_v18 = vpop.permute.xlu1 %753  ;;  %v761_v35 = vsel %vm759_vm7, %v750_v33, %v752_v26 }
 0x162   : > { %852 = vmatpush1.bf16.msra.mxu0 %v722_v34 }
 0x163   : > { %v748_v19 = vpop.permute.xlu0 %747  ;;  %853 = vmatprep.subr.bf16.mxu0 %v761_v35 }
 0x164   : > { %v760_v32 = vsel %vm759_vm7, %v748_v19, %v750_v33  ;;  %v758_v36 = vpop.permute.xlu1 %757 }
 0x166   : > { %854 = vmatpush1.bf16.msra.mxu0 %v760_v32 }
 0x167   : > { %v756_v37 = vpop.permute.xlu0 %755 }
 0x168   : > { %v762_v30 = vsel %vm759_vm7, %v754_v18, %v756_v37  ;;  %v763_v40 = vsel %vm759_vm7, %v756_v37, %v758_v36 }
 0x169   : > { %1068 = vmatprep.subr.msk.bf16.mxu0 %vm334_vm2, %v763_v40  ;;  %v824_v42 = vsel %vm334_vm2, %v762_v30, 0 }
 0x16a   : > { %856 = vmatpush1.bf16.msra.mxu0 %v824_v42 }
 0x16d   : > { %862 = vmatmul.mubr.bf16.vlgmr.msra.gmra.mrb[0].mxu0 %v1118_v43 }
 0x175   : > { %v808_v47 = vpop.permute.xlu1 %807 }
 0x178   : > { %v803_v38 = vpop.permute.xlu0 %802 }
 0x179   : > { %v883_v1 = vpop.permute.xlu1 %882 }
 0x240   : > { %v863_v44 = vpop.f32.mrb[0].mxu0 }
 0x241   : > { %v864_v45 = vadd.f32 %v863_v44, %v803_v38  ;;  %v865_v46 = vpop.f32.mrb[1].mxu0 }
 0x242   : > { %v866_v49 = vadd.f32 %v865_v46, %v803_v38  ;;  %v867_v52 = vpop.f32.mrb[2].mxu0 }
 0x243   : > { %v868_v53 = vadd.f32 %v867_v52, %v808_v47  ;;  %v869_v54 = vpop.f32.mrb[3].mxu0  ;;  %v872_v56 = vmax.f32 %v864_v45, 0.0 }
 0x244   : > { %v870_v55 = vadd.f32 %v869_v54, %v808_v47  ;;  %v873_v58 = vmax.f32 %v866_v49, 0.0 }
 0x245   : > { %v874_v57 = vmax.f32 %v868_v53, 0.0 }
 0x246   : > { %v875_v41 = vmax.f32 %v870_v55, 0.0 }
 0x247   : > { %v877_v59 = vpack.c.bf16 %v874_v57, %v872_v56 }
 0x248   : > { %v878_v60 = vpack.c.bf16 %v875_v41, %v873_v58 }
 0x24a   : > { %889 = vmatprep.subr.bf16.mxu1 %v878_v60 }
 0x24b   : > { %890 = vmatpush1.bf16.msra.mxu1 %v877_v59 }
 0x24e   : > { %1070 = vmatmul.mubr.msk.bf16.vlgmr.msra.gmra.mrb[0].mxu1 %vm418_vm10, %v876_v61 }
 0x321   : > { %v923_v39 = vpop.f32.mrb[0].mxu1 }
 0x322   : > { %v924_v2 = vadd.f32 %v923_v39, %v883_v1  ;;  %v925_v6 = vpop.f32.mrb[1].mxu1 }
 0x323   : > { %v926_v7 = vadd.f32 %v925_v6, %v883_v1  ;;  %v927_v8 = vpop.f32.mrb[2].mxu1 }
 0x324   : > { %v928_v50 = vpop.f32.mrb[3].mxu1 }
 0x325   : > { %v932_v9 = vcombine.low %v924_v2, %v926_v7 }
 0x327   : > { %934 = vst [vmem:[%s1197_s10] sm:$0x77] %v932_v9 }
 0x328 PF: > { %s16_s21 = sadd.s32 1, %s1127_s21  }
 0x329   : > { %p13_p5 = scmp.ge.s32.totalorder %s16_s21, 4  }
 0x32b   :  { %15 = sbr.rel (!%p13_p5) target bundleno = 1 (0x1), region = 81 }

</bundles_post_ra>
